<compile_context>
chip_gen: v6e
topology: v6e:2x2x1
jax: 0.10.0
libtpu: 0.0.40
codegen_flags: <defaults>
</compile_context>

<pallas_src>
import functools
import math

import jax
import jax.numpy as jnp
from jax import lax
from jax.experimental import pallas as pl
from jax.experimental.pallas import tpu as pltpu

# ---------------------------------------------------------------------------
# Small config consistent with the module (decoder requires in == hidden).
# ---------------------------------------------------------------------------
B = 2             # batch
T = 16            # sequence length
C_IN = 32         # in_channels (== hidden_channels)
C_HID = 32        # hidden_channels
C_OUT = 16        # out_channels
C_FFN = 64        # params["hidden_channels_ffn"]
NUM_HEADS = 2     # params["num_heads"]
KERNEL_SIZE = 3   # params["kernel_size"]
NUM_LAYERS = 4    # params["num_layers"]
WINDOW = 4        # params["rel_attn_window_size"]
DK = C_HID // NUM_HEADS
NHT = NUM_HEADS * T
LN_EPS = 1e-4     # glow_tts LayerNorm
BN_EPS = 1e-5     # nn.BatchNorm1d
assert KERNEL_SIZE == 3

# Packed-slab layout (rows of the per-layer weight slab, PROJ_W lanes wide).
PROJ_W = 64                                   # >= 3*DK + 2W+1 (=57) and >= C_FFN
W_IN_OFF = 0                                  # [2C, PROJ_W] stacked-head qkv + rel-K proj
WO_OFF = 2 * C_HID                            # [C, C]
WC1_OFF = WO_OFF + C_HID                      # [3C, C_FFN]
WC2_OFF = WC1_OFF + KERNEL_SIZE * C_HID       # [3F, ffn_out]
RELV_OFF = WC2_OFF + KERNEL_SIZE * C_FFN      # [2W+1, DK]
WP_OFF = RELV_OFF + 16                        # [C, C_OUT]   (last layer only)
BP_ROW = WP_OFF + C_HID                       # [1, C_OUT]
SLAB_ROWS = 440
# vector slab rows
ROW_BO = NHT
ROW_BC1 = NHT + 1
ROW_BC2 = NHT + 2
ROW_G1 = NHT + 3
ROW_B1 = NHT + 4
ROW_G2 = NHT + 5
ROW_B2 = NHT + 6
VEC_ROWS = 40


# ---------------------------------------------------------------------------
# Deterministic synthetic parameters (PyTorch weight conventions).
# ---------------------------------------------------------------------------
def init_params(key):
    def nrm(k, shape, scale):
        return scale * jax.random.normal(k, shape, jnp.float32)

    keys = iter(jax.random.split(key, 256))
    p = {
        "pre_w": nrm(next(keys), (C_HID, C_IN), 1.0 / math.sqrt(C_IN)),
        "pre_b": nrm(next(keys), (C_HID,), 0.1),
        "bn_gamma": 1.0 + nrm(next(keys), (C_HID,), 0.1),
        "bn_beta": nrm(next(keys), (C_HID,), 0.1),
    }
    layers = []
    for l in range(NUM_LAYERS):
        last = (l + 1) == NUM_LAYERS
        ffn_out = C_OUT if last else C_HID
        lp = {}
        for name in ("wq", "wk", "wv", "wo"):
            lp[name] = nrm(next(keys), (C_HID, C_HID), 1.0 / math.sqrt(C_HID))
        for name in ("bq", "bk", "bv", "bo"):
            lp[name] = nrm(next(keys), (C_HID,), 0.05)
        lp["emb_rel_k"] = nrm(next(keys), (1, 2 * WINDOW + 1, DK), DK ** -0.5)
        lp["emb_rel_v"] = nrm(next(keys), (1, 2 * WINDOW + 1, DK), DK ** -0.5)
        lp["g1"] = 0.1 * jnp.ones((C_HID,), jnp.float32)
        lp["b1"] = jnp.zeros((C_HID,), jnp.float32)
        lp["wc1"] = nrm(next(keys), (C_FFN, C_HID, KERNEL_SIZE),
                        1.0 / math.sqrt(C_HID * KERNEL_SIZE))
        lp["bc1"] = nrm(next(keys), (C_FFN,), 0.05)
        lp["wc2"] = nrm(next(keys), (ffn_out, C_FFN, KERNEL_SIZE),
                        1.0 / math.sqrt(C_FFN * KERNEL_SIZE))
        lp["bc2"] = nrm(next(keys), (ffn_out,), 0.05)
        lp["g2"] = 0.1 * jnp.ones((ffn_out,), jnp.float32)
        lp["b2"] = jnp.zeros((ffn_out,), jnp.float32)
        if last and C_HID != C_OUT:
            lp["wp"] = nrm(next(keys), (C_OUT, C_HID), 1.0 / math.sqrt(C_HID))
            lp["bp"] = nrm(next(keys), (C_OUT,), 0.05)
        layers.append(lp)
    p["layers"] = layers
    return p


# ---------------------------------------------------------------------------
# In-kernel helper
# ---------------------------------------------------------------------------
def _layer_norm(x, g, b):
    mean = jnp.mean(x, axis=-1, keepdims=True)
    xc = x - mean
    var = jnp.mean(xc * xc, axis=-1, keepdims=True)
    return xc * lax.rsqrt(var + LN_EPS) * g + b


# ---------------------------------------------------------------------------
# Fused kernel: prenet + NUM_LAYERS transformer layers + final mask.
# One grid step per batch element.
# ---------------------------------------------------------------------------
def _decoder_kernel(x_ref, mc_ref, allowed_ref, band_ref, pre_ref, wslab_ref,
                    vec_ref, o_ref, *, use_proj):
    f32 = jnp.float32
    mc = mc_ref[0]                              # [T, 1] sequence mask (column)
    allowed = allowed_ref[0] > 0.5              # [NHT, NHT] (head-block-diag & length)

    zpad_c = jnp.zeros((T, C_HID), f32)
    zrow_c = jnp.zeros((1, C_HID), f32)
    zrow_f = jnp.zeros((1, C_FFN), f32)

    # ---- prenet: conv1x1 with folded BatchNorm (running stats) -> ReLU -> mask
    x = jnp.dot(x_ref[0], pre_ref[0:C_IN, :], preferred_element_type=f32)
    x = jnp.maximum(x + pre_ref[C_IN:C_IN + 1, :], 0.0) * mc

    # ---- transformer layers (statically unrolled) ----------------------------
    for l in range(NUM_LAYERS):
        last = (l + 1) == NUM_LAYERS
        ffn_out = C_OUT if last else C_HID

        x = x * mc

        # -- RelativePositionMultiHeadAttention, heads stacked on sublanes --
        # Block-diagonal input so ONE matmul emits head-stacked q / k / v and the
        # (scale- and rel_k- folded) relative-key logits.
        xblk = jnp.concatenate(
            [jnp.concatenate([x, zpad_c], axis=1),
             jnp.concatenate([zpad_c, x], axis=1)], axis=0)            # [NHT, 2C]
        qkvr = jnp.dot(xblk, wslab_ref[l, W_IN_OFF:W_IN_OFF + 2 * C_HID, :],
                       preferred_element_type=f32) + vec_ref[l, 0:NHT, :]
        q_s = qkvr[:, 0:DK]                       # already scaled by 1/sqrt(dk)
        k_s = qkvr[:, DK:2 * DK]
        v_s = qkvr[:, 2 * DK:3 * DK]
        q_rel = qkvr[:, 3 * DK:3 * DK + 2 * WINDOW + 1]                # [NHT, 2W+1]

        scores = lax.dot_general(q_s, k_s, (((1,), (1,)), ((), ())),
                                 preferred_element_type=f32)           # [NHT, NHT]
        # windowed relative-key bias (one-hot diagonal bands, shared across heads)
        for r in range(2 * WINDOW + 1):
            scores = scores + band_ref[r] * q_rel[:, r:r + 1]
        # masked_fill(attn_mask == 0, -1e4); cross-head blocks also masked here.
        scores = jnp.where(allowed, scores, -1e4)
        scores = scores - jnp.max(scores, axis=-1, keepdims=True)
        p = jnp.exp(scores)
        p = p * pl.reciprocal(jnp.sum(p, axis=-1, keepdims=True), approx=True)

        oh = jnp.dot(p, v_s, preferred_element_type=f32)               # [NHT, DK]
        # relative-value term: oh += sum_r p[i, i+r-W] * emb_rel_v[r]
        rel_v = wslab_ref[l, RELV_OFF:RELV_OFF + 2 * WINDOW + 1, 0:DK]  # [2W+1, DK]
        for r in range(2 * WINDOW + 1):
            w_r = jnp.sum(band_ref[r] * p, axis=-1, keepdims=True)     # [NHT, 1]
            oh = oh + w_r * rel_v[r:r + 1, :]
        # re-assemble heads -> [T, C]; conv_o is a single matmul
        attn = jnp.concatenate([oh[0:T, :], oh[T:NHT, :]], axis=1)     # [T, C]
        y = jnp.dot(attn, wslab_ref[l, WO_OFF:WO_OFF + C_HID, 0:C_HID],
                    preferred_element_type=f32) + vec_ref[l, ROW_BO:ROW_BO + 1, 0:C_HID]

        # -- residual + LayerNorm 1 --
        x = _layer_norm(x + y, vec_ref[l, ROW_G1:ROW_G1 + 1, 0:C_HID],
                        vec_ref[l, ROW_B1:ROW_B1 + 1, 0:C_HID])

        # -- FeedForwardNetwork (k=3, "same" padding); taps kept in vregs --
        xm = x * mc
        xc = jnp.concatenate(
            [jnp.concatenate([zrow_c, xm[0:T - 1, :]], axis=0),        # x[t-1]
             xm,                                                       # x[t]
             jnp.concatenate([xm[1:T, :], zrow_c], axis=0)],           # x[t+1]
            axis=1)                                                    # [T, 3C]
        h1 = jnp.dot(xc, wslab_ref[l, WC1_OFF:WC1_OFF + KERNEL_SIZE * C_HID, 0:C_FFN],
                     preferred_element_type=f32) + vec_ref[l, ROW_BC1:ROW_BC1 + 1, 0:C_FFN]
        h1 = jnp.maximum(h1, 0.0) * mc
        hc = jnp.concatenate(
            [jnp.concatenate([zrow_f, h1[0:T - 1, :]], axis=0),
             h1,
             jnp.concatenate([h1[1:T, :], zrow_f], axis=0)],
            axis=1)                                                    # [T, 3F]
        y2 = jnp.dot(hc, wslab_ref[l, WC2_OFF:WC2_OFF + KERNEL_SIZE * C_FFN, 0:ffn_out],
                     preferred_element_type=f32) + vec_ref[l, ROW_BC2:ROW_BC2 + 1, 0:ffn_out]
        y2 = y2 * mc

        # -- optional output projection on the residual path (last layer) --
        if last and use_proj:
            x = jnp.dot(x, wslab_ref[l, WP_OFF:WP_OFF + C_HID, 0:C_OUT],
                        preferred_element_type=f32) + wslab_ref[l, BP_ROW:BP_ROW + 1, 0:C_OUT]

        # -- residual + LayerNorm 2 --
        x = _layer_norm(x + y2, vec_ref[l, ROW_G2:ROW_G2 + 1, 0:ffn_out],
                        vec_ref[l, ROW_B2:ROW_B2 + 1, 0:ffn_out])

    # final x * x_mask of the transformer
    o_ref[0] = x * mc


# ---------------------------------------------------------------------------
# Host-side packing: all per-layer weights into 2 slabs (+prenet, +band).
# ---------------------------------------------------------------------------
def prepare_params(p):
    layers = p["layers"]
    use_proj = "wp" in layers[-1]
    inv_sqrt_dk = 1.0 / math.sqrt(DK)

    # prenet: fold BatchNorm (eval: mean=0, var=1) scale/shift into the 1x1 conv
    bn_s = p["bn_gamma"] / jnp.sqrt(1.0 + BN_EPS)
    pre = jnp.concatenate(
        [p["pre_w"].T * bn_s[None, :],
         (p["pre_b"] * bn_s + p["bn_beta"])[None, :]], axis=0)          # [C_IN+1, C_HID]

    wslab = jnp.zeros((NUM_LAYERS, SLAB_ROWS, PROJ_W), jnp.float32)
    vslab = jnp.zeros((NUM_LAYERS, VEC_ROWS, PROJ_W), jnp.float32)
    for l, lp in enumerate(layers):
        last = (l + 1) == NUM_LAYERS
        ffn_out = C_OUT if last else C_HID
        rel_k = lp["emb_rel_k"][0]                                      # [2W+1, DK]
        for h in range(NUM_HEADS):
            sl = slice(h * DK, (h + 1) * DK)
            wq_h = lp["wq"].T[:, sl] * inv_sqrt_dk                      # [C, DK]
            w_blk = jnp.concatenate(
                [wq_h, lp["wk"].T[:, sl], lp["wv"].T[:, sl], wq_h @ rel_k.T], axis=1)
            wslab = wslab.at[l, h * C_HID:(h + 1) * C_HID, :w_blk.shape[1]].set(w_blk)
            bq_h = lp["bq"][sl] * inv_sqrt_dk
            b_blk = jnp.concatenate([bq_h, lp["bk"][sl], lp["bv"][sl], bq_h @ rel_k.T])
            vslab = vslab.at[l, h * T:(h + 1) * T, :b_blk.shape[0]].set(
                jnp.broadcast_to(b_blk, (T, b_blk.shape[0])))
        wslab = wslab.at[l, WO_OFF:WO_OFF + C_HID, :C_HID].set(lp["wo"].T)
        wslab = wslab.at[l, WC1_OFF:WC1_OFF + KERNEL_SIZE * C_HID, :C_FFN].set(
            jnp.transpose(lp["wc1"], (2, 1, 0)).reshape(KERNEL_SIZE * C_HID, C_FFN))
        wslab = wslab.at[l, WC2_OFF:WC2_OFF + KERNEL_SIZE * C_FFN, :ffn_out].set(
            jnp.transpose(lp["wc2"], (2, 1, 0)).reshape(KERNEL_SIZE * C_FFN, ffn_out))
        wslab = wslab.at[l, RELV_OFF:RELV_OFF + 2 * WINDOW + 1, :DK].set(lp["emb_rel_v"][0])
        if last and use_proj:
            wslab = wslab.at[l, WP_OFF:WP_OFF + C_HID, :C_OUT].set(lp["wp"].T)
            wslab = wslab.at[l, BP_ROW, :C_OUT].set(lp["bp"])
        vslab = vslab.at[l, ROW_BO, :C_HID].set(lp["bo"])
        vslab = vslab.at[l, ROW_BC1, :C_FFN].set(lp["bc1"])
        vslab = vslab.at[l, ROW_BC2, :ffn_out].set(lp["bc2"])
        vslab = vslab.at[l, ROW_G1, :C_HID].set(lp["g1"])
        vslab = vslab.at[l, ROW_B1, :C_HID].set(lp["b1"])
        vslab = vslab.at[l, ROW_G2, :ffn_out].set(lp["g2"])
        vslab = vslab.at[l, ROW_B2, :ffn_out].set(lp["b2"])

    # one-hot diagonal band masks with the head-block-diag structure baked in,
    # shared by all layers (and both heads via the sublane stacking).
    offs = jnp.arange(2 * WINDOW + 1) - WINDOW
    idx = jnp.arange(NHT)
    same_head = (idx[:, None] // T) == (idx[None, :] // T)
    rel = (idx[None, :] % T) - (idx[:, None] % T)
    band = ((rel[None, :, :] == offs[:, None, None]) & same_head[None]).astype(jnp.float32)

    return {"pre": pre, "wslab": wslab, "vslab": vslab, "band": band}, use_proj


# ---------------------------------------------------------------------------
# pallas_call wrapper (layout transposes + mask construction only)
# ---------------------------------------------------------------------------
def _batch_spec(shape):
    nd = len(shape)
    return pl.BlockSpec((1,) + tuple(shape[1:]), lambda b: (b,) + (0,) * (nd - 1))


def _const_spec(a):
    zeros = (0,) * a.ndim
    return pl.BlockSpec(a.shape, lambda b: zeros)


@functools.partial(jax.jit, static_argnames=("use_proj",))
def decoder_forward(x_nct, x_mask, packed, *, use_proj):
    """x_nct: [B, C_in, T] (PyTorch NCW), x_mask: [B, 1, T] -> [B, C_out, T]."""
    x_btc = jnp.transpose(x_nct, (0, 2, 1))               # [B, T, C_in]
    mc = jnp.transpose(x_mask, (0, 2, 1))                  # [B, T, 1]
    # head-stacked attention-allow mask (length mask x length mask x same-head)
    idx = jnp.arange(NHT)
    same_head = ((idx[:, None] // T) == (idx[None, :] // T)).astype(jnp.float32)
    ms = jnp.tile(x_mask[:, 0, :], (1, NUM_HEADS))         # [B, NHT]
    allowed = same_head[None] * ms[:, :, None] * ms[:, None, :]   # [B, NHT, NHT]

    inputs = [x_btc, mc, allowed,
              packed["band"], packed["pre"], packed["wslab"], packed["vslab"]]
    in_specs = [_batch_spec(x_btc.shape), _batch_spec(mc.shape),
                _batch_spec(allowed.shape)]
    in_specs += [_const_spec(a) for a in inputs[3:]]

    out = pl.pallas_call(
        functools.partial(_decoder_kernel, use_proj=use_proj),
        grid=(B,),
        in_specs=in_specs,
        out_specs=_batch_spec((B, T, C_OUT)),
        out_shape=jax.ShapeDtypeStruct((B, T, C_OUT), jnp.float32),
        compiler_params=pltpu.CompilerParams(
            dimension_semantics=("parallel",)),
    )(*inputs)
    return jnp.transpose(out, (0, 2, 1))                   # back to PyTorch NCW


# ---------------------------------------------------------------------------
# PyTorch-literal reference in plain JAX (NCW layout) for a numerical cross-check.
# ---------------------------------------------------------------------------
def _ref_conv1x1(x, w, b):
    return jnp.einsum("oc,bct->bot", w, x) + b[None, :, None]


def _ref_conv_k(x, w, b):
    pad_l = (KERNEL_SIZE - 1) // 2
    pad_r = KERNEL_SIZE // 2
    xp = jnp.pad(x, ((0, 0), (0, 0), (pad_l, pad_r)))
    y = lax.conv_general_dilated(xp, w, window_strides=(1,), padding="VALID",
                                 dimension_numbers=("NCH", "OIH", "NCH"))
    return y + b[None, :, None]


def _ref_layer_norm(x, g, b):
    mean = jnp.mean(x, axis=1, keepdims=True)
    var = jnp.mean(jnp.square(x - mean), axis=1, keepdims=True)
    x = (x - mean) * lax.rsqrt(var + LN_EPS)
    return x * g[None, :, None] + b[None, :, None]


def _ref_get_rel_emb(emb, t):
    pad_len = max(t - (WINDOW + 1), 0)
    start = max((WINDOW + 1) - t, 0)
    emb = jnp.pad(emb, ((0, 0), (pad_len, pad_len), (0, 0)))
    return emb[:, start:start + 2 * t - 1]


def _ref_rel_to_abs(x):
    b, h, t, _ = x.shape
    x = jnp.pad(x, ((0, 0), (0, 0), (0, 0), (0, 1)))
    xf = x.reshape(b, h, t * 2 * t)
    xf = jnp.pad(xf, ((0, 0), (0, 0), (0, t - 1)))
    return xf.reshape(b, h, t + 1, 2 * t - 1)[:, :, :t, t - 1:]


def _ref_abs_to_rel(x):
    b, h, t, _ = x.shape
    x = jnp.pad(x, ((0, 0), (0, 0), (0, 0), (0, t - 1)))
    xf = x.reshape(b, h, t * (2 * t - 1))
    xf = jnp.pad(xf, ((0, 0), (0, 0), (t, 0)))
    return xf.reshape(b, h, t, 2 * t)[:, :, :, 1:]


def _ref_attention(x, attn_mask, lp):
    b, _, t = x.shape
    q = _ref_conv1x1(x, lp["wq"], lp["bq"]).reshape(b, NUM_HEADS, DK, t).transpose(0, 1, 3, 2)
    k = _ref_conv1x1(x, lp["wk"], lp["bk"]).reshape(b, NUM_HEADS, DK, t).transpose(0, 1, 3, 2)
    v = _ref_conv1x1(x, lp["wv"], lp["bv"]).reshape(b, NUM_HEADS, DK, t).transpose(0, 1, 3, 2)
    scores = jnp.einsum("bhtd,bhsd->bhts", q, k) / math.sqrt(DK)
    rel_k = _ref_get_rel_emb(lp["emb_rel_k"], t)[0]
    rel_logits = jnp.einsum("bhtd,vd->bhtv", q, rel_k)
    scores = scores + _ref_rel_to_abs(rel_logits) / math.sqrt(DK)
    scores = jnp.where(attn_mask == 0, -1e4, scores)
    p = jax.nn.softmax(scores, axis=-1)
    out = jnp.einsum("bhts,bhsd->bhtd", p, v)
    rel_w = _ref_abs_to_rel(p)
    rel_v = _ref_get_rel_emb(lp["emb_rel_v"], t)[0]
    out = out + jnp.einsum("bhtv,vd->bhtd", rel_w, rel_v)
    out = out.transpose(0, 1, 3, 2).reshape(b, NUM_HEADS * DK, t)
    return _ref_conv1x1(out, lp["wo"], lp["bo"])


def _ref_ffn(x, x_mask, lp):
    h = _ref_conv_k(x * x_mask, lp["wc1"], lp["bc1"])
    h = jax.nn.relu(h)
    return _ref_conv_k(h * x_mask, lp["wc2"], lp["bc2"]) * x_mask


def reference_forward(x, x_mask, params):
    o = _ref_conv1x1(x, params["pre_w"], params["pre_b"])
    o = o / jnp.sqrt(1.0 + BN_EPS)
    o = o * params["bn_gamma"][None, :, None] + params["bn_beta"][None, :, None]
    o = jax.nn.relu(o) * x_mask
    attn_mask = x_mask[:, :, None, :] * x_mask[:, :, :, None]   # [B,1,T,T]
    xc = o
    for lp in params["layers"]:
        xc = xc * x_mask
        y = _ref_attention(xc, attn_mask, lp)
        xc = _ref_layer_norm(xc + y, lp["g1"], lp["b1"])
        y = _ref_ffn(xc, x_mask, lp)
        if "wp" in lp:
            xc = _ref_conv1x1(xc, lp["wp"], lp["bp"])
        xc = _ref_layer_norm(xc + y, lp["g2"], lp["b2"])
    return xc * x_mask


# ---------------------------------------------------------------------------
if __name__ == "__main__":
    key = jax.random.PRNGKey(0)
    k_param, k_x = jax.random.split(key)
    params = init_params(k_param)
    packed, use_proj = prepare_params(params)

    x = jax.random.normal(k_x, (B, C_IN, T), jnp.float32)        # PyTorch NCW
    lengths = jnp.array([T, 11], dtype=jnp.int32)
    x_mask = (jnp.arange(T)[None, None, :] < lengths[:, None, None]).astype(jnp.float32)

    out = jax.block_until_ready(decoder_forward(x, x_mask, packed, use_proj=use_proj))
    assert out.shape == (B, C_OUT, T), out.shape
    assert bool(jnp.all(jnp.isfinite(out)))

    ref = jax.block_until_ready(reference_forward(x, x_mask, params))
    max_err = float(jnp.max(jnp.abs(out - ref)))
    # all-f32 path; residual slack is the approximate (EUP) softmax reciprocal
    assert max_err < 5e-3, f"kernel/reference mismatch: {max_err}"

    print("KERNEL_OK")
</pallas_src>

<mosaic_0001>
module attributes {stable_mosaic.version = 11 : i64} {
  func.func @_decoder_kernel(%arg0: i32, %arg1: memref<1x16x32xf32, #tpu.memory_space<vmem>>, %arg2: memref<1x16x1xf32, #tpu.memory_space<vmem>>, %arg3: memref<1x32x32xf32, #tpu.memory_space<vmem>>, %arg4: memref<9x32x32xf32, #tpu.memory_space<vmem>>, %arg5: memref<33x32xf32, #tpu.memory_space<vmem>>, %arg6: memref<4x440x64xf32, #tpu.memory_space<vmem>>, %arg7: memref<4x40x64xf32, #tpu.memory_space<vmem>>, %arg8: memref<1x16x16xf32, #tpu.memory_space<vmem>>) attributes {dimension_semantics = [#tpu.dimension_semantics<parallel>], iteration_bounds = array<i64: 2>, scalar_prefetch = 0 : i64, scratch_operands = 0 : i64, tpu.core_type = #tpu.core_type<tc>, window_params = [{transform_indices = @transform_0, window_bounds = array<i64: 1, 16, 32>}, {transform_indices = @transform_1, window_bounds = array<i64: 1, 16, 1>}, {transform_indices = @transform_2, window_bounds = array<i64: 1, 32, 32>}, {pipeline_mode = #tpu.pipeline_mode<synchronous>, transform_indices = @transform_3, window_bounds = array<i64: 9, 32, 32>}, {pipeline_mode = #tpu.pipeline_mode<synchronous>, transform_indices = @transform_4, window_bounds = array<i64: 33, 32>}, {pipeline_mode = #tpu.pipeline_mode<synchronous>, transform_indices = @transform_5, window_bounds = array<i64: 4, 440, 64>}, {pipeline_mode = #tpu.pipeline_mode<synchronous>, transform_indices = @transform_6, window_bounds = array<i64: 4, 40, 64>}, {transform_indices = @transform_7, window_bounds = array<i64: 1, 16, 16>}]} {
    %c0 = arith.constant 0 : index
    %c0_0 = arith.constant 0 : index
    %c0_1 = arith.constant 0 : index
    %0 = vector.load %arg2[%c0, %c0_0, %c0_1] : memref<1x16x1xf32, #tpu.memory_space<vmem>>, vector<1x16x1xf32>
    %1 = vector.shape_cast %0 : vector<1x16x1xf32> to vector<16x1xf32>
    %c0_2 = arith.constant 0 : index
    %c0_3 = arith.constant 0 : index
    %c0_4 = arith.constant 0 : index
    %2 = vector.load %arg3[%c0_2, %c0_3, %c0_4] : memref<1x32x32xf32, #tpu.memory_space<vmem>>, vector<1x32x32xf32>
    %3 = vector.shape_cast %2 : vector<1x32x32xf32> to vector<32x32xf32>
    %cst = arith.constant 5.000000e-01 : f32
    %4 = vector.broadcast %cst : f32 to vector<32x32xf32>
    %5 = arith.cmpf ogt, %3, %4 : vector<32x32xf32>
    %cst_5 = arith.constant 0.000000e+00 : f32
    %6 = vector.broadcast %cst_5 : f32 to vector<16x32xf32>
    %cst_6 = arith.constant 0.000000e+00 : f32
    %7 = vector.broadcast %cst_6 : f32 to vector<1x32xf32>
    %cst_7 = arith.constant 0.000000e+00 : f32
    %8 = vector.broadcast %cst_7 : f32 to vector<1x64xf32>
    %c0_8 = arith.constant 0 : index
    %c0_9 = arith.constant 0 : index
    %c0_10 = arith.constant 0 : index
    %9 = vector.load %arg1[%c0_8, %c0_9, %c0_10] : memref<1x16x32xf32, #tpu.memory_space<vmem>>, vector<1x16x32xf32>
    %10 = vector.shape_cast %9 : vector<1x16x32xf32> to vector<16x32xf32>
    %c0_11 = arith.constant 0 : index
    %c0_12 = arith.constant 0 : index
    %11 = vector.load %arg5[%c0_11, %c0_12] : memref<33x32xf32, #tpu.memory_space<vmem>>, vector<32x32xf32>
    %cst_13 = arith.constant dense<0.000000e+00> : vector<16x32xf32>
    %12 = tpu.matmul %10, %11, %cst_13 {dimension_numbers = #tpu.dot_dimension_numbers<[1], [0], [0], [1], [0, 0, 1, 1], [], []>} : vector<16x32xf32>, vector<32x32xf32>, vector<16x32xf32> -> vector<16x32xf32>
    %c32 = arith.constant 32 : index
    %c0_14 = arith.constant 0 : index
    %13 = vector.load %arg5[%c32, %c0_14] : memref<33x32xf32, #tpu.memory_space<vmem>>, vector<1x32xf32>
    %14 = vector.broadcast %13 : vector<1x32xf32> to vector<16x32xf32>
    %15 = arith.addf %12, %14 : vector<16x32xf32>
    %cst_15 = arith.constant 0.000000e+00 : f32
    %16 = vector.broadcast %cst_15 : f32 to vector<16x32xf32>
    %17 = arith.maximumf %15, %16 : vector<16x32xf32>
    %18 = vector.broadcast %1 : vector<16x1xf32> to vector<16x32xf32>
    %19 = arith.mulf %17, %18 : vector<16x32xf32>
    %20 = vector.broadcast %1 : vector<16x1xf32> to vector<16x32xf32>
    %21 = arith.mulf %19, %20 : vector<16x32xf32>
    %22 = tpu.concatenate %21, %6 in 1 : vector<16x32xf32>, vector<16x32xf32> -> vector<16x64xf32>
    %23 = tpu.concatenate %6, %21 in 1 : vector<16x32xf32>, vector<16x32xf32> -> vector<16x64xf32>
    %24 = tpu.concatenate %22, %23 in 0 : vector<16x64xf32>, vector<16x64xf32> -> vector<32x64xf32>
    %c0_16 = arith.constant 0 : index
    %c0_17 = arith.constant 0 : index
    %c0_18 = arith.constant 0 : index
    %25 = vector.load %arg6[%c0_16, %c0_17, %c0_18] : memref<4x440x64xf32, #tpu.memory_space<vmem>>, vector<1x64x64xf32>
    %26 = vector.shape_cast %25 : vector<1x64x64xf32> to vector<64x64xf32>
    %cst_19 = arith.constant dense<0.000000e+00> : vector<32x64xf32>
    %27 = tpu.matmul %24, %26, %cst_19 {dimension_numbers = #tpu.dot_dimension_numbers<[1], [0], [0], [1], [0, 0, 1, 1], [], []>} : vector<32x64xf32>, vector<64x64xf32>, vector<32x64xf32> -> vector<32x64xf32>
    %c0_20 = arith.constant 0 : index
    %c0_21 = arith.constant 0 : index
    %c0_22 = arith.constant 0 : index
    %28 = vector.load %arg7[%c0_20, %c0_21, %c0_22] : memref<4x40x64xf32, #tpu.memory_space<vmem>>, vector<1x32x64xf32>
    %29 = vector.shape_cast %28 : vector<1x32x64xf32> to vector<32x64xf32>
    %30 = arith.addf %27, %29 : vector<32x64xf32>
    %31 = vector.extract_strided_slice %30 {offsets = [0, 0], sizes = [32, 16], strides = [1, 1]} : vector<32x64xf32> to vector<32x16xf32>
    %32 = vector.extract_strided_slice %30 {offsets = [0, 16], sizes = [32, 16], strides = [1, 1]} : vector<32x64xf32> to vector<32x16xf32>
    %33 = vector.extract_strided_slice %30 {offsets = [0, 32], sizes = [32, 16], strides = [1, 1]} : vector<32x64xf32> to vector<32x16xf32>
    %34 = vector.extract_strided_slice %30 {offsets = [0, 48], sizes = [32, 9], strides = [1, 1]} : vector<32x64xf32> to vector<32x9xf32>
    %cst_23 = arith.constant dense<0.000000e+00> : vector<32x32xf32>
    %35 = tpu.matmul %31, %32, %cst_23 {dimension_numbers = #tpu.dot_dimension_numbers<[1], [1], [0], [0], [0, 0, 1, 0], [], []>} : vector<32x16xf32>, vector<32x16xf32>, vector<32x32xf32> -> vector<32x32xf32>
    %c0_24 = arith.constant 0 : index
    %c0_25 = arith.constant 0 : index
    %c0_26 = arith.constant 0 : index
    %36 = vector.load %arg4[%c0_24, %c0_25, %c0_26] : memref<9x32x32xf32, #tpu.memory_space<vmem>>, vector<1x32x32xf32>
    %37 = vector.shape_cast %36 : vector<1x32x32xf32> to vector<32x32xf32>
    %38 = vector.extract_strided_slice %34 {offsets = [0, 0], sizes = [32, 1], strides = [1, 1]} : vector<32x9xf32> to vector<32x1xf32>
    %39 = vector.broadcast %38 : vector<32x1xf32> to vector<32x32xf32>
    %40 = arith.mulf %37, %39 : vector<32x32xf32>
    %41 = arith.addf %35, %40 : vector<32x32xf32>
    %c1 = arith.constant 1 : index
    %c0_27 = arith.constant 0 : index
    %c0_28 = arith.constant 0 : index
    %42 = vector.load %arg4[%c1, %c0_27, %c0_28] : memref<9x32x32xf32, #tpu.memory_space<vmem>>, vector<1x32x32xf32>
    %43 = vector.shape_cast %42 : vector<1x32x32xf32> to vector<32x32xf32>
    %44 = vector.extract_strided_slice %34 {offsets = [0, 1], sizes = [32, 1], strides = [1, 1]} : vector<32x9xf32> to vector<32x1xf32>
    %45 = vector.broadcast %44 : vector<32x1xf32> to vector<32x32xf32>
    %46 = arith.mulf %43, %45 : vector<32x32xf32>
    %47 = arith.addf %41, %46 : vector<32x32xf32>
    %c2 = arith.constant 2 : index
    %c0_29 = arith.constant 0 : index
    %c0_30 = arith.constant 0 : index
    %48 = vector.load %arg4[%c2, %c0_29, %c0_30] : memref<9x32x32xf32, #tpu.memory_space<vmem>>, vector<1x32x32xf32>
    %49 = vector.shape_cast %48 : vector<1x32x32xf32> to vector<32x32xf32>
    %50 = vector.extract_strided_slice %34 {offsets = [0, 2], sizes = [32, 1], strides = [1, 1]} : vector<32x9xf32> to vector<32x1xf32>
    %51 = vector.broadcast %50 : vector<32x1xf32> to vector<32x32xf32>
    %52 = arith.mulf %49, %51 : vector<32x32xf32>
    %53 = arith.addf %47, %52 : vector<32x32xf32>
    %c3 = arith.constant 3 : index
    %c0_31 = arith.constant 0 : index
    %c0_32 = arith.constant 0 : index
    %54 = vector.load %arg4[%c3, %c0_31, %c0_32] : memref<9x32x32xf32, #tpu.memory_space<vmem>>, vector<1x32x32xf32>
    %55 = vector.shape_cast %54 : vector<1x32x32xf32> to vector<32x32xf32>
    %56 = vector.extract_strided_slice %34 {offsets = [0, 3], sizes = [32, 1], strides = [1, 1]} : vector<32x9xf32> to vector<32x1xf32>
    %57 = vector.broadcast %56 : vector<32x1xf32> to vector<32x32xf32>
    %58 = arith.mulf %55, %57 : vector<32x32xf32>
    %59 = arith.addf %53, %58 : vector<32x32xf32>
    %c4 = arith.constant 4 : index
    %c0_33 = arith.constant 0 : index
    %c0_34 = arith.constant 0 : index
    %60 = vector.load %arg4[%c4, %c0_33, %c0_34] : memref<9x32x32xf32, #tpu.memory_space<vmem>>, vector<1x32x32xf32>
    %61 = vector.shape_cast %60 : vector<1x32x32xf32> to vector<32x32xf32>
    %62 = vector.extract_strided_slice %34 {offsets = [0, 4], sizes = [32, 1], strides = [1, 1]} : vector<32x9xf32> to vector<32x1xf32>
    %63 = vector.broadcast %62 : vector<32x1xf32> to vector<32x32xf32>
    %64 = arith.mulf %61, %63 : vector<32x32xf32>
    %65 = arith.addf %59, %64 : vector<32x32xf32>
    %c5 = arith.constant 5 : index
    %c0_35 = arith.constant 0 : index
    %c0_36 = arith.constant 0 : index
    %66 = vector.load %arg4[%c5, %c0_35, %c0_36] : memref<9x32x32xf32, #tpu.memory_space<vmem>>, vector<1x32x32xf32>
    %67 = vector.shape_cast %66 : vector<1x32x32xf32> to vector<32x32xf32>
    %68 = vector.extract_strided_slice %34 {offsets = [0, 5], sizes = [32, 1], strides = [1, 1]} : vector<32x9xf32> to vector<32x1xf32>
    %69 = vector.broadcast %68 : vector<32x1xf32> to vector<32x32xf32>
    %70 = arith.mulf %67, %69 : vector<32x32xf32>
    %71 = arith.addf %65, %70 : vector<32x32xf32>
    %c6 = arith.constant 6 : index
    %c0_37 = arith.constant 0 : index
    %c0_38 = arith.constant 0 : index
    %72 = vector.load %arg4[%c6, %c0_37, %c0_38] : memref<9x32x32xf32, #tpu.memory_space<vmem>>, vector<1x32x32xf32>
    %73 = vector.shape_cast %72 : vector<1x32x32xf32> to vector<32x32xf32>
    %74 = vector.extract_strided_slice %34 {offsets = [0, 6], sizes = [32, 1], strides = [1, 1]} : vector<32x9xf32> to vector<32x1xf32>
    %75 = vector.broadcast %74 : vector<32x1xf32> to vector<32x32xf32>
    %76 = arith.mulf %73, %75 : vector<32x32xf32>
    %77 = arith.addf %71, %76 : vector<32x32xf32>
    %c7 = arith.constant 7 : index
    %c0_39 = arith.constant 0 : index
    %c0_40 = arith.constant 0 : index
    %78 = vector.load %arg4[%c7, %c0_39, %c0_40] : memref<9x32x32xf32, #tpu.memory_space<vmem>>, vector<1x32x32xf32>
    %79 = vector.shape_cast %78 : vector<1x32x32xf32> to vector<32x32xf32>
    %80 = vector.extract_strided_slice %34 {offsets = [0, 7], sizes = [32, 1], strides = [1, 1]} : vector<32x9xf32> to vector<32x1xf32>
    %81 = vector.broadcast %80 : vector<32x1xf32> to vector<32x32xf32>
    %82 = arith.mulf %79, %81 : vector<32x32xf32>
    %83 = arith.addf %77, %82 : vector<32x32xf32>
    %c8 = arith.constant 8 : index
    %c0_41 = arith.constant 0 : index
    %c0_42 = arith.constant 0 : index
    %84 = vector.load %arg4[%c8, %c0_41, %c0_42] : memref<9x32x32xf32, #tpu.memory_space<vmem>>, vector<1x32x32xf32>
    %85 = vector.shape_cast %84 : vector<1x32x32xf32> to vector<32x32xf32>
    %86 = vector.extract_strided_slice %34 {offsets = [0, 8], sizes = [32, 1], strides = [1, 1]} : vector<32x9xf32> to vector<32x1xf32>
    %87 = vector.broadcast %86 : vector<32x1xf32> to vector<32x32xf32>
    %88 = arith.mulf %85, %87 : vector<32x32xf32>
    %89 = arith.addf %83, %88 : vector<32x32xf32>
    %cst_43 = arith.constant -1.000000e+04 : f32
    %90 = vector.broadcast %cst_43 : f32 to vector<32x32xf32>
    %91 = arith.select %5, %89, %90 : vector<32x32xi1>, vector<32x32xf32>
    %cst_44 = arith.constant dense<0xFF800000> : vector<32xf32>
    %92 = vector.multi_reduction <maximumf>, %91, %cst_44 [1] : vector<32x32xf32> to vector<32xf32>
    %93 = vector.shape_cast %92 : vector<32xf32> to vector<32x1xf32>
    %94 = vector.broadcast %93 : vector<32x1xf32> to vector<32x32xf32>
    %95 = arith.subf %91, %94 : vector<32x32xf32>
    %96 = math.exp %95 : vector<32x32xf32>
    %cst_45 = arith.constant dense<0.000000e+00> : vector<32xf32>
    %97 = vector.multi_reduction <add>, %96, %cst_45 [1] : vector<32x32xf32> to vector<32xf32>
    %98 = vector.shape_cast %97 : vector<32xf32> to vector<32x1xf32>
    %99 = tpu.reciprocal %98 {approx = true} : vector<32x1xf32> -> vector<32x1xf32>
    %100 = vector.broadcast %99 : vector<32x1xf32> to vector<32x32xf32>
    %101 = arith.mulf %96, %100 : vector<32x32xf32>
    %cst_46 = arith.constant dense<0.000000e+00> : vector<32x16xf32>
    %102 = tpu.matmul %101, %33, %cst_46 {dimension_numbers = #tpu.dot_dimension_numbers<[1], [0], [0], [1], [0, 0, 1, 1], [], []>} : vector<32x32xf32>, vector<32x16xf32>, vector<32x16xf32> -> vector<32x16xf32>
    %c0_47 = arith.constant 0 : index
    %c384 = arith.constant 384 : index
    %c0_48 = arith.constant 0 : index
    %103 = vector.load %arg6[%c0_47, %c384, %c0_48] : memref<4x440x64xf32, #tpu.memory_space<vmem>>, vector<1x9x16xf32>
    %104 = vector.shape_cast %103 : vector<1x9x16xf32> to vector<9x16xf32>
    %c0_49 = arith.constant 0 : index
    %c0_50 = arith.constant 0 : index
    %c0_51 = arith.constant 0 : index
    %105 = vector.load %arg4[%c0_49, %c0_50, %c0_51] : memref<9x32x32xf32, #tpu.memory_space<vmem>>, vector<1x32x32xf32>
    %106 = vector.shape_cast %105 : vector<1x32x32xf32> to vector<32x32xf32>
    %107 = arith.mulf %106, %101 : vector<32x32xf32>
    %cst_52 = arith.constant dense<0.000000e+00> : vector<32xf32>
    %108 = vector.multi_reduction <add>, %107, %cst_52 [1] : vector<32x32xf32> to vector<32xf32>
    %109 = vector.shape_cast %108 : vector<32xf32> to vector<32x1xf32>
    %110 = vector.extract_strided_slice %104 {offsets = [0, 0], sizes = [1, 16], strides = [1, 1]} : vector<9x16xf32> to vector<1x16xf32>
    %111 = vector.broadcast %109 : vector<32x1xf32> to vector<32x16xf32>
    %112 = vector.broadcast %110 : vector<1x16xf32> to vector<32x16xf32>
    %113 = arith.mulf %111, %112 : vector<32x16xf32>
    %114 = arith.addf %102, %113 : vector<32x16xf32>
    %c1_53 = arith.constant 1 : index
    %c0_54 = arith.constant 0 : index
    %c0_55 = arith.constant 0 : index
    %115 = vector.load %arg4[%c1_53, %c0_54, %c0_55] : memref<9x32x32xf32, #tpu.memory_space<vmem>>, vector<1x32x32xf32>
    %116 = vector.shape_cast %115 : vector<1x32x32xf32> to vector<32x32xf32>
    %117 = arith.mulf %116, %101 : vector<32x32xf32>
    %cst_56 = arith.constant dense<0.000000e+00> : vector<32xf32>
    %118 = vector.multi_reduction <add>, %117, %cst_56 [1] : vector<32x32xf32> to vector<32xf32>
    %119 = vector.shape_cast %118 : vector<32xf32> to vector<32x1xf32>
    %120 = vector.extract_strided_slice %104 {offsets = [1, 0], sizes = [1, 16], strides = [1, 1]} : vector<9x16xf32> to vector<1x16xf32>
    %121 = vector.broadcast %119 : vector<32x1xf32> to vector<32x16xf32>
    %122 = vector.broadcast %120 : vector<1x16xf32> to vector<32x16xf32>
    %123 = arith.mulf %121, %122 : vector<32x16xf32>
    %124 = arith.addf %114, %123 : vector<32x16xf32>
    %c2_57 = arith.constant 2 : index
    %c0_58 = arith.constant 0 : index
    %c0_59 = arith.constant 0 : index
    %125 = vector.load %arg4[%c2_57, %c0_58, %c0_59] : memref<9x32x32xf32, #tpu.memory_space<vmem>>, vector<1x32x32xf32>
    %126 = vector.shape_cast %125 : vector<1x32x32xf32> to vector<32x32xf32>
    %127 = arith.mulf %126, %101 : vector<32x32xf32>
    %cst_60 = arith.constant dense<0.000000e+00> : vector<32xf32>
    %128 = vector.multi_reduction <add>, %127, %cst_60 [1] : vector<32x32xf32> to vector<32xf32>
    %129 = vector.shape_cast %128 : vector<32xf32> to vector<32x1xf32>
    %130 = vector.extract_strided_slice %104 {offsets = [2, 0], sizes = [1, 16], strides = [1, 1]} : vector<9x16xf32> to vector<1x16xf32>
    %131 = vector.broadcast %129 : vector<32x1xf32> to vector<32x16xf32>
    %132 = vector.broadcast %130 : vector<1x16xf32> to vector<32x16xf32>
    %133 = arith.mulf %131, %132 : vector<32x16xf32>
    %134 = arith.addf %124, %133 : vector<32x16xf32>
    %c3_61 = arith.constant 3 : index
    %c0_62 = arith.constant 0 : index
    %c0_63 = arith.constant 0 : index
    %135 = vector.load %arg4[%c3_61, %c0_62, %c0_63] : memref<9x32x32xf32, #tpu.memory_space<vmem>>, vector<1x32x32xf32>
    %136 = vector.shape_cast %135 : vector<1x32x32xf32> to vector<32x32xf32>
    %137 = arith.mulf %136, %101 : vector<32x32xf32>
    %cst_64 = arith.constant dense<0.000000e+00> : vector<32xf32>
    %138 = vector.multi_reduction <add>, %137, %cst_64 [1] : vector<32x32xf32> to vector<32xf32>
    %139 = vector.shape_cast %138 : vector<32xf32> to vector<32x1xf32>
    %140 = vector.extract_strided_slice %104 {offsets = [3, 0], sizes = [1, 16], strides = [1, 1]} : vector<9x16xf32> to vector<1x16xf32>
    %141 = vector.broadcast %139 : vector<32x1xf32> to vector<32x16xf32>
    %142 = vector.broadcast %140 : vector<1x16xf32> to vector<32x16xf32>
    %143 = arith.mulf %141, %142 : vector<32x16xf32>
    %144 = arith.addf %134, %143 : vector<32x16xf32>
    %c4_65 = arith.constant 4 : index
    %c0_66 = arith.constant 0 : index
    %c0_67 = arith.constant 0 : index
    %145 = vector.load %arg4[%c4_65, %c0_66, %c0_67] : memref<9x32x32xf32, #tpu.memory_space<vmem>>, vector<1x32x32xf32>
    %146 = vector.shape_cast %145 : vector<1x32x32xf32> to vector<32x32xf32>
    %147 = arith.mulf %146, %101 : vector<32x32xf32>
    %cst_68 = arith.constant dense<0.000000e+00> : vector<32xf32>
    %148 = vector.multi_reduction <add>, %147, %cst_68 [1] : vector<32x32xf32> to vector<32xf32>
    %149 = vector.shape_cast %148 : vector<32xf32> to vector<32x1xf32>
    %150 = vector.extract_strided_slice %104 {offsets = [4, 0], sizes = [1, 16], strides = [1, 1]} : vector<9x16xf32> to vector<1x16xf32>
    %151 = vector.broadcast %149 : vector<32x1xf32> to vector<32x16xf32>
    %152 = vector.broadcast %150 : vector<1x16xf32> to vector<32x16xf32>
    %153 = arith.mulf %151, %152 : vector<32x16xf32>
    %154 = arith.addf %144, %153 : vector<32x16xf32>
    %c5_69 = arith.constant 5 : index
    %c0_70 = arith.constant 0 : index
    %c0_71 = arith.constant 0 : index
    %155 = vector.load %arg4[%c5_69, %c0_70, %c0_71] : memref<9x32x32xf32, #tpu.memory_space<vmem>>, vector<1x32x32xf32>
    %156 = vector.shape_cast %155 : vector<1x32x32xf32> to vector<32x32xf32>
    %157 = arith.mulf %156, %101 : vector<32x32xf32>
    %cst_72 = arith.constant dense<0.000000e+00> : vector<32xf32>
    %158 = vector.multi_reduction <add>, %157, %cst_72 [1] : vector<32x32xf32> to vector<32xf32>
    %159 = vector.shape_cast %158 : vector<32xf32> to vector<32x1xf32>
    %160 = vector.extract_strided_slice %104 {offsets = [5, 0], sizes = [1, 16], strides = [1, 1]} : vector<9x16xf32> to vector<1x16xf32>
    %161 = vector.broadcast %159 : vector<32x1xf32> to vector<32x16xf32>
    %162 = vector.broadcast %160 : vector<1x16xf32> to vector<32x16xf32>
    %163 = arith.mulf %161, %162 : vector<32x16xf32>
    %164 = arith.addf %154, %163 : vector<32x16xf32>
    %c6_73 = arith.constant 6 : index
    %c0_74 = arith.constant 0 : index
    %c0_75 = arith.constant 0 : index
    %165 = vector.load %arg4[%c6_73, %c0_74, %c0_75] : memref<9x32x32xf32, #tpu.memory_space<vmem>>, vector<1x32x32xf32>
    %166 = vector.shape_cast %165 : vector<1x32x32xf32> to vector<32x32xf32>
    %167 = arith.mulf %166, %101 : vector<32x32xf32>
    %cst_76 = arith.constant dense<0.000000e+00> : vector<32xf32>
    %168 = vector.multi_reduction <add>, %167, %cst_76 [1] : vector<32x32xf32> to vector<32xf32>
    %169 = vector.shape_cast %168 : vector<32xf32> to vector<32x1xf32>
    %170 = vector.extract_strided_slice %104 {offsets = [6, 0], sizes = [1, 16], strides = [1, 1]} : vector<9x16xf32> to vector<1x16xf32>
    %171 = vector.broadcast %169 : vector<32x1xf32> to vector<32x16xf32>
    %172 = vector.broadcast %170 : vector<1x16xf32> to vector<32x16xf32>
    %173 = arith.mulf %171, %172 : vector<32x16xf32>
    %174 = arith.addf %164, %173 : vector<32x16xf32>
    %c7_77 = arith.constant 7 : index
    %c0_78 = arith.constant 0 : index
    %c0_79 = arith.constant 0 : index
    %175 = vector.load %arg4[%c7_77, %c0_78, %c0_79] : memref<9x32x32xf32, #tpu.memory_space<vmem>>, vector<1x32x32xf32>
    %176 = vector.shape_cast %175 : vector<1x32x32xf32> to vector<32x32xf32>
    %177 = arith.mulf %176, %101 : vector<32x32xf32>
    %cst_80 = arith.constant dense<0.000000e+00> : vector<32xf32>
    %178 = vector.multi_reduction <add>, %177, %cst_80 [1] : vector<32x32xf32> to vector<32xf32>
    %179 = vector.shape_cast %178 : vector<32xf32> to vector<32x1xf32>
    %180 = vector.extract_strided_slice %104 {offsets = [7, 0], sizes = [1, 16], strides = [1, 1]} : vector<9x16xf32> to vector<1x16xf32>
    %181 = vector.broadcast %179 : vector<32x1xf32> to vector<32x16xf32>
    %182 = vector.broadcast %180 : vector<1x16xf32> to vector<32x16xf32>
    %183 = arith.mulf %181, %182 : vector<32x16xf32>
    %184 = arith.addf %174, %183 : vector<32x16xf32>
    %c8_81 = arith.constant 8 : index
    %c0_82 = arith.constant 0 : index
    %c0_83 = arith.constant 0 : index
    %185 = vector.load %arg4[%c8_81, %c0_82, %c0_83] : memref<9x32x32xf32, #tpu.memory_space<vmem>>, vector<1x32x32xf32>
    %186 = vector.shape_cast %185 : vector<1x32x32xf32> to vector<32x32xf32>
    %187 = arith.mulf %186, %101 : vector<32x32xf32>
    %cst_84 = arith.constant dense<0.000000e+00> : vector<32xf32>
    %188 = vector.multi_reduction <add>, %187, %cst_84 [1] : vector<32x32xf32> to vector<32xf32>
    %189 = vector.shape_cast %188 : vector<32xf32> to vector<32x1xf32>
    %190 = vector.extract_strided_slice %104 {offsets = [8, 0], sizes = [1, 16], strides = [1, 1]} : vector<9x16xf32> to vector<1x16xf32>
    %191 = vector.broadcast %189 : vector<32x1xf32> to vector<32x16xf32>
    %192 = vector.broadcast %190 : vector<1x16xf32> to vector<32x16xf32>
    %193 = arith.mulf %191, %192 : vector<32x16xf32>
    %194 = arith.addf %184, %193 : vector<32x16xf32>
    %195 = vector.extract_strided_slice %194 {offsets = [0, 0], sizes = [16, 16], strides = [1, 1]} : vector<32x16xf32> to vector<16x16xf32>
    %196 = vector.extract_strided_slice %194 {offsets = [16, 0], sizes = [16, 16], strides = [1, 1]} : vector<32x16xf32> to vector<16x16xf32>
    %197 = tpu.concatenate %195, %196 in 1 : vector<16x16xf32>, vector<16x16xf32> -> vector<16x32xf32>
    %c0_85 = arith.constant 0 : index
    %c64 = arith.constant 64 : index
    %c0_86 = arith.constant 0 : index
    %198 = vector.load %arg6[%c0_85, %c64, %c0_86] : memref<4x440x64xf32, #tpu.memory_space<vmem>>, vector<1x32x32xf32>
    %199 = vector.shape_cast %198 : vector<1x32x32xf32> to vector<32x32xf32>
    %cst_87 = arith.constant dense<0.000000e+00> : vector<16x32xf32>
    %200 = tpu.matmul %197, %199, %cst_87 {dimension_numbers = #tpu.dot_dimension_numbers<[1], [0], [0], [1], [0, 0, 1, 1], [], []>} : vector<16x32xf32>, vector<32x32xf32>, vector<16x32xf32> -> vector<16x32xf32>
    %c0_88 = arith.constant 0 : index
    %c32_89 = arith.constant 32 : index
    %c0_90 = arith.constant 0 : index
    %201 = vector.load %arg7[%c0_88, %c32_89, %c0_90] : memref<4x40x64xf32, #tpu.memory_space<vmem>>, vector<1x1x32xf32>
    %202 = vector.shape_cast %201 : vector<1x1x32xf32> to vector<1x32xf32>
    %203 = vector.broadcast %202 : vector<1x32xf32> to vector<16x32xf32>
    %204 = arith.addf %200, %203 : vector<16x32xf32>
    %205 = arith.addf %21, %204 : vector<16x32xf32>
    %c0_91 = arith.constant 0 : index
    %c35 = arith.constant 35 : index
    %c0_92 = arith.constant 0 : index
    %206 = vector.load %arg7[%c0_91, %c35, %c0_92] : memref<4x40x64xf32, #tpu.memory_space<vmem>>, vector<1x1x32xf32>
    %207 = vector.shape_cast %206 : vector<1x1x32xf32> to vector<1x32xf32>
    %c0_93 = arith.constant 0 : index
    %c36 = arith.constant 36 : index
    %c0_94 = arith.constant 0 : index
    %208 = vector.load %arg7[%c0_93, %c36, %c0_94] : memref<4x40x64xf32, #tpu.memory_space<vmem>>, vector<1x1x32xf32>
    %209 = vector.shape_cast %208 : vector<1x1x32xf32> to vector<1x32xf32>
    %cst_95 = arith.constant dense<0.000000e+00> : vector<16xf32>
    %210 = vector.multi_reduction <add>, %205, %cst_95 [1] : vector<16x32xf32> to vector<16xf32>
    %211 = vector.shape_cast %210 : vector<16xf32> to vector<16x1xf32>
    %cst_96 = arith.constant 3.200000e+01 : f32
    %212 = vector.broadcast %cst_96 : f32 to vector<16x1xf32>
    %213 = arith.divf %211, %212 : vector<16x1xf32>
    %214 = vector.broadcast %213 : vector<16x1xf32> to vector<16x32xf32>
    %215 = arith.subf %205, %214 : vector<16x32xf32>
    %216 = arith.mulf %215, %215 : vector<16x32xf32>
    %cst_97 = arith.constant dense<0.000000e+00> : vector<16xf32>
    %217 = vector.multi_reduction <add>, %216, %cst_97 [1] : vector<16x32xf32> to vector<16xf32>
    %218 = vector.shape_cast %217 : vector<16xf32> to vector<16x1xf32>
    %cst_98 = arith.constant 3.200000e+01 : f32
    %219 = vector.broadcast %cst_98 : f32 to vector<16x1xf32>
    %220 = arith.divf %218, %219 : vector<16x1xf32>
    %cst_99 = arith.constant 9.99999974E-5 : f32
    %221 = vector.broadcast %cst_99 : f32 to vector<16x1xf32>
    %222 = arith.addf %220, %221 : vector<16x1xf32>
    %223 = math.rsqrt %222 : vector<16x1xf32>
    %224 = vector.broadcast %223 : vector<16x1xf32> to vector<16x32xf32>
    %225 = arith.mulf %215, %224 : vector<16x32xf32>
    %226 = vector.broadcast %207 : vector<1x32xf32> to vector<16x32xf32>
    %227 = arith.mulf %225, %226 : vector<16x32xf32>
    %228 = vector.broadcast %209 : vector<1x32xf32> to vector<16x32xf32>
    %229 = arith.addf %227, %228 : vector<16x32xf32>
    %230 = vector.broadcast %1 : vector<16x1xf32> to vector<16x32xf32>
    %231 = arith.mulf %229, %230 : vector<16x32xf32>
    %232 = vector.extract_strided_slice %231 {offsets = [0, 0], sizes = [15, 32], strides = [1, 1]} : vector<16x32xf32> to vector<15x32xf32>
    %233 = tpu.concatenate %7, %232 in 0 : vector<1x32xf32>, vector<15x32xf32> -> vector<16x32xf32>
    %234 = vector.extract_strided_slice %231 {offsets = [1, 0], sizes = [15, 32], strides = [1, 1]} : vector<16x32xf32> to vector<15x32xf32>
    %235 = tpu.concatenate %234, %7 in 0 : vector<15x32xf32>, vector<1x32xf32> -> vector<16x32xf32>
    %236 = tpu.concatenate %233, %231, %235 in 1 : vector<16x32xf32>, vector<16x32xf32>, vector<16x32xf32> -> vector<16x96xf32>
    %c0_100 = arith.constant 0 : index
    %c96 = arith.constant 96 : index
    %c0_101 = arith.constant 0 : index
    %237 = vector.load %arg6[%c0_100, %c96, %c0_101] : memref<4x440x64xf32, #tpu.memory_space<vmem>>, vector<1x96x64xf32>
    %238 = vector.shape_cast %237 : vector<1x96x64xf32> to vector<96x64xf32>
    %cst_102 = arith.constant dense<0.000000e+00> : vector<16x64xf32>
    %239 = tpu.matmul %236, %238, %cst_102 {dimension_numbers = #tpu.dot_dimension_numbers<[1], [0], [0], [1], [0, 0, 1, 1], [], []>} : vector<16x96xf32>, vector<96x64xf32>, vector<16x64xf32> -> vector<16x64xf32>
    %c0_103 = arith.constant 0 : index
    %c33 = arith.constant 33 : index
    %c0_104 = arith.constant 0 : index
    %240 = vector.load %arg7[%c0_103, %c33, %c0_104] : memref<4x40x64xf32, #tpu.memory_space<vmem>>, vector<1x1x64xf32>
    %241 = vector.shape_cast %240 : vector<1x1x64xf32> to vector<1x64xf32>
    %242 = vector.broadcast %241 : vector<1x64xf32> to vector<16x64xf32>
    %243 = arith.addf %239, %242 : vector<16x64xf32>
    %cst_105 = arith.constant 0.000000e+00 : f32
    %244 = vector.broadcast %cst_105 : f32 to vector<16x64xf32>
    %245 = arith.maximumf %243, %244 : vector<16x64xf32>
    %246 = vector.broadcast %1 : vector<16x1xf32> to vector<16x64xf32>
    %247 = arith.mulf %245, %246 : vector<16x64xf32>
    %248 = vector.extract_strided_slice %247 {offsets = [0, 0], sizes = [15, 64], strides = [1, 1]} : vector<16x64xf32> to vector<15x64xf32>
    %249 = tpu.concatenate %8, %248 in 0 : vector<1x64xf32>, vector<15x64xf32> -> vector<16x64xf32>
    %250 = vector.extract_strided_slice %247 {offsets = [1, 0], sizes = [15, 64], strides = [1, 1]} : vector<16x64xf32> to vector<15x64xf32>
    %251 = tpu.concatenate %250, %8 in 0 : vector<15x64xf32>, vector<1x64xf32> -> vector<16x64xf32>
    %252 = tpu.concatenate %249, %247, %251 in 1 : vector<16x64xf32>, vector<16x64xf32>, vector<16x64xf32> -> vector<16x192xf32>
    %c0_106 = arith.constant 0 : index
    %c192 = arith.constant 192 : index
    %c0_107 = arith.constant 0 : index
    %253 = vector.load %arg6[%c0_106, %c192, %c0_107] : memref<4x440x64xf32, #tpu.memory_space<vmem>>, vector<1x192x32xf32>
    %254 = vector.shape_cast %253 : vector<1x192x32xf32> to vector<192x32xf32>
    %cst_108 = arith.constant dense<0.000000e+00> : vector<16x32xf32>
    %255 = tpu.matmul %252, %254, %cst_108 {dimension_numbers = #tpu.dot_dimension_numbers<[1], [0], [0], [1], [0, 0, 1, 1], [], []>} : vector<16x192xf32>, vector<192x32xf32>, vector<16x32xf32> -> vector<16x32xf32>
    %c0_109 = arith.constant 0 : index
    %c34 = arith.constant 34 : index
    %c0_110 = arith.constant 0 : index
    %256 = vector.load %arg7[%c0_109, %c34, %c0_110] : memref<4x40x64xf32, #tpu.memory_space<vmem>>, vector<1x1x32xf32>
    %257 = vector.shape_cast %256 : vector<1x1x32xf32> to vector<1x32xf32>
    %258 = vector.broadcast %257 : vector<1x32xf32> to vector<16x32xf32>
    %259 = arith.addf %255, %258 : vector<16x32xf32>
    %260 = vector.broadcast %1 : vector<16x1xf32> to vector<16x32xf32>
    %261 = arith.mulf %259, %260 : vector<16x32xf32>
    %262 = arith.addf %229, %261 : vector<16x32xf32>
    %c0_111 = arith.constant 0 : index
    %c37 = arith.constant 37 : index
    %c0_112 = arith.constant 0 : index
    %263 = vector.load %arg7[%c0_111, %c37, %c0_112] : memref<4x40x64xf32, #tpu.memory_space<vmem>>, vector<1x1x32xf32>
    %264 = vector.shape_cast %263 : vector<1x1x32xf32> to vector<1x32xf32>
    %c0_113 = arith.constant 0 : index
    %c38 = arith.constant 38 : index
    %c0_114 = arith.constant 0 : index
    %265 = vector.load %arg7[%c0_113, %c38, %c0_114] : memref<4x40x64xf32, #tpu.memory_space<vmem>>, vector<1x1x32xf32>
    %266 = vector.shape_cast %265 : vector<1x1x32xf32> to vector<1x32xf32>
    %cst_115 = arith.constant dense<0.000000e+00> : vector<16xf32>
    %267 = vector.multi_reduction <add>, %262, %cst_115 [1] : vector<16x32xf32> to vector<16xf32>
    %268 = vector.shape_cast %267 : vector<16xf32> to vector<16x1xf32>
    %cst_116 = arith.constant 3.200000e+01 : f32
    %269 = vector.broadcast %cst_116 : f32 to vector<16x1xf32>
    %270 = arith.divf %268, %269 : vector<16x1xf32>
    %271 = vector.broadcast %270 : vector<16x1xf32> to vector<16x32xf32>
    %272 = arith.subf %262, %271 : vector<16x32xf32>
    %273 = arith.mulf %272, %272 : vector<16x32xf32>
    %cst_117 = arith.constant dense<0.000000e+00> : vector<16xf32>
    %274 = vector.multi_reduction <add>, %273, %cst_117 [1] : vector<16x32xf32> to vector<16xf32>
    %275 = vector.shape_cast %274 : vector<16xf32> to vector<16x1xf32>
    %cst_118 = arith.constant 3.200000e+01 : f32
    %276 = vector.broadcast %cst_118 : f32 to vector<16x1xf32>
    %277 = arith.divf %275, %276 : vector<16x1xf32>
    %cst_119 = arith.constant 9.99999974E-5 : f32
    %278 = vector.broadcast %cst_119 : f32 to vector<16x1xf32>
    %279 = arith.addf %277, %278 : vector<16x1xf32>
    %280 = math.rsqrt %279 : vector<16x1xf32>
    %281 = vector.broadcast %280 : vector<16x1xf32> to vector<16x32xf32>
    %282 = arith.mulf %272, %281 : vector<16x32xf32>
    %283 = vector.broadcast %264 : vector<1x32xf32> to vector<16x32xf32>
    %284 = arith.mulf %282, %283 : vector<16x32xf32>
    %285 = vector.broadcast %266 : vector<1x32xf32> to vector<16x32xf32>
    %286 = arith.addf %284, %285 : vector<16x32xf32>
    %287 = vector.broadcast %1 : vector<16x1xf32> to vector<16x32xf32>
    %288 = arith.mulf %286, %287 : vector<16x32xf32>
    %289 = tpu.concatenate %288, %6 in 1 : vector<16x32xf32>, vector<16x32xf32> -> vector<16x64xf32>
    %290 = tpu.concatenate %6, %288 in 1 : vector<16x32xf32>, vector<16x32xf32> -> vector<16x64xf32>
    %291 = tpu.concatenate %289, %290 in 0 : vector<16x64xf32>, vector<16x64xf32> -> vector<32x64xf32>
    %c1_120 = arith.constant 1 : index
    %c0_121 = arith.constant 0 : index
    %c0_122 = arith.constant 0 : index
    %292 = vector.load %arg6[%c1_120, %c0_121, %c0_122] : memref<4x440x64xf32, #tpu.memory_space<vmem>>, vector<1x64x64xf32>
    %293 = vector.shape_cast %292 : vector<1x64x64xf32> to vector<64x64xf32>
    %cst_123 = arith.constant dense<0.000000e+00> : vector<32x64xf32>
    %294 = tpu.matmul %291, %293, %cst_123 {dimension_numbers = #tpu.dot_dimension_numbers<[1], [0], [0], [1], [0, 0, 1, 1], [], []>} : vector<32x64xf32>, vector<64x64xf32>, vector<32x64xf32> -> vector<32x64xf32>
    %c1_124 = arith.constant 1 : index
    %c0_125 = arith.constant 0 : index
    %c0_126 = arith.constant 0 : index
    %295 = vector.load %arg7[%c1_124, %c0_125, %c0_126] : memref<4x40x64xf32, #tpu.memory_space<vmem>>, vector<1x32x64xf32>
    %296 = vector.shape_cast %295 : vector<1x32x64xf32> to vector<32x64xf32>
    %297 = arith.addf %294, %296 : vector<32x64xf32>
    %298 = vector.extract_strided_slice %297 {offsets = [0, 0], sizes = [32, 16], strides = [1, 1]} : vector<32x64xf32> to vector<32x16xf32>
    %299 = vector.extract_strided_slice %297 {offsets = [0, 16], sizes = [32, 16], strides = [1, 1]} : vector<32x64xf32> to vector<32x16xf32>
    %300 = vector.extract_strided_slice %297 {offsets = [0, 32], sizes = [32, 16], strides = [1, 1]} : vector<32x64xf32> to vector<32x16xf32>
    %301 = vector.extract_strided_slice %297 {offsets = [0, 48], sizes = [32, 9], strides = [1, 1]} : vector<32x64xf32> to vector<32x9xf32>
    %cst_127 = arith.constant dense<0.000000e+00> : vector<32x32xf32>
    %302 = tpu.matmul %298, %299, %cst_127 {dimension_numbers = #tpu.dot_dimension_numbers<[1], [1], [0], [0], [0, 0, 1, 0], [], []>} : vector<32x16xf32>, vector<32x16xf32>, vector<32x32xf32> -> vector<32x32xf32>
    %c0_128 = arith.constant 0 : index
    %c0_129 = arith.constant 0 : index
    %c0_130 = arith.constant 0 : index
    %303 = vector.load %arg4[%c0_128, %c0_129, %c0_130] : memref<9x32x32xf32, #tpu.memory_space<vmem>>, vector<1x32x32xf32>
    %304 = vector.shape_cast %303 : vector<1x32x32xf32> to vector<32x32xf32>
    %305 = vector.extract_strided_slice %301 {offsets = [0, 0], sizes = [32, 1], strides = [1, 1]} : vector<32x9xf32> to vector<32x1xf32>
    %306 = vector.broadcast %305 : vector<32x1xf32> to vector<32x32xf32>
    %307 = arith.mulf %304, %306 : vector<32x32xf32>
    %308 = arith.addf %302, %307 : vector<32x32xf32>
    %c1_131 = arith.constant 1 : index
    %c0_132 = arith.constant 0 : index
    %c0_133 = arith.constant 0 : index
    %309 = vector.load %arg4[%c1_131, %c0_132, %c0_133] : memref<9x32x32xf32, #tpu.memory_space<vmem>>, vector<1x32x32xf32>
    %310 = vector.shape_cast %309 : vector<1x32x32xf32> to vector<32x32xf32>
    %311 = vector.extract_strided_slice %301 {offsets = [0, 1], sizes = [32, 1], strides = [1, 1]} : vector<32x9xf32> to vector<32x1xf32>
    %312 = vector.broadcast %311 : vector<32x1xf32> to vector<32x32xf32>
    %313 = arith.mulf %310, %312 : vector<32x32xf32>
    %314 = arith.addf %308, %313 : vector<32x32xf32>
    %c2_134 = arith.constant 2 : index
    %c0_135 = arith.constant 0 : index
    %c0_136 = arith.constant 0 : index
    %315 = vector.load %arg4[%c2_134, %c0_135, %c0_136] : memref<9x32x32xf32, #tpu.memory_space<vmem>>, vector<1x32x32xf32>
    %316 = vector.shape_cast %315 : vector<1x32x32xf32> to vector<32x32xf32>
    %317 = vector.extract_strided_slice %301 {offsets = [0, 2], sizes = [32, 1], strides = [1, 1]} : vector<32x9xf32> to vector<32x1xf32>
    %318 = vector.broadcast %317 : vector<32x1xf32> to vector<32x32xf32>
    %319 = arith.mulf %316, %318 : vector<32x32xf32>
    %320 = arith.addf %314, %319 : vector<32x32xf32>
    %c3_137 = arith.constant 3 : index
    %c0_138 = arith.constant 0 : index
    %c0_139 = arith.constant 0 : index
    %321 = vector.load %arg4[%c3_137, %c0_138, %c0_139] : memref<9x32x32xf32, #tpu.memory_space<vmem>>, vector<1x32x32xf32>
    %322 = vector.shape_cast %321 : vector<1x32x32xf32> to vector<32x32xf32>
    %323 = vector.extract_strided_slice %301 {offsets = [0, 3], sizes = [32, 1], strides = [1, 1]} : vector<32x9xf32> to vector<32x1xf32>
    %324 = vector.broadcast %323 : vector<32x1xf32> to vector<32x32xf32>
    %325 = arith.mulf %322, %324 : vector<32x32xf32>
    %326 = arith.addf %320, %325 : vector<32x32xf32>
    %c4_140 = arith.constant 4 : index
    %c0_141 = arith.constant 0 : index
    %c0_142 = arith.constant 0 : index
    %327 = vector.load %arg4[%c4_140, %c0_141, %c0_142] : memref<9x32x32xf32, #tpu.memory_space<vmem>>, vector<1x32x32xf32>
    %328 = vector.shape_cast %327 : vector<1x32x32xf32> to vector<32x32xf32>
    %329 = vector.extract_strided_slice %301 {offsets = [0, 4], sizes = [32, 1], strides = [1, 1]} : vector<32x9xf32> to vector<32x1xf32>
    %330 = vector.broadcast %329 : vector<32x1xf32> to vector<32x32xf32>
    %331 = arith.mulf %328, %330 : vector<32x32xf32>
    %332 = arith.addf %326, %331 : vector<32x32xf32>
    %c5_143 = arith.constant 5 : index
    %c0_144 = arith.constant 0 : index
    %c0_145 = arith.constant 0 : index
    %333 = vector.load %arg4[%c5_143, %c0_144, %c0_145] : memref<9x32x32xf32, #tpu.memory_space<vmem>>, vector<1x32x32xf32>
    %334 = vector.shape_cast %333 : vector<1x32x32xf32> to vector<32x32xf32>
    %335 = vector.extract_strided_slice %301 {offsets = [0, 5], sizes = [32, 1], strides = [1, 1]} : vector<32x9xf32> to vector<32x1xf32>
    %336 = vector.broadcast %335 : vector<32x1xf32> to vector<32x32xf32>
    %337 = arith.mulf %334, %336 : vector<32x32xf32>
    %338 = arith.addf %332, %337 : vector<32x32xf32>
    %c6_146 = arith.constant 6 : index
    %c0_147 = arith.constant 0 : index
    %c0_148 = arith.constant 0 : index
    %339 = vector.load %arg4[%c6_146, %c0_147, %c0_148] : memref<9x32x32xf32, #tpu.memory_space<vmem>>, vector<1x32x32xf32>
    %340 = vector.shape_cast %339 : vector<1x32x32xf32> to vector<32x32xf32>
    %341 = vector.extract_strided_slice %301 {offsets = [0, 6], sizes = [32, 1], strides = [1, 1]} : vector<32x9xf32> to vector<32x1xf32>
    %342 = vector.broadcast %341 : vector<32x1xf32> to vector<32x32xf32>
    %343 = arith.mulf %340, %342 : vector<32x32xf32>
    %344 = arith.addf %338, %343 : vector<32x32xf32>
    %c7_149 = arith.constant 7 : index
    %c0_150 = arith.constant 0 : index
    %c0_151 = arith.constant 0 : index
    %345 = vector.load %arg4[%c7_149, %c0_150, %c0_151] : memref<9x32x32xf32, #tpu.memory_space<vmem>>, vector<1x32x32xf32>
    %346 = vector.shape_cast %345 : vector<1x32x32xf32> to vector<32x32xf32>
    %347 = vector.extract_strided_slice %301 {offsets = [0, 7], sizes = [32, 1], strides = [1, 1]} : vector<32x9xf32> to vector<32x1xf32>
    %348 = vector.broadcast %347 : vector<32x1xf32> to vector<32x32xf32>
    %349 = arith.mulf %346, %348 : vector<32x32xf32>
    %350 = arith.addf %344, %349 : vector<32x32xf32>
    %c8_152 = arith.constant 8 : index
    %c0_153 = arith.constant 0 : index
    %c0_154 = arith.constant 0 : index
    %351 = vector.load %arg4[%c8_152, %c0_153, %c0_154] : memref<9x32x32xf32, #tpu.memory_space<vmem>>, vector<1x32x32xf32>
    %352 = vector.shape_cast %351 : vector<1x32x32xf32> to vector<32x32xf32>
    %353 = vector.extract_strided_slice %301 {offsets = [0, 8], sizes = [32, 1], strides = [1, 1]} : vector<32x9xf32> to vector<32x1xf32>
    %354 = vector.broadcast %353 : vector<32x1xf32> to vector<32x32xf32>
    %355 = arith.mulf %352, %354 : vector<32x32xf32>
    %356 = arith.addf %350, %355 : vector<32x32xf32>
    %cst_155 = arith.constant -1.000000e+04 : f32
    %357 = vector.broadcast %cst_155 : f32 to vector<32x32xf32>
    %358 = arith.select %5, %356, %357 : vector<32x32xi1>, vector<32x32xf32>
    %cst_156 = arith.constant dense<0xFF800000> : vector<32xf32>
    %359 = vector.multi_reduction <maximumf>, %358, %cst_156 [1] : vector<32x32xf32> to vector<32xf32>
    %360 = vector.shape_cast %359 : vector<32xf32> to vector<32x1xf32>
    %361 = vector.broadcast %360 : vector<32x1xf32> to vector<32x32xf32>
    %362 = arith.subf %358, %361 : vector<32x32xf32>
    %363 = math.exp %362 : vector<32x32xf32>
    %cst_157 = arith.constant dense<0.000000e+00> : vector<32xf32>
    %364 = vector.multi_reduction <add>, %363, %cst_157 [1] : vector<32x32xf32> to vector<32xf32>
    %365 = vector.shape_cast %364 : vector<32xf32> to vector<32x1xf32>
    %366 = tpu.reciprocal %365 {approx = true} : vector<32x1xf32> -> vector<32x1xf32>
    %367 = vector.broadcast %366 : vector<32x1xf32> to vector<32x32xf32>
    %368 = arith.mulf %363, %367 : vector<32x32xf32>
    %cst_158 = arith.constant dense<0.000000e+00> : vector<32x16xf32>
    %369 = tpu.matmul %368, %300, %cst_158 {dimension_numbers = #tpu.dot_dimension_numbers<[1], [0], [0], [1], [0, 0, 1, 1], [], []>} : vector<32x32xf32>, vector<32x16xf32>, vector<32x16xf32> -> vector<32x16xf32>
    %c1_159 = arith.constant 1 : index
    %c384_160 = arith.constant 384 : index
    %c0_161 = arith.constant 0 : index
    %370 = vector.load %arg6[%c1_159, %c384_160, %c0_161] : memref<4x440x64xf32, #tpu.memory_space<vmem>>, vector<1x9x16xf32>
    %371 = vector.shape_cast %370 : vector<1x9x16xf32> to vector<9x16xf32>
    %c0_162 = arith.constant 0 : index
    %c0_163 = arith.constant 0 : index
    %c0_164 = arith.constant 0 : index
    %372 = vector.load %arg4[%c0_162, %c0_163, %c0_164] : memref<9x32x32xf32, #tpu.memory_space<vmem>>, vector<1x32x32xf32>
    %373 = vector.shape_cast %372 : vector<1x32x32xf32> to vector<32x32xf32>
    %374 = arith.mulf %373, %368 : vector<32x32xf32>
    %cst_165 = arith.constant dense<0.000000e+00> : vector<32xf32>
    %375 = vector.multi_reduction <add>, %374, %cst_165 [1] : vector<32x32xf32> to vector<32xf32>
    %376 = vector.shape_cast %375 : vector<32xf32> to vector<32x1xf32>
    %377 = vector.extract_strided_slice %371 {offsets = [0, 0], sizes = [1, 16], strides = [1, 1]} : vector<9x16xf32> to vector<1x16xf32>
    %378 = vector.broadcast %376 : vector<32x1xf32> to vector<32x16xf32>
    %379 = vector.broadcast %377 : vector<1x16xf32> to vector<32x16xf32>
    %380 = arith.mulf %378, %379 : vector<32x16xf32>
    %381 = arith.addf %369, %380 : vector<32x16xf32>
    %c1_166 = arith.constant 1 : index
    %c0_167 = arith.constant 0 : index
    %c0_168 = arith.constant 0 : index
    %382 = vector.load %arg4[%c1_166, %c0_167, %c0_168] : memref<9x32x32xf32, #tpu.memory_space<vmem>>, vector<1x32x32xf32>
    %383 = vector.shape_cast %382 : vector<1x32x32xf32> to vector<32x32xf32>
    %384 = arith.mulf %383, %368 : vector<32x32xf32>
    %cst_169 = arith.constant dense<0.000000e+00> : vector<32xf32>
    %385 = vector.multi_reduction <add>, %384, %cst_169 [1] : vector<32x32xf32> to vector<32xf32>
    %386 = vector.shape_cast %385 : vector<32xf32> to vector<32x1xf32>
    %387 = vector.extract_strided_slice %371 {offsets = [1, 0], sizes = [1, 16], strides = [1, 1]} : vector<9x16xf32> to vector<1x16xf32>
    %388 = vector.broadcast %386 : vector<32x1xf32> to vector<32x16xf32>
    %389 = vector.broadcast %387 : vector<1x16xf32> to vector<32x16xf32>
    %390 = arith.mulf %388, %389 : vector<32x16xf32>
    %391 = arith.addf %381, %390 : vector<32x16xf32>
    %c2_170 = arith.constant 2 : index
    %c0_171 = arith.constant 0 : index
    %c0_172 = arith.constant 0 : index
    %392 = vector.load %arg4[%c2_170, %c0_171, %c0_172] : memref<9x32x32xf32, #tpu.memory_space<vmem>>, vector<1x32x32xf32>
    %393 = vector.shape_cast %392 : vector<1x32x32xf32> to vector<32x32xf32>
    %394 = arith.mulf %393, %368 : vector<32x32xf32>
    %cst_173 = arith.constant dense<0.000000e+00> : vector<32xf32>
    %395 = vector.multi_reduction <add>, %394, %cst_173 [1] : vector<32x32xf32> to vector<32xf32>
    %396 = vector.shape_cast %395 : vector<32xf32> to vector<32x1xf32>
    %397 = vector.extract_strided_slice %371 {offsets = [2, 0], sizes = [1, 16], strides = [1, 1]} : vector<9x16xf32> to vector<1x16xf32>
    %398 = vector.broadcast %396 : vector<32x1xf32> to vector<32x16xf32>
    %399 = vector.broadcast %397 : vector<1x16xf32> to vector<32x16xf32>
    %400 = arith.mulf %398, %399 : vector<32x16xf32>
    %401 = arith.addf %391, %400 : vector<32x16xf32>
    %c3_174 = arith.constant 3 : index
    %c0_175 = arith.constant 0 : index
    %c0_176 = arith.constant 0 : index
    %402 = vector.load %arg4[%c3_174, %c0_175, %c0_176] : memref<9x32x32xf32, #tpu.memory_space<vmem>>, vector<1x32x32xf32>
    %403 = vector.shape_cast %402 : vector<1x32x32xf32> to vector<32x32xf32>
    %404 = arith.mulf %403, %368 : vector<32x32xf32>
    %cst_177 = arith.constant dense<0.000000e+00> : vector<32xf32>
    %405 = vector.multi_reduction <add>, %404, %cst_177 [1] : vector<32x32xf32> to vector<32xf32>
    %406 = vector.shape_cast %405 : vector<32xf32> to vector<32x1xf32>
    %407 = vector.extract_strided_slice %371 {offsets = [3, 0], sizes = [1, 16], strides = [1, 1]} : vector<9x16xf32> to vector<1x16xf32>
    %408 = vector.broadcast %406 : vector<32x1xf32> to vector<32x16xf32>
    %409 = vector.broadcast %407 : vector<1x16xf32> to vector<32x16xf32>
    %410 = arith.mulf %408, %409 : vector<32x16xf32>
    %411 = arith.addf %401, %410 : vector<32x16xf32>
    %c4_178 = arith.constant 4 : index
    %c0_179 = arith.constant 0 : index
    %c0_180 = arith.constant 0 : index
    %412 = vector.load %arg4[%c4_178, %c0_179, %c0_180] : memref<9x32x32xf32, #tpu.memory_space<vmem>>, vector<1x32x32xf32>
    %413 = vector.shape_cast %412 : vector<1x32x32xf32> to vector<32x32xf32>
    %414 = arith.mulf %413, %368 : vector<32x32xf32>
    %cst_181 = arith.constant dense<0.000000e+00> : vector<32xf32>
    %415 = vector.multi_reduction <add>, %414, %cst_181 [1] : vector<32x32xf32> to vector<32xf32>
    %416 = vector.shape_cast %415 : vector<32xf32> to vector<32x1xf32>
    %417 = vector.extract_strided_slice %371 {offsets = [4, 0], sizes = [1, 16], strides = [1, 1]} : vector<9x16xf32> to vector<1x16xf32>
    %418 = vector.broadcast %416 : vector<32x1xf32> to vector<32x16xf32>
    %419 = vector.broadcast %417 : vector<1x16xf32> to vector<32x16xf32>
    %420 = arith.mulf %418, %419 : vector<32x16xf32>
    %421 = arith.addf %411, %420 : vector<32x16xf32>
    %c5_182 = arith.constant 5 : index
    %c0_183 = arith.constant 0 : index
    %c0_184 = arith.constant 0 : index
    %422 = vector.load %arg4[%c5_182, %c0_183, %c0_184] : memref<9x32x32xf32, #tpu.memory_space<vmem>>, vector<1x32x32xf32>
    %423 = vector.shape_cast %422 : vector<1x32x32xf32> to vector<32x32xf32>
    %424 = arith.mulf %423, %368 : vector<32x32xf32>
    %cst_185 = arith.constant dense<0.000000e+00> : vector<32xf32>
    %425 = vector.multi_reduction <add>, %424, %cst_185 [1] : vector<32x32xf32> to vector<32xf32>
    %426 = vector.shape_cast %425 : vector<32xf32> to vector<32x1xf32>
    %427 = vector.extract_strided_slice %371 {offsets = [5, 0], sizes = [1, 16], strides = [1, 1]} : vector<9x16xf32> to vector<1x16xf32>
    %428 = vector.broadcast %426 : vector<32x1xf32> to vector<32x16xf32>
    %429 = vector.broadcast %427 : vector<1x16xf32> to vector<32x16xf32>
    %430 = arith.mulf %428, %429 : vector<32x16xf32>
    %431 = arith.addf %421, %430 : vector<32x16xf32>
    %c6_186 = arith.constant 6 : index
    %c0_187 = arith.constant 0 : index
    %c0_188 = arith.constant 0 : index
    %432 = vector.load %arg4[%c6_186, %c0_187, %c0_188] : memref<9x32x32xf32, #tpu.memory_space<vmem>>, vector<1x32x32xf32>
    %433 = vector.shape_cast %432 : vector<1x32x32xf32> to vector<32x32xf32>
    %434 = arith.mulf %433, %368 : vector<32x32xf32>
    %cst_189 = arith.constant dense<0.000000e+00> : vector<32xf32>
    %435 = vector.multi_reduction <add>, %434, %cst_189 [1] : vector<32x32xf32> to vector<32xf32>
    %436 = vector.shape_cast %435 : vector<32xf32> to vector<32x1xf32>
    %437 = vector.extract_strided_slice %371 {offsets = [6, 0], sizes = [1, 16], strides = [1, 1]} : vector<9x16xf32> to vector<1x16xf32>
    %438 = vector.broadcast %436 : vector<32x1xf32> to vector<32x16xf32>
    %439 = vector.broadcast %437 : vector<1x16xf32> to vector<32x16xf32>
    %440 = arith.mulf %438, %439 : vector<32x16xf32>
    %441 = arith.addf %431, %440 : vector<32x16xf32>
    %c7_190 = arith.constant 7 : index
    %c0_191 = arith.constant 0 : index
    %c0_192 = arith.constant 0 : index
    %442 = vector.load %arg4[%c7_190, %c0_191, %c0_192] : memref<9x32x32xf32, #tpu.memory_space<vmem>>, vector<1x32x32xf32>
    %443 = vector.shape_cast %442 : vector<1x32x32xf32> to vector<32x32xf32>
    %444 = arith.mulf %443, %368 : vector<32x32xf32>
    %cst_193 = arith.constant dense<0.000000e+00> : vector<32xf32>
    %445 = vector.multi_reduction <add>, %444, %cst_193 [1] : vector<32x32xf32> to vector<32xf32>
    %446 = vector.shape_cast %445 : vector<32xf32> to vector<32x1xf32>
    %447 = vector.extract_strided_slice %371 {offsets = [7, 0], sizes = [1, 16], strides = [1, 1]} : vector<9x16xf32> to vector<1x16xf32>
    %448 = vector.broadcast %446 : vector<32x1xf32> to vector<32x16xf32>
    %449 = vector.broadcast %447 : vector<1x16xf32> to vector<32x16xf32>
    %450 = arith.mulf %448, %449 : vector<32x16xf32>
    %451 = arith.addf %441, %450 : vector<32x16xf32>
    %c8_194 = arith.constant 8 : index
    %c0_195 = arith.constant 0 : index
    %c0_196 = arith.constant 0 : index
    %452 = vector.load %arg4[%c8_194, %c0_195, %c0_196] : memref<9x32x32xf32, #tpu.memory_space<vmem>>, vector<1x32x32xf32>
    %453 = vector.shape_cast %452 : vector<1x32x32xf32> to vector<32x32xf32>
    %454 = arith.mulf %453, %368 : vector<32x32xf32>
    %cst_197 = arith.constant dense<0.000000e+00> : vector<32xf32>
    %455 = vector.multi_reduction <add>, %454, %cst_197 [1] : vector<32x32xf32> to vector<32xf32>
    %456 = vector.shape_cast %455 : vector<32xf32> to vector<32x1xf32>
    %457 = vector.extract_strided_slice %371 {offsets = [8, 0], sizes = [1, 16], strides = [1, 1]} : vector<9x16xf32> to vector<1x16xf32>
    %458 = vector.broadcast %456 : vector<32x1xf32> to vector<32x16xf32>
    %459 = vector.broadcast %457 : vector<1x16xf32> to vector<32x16xf32>
    %460 = arith.mulf %458, %459 : vector<32x16xf32>
    %461 = arith.addf %451, %460 : vector<32x16xf32>
    %462 = vector.extract_strided_slice %461 {offsets = [0, 0], sizes = [16, 16], strides = [1, 1]} : vector<32x16xf32> to vector<16x16xf32>
    %463 = vector.extract_strided_slice %461 {offsets = [16, 0], sizes = [16, 16], strides = [1, 1]} : vector<32x16xf32> to vector<16x16xf32>
    %464 = tpu.concatenate %462, %463 in 1 : vector<16x16xf32>, vector<16x16xf32> -> vector<16x32xf32>
    %c1_198 = arith.constant 1 : index
    %c64_199 = arith.constant 64 : index
    %c0_200 = arith.constant 0 : index
    %465 = vector.load %arg6[%c1_198, %c64_199, %c0_200] : memref<4x440x64xf32, #tpu.memory_space<vmem>>, vector<1x32x32xf32>
    %466 = vector.shape_cast %465 : vector<1x32x32xf32> to vector<32x32xf32>
    %cst_201 = arith.constant dense<0.000000e+00> : vector<16x32xf32>
    %467 = tpu.matmul %464, %466, %cst_201 {dimension_numbers = #tpu.dot_dimension_numbers<[1], [0], [0], [1], [0, 0, 1, 1], [], []>} : vector<16x32xf32>, vector<32x32xf32>, vector<16x32xf32> -> vector<16x32xf32>
    %c1_202 = arith.constant 1 : index
    %c32_203 = arith.constant 32 : index
    %c0_204 = arith.constant 0 : index
    %468 = vector.load %arg7[%c1_202, %c32_203, %c0_204] : memref<4x40x64xf32, #tpu.memory_space<vmem>>, vector<1x1x32xf32>
    %469 = vector.shape_cast %468 : vector<1x1x32xf32> to vector<1x32xf32>
    %470 = vector.broadcast %469 : vector<1x32xf32> to vector<16x32xf32>
    %471 = arith.addf %467, %470 : vector<16x32xf32>
    %472 = arith.addf %288, %471 : vector<16x32xf32>
    %c1_205 = arith.constant 1 : index
    %c35_206 = arith.constant 35 : index
    %c0_207 = arith.constant 0 : index
    %473 = vector.load %arg7[%c1_205, %c35_206, %c0_207] : memref<4x40x64xf32, #tpu.memory_space<vmem>>, vector<1x1x32xf32>
    %474 = vector.shape_cast %473 : vector<1x1x32xf32> to vector<1x32xf32>
    %c1_208 = arith.constant 1 : index
    %c36_209 = arith.constant 36 : index
    %c0_210 = arith.constant 0 : index
    %475 = vector.load %arg7[%c1_208, %c36_209, %c0_210] : memref<4x40x64xf32, #tpu.memory_space<vmem>>, vector<1x1x32xf32>
    %476 = vector.shape_cast %475 : vector<1x1x32xf32> to vector<1x32xf32>
    %cst_211 = arith.constant dense<0.000000e+00> : vector<16xf32>
    %477 = vector.multi_reduction <add>, %472, %cst_211 [1] : vector<16x32xf32> to vector<16xf32>
    %478 = vector.shape_cast %477 : vector<16xf32> to vector<16x1xf32>
    %cst_212 = arith.constant 3.200000e+01 : f32
    %479 = vector.broadcast %cst_212 : f32 to vector<16x1xf32>
    %480 = arith.divf %478, %479 : vector<16x1xf32>
    %481 = vector.broadcast %480 : vector<16x1xf32> to vector<16x32xf32>
    %482 = arith.subf %472, %481 : vector<16x32xf32>
    %483 = arith.mulf %482, %482 : vector<16x32xf32>
    %cst_213 = arith.constant dense<0.000000e+00> : vector<16xf32>
    %484 = vector.multi_reduction <add>, %483, %cst_213 [1] : vector<16x32xf32> to vector<16xf32>
    %485 = vector.shape_cast %484 : vector<16xf32> to vector<16x1xf32>
    %cst_214 = arith.constant 3.200000e+01 : f32
    %486 = vector.broadcast %cst_214 : f32 to vector<16x1xf32>
    %487 = arith.divf %485, %486 : vector<16x1xf32>
    %cst_215 = arith.constant 9.99999974E-5 : f32
    %488 = vector.broadcast %cst_215 : f32 to vector<16x1xf32>
    %489 = arith.addf %487, %488 : vector<16x1xf32>
    %490 = math.rsqrt %489 : vector<16x1xf32>
    %491 = vector.broadcast %490 : vector<16x1xf32> to vector<16x32xf32>
    %492 = arith.mulf %482, %491 : vector<16x32xf32>
    %493 = vector.broadcast %474 : vector<1x32xf32> to vector<16x32xf32>
    %494 = arith.mulf %492, %493 : vector<16x32xf32>
    %495 = vector.broadcast %476 : vector<1x32xf32> to vector<16x32xf32>
    %496 = arith.addf %494, %495 : vector<16x32xf32>
    %497 = vector.broadcast %1 : vector<16x1xf32> to vector<16x32xf32>
    %498 = arith.mulf %496, %497 : vector<16x32xf32>
    %499 = vector.extract_strided_slice %498 {offsets = [0, 0], sizes = [15, 32], strides = [1, 1]} : vector<16x32xf32> to vector<15x32xf32>
    %500 = tpu.concatenate %7, %499 in 0 : vector<1x32xf32>, vector<15x32xf32> -> vector<16x32xf32>
    %501 = vector.extract_strided_slice %498 {offsets = [1, 0], sizes = [15, 32], strides = [1, 1]} : vector<16x32xf32> to vector<15x32xf32>
    %502 = tpu.concatenate %501, %7 in 0 : vector<15x32xf32>, vector<1x32xf32> -> vector<16x32xf32>
    %503 = tpu.concatenate %500, %498, %502 in 1 : vector<16x32xf32>, vector<16x32xf32>, vector<16x32xf32> -> vector<16x96xf32>
    %c1_216 = arith.constant 1 : index
    %c96_217 = arith.constant 96 : index
    %c0_218 = arith.constant 0 : index
    %504 = vector.load %arg6[%c1_216, %c96_217, %c0_218] : memref<4x440x64xf32, #tpu.memory_space<vmem>>, vector<1x96x64xf32>
    %505 = vector.shape_cast %504 : vector<1x96x64xf32> to vector<96x64xf32>
    %cst_219 = arith.constant dense<0.000000e+00> : vector<16x64xf32>
    %506 = tpu.matmul %503, %505, %cst_219 {dimension_numbers = #tpu.dot_dimension_numbers<[1], [0], [0], [1], [0, 0, 1, 1], [], []>} : vector<16x96xf32>, vector<96x64xf32>, vector<16x64xf32> -> vector<16x64xf32>
    %c1_220 = arith.constant 1 : index
    %c33_221 = arith.constant 33 : index
    %c0_222 = arith.constant 0 : index
    %507 = vector.load %arg7[%c1_220, %c33_221, %c0_222] : memref<4x40x64xf32, #tpu.memory_space<vmem>>, vector<1x1x64xf32>
    %508 = vector.shape_cast %507 : vector<1x1x64xf32> to vector<1x64xf32>
    %509 = vector.broadcast %508 : vector<1x64xf32> to vector<16x64xf32>
    %510 = arith.addf %506, %509 : vector<16x64xf32>
    %cst_223 = arith.constant 0.000000e+00 : f32
    %511 = vector.broadcast %cst_223 : f32 to vector<16x64xf32>
    %512 = arith.maximumf %510, %511 : vector<16x64xf32>
    %513 = vector.broadcast %1 : vector<16x1xf32> to vector<16x64xf32>
    %514 = arith.mulf %512, %513 : vector<16x64xf32>
    %515 = vector.extract_strided_slice %514 {offsets = [0, 0], sizes = [15, 64], strides = [1, 1]} : vector<16x64xf32> to vector<15x64xf32>
    %516 = tpu.concatenate %8, %515 in 0 : vector<1x64xf32>, vector<15x64xf32> -> vector<16x64xf32>
    %517 = vector.extract_strided_slice %514 {offsets = [1, 0], sizes = [15, 64], strides = [1, 1]} : vector<16x64xf32> to vector<15x64xf32>
    %518 = tpu.concatenate %517, %8 in 0 : vector<15x64xf32>, vector<1x64xf32> -> vector<16x64xf32>
    %519 = tpu.concatenate %516, %514, %518 in 1 : vector<16x64xf32>, vector<16x64xf32>, vector<16x64xf32> -> vector<16x192xf32>
    %c1_224 = arith.constant 1 : index
    %c192_225 = arith.constant 192 : index
    %c0_226 = arith.constant 0 : index
    %520 = vector.load %arg6[%c1_224, %c192_225, %c0_226] : memref<4x440x64xf32, #tpu.memory_space<vmem>>, vector<1x192x32xf32>
    %521 = vector.shape_cast %520 : vector<1x192x32xf32> to vector<192x32xf32>
    %cst_227 = arith.constant dense<0.000000e+00> : vector<16x32xf32>
    %522 = tpu.matmul %519, %521, %cst_227 {dimension_numbers = #tpu.dot_dimension_numbers<[1], [0], [0], [1], [0, 0, 1, 1], [], []>} : vector<16x192xf32>, vector<192x32xf32>, vector<16x32xf32> -> vector<16x32xf32>
    %c1_228 = arith.constant 1 : index
    %c34_229 = arith.constant 34 : index
    %c0_230 = arith.constant 0 : index
    %523 = vector.load %arg7[%c1_228, %c34_229, %c0_230] : memref<4x40x64xf32, #tpu.memory_space<vmem>>, vector<1x1x32xf32>
    %524 = vector.shape_cast %523 : vector<1x1x32xf32> to vector<1x32xf32>
    %525 = vector.broadcast %524 : vector<1x32xf32> to vector<16x32xf32>
    %526 = arith.addf %522, %525 : vector<16x32xf32>
    %527 = vector.broadcast %1 : vector<16x1xf32> to vector<16x32xf32>
    %528 = arith.mulf %526, %527 : vector<16x32xf32>
    %529 = arith.addf %496, %528 : vector<16x32xf32>
    %c1_231 = arith.constant 1 : index
    %c37_232 = arith.constant 37 : index
    %c0_233 = arith.constant 0 : index
    %530 = vector.load %arg7[%c1_231, %c37_232, %c0_233] : memref<4x40x64xf32, #tpu.memory_space<vmem>>, vector<1x1x32xf32>
    %531 = vector.shape_cast %530 : vector<1x1x32xf32> to vector<1x32xf32>
    %c1_234 = arith.constant 1 : index
    %c38_235 = arith.constant 38 : index
    %c0_236 = arith.constant 0 : index
    %532 = vector.load %arg7[%c1_234, %c38_235, %c0_236] : memref<4x40x64xf32, #tpu.memory_space<vmem>>, vector<1x1x32xf32>
    %533 = vector.shape_cast %532 : vector<1x1x32xf32> to vector<1x32xf32>
    %cst_237 = arith.constant dense<0.000000e+00> : vector<16xf32>
    %534 = vector.multi_reduction <add>, %529, %cst_237 [1] : vector<16x32xf32> to vector<16xf32>
    %535 = vector.shape_cast %534 : vector<16xf32> to vector<16x1xf32>
    %cst_238 = arith.constant 3.200000e+01 : f32
    %536 = vector.broadcast %cst_238 : f32 to vector<16x1xf32>
    %537 = arith.divf %535, %536 : vector<16x1xf32>
    %538 = vector.broadcast %537 : vector<16x1xf32> to vector<16x32xf32>
    %539 = arith.subf %529, %538 : vector<16x32xf32>
    %540 = arith.mulf %539, %539 : vector<16x32xf32>
    %cst_239 = arith.constant dense<0.000000e+00> : vector<16xf32>
    %541 = vector.multi_reduction <add>, %540, %cst_239 [1] : vector<16x32xf32> to vector<16xf32>
    %542 = vector.shape_cast %541 : vector<16xf32> to vector<16x1xf32>
    %cst_240 = arith.constant 3.200000e+01 : f32
    %543 = vector.broadcast %cst_240 : f32 to vector<16x1xf32>
    %544 = arith.divf %542, %543 : vector<16x1xf32>
    %cst_241 = arith.constant 9.99999974E-5 : f32
    %545 = vector.broadcast %cst_241 : f32 to vector<16x1xf32>
    %546 = arith.addf %544, %545 : vector<16x1xf32>
    %547 = math.rsqrt %546 : vector<16x1xf32>
    %548 = vector.broadcast %547 : vector<16x1xf32> to vector<16x32xf32>
    %549 = arith.mulf %539, %548 : vector<16x32xf32>
    %550 = vector.broadcast %531 : vector<1x32xf32> to vector<16x32xf32>
    %551 = arith.mulf %549, %550 : vector<16x32xf32>
    %552 = vector.broadcast %533 : vector<1x32xf32> to vector<16x32xf32>
    %553 = arith.addf %551, %552 : vector<16x32xf32>
    %554 = vector.broadcast %1 : vector<16x1xf32> to vector<16x32xf32>
    %555 = arith.mulf %553, %554 : vector<16x32xf32>
    %556 = tpu.concatenate %555, %6 in 1 : vector<16x32xf32>, vector<16x32xf32> -> vector<16x64xf32>
    %557 = tpu.concatenate %6, %555 in 1 : vector<16x32xf32>, vector<16x32xf32> -> vector<16x64xf32>
    %558 = tpu.concatenate %556, %557 in 0 : vector<16x64xf32>, vector<16x64xf32> -> vector<32x64xf32>
    %c2_242 = arith.constant 2 : index
    %c0_243 = arith.constant 0 : index
    %c0_244 = arith.constant 0 : index
    %559 = vector.load %arg6[%c2_242, %c0_243, %c0_244] : memref<4x440x64xf32, #tpu.memory_space<vmem>>, vector<1x64x64xf32>
    %560 = vector.shape_cast %559 : vector<1x64x64xf32> to vector<64x64xf32>
    %cst_245 = arith.constant dense<0.000000e+00> : vector<32x64xf32>
    %561 = tpu.matmul %558, %560, %cst_245 {dimension_numbers = #tpu.dot_dimension_numbers<[1], [0], [0], [1], [0, 0, 1, 1], [], []>} : vector<32x64xf32>, vector<64x64xf32>, vector<32x64xf32> -> vector<32x64xf32>
    %c2_246 = arith.constant 2 : index
    %c0_247 = arith.constant 0 : index
    %c0_248 = arith.constant 0 : index
    %562 = vector.load %arg7[%c2_246, %c0_247, %c0_248] : memref<4x40x64xf32, #tpu.memory_space<vmem>>, vector<1x32x64xf32>
    %563 = vector.shape_cast %562 : vector<1x32x64xf32> to vector<32x64xf32>
    %564 = arith.addf %561, %563 : vector<32x64xf32>
    %565 = vector.extract_strided_slice %564 {offsets = [0, 0], sizes = [32, 16], strides = [1, 1]} : vector<32x64xf32> to vector<32x16xf32>
    %566 = vector.extract_strided_slice %564 {offsets = [0, 16], sizes = [32, 16], strides = [1, 1]} : vector<32x64xf32> to vector<32x16xf32>
    %567 = vector.extract_strided_slice %564 {offsets = [0, 32], sizes = [32, 16], strides = [1, 1]} : vector<32x64xf32> to vector<32x16xf32>
    %568 = vector.extract_strided_slice %564 {offsets = [0, 48], sizes = [32, 9], strides = [1, 1]} : vector<32x64xf32> to vector<32x9xf32>
    %cst_249 = arith.constant dense<0.000000e+00> : vector<32x32xf32>
    %569 = tpu.matmul %565, %566, %cst_249 {dimension_numbers = #tpu.dot_dimension_numbers<[1], [1], [0], [0], [0, 0, 1, 0], [], []>} : vector<32x16xf32>, vector<32x16xf32>, vector<32x32xf32> -> vector<32x32xf32>
    %c0_250 = arith.constant 0 : index
    %c0_251 = arith.constant 0 : index
    %c0_252 = arith.constant 0 : index
    %570 = vector.load %arg4[%c0_250, %c0_251, %c0_252] : memref<9x32x32xf32, #tpu.memory_space<vmem>>, vector<1x32x32xf32>
    %571 = vector.shape_cast %570 : vector<1x32x32xf32> to vector<32x32xf32>
    %572 = vector.extract_strided_slice %568 {offsets = [0, 0], sizes = [32, 1], strides = [1, 1]} : vector<32x9xf32> to vector<32x1xf32>
    %573 = vector.broadcast %572 : vector<32x1xf32> to vector<32x32xf32>
    %574 = arith.mulf %571, %573 : vector<32x32xf32>
    %575 = arith.addf %569, %574 : vector<32x32xf32>
    %c1_253 = arith.constant 1 : index
    %c0_254 = arith.constant 0 : index
    %c0_255 = arith.constant 0 : index
    %576 = vector.load %arg4[%c1_253, %c0_254, %c0_255] : memref<9x32x32xf32, #tpu.memory_space<vmem>>, vector<1x32x32xf32>
    %577 = vector.shape_cast %576 : vector<1x32x32xf32> to vector<32x32xf32>
    %578 = vector.extract_strided_slice %568 {offsets = [0, 1], sizes = [32, 1], strides = [1, 1]} : vector<32x9xf32> to vector<32x1xf32>
    %579 = vector.broadcast %578 : vector<32x1xf32> to vector<32x32xf32>
    %580 = arith.mulf %577, %579 : vector<32x32xf32>
    %581 = arith.addf %575, %580 : vector<32x32xf32>
    %c2_256 = arith.constant 2 : index
    %c0_257 = arith.constant 0 : index
    %c0_258 = arith.constant 0 : index
    %582 = vector.load %arg4[%c2_256, %c0_257, %c0_258] : memref<9x32x32xf32, #tpu.memory_space<vmem>>, vector<1x32x32xf32>
    %583 = vector.shape_cast %582 : vector<1x32x32xf32> to vector<32x32xf32>
    %584 = vector.extract_strided_slice %568 {offsets = [0, 2], sizes = [32, 1], strides = [1, 1]} : vector<32x9xf32> to vector<32x1xf32>
    %585 = vector.broadcast %584 : vector<32x1xf32> to vector<32x32xf32>
    %586 = arith.mulf %583, %585 : vector<32x32xf32>
    %587 = arith.addf %581, %586 : vector<32x32xf32>
    %c3_259 = arith.constant 3 : index
    %c0_260 = arith.constant 0 : index
    %c0_261 = arith.constant 0 : index
    %588 = vector.load %arg4[%c3_259, %c0_260, %c0_261] : memref<9x32x32xf32, #tpu.memory_space<vmem>>, vector<1x32x32xf32>
    %589 = vector.shape_cast %588 : vector<1x32x32xf32> to vector<32x32xf32>
    %590 = vector.extract_strided_slice %568 {offsets = [0, 3], sizes = [32, 1], strides = [1, 1]} : vector<32x9xf32> to vector<32x1xf32>
    %591 = vector.broadcast %590 : vector<32x1xf32> to vector<32x32xf32>
    %592 = arith.mulf %589, %591 : vector<32x32xf32>
    %593 = arith.addf %587, %592 : vector<32x32xf32>
    %c4_262 = arith.constant 4 : index
    %c0_263 = arith.constant 0 : index
    %c0_264 = arith.constant 0 : index
    %594 = vector.load %arg4[%c4_262, %c0_263, %c0_264] : memref<9x32x32xf32, #tpu.memory_space<vmem>>, vector<1x32x32xf32>
    %595 = vector.shape_cast %594 : vector<1x32x32xf32> to vector<32x32xf32>
    %596 = vector.extract_strided_slice %568 {offsets = [0, 4], sizes = [32, 1], strides = [1, 1]} : vector<32x9xf32> to vector<32x1xf32>
    %597 = vector.broadcast %596 : vector<32x1xf32> to vector<32x32xf32>
    %598 = arith.mulf %595, %597 : vector<32x32xf32>
    %599 = arith.addf %593, %598 : vector<32x32xf32>
    %c5_265 = arith.constant 5 : index
    %c0_266 = arith.constant 0 : index
    %c0_267 = arith.constant 0 : index
    %600 = vector.load %arg4[%c5_265, %c0_266, %c0_267] : memref<9x32x32xf32, #tpu.memory_space<vmem>>, vector<1x32x32xf32>
    %601 = vector.shape_cast %600 : vector<1x32x32xf32> to vector<32x32xf32>
    %602 = vector.extract_strided_slice %568 {offsets = [0, 5], sizes = [32, 1], strides = [1, 1]} : vector<32x9xf32> to vector<32x1xf32>
    %603 = vector.broadcast %602 : vector<32x1xf32> to vector<32x32xf32>
    %604 = arith.mulf %601, %603 : vector<32x32xf32>
    %605 = arith.addf %599, %604 : vector<32x32xf32>
    %c6_268 = arith.constant 6 : index
    %c0_269 = arith.constant 0 : index
    %c0_270 = arith.constant 0 : index
    %606 = vector.load %arg4[%c6_268, %c0_269, %c0_270] : memref<9x32x32xf32, #tpu.memory_space<vmem>>, vector<1x32x32xf32>
    %607 = vector.shape_cast %606 : vector<1x32x32xf32> to vector<32x32xf32>
    %608 = vector.extract_strided_slice %568 {offsets = [0, 6], sizes = [32, 1], strides = [1, 1]} : vector<32x9xf32> to vector<32x1xf32>
    %609 = vector.broadcast %608 : vector<32x1xf32> to vector<32x32xf32>
    %610 = arith.mulf %607, %609 : vector<32x32xf32>
    %611 = arith.addf %605, %610 : vector<32x32xf32>
    %c7_271 = arith.constant 7 : index
    %c0_272 = arith.constant 0 : index
    %c0_273 = arith.constant 0 : index
    %612 = vector.load %arg4[%c7_271, %c0_272, %c0_273] : memref<9x32x32xf32, #tpu.memory_space<vmem>>, vector<1x32x32xf32>
    %613 = vector.shape_cast %612 : vector<1x32x32xf32> to vector<32x32xf32>
    %614 = vector.extract_strided_slice %568 {offsets = [0, 7], sizes = [32, 1], strides = [1, 1]} : vector<32x9xf32> to vector<32x1xf32>
    %615 = vector.broadcast %614 : vector<32x1xf32> to vector<32x32xf32>
    %616 = arith.mulf %613, %615 : vector<32x32xf32>
    %617 = arith.addf %611, %616 : vector<32x32xf32>
    %c8_274 = arith.constant 8 : index
    %c0_275 = arith.constant 0 : index
    %c0_276 = arith.constant 0 : index
    %618 = vector.load %arg4[%c8_274, %c0_275, %c0_276] : memref<9x32x32xf32, #tpu.memory_space<vmem>>, vector<1x32x32xf32>
    %619 = vector.shape_cast %618 : vector<1x32x32xf32> to vector<32x32xf32>
    %620 = vector.extract_strided_slice %568 {offsets = [0, 8], sizes = [32, 1], strides = [1, 1]} : vector<32x9xf32> to vector<32x1xf32>
    %621 = vector.broadcast %620 : vector<32x1xf32> to vector<32x32xf32>
    %622 = arith.mulf %619, %621 : vector<32x32xf32>
    %623 = arith.addf %617, %622 : vector<32x32xf32>
    %cst_277 = arith.constant -1.000000e+04 : f32
    %624 = vector.broadcast %cst_277 : f32 to vector<32x32xf32>
    %625 = arith.select %5, %623, %624 : vector<32x32xi1>, vector<32x32xf32>
    %cst_278 = arith.constant dense<0xFF800000> : vector<32xf32>
    %626 = vector.multi_reduction <maximumf>, %625, %cst_278 [1] : vector<32x32xf32> to vector<32xf32>
    %627 = vector.shape_cast %626 : vector<32xf32> to vector<32x1xf32>
    %628 = vector.broadcast %627 : vector<32x1xf32> to vector<32x32xf32>
    %629 = arith.subf %625, %628 : vector<32x32xf32>
    %630 = math.exp %629 : vector<32x32xf32>
    %cst_279 = arith.constant dense<0.000000e+00> : vector<32xf32>
    %631 = vector.multi_reduction <add>, %630, %cst_279 [1] : vector<32x32xf32> to vector<32xf32>
    %632 = vector.shape_cast %631 : vector<32xf32> to vector<32x1xf32>
    %633 = tpu.reciprocal %632 {approx = true} : vector<32x1xf32> -> vector<32x1xf32>
    %634 = vector.broadcast %633 : vector<32x1xf32> to vector<32x32xf32>
    %635 = arith.mulf %630, %634 : vector<32x32xf32>
    %cst_280 = arith.constant dense<0.000000e+00> : vector<32x16xf32>
    %636 = tpu.matmul %635, %567, %cst_280 {dimension_numbers = #tpu.dot_dimension_numbers<[1], [0], [0], [1], [0, 0, 1, 1], [], []>} : vector<32x32xf32>, vector<32x16xf32>, vector<32x16xf32> -> vector<32x16xf32>
    %c2_281 = arith.constant 2 : index
    %c384_282 = arith.constant 384 : index
    %c0_283 = arith.constant 0 : index
    %637 = vector.load %arg6[%c2_281, %c384_282, %c0_283] : memref<4x440x64xf32, #tpu.memory_space<vmem>>, vector<1x9x16xf32>
    %638 = vector.shape_cast %637 : vector<1x9x16xf32> to vector<9x16xf32>
    %c0_284 = arith.constant 0 : index
    %c0_285 = arith.constant 0 : index
    %c0_286 = arith.constant 0 : index
    %639 = vector.load %arg4[%c0_284, %c0_285, %c0_286] : memref<9x32x32xf32, #tpu.memory_space<vmem>>, vector<1x32x32xf32>
    %640 = vector.shape_cast %639 : vector<1x32x32xf32> to vector<32x32xf32>
    %641 = arith.mulf %640, %635 : vector<32x32xf32>
    %cst_287 = arith.constant dense<0.000000e+00> : vector<32xf32>
    %642 = vector.multi_reduction <add>, %641, %cst_287 [1] : vector<32x32xf32> to vector<32xf32>
    %643 = vector.shape_cast %642 : vector<32xf32> to vector<32x1xf32>
    %644 = vector.extract_strided_slice %638 {offsets = [0, 0], sizes = [1, 16], strides = [1, 1]} : vector<9x16xf32> to vector<1x16xf32>
    %645 = vector.broadcast %643 : vector<32x1xf32> to vector<32x16xf32>
    %646 = vector.broadcast %644 : vector<1x16xf32> to vector<32x16xf32>
    %647 = arith.mulf %645, %646 : vector<32x16xf32>
    %648 = arith.addf %636, %647 : vector<32x16xf32>
    %c1_288 = arith.constant 1 : index
    %c0_289 = arith.constant 0 : index
    %c0_290 = arith.constant 0 : index
    %649 = vector.load %arg4[%c1_288, %c0_289, %c0_290] : memref<9x32x32xf32, #tpu.memory_space<vmem>>, vector<1x32x32xf32>
    %650 = vector.shape_cast %649 : vector<1x32x32xf32> to vector<32x32xf32>
    %651 = arith.mulf %650, %635 : vector<32x32xf32>
    %cst_291 = arith.constant dense<0.000000e+00> : vector<32xf32>
    %652 = vector.multi_reduction <add>, %651, %cst_291 [1] : vector<32x32xf32> to vector<32xf32>
    %653 = vector.shape_cast %652 : vector<32xf32> to vector<32x1xf32>
    %654 = vector.extract_strided_slice %638 {offsets = [1, 0], sizes = [1, 16], strides = [1, 1]} : vector<9x16xf32> to vector<1x16xf32>
    %655 = vector.broadcast %653 : vector<32x1xf32> to vector<32x16xf32>
    %656 = vector.broadcast %654 : vector<1x16xf32> to vector<32x16xf32>
    %657 = arith.mulf %655, %656 : vector<32x16xf32>
    %658 = arith.addf %648, %657 : vector<32x16xf32>
    %c2_292 = arith.constant 2 : index
    %c0_293 = arith.constant 0 : index
    %c0_294 = arith.constant 0 : index
    %659 = vector.load %arg4[%c2_292, %c0_293, %c0_294] : memref<9x32x32xf32, #tpu.memory_space<vmem>>, vector<1x32x32xf32>
    %660 = vector.shape_cast %659 : vector<1x32x32xf32> to vector<32x32xf32>
    %661 = arith.mulf %660, %635 : vector<32x32xf32>
    %cst_295 = arith.constant dense<0.000000e+00> : vector<32xf32>
    %662 = vector.multi_reduction <add>, %661, %cst_295 [1] : vector<32x32xf32> to vector<32xf32>
    %663 = vector.shape_cast %662 : vector<32xf32> to vector<32x1xf32>
    %664 = vector.extract_strided_slice %638 {offsets = [2, 0], sizes = [1, 16], strides = [1, 1]} : vector<9x16xf32> to vector<1x16xf32>
    %665 = vector.broadcast %663 : vector<32x1xf32> to vector<32x16xf32>
    %666 = vector.broadcast %664 : vector<1x16xf32> to vector<32x16xf32>
    %667 = arith.mulf %665, %666 : vector<32x16xf32>
    %668 = arith.addf %658, %667 : vector<32x16xf32>
    %c3_296 = arith.constant 3 : index
    %c0_297 = arith.constant 0 : index
    %c0_298 = arith.constant 0 : index
    %669 = vector.load %arg4[%c3_296, %c0_297, %c0_298] : memref<9x32x32xf32, #tpu.memory_space<vmem>>, vector<1x32x32xf32>
    %670 = vector.shape_cast %669 : vector<1x32x32xf32> to vector<32x32xf32>
    %671 = arith.mulf %670, %635 : vector<32x32xf32>
    %cst_299 = arith.constant dense<0.000000e+00> : vector<32xf32>
    %672 = vector.multi_reduction <add>, %671, %cst_299 [1] : vector<32x32xf32> to vector<32xf32>
    %673 = vector.shape_cast %672 : vector<32xf32> to vector<32x1xf32>
    %674 = vector.extract_strided_slice %638 {offsets = [3, 0], sizes = [1, 16], strides = [1, 1]} : vector<9x16xf32> to vector<1x16xf32>
    %675 = vector.broadcast %673 : vector<32x1xf32> to vector<32x16xf32>
    %676 = vector.broadcast %674 : vector<1x16xf32> to vector<32x16xf32>
    %677 = arith.mulf %675, %676 : vector<32x16xf32>
    %678 = arith.addf %668, %677 : vector<32x16xf32>
    %c4_300 = arith.constant 4 : index
    %c0_301 = arith.constant 0 : index
    %c0_302 = arith.constant 0 : index
    %679 = vector.load %arg4[%c4_300, %c0_301, %c0_302] : memref<9x32x32xf32, #tpu.memory_space<vmem>>, vector<1x32x32xf32>
    %680 = vector.shape_cast %679 : vector<1x32x32xf32> to vector<32x32xf32>
    %681 = arith.mulf %680, %635 : vector<32x32xf32>
    %cst_303 = arith.constant dense<0.000000e+00> : vector<32xf32>
    %682 = vector.multi_reduction <add>, %681, %cst_303 [1] : vector<32x32xf32> to vector<32xf32>
    %683 = vector.shape_cast %682 : vector<32xf32> to vector<32x1xf32>
    %684 = vector.extract_strided_slice %638 {offsets = [4, 0], sizes = [1, 16], strides = [1, 1]} : vector<9x16xf32> to vector<1x16xf32>
    %685 = vector.broadcast %683 : vector<32x1xf32> to vector<32x16xf32>
    %686 = vector.broadcast %684 : vector<1x16xf32> to vector<32x16xf32>
    %687 = arith.mulf %685, %686 : vector<32x16xf32>
    %688 = arith.addf %678, %687 : vector<32x16xf32>
    %c5_304 = arith.constant 5 : index
    %c0_305 = arith.constant 0 : index
    %c0_306 = arith.constant 0 : index
    %689 = vector.load %arg4[%c5_304, %c0_305, %c0_306] : memref<9x32x32xf32, #tpu.memory_space<vmem>>, vector<1x32x32xf32>
    %690 = vector.shape_cast %689 : vector<1x32x32xf32> to vector<32x32xf32>
    %691 = arith.mulf %690, %635 : vector<32x32xf32>
    %cst_307 = arith.constant dense<0.000000e+00> : vector<32xf32>
    %692 = vector.multi_reduction <add>, %691, %cst_307 [1] : vector<32x32xf32> to vector<32xf32>
    %693 = vector.shape_cast %692 : vector<32xf32> to vector<32x1xf32>
    %694 = vector.extract_strided_slice %638 {offsets = [5, 0], sizes = [1, 16], strides = [1, 1]} : vector<9x16xf32> to vector<1x16xf32>
    %695 = vector.broadcast %693 : vector<32x1xf32> to vector<32x16xf32>
    %696 = vector.broadcast %694 : vector<1x16xf32> to vector<32x16xf32>
    %697 = arith.mulf %695, %696 : vector<32x16xf32>
    %698 = arith.addf %688, %697 : vector<32x16xf32>
    %c6_308 = arith.constant 6 : index
    %c0_309 = arith.constant 0 : index
    %c0_310 = arith.constant 0 : index
    %699 = vector.load %arg4[%c6_308, %c0_309, %c0_310] : memref<9x32x32xf32, #tpu.memory_space<vmem>>, vector<1x32x32xf32>
    %700 = vector.shape_cast %699 : vector<1x32x32xf32> to vector<32x32xf32>
    %701 = arith.mulf %700, %635 : vector<32x32xf32>
    %cst_311 = arith.constant dense<0.000000e+00> : vector<32xf32>
    %702 = vector.multi_reduction <add>, %701, %cst_311 [1] : vector<32x32xf32> to vector<32xf32>
    %703 = vector.shape_cast %702 : vector<32xf32> to vector<32x1xf32>
    %704 = vector.extract_strided_slice %638 {offsets = [6, 0], sizes = [1, 16], strides = [1, 1]} : vector<9x16xf32> to vector<1x16xf32>
    %705 = vector.broadcast %703 : vector<32x1xf32> to vector<32x16xf32>
    %706 = vector.broadcast %704 : vector<1x16xf32> to vector<32x16xf32>
    %707 = arith.mulf %705, %706 : vector<32x16xf32>
    %708 = arith.addf %698, %707 : vector<32x16xf32>
    %c7_312 = arith.constant 7 : index
    %c0_313 = arith.constant 0 : index
    %c0_314 = arith.constant 0 : index
    %709 = vector.load %arg4[%c7_312, %c0_313, %c0_314] : memref<9x32x32xf32, #tpu.memory_space<vmem>>, vector<1x32x32xf32>
    %710 = vector.shape_cast %709 : vector<1x32x32xf32> to vector<32x32xf32>
    %711 = arith.mulf %710, %635 : vector<32x32xf32>
    %cst_315 = arith.constant dense<0.000000e+00> : vector<32xf32>
    %712 = vector.multi_reduction <add>, %711, %cst_315 [1] : vector<32x32xf32> to vector<32xf32>
    %713 = vector.shape_cast %712 : vector<32xf32> to vector<32x1xf32>
    %714 = vector.extract_strided_slice %638 {offsets = [7, 0], sizes = [1, 16], strides = [1, 1]} : vector<9x16xf32> to vector<1x16xf32>
    %715 = vector.broadcast %713 : vector<32x1xf32> to vector<32x16xf32>
    %716 = vector.broadcast %714 : vector<1x16xf32> to vector<32x16xf32>
    %717 = arith.mulf %715, %716 : vector<32x16xf32>
    %718 = arith.addf %708, %717 : vector<32x16xf32>
    %c8_316 = arith.constant 8 : index
    %c0_317 = arith.constant 0 : index
    %c0_318 = arith.constant 0 : index
    %719 = vector.load %arg4[%c8_316, %c0_317, %c0_318] : memref<9x32x32xf32, #tpu.memory_space<vmem>>, vector<1x32x32xf32>
    %720 = vector.shape_cast %719 : vector<1x32x32xf32> to vector<32x32xf32>
    %721 = arith.mulf %720, %635 : vector<32x32xf32>
    %cst_319 = arith.constant dense<0.000000e+00> : vector<32xf32>
    %722 = vector.multi_reduction <add>, %721, %cst_319 [1] : vector<32x32xf32> to vector<32xf32>
    %723 = vector.shape_cast %722 : vector<32xf32> to vector<32x1xf32>
    %724 = vector.extract_strided_slice %638 {offsets = [8, 0], sizes = [1, 16], strides = [1, 1]} : vector<9x16xf32> to vector<1x16xf32>
    %725 = vector.broadcast %723 : vector<32x1xf32> to vector<32x16xf32>
    %726 = vector.broadcast %724 : vector<1x16xf32> to vector<32x16xf32>
    %727 = arith.mulf %725, %726 : vector<32x16xf32>
    %728 = arith.addf %718, %727 : vector<32x16xf32>
    %729 = vector.extract_strided_slice %728 {offsets = [0, 0], sizes = [16, 16], strides = [1, 1]} : vector<32x16xf32> to vector<16x16xf32>
    %730 = vector.extract_strided_slice %728 {offsets = [16, 0], sizes = [16, 16], strides = [1, 1]} : vector<32x16xf32> to vector<16x16xf32>
    %731 = tpu.concatenate %729, %730 in 1 : vector<16x16xf32>, vector<16x16xf32> -> vector<16x32xf32>
    %c2_320 = arith.constant 2 : index
    %c64_321 = arith.constant 64 : index
    %c0_322 = arith.constant 0 : index
    %732 = vector.load %arg6[%c2_320, %c64_321, %c0_322] : memref<4x440x64xf32, #tpu.memory_space<vmem>>, vector<1x32x32xf32>
    %733 = vector.shape_cast %732 : vector<1x32x32xf32> to vector<32x32xf32>
    %cst_323 = arith.constant dense<0.000000e+00> : vector<16x32xf32>
    %734 = tpu.matmul %731, %733, %cst_323 {dimension_numbers = #tpu.dot_dimension_numbers<[1], [0], [0], [1], [0, 0, 1, 1], [], []>} : vector<16x32xf32>, vector<32x32xf32>, vector<16x32xf32> -> vector<16x32xf32>
    %c2_324 = arith.constant 2 : index
    %c32_325 = arith.constant 32 : index
    %c0_326 = arith.constant 0 : index
    %735 = vector.load %arg7[%c2_324, %c32_325, %c0_326] : memref<4x40x64xf32, #tpu.memory_space<vmem>>, vector<1x1x32xf32>
    %736 = vector.shape_cast %735 : vector<1x1x32xf32> to vector<1x32xf32>
    %737 = vector.broadcast %736 : vector<1x32xf32> to vector<16x32xf32>
    %738 = arith.addf %734, %737 : vector<16x32xf32>
    %739 = arith.addf %555, %738 : vector<16x32xf32>
    %c2_327 = arith.constant 2 : index
    %c35_328 = arith.constant 35 : index
    %c0_329 = arith.constant 0 : index
    %740 = vector.load %arg7[%c2_327, %c35_328, %c0_329] : memref<4x40x64xf32, #tpu.memory_space<vmem>>, vector<1x1x32xf32>
    %741 = vector.shape_cast %740 : vector<1x1x32xf32> to vector<1x32xf32>
    %c2_330 = arith.constant 2 : index
    %c36_331 = arith.constant 36 : index
    %c0_332 = arith.constant 0 : index
    %742 = vector.load %arg7[%c2_330, %c36_331, %c0_332] : memref<4x40x64xf32, #tpu.memory_space<vmem>>, vector<1x1x32xf32>
    %743 = vector.shape_cast %742 : vector<1x1x32xf32> to vector<1x32xf32>
    %cst_333 = arith.constant dense<0.000000e+00> : vector<16xf32>
    %744 = vector.multi_reduction <add>, %739, %cst_333 [1] : vector<16x32xf32> to vector<16xf32>
    %745 = vector.shape_cast %744 : vector<16xf32> to vector<16x1xf32>
    %cst_334 = arith.constant 3.200000e+01 : f32
    %746 = vector.broadcast %cst_334 : f32 to vector<16x1xf32>
    %747 = arith.divf %745, %746 : vector<16x1xf32>
    %748 = vector.broadcast %747 : vector<16x1xf32> to vector<16x32xf32>
    %749 = arith.subf %739, %748 : vector<16x32xf32>
    %750 = arith.mulf %749, %749 : vector<16x32xf32>
    %cst_335 = arith.constant dense<0.000000e+00> : vector<16xf32>
    %751 = vector.multi_reduction <add>, %750, %cst_335 [1] : vector<16x32xf32> to vector<16xf32>
    %752 = vector.shape_cast %751 : vector<16xf32> to vector<16x1xf32>
    %cst_336 = arith.constant 3.200000e+01 : f32
    %753 = vector.broadcast %cst_336 : f32 to vector<16x1xf32>
    %754 = arith.divf %752, %753 : vector<16x1xf32>
    %cst_337 = arith.constant 9.99999974E-5 : f32
    %755 = vector.broadcast %cst_337 : f32 to vector<16x1xf32>
    %756 = arith.addf %754, %755 : vector<16x1xf32>
    %757 = math.rsqrt %756 : vector<16x1xf32>
    %758 = vector.broadcast %757 : vector<16x1xf32> to vector<16x32xf32>
    %759 = arith.mulf %749, %758 : vector<16x32xf32>
    %760 = vector.broadcast %741 : vector<1x32xf32> to vector<16x32xf32>
    %761 = arith.mulf %759, %760 : vector<16x32xf32>
    %762 = vector.broadcast %743 : vector<1x32xf32> to vector<16x32xf32>
    %763 = arith.addf %761, %762 : vector<16x32xf32>
    %764 = vector.broadcast %1 : vector<16x1xf32> to vector<16x32xf32>
    %765 = arith.mulf %763, %764 : vector<16x32xf32>
    %766 = vector.extract_strided_slice %765 {offsets = [0, 0], sizes = [15, 32], strides = [1, 1]} : vector<16x32xf32> to vector<15x32xf32>
    %767 = tpu.concatenate %7, %766 in 0 : vector<1x32xf32>, vector<15x32xf32> -> vector<16x32xf32>
    %768 = vector.extract_strided_slice %765 {offsets = [1, 0], sizes = [15, 32], strides = [1, 1]} : vector<16x32xf32> to vector<15x32xf32>
    %769 = tpu.concatenate %768, %7 in 0 : vector<15x32xf32>, vector<1x32xf32> -> vector<16x32xf32>
    %770 = tpu.concatenate %767, %765, %769 in 1 : vector<16x32xf32>, vector<16x32xf32>, vector<16x32xf32> -> vector<16x96xf32>
    %c2_338 = arith.constant 2 : index
    %c96_339 = arith.constant 96 : index
    %c0_340 = arith.constant 0 : index
    %771 = vector.load %arg6[%c2_338, %c96_339, %c0_340] : memref<4x440x64xf32, #tpu.memory_space<vmem>>, vector<1x96x64xf32>
    %772 = vector.shape_cast %771 : vector<1x96x64xf32> to vector<96x64xf32>
    %cst_341 = arith.constant dense<0.000000e+00> : vector<16x64xf32>
    %773 = tpu.matmul %770, %772, %cst_341 {dimension_numbers = #tpu.dot_dimension_numbers<[1], [0], [0], [1], [0, 0, 1, 1], [], []>} : vector<16x96xf32>, vector<96x64xf32>, vector<16x64xf32> -> vector<16x64xf32>
    %c2_342 = arith.constant 2 : index
    %c33_343 = arith.constant 33 : index
    %c0_344 = arith.constant 0 : index
    %774 = vector.load %arg7[%c2_342, %c33_343, %c0_344] : memref<4x40x64xf32, #tpu.memory_space<vmem>>, vector<1x1x64xf32>
    %775 = vector.shape_cast %774 : vector<1x1x64xf32> to vector<1x64xf32>
    %776 = vector.broadcast %775 : vector<1x64xf32> to vector<16x64xf32>
    %777 = arith.addf %773, %776 : vector<16x64xf32>
    %cst_345 = arith.constant 0.000000e+00 : f32
    %778 = vector.broadcast %cst_345 : f32 to vector<16x64xf32>
    %779 = arith.maximumf %777, %778 : vector<16x64xf32>
    %780 = vector.broadcast %1 : vector<16x1xf32> to vector<16x64xf32>
    %781 = arith.mulf %779, %780 : vector<16x64xf32>
    %782 = vector.extract_strided_slice %781 {offsets = [0, 0], sizes = [15, 64], strides = [1, 1]} : vector<16x64xf32> to vector<15x64xf32>
    %783 = tpu.concatenate %8, %782 in 0 : vector<1x64xf32>, vector<15x64xf32> -> vector<16x64xf32>
    %784 = vector.extract_strided_slice %781 {offsets = [1, 0], sizes = [15, 64], strides = [1, 1]} : vector<16x64xf32> to vector<15x64xf32>
    %785 = tpu.concatenate %784, %8 in 0 : vector<15x64xf32>, vector<1x64xf32> -> vector<16x64xf32>
    %786 = tpu.concatenate %783, %781, %785 in 1 : vector<16x64xf32>, vector<16x64xf32>, vector<16x64xf32> -> vector<16x192xf32>
    %c2_346 = arith.constant 2 : index
    %c192_347 = arith.constant 192 : index
    %c0_348 = arith.constant 0 : index
    %787 = vector.load %arg6[%c2_346, %c192_347, %c0_348] : memref<4x440x64xf32, #tpu.memory_space<vmem>>, vector<1x192x32xf32>
    %788 = vector.shape_cast %787 : vector<1x192x32xf32> to vector<192x32xf32>
    %cst_349 = arith.constant dense<0.000000e+00> : vector<16x32xf32>
    %789 = tpu.matmul %786, %788, %cst_349 {dimension_numbers = #tpu.dot_dimension_numbers<[1], [0], [0], [1], [0, 0, 1, 1], [], []>} : vector<16x192xf32>, vector<192x32xf32>, vector<16x32xf32> -> vector<16x32xf32>
    %c2_350 = arith.constant 2 : index
    %c34_351 = arith.constant 34 : index
    %c0_352 = arith.constant 0 : index
    %790 = vector.load %arg7[%c2_350, %c34_351, %c0_352] : memref<4x40x64xf32, #tpu.memory_space<vmem>>, vector<1x1x32xf32>
    %791 = vector.shape_cast %790 : vector<1x1x32xf32> to vector<1x32xf32>
    %792 = vector.broadcast %791 : vector<1x32xf32> to vector<16x32xf32>
    %793 = arith.addf %789, %792 : vector<16x32xf32>
    %794 = vector.broadcast %1 : vector<16x1xf32> to vector<16x32xf32>
    %795 = arith.mulf %793, %794 : vector<16x32xf32>
    %796 = arith.addf %763, %795 : vector<16x32xf32>
    %c2_353 = arith.constant 2 : index
    %c37_354 = arith.constant 37 : index
    %c0_355 = arith.constant 0 : index
    %797 = vector.load %arg7[%c2_353, %c37_354, %c0_355] : memref<4x40x64xf32, #tpu.memory_space<vmem>>, vector<1x1x32xf32>
    %798 = vector.shape_cast %797 : vector<1x1x32xf32> to vector<1x32xf32>
    %c2_356 = arith.constant 2 : index
    %c38_357 = arith.constant 38 : index
    %c0_358 = arith.constant 0 : index
    %799 = vector.load %arg7[%c2_356, %c38_357, %c0_358] : memref<4x40x64xf32, #tpu.memory_space<vmem>>, vector<1x1x32xf32>
    %800 = vector.shape_cast %799 : vector<1x1x32xf32> to vector<1x32xf32>
    %cst_359 = arith.constant dense<0.000000e+00> : vector<16xf32>
    %801 = vector.multi_reduction <add>, %796, %cst_359 [1] : vector<16x32xf32> to vector<16xf32>
    %802 = vector.shape_cast %801 : vector<16xf32> to vector<16x1xf32>
    %cst_360 = arith.constant 3.200000e+01 : f32
    %803 = vector.broadcast %cst_360 : f32 to vector<16x1xf32>
    %804 = arith.divf %802, %803 : vector<16x1xf32>
    %805 = vector.broadcast %804 : vector<16x1xf32> to vector<16x32xf32>
    %806 = arith.subf %796, %805 : vector<16x32xf32>
    %807 = arith.mulf %806, %806 : vector<16x32xf32>
    %cst_361 = arith.constant dense<0.000000e+00> : vector<16xf32>
    %808 = vector.multi_reduction <add>, %807, %cst_361 [1] : vector<16x32xf32> to vector<16xf32>
    %809 = vector.shape_cast %808 : vector<16xf32> to vector<16x1xf32>
    %cst_362 = arith.constant 3.200000e+01 : f32
    %810 = vector.broadcast %cst_362 : f32 to vector<16x1xf32>
    %811 = arith.divf %809, %810 : vector<16x1xf32>
    %cst_363 = arith.constant 9.99999974E-5 : f32
    %812 = vector.broadcast %cst_363 : f32 to vector<16x1xf32>
    %813 = arith.addf %811, %812 : vector<16x1xf32>
    %814 = math.rsqrt %813 : vector<16x1xf32>
    %815 = vector.broadcast %814 : vector<16x1xf32> to vector<16x32xf32>
    %816 = arith.mulf %806, %815 : vector<16x32xf32>
    %817 = vector.broadcast %798 : vector<1x32xf32> to vector<16x32xf32>
    %818 = arith.mulf %816, %817 : vector<16x32xf32>
    %819 = vector.broadcast %800 : vector<1x32xf32> to vector<16x32xf32>
    %820 = arith.addf %818, %819 : vector<16x32xf32>
    %821 = vector.broadcast %1 : vector<16x1xf32> to vector<16x32xf32>
    %822 = arith.mulf %820, %821 : vector<16x32xf32>
    %823 = tpu.concatenate %822, %6 in 1 : vector<16x32xf32>, vector<16x32xf32> -> vector<16x64xf32>
    %824 = tpu.concatenate %6, %822 in 1 : vector<16x32xf32>, vector<16x32xf32> -> vector<16x64xf32>
    %825 = tpu.concatenate %823, %824 in 0 : vector<16x64xf32>, vector<16x64xf32> -> vector<32x64xf32>
    %c3_364 = arith.constant 3 : index
    %c0_365 = arith.constant 0 : index
    %c0_366 = arith.constant 0 : index
    %826 = vector.load %arg6[%c3_364, %c0_365, %c0_366] : memref<4x440x64xf32, #tpu.memory_space<vmem>>, vector<1x64x64xf32>
    %827 = vector.shape_cast %826 : vector<1x64x64xf32> to vector<64x64xf32>
    %cst_367 = arith.constant dense<0.000000e+00> : vector<32x64xf32>
    %828 = tpu.matmul %825, %827, %cst_367 {dimension_numbers = #tpu.dot_dimension_numbers<[1], [0], [0], [1], [0, 0, 1, 1], [], []>} : vector<32x64xf32>, vector<64x64xf32>, vector<32x64xf32> -> vector<32x64xf32>
    %c3_368 = arith.constant 3 : index
    %c0_369 = arith.constant 0 : index
    %c0_370 = arith.constant 0 : index
    %829 = vector.load %arg7[%c3_368, %c0_369, %c0_370] : memref<4x40x64xf32, #tpu.memory_space<vmem>>, vector<1x32x64xf32>
    %830 = vector.shape_cast %829 : vector<1x32x64xf32> to vector<32x64xf32>
    %831 = arith.addf %828, %830 : vector<32x64xf32>
    %832 = vector.extract_strided_slice %831 {offsets = [0, 0], sizes = [32, 16], strides = [1, 1]} : vector<32x64xf32> to vector<32x16xf32>
    %833 = vector.extract_strided_slice %831 {offsets = [0, 16], sizes = [32, 16], strides = [1, 1]} : vector<32x64xf32> to vector<32x16xf32>
    %834 = vector.extract_strided_slice %831 {offsets = [0, 32], sizes = [32, 16], strides = [1, 1]} : vector<32x64xf32> to vector<32x16xf32>
    %835 = vector.extract_strided_slice %831 {offsets = [0, 48], sizes = [32, 9], strides = [1, 1]} : vector<32x64xf32> to vector<32x9xf32>
    %cst_371 = arith.constant dense<0.000000e+00> : vector<32x32xf32>
    %836 = tpu.matmul %832, %833, %cst_371 {dimension_numbers = #tpu.dot_dimension_numbers<[1], [1], [0], [0], [0, 0, 1, 0], [], []>} : vector<32x16xf32>, vector<32x16xf32>, vector<32x32xf32> -> vector<32x32xf32>
    %c0_372 = arith.constant 0 : index
    %c0_373 = arith.constant 0 : index
    %c0_374 = arith.constant 0 : index
    %837 = vector.load %arg4[%c0_372, %c0_373, %c0_374] : memref<9x32x32xf32, #tpu.memory_space<vmem>>, vector<1x32x32xf32>
    %838 = vector.shape_cast %837 : vector<1x32x32xf32> to vector<32x32xf32>
    %839 = vector.extract_strided_slice %835 {offsets = [0, 0], sizes = [32, 1], strides = [1, 1]} : vector<32x9xf32> to vector<32x1xf32>
    %840 = vector.broadcast %839 : vector<32x1xf32> to vector<32x32xf32>
    %841 = arith.mulf %838, %840 : vector<32x32xf32>
    %842 = arith.addf %836, %841 : vector<32x32xf32>
    %c1_375 = arith.constant 1 : index
    %c0_376 = arith.constant 0 : index
    %c0_377 = arith.constant 0 : index
    %843 = vector.load %arg4[%c1_375, %c0_376, %c0_377] : memref<9x32x32xf32, #tpu.memory_space<vmem>>, vector<1x32x32xf32>
    %844 = vector.shape_cast %843 : vector<1x32x32xf32> to vector<32x32xf32>
    %845 = vector.extract_strided_slice %835 {offsets = [0, 1], sizes = [32, 1], strides = [1, 1]} : vector<32x9xf32> to vector<32x1xf32>
    %846 = vector.broadcast %845 : vector<32x1xf32> to vector<32x32xf32>
    %847 = arith.mulf %844, %846 : vector<32x32xf32>
    %848 = arith.addf %842, %847 : vector<32x32xf32>
    %c2_378 = arith.constant 2 : index
    %c0_379 = arith.constant 0 : index
    %c0_380 = arith.constant 0 : index
    %849 = vector.load %arg4[%c2_378, %c0_379, %c0_380] : memref<9x32x32xf32, #tpu.memory_space<vmem>>, vector<1x32x32xf32>
    %850 = vector.shape_cast %849 : vector<1x32x32xf32> to vector<32x32xf32>
    %851 = vector.extract_strided_slice %835 {offsets = [0, 2], sizes = [32, 1], strides = [1, 1]} : vector<32x9xf32> to vector<32x1xf32>
    %852 = vector.broadcast %851 : vector<32x1xf32> to vector<32x32xf32>
    %853 = arith.mulf %850, %852 : vector<32x32xf32>
    %854 = arith.addf %848, %853 : vector<32x32xf32>
    %c3_381 = arith.constant 3 : index
    %c0_382 = arith.constant 0 : index
    %c0_383 = arith.constant 0 : index
    %855 = vector.load %arg4[%c3_381, %c0_382, %c0_383] : memref<9x32x32xf32, #tpu.memory_space<vmem>>, vector<1x32x32xf32>
    %856 = vector.shape_cast %855 : vector<1x32x32xf32> to vector<32x32xf32>
    %857 = vector.extract_strided_slice %835 {offsets = [0, 3], sizes = [32, 1], strides = [1, 1]} : vector<32x9xf32> to vector<32x1xf32>
    %858 = vector.broadcast %857 : vector<32x1xf32> to vector<32x32xf32>
    %859 = arith.mulf %856, %858 : vector<32x32xf32>
    %860 = arith.addf %854, %859 : vector<32x32xf32>
    %c4_384 = arith.constant 4 : index
    %c0_385 = arith.constant 0 : index
    %c0_386 = arith.constant 0 : index
    %861 = vector.load %arg4[%c4_384, %c0_385, %c0_386] : memref<9x32x32xf32, #tpu.memory_space<vmem>>, vector<1x32x32xf32>
    %862 = vector.shape_cast %861 : vector<1x32x32xf32> to vector<32x32xf32>
    %863 = vector.extract_strided_slice %835 {offsets = [0, 4], sizes = [32, 1], strides = [1, 1]} : vector<32x9xf32> to vector<32x1xf32>
    %864 = vector.broadcast %863 : vector<32x1xf32> to vector<32x32xf32>
    %865 = arith.mulf %862, %864 : vector<32x32xf32>
    %866 = arith.addf %860, %865 : vector<32x32xf32>
    %c5_387 = arith.constant 5 : index
    %c0_388 = arith.constant 0 : index
    %c0_389 = arith.constant 0 : index
    %867 = vector.load %arg4[%c5_387, %c0_388, %c0_389] : memref<9x32x32xf32, #tpu.memory_space<vmem>>, vector<1x32x32xf32>
    %868 = vector.shape_cast %867 : vector<1x32x32xf32> to vector<32x32xf32>
    %869 = vector.extract_strided_slice %835 {offsets = [0, 5], sizes = [32, 1], strides = [1, 1]} : vector<32x9xf32> to vector<32x1xf32>
    %870 = vector.broadcast %869 : vector<32x1xf32> to vector<32x32xf32>
    %871 = arith.mulf %868, %870 : vector<32x32xf32>
    %872 = arith.addf %866, %871 : vector<32x32xf32>
    %c6_390 = arith.constant 6 : index
    %c0_391 = arith.constant 0 : index
    %c0_392 = arith.constant 0 : index
    %873 = vector.load %arg4[%c6_390, %c0_391, %c0_392] : memref<9x32x32xf32, #tpu.memory_space<vmem>>, vector<1x32x32xf32>
    %874 = vector.shape_cast %873 : vector<1x32x32xf32> to vector<32x32xf32>
    %875 = vector.extract_strided_slice %835 {offsets = [0, 6], sizes = [32, 1], strides = [1, 1]} : vector<32x9xf32> to vector<32x1xf32>
    %876 = vector.broadcast %875 : vector<32x1xf32> to vector<32x32xf32>
    %877 = arith.mulf %874, %876 : vector<32x32xf32>
    %878 = arith.addf %872, %877 : vector<32x32xf32>
    %c7_393 = arith.constant 7 : index
    %c0_394 = arith.constant 0 : index
    %c0_395 = arith.constant 0 : index
    %879 = vector.load %arg4[%c7_393, %c0_394, %c0_395] : memref<9x32x32xf32, #tpu.memory_space<vmem>>, vector<1x32x32xf32>
    %880 = vector.shape_cast %879 : vector<1x32x32xf32> to vector<32x32xf32>
    %881 = vector.extract_strided_slice %835 {offsets = [0, 7], sizes = [32, 1], strides = [1, 1]} : vector<32x9xf32> to vector<32x1xf32>
    %882 = vector.broadcast %881 : vector<32x1xf32> to vector<32x32xf32>
    %883 = arith.mulf %880, %882 : vector<32x32xf32>
    %884 = arith.addf %878, %883 : vector<32x32xf32>
    %c8_396 = arith.constant 8 : index
    %c0_397 = arith.constant 0 : index
    %c0_398 = arith.constant 0 : index
    %885 = vector.load %arg4[%c8_396, %c0_397, %c0_398] : memref<9x32x32xf32, #tpu.memory_space<vmem>>, vector<1x32x32xf32>
    %886 = vector.shape_cast %885 : vector<1x32x32xf32> to vector<32x32xf32>
    %887 = vector.extract_strided_slice %835 {offsets = [0, 8], sizes = [32, 1], strides = [1, 1]} : vector<32x9xf32> to vector<32x1xf32>
    %888 = vector.broadcast %887 : vector<32x1xf32> to vector<32x32xf32>
    %889 = arith.mulf %886, %888 : vector<32x32xf32>
    %890 = arith.addf %884, %889 : vector<32x32xf32>
    %cst_399 = arith.constant -1.000000e+04 : f32
    %891 = vector.broadcast %cst_399 : f32 to vector<32x32xf32>
    %892 = arith.select %5, %890, %891 : vector<32x32xi1>, vector<32x32xf32>
    %cst_400 = arith.constant dense<0xFF800000> : vector<32xf32>
    %893 = vector.multi_reduction <maximumf>, %892, %cst_400 [1] : vector<32x32xf32> to vector<32xf32>
    %894 = vector.shape_cast %893 : vector<32xf32> to vector<32x1xf32>
    %895 = vector.broadcast %894 : vector<32x1xf32> to vector<32x32xf32>
    %896 = arith.subf %892, %895 : vector<32x32xf32>
    %897 = math.exp %896 : vector<32x32xf32>
    %cst_401 = arith.constant dense<0.000000e+00> : vector<32xf32>
    %898 = vector.multi_reduction <add>, %897, %cst_401 [1] : vector<32x32xf32> to vector<32xf32>
    %899 = vector.shape_cast %898 : vector<32xf32> to vector<32x1xf32>
    %900 = tpu.reciprocal %899 {approx = true} : vector<32x1xf32> -> vector<32x1xf32>
    %901 = vector.broadcast %900 : vector<32x1xf32> to vector<32x32xf32>
    %902 = arith.mulf %897, %901 : vector<32x32xf32>
    %cst_402 = arith.constant dense<0.000000e+00> : vector<32x16xf32>
    %903 = tpu.matmul %902, %834, %cst_402 {dimension_numbers = #tpu.dot_dimension_numbers<[1], [0], [0], [1], [0, 0, 1, 1], [], []>} : vector<32x32xf32>, vector<32x16xf32>, vector<32x16xf32> -> vector<32x16xf32>
    %c3_403 = arith.constant 3 : index
    %c384_404 = arith.constant 384 : index
    %c0_405 = arith.constant 0 : index
    %904 = vector.load %arg6[%c3_403, %c384_404, %c0_405] : memref<4x440x64xf32, #tpu.memory_space<vmem>>, vector<1x9x16xf32>
    %905 = vector.shape_cast %904 : vector<1x9x16xf32> to vector<9x16xf32>
    %c0_406 = arith.constant 0 : index
    %c0_407 = arith.constant 0 : index
    %c0_408 = arith.constant 0 : index
    %906 = vector.load %arg4[%c0_406, %c0_407, %c0_408] : memref<9x32x32xf32, #tpu.memory_space<vmem>>, vector<1x32x32xf32>
    %907 = vector.shape_cast %906 : vector<1x32x32xf32> to vector<32x32xf32>
    %908 = arith.mulf %907, %902 : vector<32x32xf32>
    %cst_409 = arith.constant dense<0.000000e+00> : vector<32xf32>
    %909 = vector.multi_reduction <add>, %908, %cst_409 [1] : vector<32x32xf32> to vector<32xf32>
    %910 = vector.shape_cast %909 : vector<32xf32> to vector<32x1xf32>
    %911 = vector.extract_strided_slice %905 {offsets = [0, 0], sizes = [1, 16], strides = [1, 1]} : vector<9x16xf32> to vector<1x16xf32>
    %912 = vector.broadcast %910 : vector<32x1xf32> to vector<32x16xf32>
    %913 = vector.broadcast %911 : vector<1x16xf32> to vector<32x16xf32>
    %914 = arith.mulf %912, %913 : vector<32x16xf32>
    %915 = arith.addf %903, %914 : vector<32x16xf32>
    %c1_410 = arith.constant 1 : index
    %c0_411 = arith.constant 0 : index
    %c0_412 = arith.constant 0 : index
    %916 = vector.load %arg4[%c1_410, %c0_411, %c0_412] : memref<9x32x32xf32, #tpu.memory_space<vmem>>, vector<1x32x32xf32>
    %917 = vector.shape_cast %916 : vector<1x32x32xf32> to vector<32x32xf32>
    %918 = arith.mulf %917, %902 : vector<32x32xf32>
    %cst_413 = arith.constant dense<0.000000e+00> : vector<32xf32>
    %919 = vector.multi_reduction <add>, %918, %cst_413 [1] : vector<32x32xf32> to vector<32xf32>
    %920 = vector.shape_cast %919 : vector<32xf32> to vector<32x1xf32>
    %921 = vector.extract_strided_slice %905 {offsets = [1, 0], sizes = [1, 16], strides = [1, 1]} : vector<9x16xf32> to vector<1x16xf32>
    %922 = vector.broadcast %920 : vector<32x1xf32> to vector<32x16xf32>
    %923 = vector.broadcast %921 : vector<1x16xf32> to vector<32x16xf32>
    %924 = arith.mulf %922, %923 : vector<32x16xf32>
    %925 = arith.addf %915, %924 : vector<32x16xf32>
    %c2_414 = arith.constant 2 : index
    %c0_415 = arith.constant 0 : index
    %c0_416 = arith.constant 0 : index
    %926 = vector.load %arg4[%c2_414, %c0_415, %c0_416] : memref<9x32x32xf32, #tpu.memory_space<vmem>>, vector<1x32x32xf32>
    %927 = vector.shape_cast %926 : vector<1x32x32xf32> to vector<32x32xf32>
    %928 = arith.mulf %927, %902 : vector<32x32xf32>
    %cst_417 = arith.constant dense<0.000000e+00> : vector<32xf32>
    %929 = vector.multi_reduction <add>, %928, %cst_417 [1] : vector<32x32xf32> to vector<32xf32>
    %930 = vector.shape_cast %929 : vector<32xf32> to vector<32x1xf32>
    %931 = vector.extract_strided_slice %905 {offsets = [2, 0], sizes = [1, 16], strides = [1, 1]} : vector<9x16xf32> to vector<1x16xf32>
    %932 = vector.broadcast %930 : vector<32x1xf32> to vector<32x16xf32>
    %933 = vector.broadcast %931 : vector<1x16xf32> to vector<32x16xf32>
    %934 = arith.mulf %932, %933 : vector<32x16xf32>
    %935 = arith.addf %925, %934 : vector<32x16xf32>
    %c3_418 = arith.constant 3 : index
    %c0_419 = arith.constant 0 : index
    %c0_420 = arith.constant 0 : index
    %936 = vector.load %arg4[%c3_418, %c0_419, %c0_420] : memref<9x32x32xf32, #tpu.memory_space<vmem>>, vector<1x32x32xf32>
    %937 = vector.shape_cast %936 : vector<1x32x32xf32> to vector<32x32xf32>
    %938 = arith.mulf %937, %902 : vector<32x32xf32>
    %cst_421 = arith.constant dense<0.000000e+00> : vector<32xf32>
    %939 = vector.multi_reduction <add>, %938, %cst_421 [1] : vector<32x32xf32> to vector<32xf32>
    %940 = vector.shape_cast %939 : vector<32xf32> to vector<32x1xf32>
    %941 = vector.extract_strided_slice %905 {offsets = [3, 0], sizes = [1, 16], strides = [1, 1]} : vector<9x16xf32> to vector<1x16xf32>
    %942 = vector.broadcast %940 : vector<32x1xf32> to vector<32x16xf32>
    %943 = vector.broadcast %941 : vector<1x16xf32> to vector<32x16xf32>
    %944 = arith.mulf %942, %943 : vector<32x16xf32>
    %945 = arith.addf %935, %944 : vector<32x16xf32>
    %c4_422 = arith.constant 4 : index
    %c0_423 = arith.constant 0 : index
    %c0_424 = arith.constant 0 : index
    %946 = vector.load %arg4[%c4_422, %c0_423, %c0_424] : memref<9x32x32xf32, #tpu.memory_space<vmem>>, vector<1x32x32xf32>
    %947 = vector.shape_cast %946 : vector<1x32x32xf32> to vector<32x32xf32>
    %948 = arith.mulf %947, %902 : vector<32x32xf32>
    %cst_425 = arith.constant dense<0.000000e+00> : vector<32xf32>
    %949 = vector.multi_reduction <add>, %948, %cst_425 [1] : vector<32x32xf32> to vector<32xf32>
    %950 = vector.shape_cast %949 : vector<32xf32> to vector<32x1xf32>
    %951 = vector.extract_strided_slice %905 {offsets = [4, 0], sizes = [1, 16], strides = [1, 1]} : vector<9x16xf32> to vector<1x16xf32>
    %952 = vector.broadcast %950 : vector<32x1xf32> to vector<32x16xf32>
    %953 = vector.broadcast %951 : vector<1x16xf32> to vector<32x16xf32>
    %954 = arith.mulf %952, %953 : vector<32x16xf32>
    %955 = arith.addf %945, %954 : vector<32x16xf32>
    %c5_426 = arith.constant 5 : index
    %c0_427 = arith.constant 0 : index
    %c0_428 = arith.constant 0 : index
    %956 = vector.load %arg4[%c5_426, %c0_427, %c0_428] : memref<9x32x32xf32, #tpu.memory_space<vmem>>, vector<1x32x32xf32>
    %957 = vector.shape_cast %956 : vector<1x32x32xf32> to vector<32x32xf32>
    %958 = arith.mulf %957, %902 : vector<32x32xf32>
    %cst_429 = arith.constant dense<0.000000e+00> : vector<32xf32>
    %959 = vector.multi_reduction <add>, %958, %cst_429 [1] : vector<32x32xf32> to vector<32xf32>
    %960 = vector.shape_cast %959 : vector<32xf32> to vector<32x1xf32>
    %961 = vector.extract_strided_slice %905 {offsets = [5, 0], sizes = [1, 16], strides = [1, 1]} : vector<9x16xf32> to vector<1x16xf32>
    %962 = vector.broadcast %960 : vector<32x1xf32> to vector<32x16xf32>
    %963 = vector.broadcast %961 : vector<1x16xf32> to vector<32x16xf32>
    %964 = arith.mulf %962, %963 : vector<32x16xf32>
    %965 = arith.addf %955, %964 : vector<32x16xf32>
    %c6_430 = arith.constant 6 : index
    %c0_431 = arith.constant 0 : index
    %c0_432 = arith.constant 0 : index
    %966 = vector.load %arg4[%c6_430, %c0_431, %c0_432] : memref<9x32x32xf32, #tpu.memory_space<vmem>>, vector<1x32x32xf32>
    %967 = vector.shape_cast %966 : vector<1x32x32xf32> to vector<32x32xf32>
    %968 = arith.mulf %967, %902 : vector<32x32xf32>
    %cst_433 = arith.constant dense<0.000000e+00> : vector<32xf32>
    %969 = vector.multi_reduction <add>, %968, %cst_433 [1] : vector<32x32xf32> to vector<32xf32>
    %970 = vector.shape_cast %969 : vector<32xf32> to vector<32x1xf32>
    %971 = vector.extract_strided_slice %905 {offsets = [6, 0], sizes = [1, 16], strides = [1, 1]} : vector<9x16xf32> to vector<1x16xf32>
    %972 = vector.broadcast %970 : vector<32x1xf32> to vector<32x16xf32>
    %973 = vector.broadcast %971 : vector<1x16xf32> to vector<32x16xf32>
    %974 = arith.mulf %972, %973 : vector<32x16xf32>
    %975 = arith.addf %965, %974 : vector<32x16xf32>
    %c7_434 = arith.constant 7 : index
    %c0_435 = arith.constant 0 : index
    %c0_436 = arith.constant 0 : index
    %976 = vector.load %arg4[%c7_434, %c0_435, %c0_436] : memref<9x32x32xf32, #tpu.memory_space<vmem>>, vector<1x32x32xf32>
    %977 = vector.shape_cast %976 : vector<1x32x32xf32> to vector<32x32xf32>
    %978 = arith.mulf %977, %902 : vector<32x32xf32>
    %cst_437 = arith.constant dense<0.000000e+00> : vector<32xf32>
    %979 = vector.multi_reduction <add>, %978, %cst_437 [1] : vector<32x32xf32> to vector<32xf32>
    %980 = vector.shape_cast %979 : vector<32xf32> to vector<32x1xf32>
    %981 = vector.extract_strided_slice %905 {offsets = [7, 0], sizes = [1, 16], strides = [1, 1]} : vector<9x16xf32> to vector<1x16xf32>
    %982 = vector.broadcast %980 : vector<32x1xf32> to vector<32x16xf32>
    %983 = vector.broadcast %981 : vector<1x16xf32> to vector<32x16xf32>
    %984 = arith.mulf %982, %983 : vector<32x16xf32>
    %985 = arith.addf %975, %984 : vector<32x16xf32>
    %c8_438 = arith.constant 8 : index
    %c0_439 = arith.constant 0 : index
    %c0_440 = arith.constant 0 : index
    %986 = vector.load %arg4[%c8_438, %c0_439, %c0_440] : memref<9x32x32xf32, #tpu.memory_space<vmem>>, vector<1x32x32xf32>
    %987 = vector.shape_cast %986 : vector<1x32x32xf32> to vector<32x32xf32>
    %988 = arith.mulf %987, %902 : vector<32x32xf32>
    %cst_441 = arith.constant dense<0.000000e+00> : vector<32xf32>
    %989 = vector.multi_reduction <add>, %988, %cst_441 [1] : vector<32x32xf32> to vector<32xf32>
    %990 = vector.shape_cast %989 : vector<32xf32> to vector<32x1xf32>
    %991 = vector.extract_strided_slice %905 {offsets = [8, 0], sizes = [1, 16], strides = [1, 1]} : vector<9x16xf32> to vector<1x16xf32>
    %992 = vector.broadcast %990 : vector<32x1xf32> to vector<32x16xf32>
    %993 = vector.broadcast %991 : vector<1x16xf32> to vector<32x16xf32>
    %994 = arith.mulf %992, %993 : vector<32x16xf32>
    %995 = arith.addf %985, %994 : vector<32x16xf32>
    %996 = vector.extract_strided_slice %995 {offsets = [0, 0], sizes = [16, 16], strides = [1, 1]} : vector<32x16xf32> to vector<16x16xf32>
    %997 = vector.extract_strided_slice %995 {offsets = [16, 0], sizes = [16, 16], strides = [1, 1]} : vector<32x16xf32> to vector<16x16xf32>
    %998 = tpu.concatenate %996, %997 in 1 : vector<16x16xf32>, vector<16x16xf32> -> vector<16x32xf32>
    %c3_442 = arith.constant 3 : index
    %c64_443 = arith.constant 64 : index
    %c0_444 = arith.constant 0 : index
    %999 = vector.load %arg6[%c3_442, %c64_443, %c0_444] : memref<4x440x64xf32, #tpu.memory_space<vmem>>, vector<1x32x32xf32>
    %1000 = vector.shape_cast %999 : vector<1x32x32xf32> to vector<32x32xf32>
    %cst_445 = arith.constant dense<0.000000e+00> : vector<16x32xf32>
    %1001 = tpu.matmul %998, %1000, %cst_445 {dimension_numbers = #tpu.dot_dimension_numbers<[1], [0], [0], [1], [0, 0, 1, 1], [], []>} : vector<16x32xf32>, vector<32x32xf32>, vector<16x32xf32> -> vector<16x32xf32>
    %c3_446 = arith.constant 3 : index
    %c32_447 = arith.constant 32 : index
    %c0_448 = arith.constant 0 : index
    %1002 = vector.load %arg7[%c3_446, %c32_447, %c0_448] : memref<4x40x64xf32, #tpu.memory_space<vmem>>, vector<1x1x32xf32>
    %1003 = vector.shape_cast %1002 : vector<1x1x32xf32> to vector<1x32xf32>
    %1004 = vector.broadcast %1003 : vector<1x32xf32> to vector<16x32xf32>
    %1005 = arith.addf %1001, %1004 : vector<16x32xf32>
    %1006 = arith.addf %822, %1005 : vector<16x32xf32>
    %c3_449 = arith.constant 3 : index
    %c35_450 = arith.constant 35 : index
    %c0_451 = arith.constant 0 : index
    %1007 = vector.load %arg7[%c3_449, %c35_450, %c0_451] : memref<4x40x64xf32, #tpu.memory_space<vmem>>, vector<1x1x32xf32>
    %1008 = vector.shape_cast %1007 : vector<1x1x32xf32> to vector<1x32xf32>
    %c3_452 = arith.constant 3 : index
    %c36_453 = arith.constant 36 : index
    %c0_454 = arith.constant 0 : index
    %1009 = vector.load %arg7[%c3_452, %c36_453, %c0_454] : memref<4x40x64xf32, #tpu.memory_space<vmem>>, vector<1x1x32xf32>
    %1010 = vector.shape_cast %1009 : vector<1x1x32xf32> to vector<1x32xf32>
    %cst_455 = arith.constant dense<0.000000e+00> : vector<16xf32>
    %1011 = vector.multi_reduction <add>, %1006, %cst_455 [1] : vector<16x32xf32> to vector<16xf32>
    %1012 = vector.shape_cast %1011 : vector<16xf32> to vector<16x1xf32>
    %cst_456 = arith.constant 3.200000e+01 : f32
    %1013 = vector.broadcast %cst_456 : f32 to vector<16x1xf32>
    %1014 = arith.divf %1012, %1013 : vector<16x1xf32>
    %1015 = vector.broadcast %1014 : vector<16x1xf32> to vector<16x32xf32>
    %1016 = arith.subf %1006, %1015 : vector<16x32xf32>
    %1017 = arith.mulf %1016, %1016 : vector<16x32xf32>
    %cst_457 = arith.constant dense<0.000000e+00> : vector<16xf32>
    %1018 = vector.multi_reduction <add>, %1017, %cst_457 [1] : vector<16x32xf32> to vector<16xf32>
    %1019 = vector.shape_cast %1018 : vector<16xf32> to vector<16x1xf32>
    %cst_458 = arith.constant 3.200000e+01 : f32
    %1020 = vector.broadcast %cst_458 : f32 to vector<16x1xf32>
    %1021 = arith.divf %1019, %1020 : vector<16x1xf32>
    %cst_459 = arith.constant 9.99999974E-5 : f32
    %1022 = vector.broadcast %cst_459 : f32 to vector<16x1xf32>
    %1023 = arith.addf %1021, %1022 : vector<16x1xf32>
    %1024 = math.rsqrt %1023 : vector<16x1xf32>
    %1025 = vector.broadcast %1024 : vector<16x1xf32> to vector<16x32xf32>
    %1026 = arith.mulf %1016, %1025 : vector<16x32xf32>
    %1027 = vector.broadcast %1008 : vector<1x32xf32> to vector<16x32xf32>
    %1028 = arith.mulf %1026, %1027 : vector<16x32xf32>
    %1029 = vector.broadcast %1010 : vector<1x32xf32> to vector<16x32xf32>
    %1030 = arith.addf %1028, %1029 : vector<16x32xf32>
    %1031 = vector.broadcast %1 : vector<16x1xf32> to vector<16x32xf32>
    %1032 = arith.mulf %1030, %1031 : vector<16x32xf32>
    %1033 = vector.extract_strided_slice %1032 {offsets = [0, 0], sizes = [15, 32], strides = [1, 1]} : vector<16x32xf32> to vector<15x32xf32>
    %1034 = tpu.concatenate %7, %1033 in 0 : vector<1x32xf32>, vector<15x32xf32> -> vector<16x32xf32>
    %1035 = vector.extract_strided_slice %1032 {offsets = [1, 0], sizes = [15, 32], strides = [1, 1]} : vector<16x32xf32> to vector<15x32xf32>
    %1036 = tpu.concatenate %1035, %7 in 0 : vector<15x32xf32>, vector<1x32xf32> -> vector<16x32xf32>
    %1037 = tpu.concatenate %1034, %1032, %1036 in 1 : vector<16x32xf32>, vector<16x32xf32>, vector<16x32xf32> -> vector<16x96xf32>
    %c3_460 = arith.constant 3 : index
    %c96_461 = arith.constant 96 : index
    %c0_462 = arith.constant 0 : index
    %1038 = vector.load %arg6[%c3_460, %c96_461, %c0_462] : memref<4x440x64xf32, #tpu.memory_space<vmem>>, vector<1x96x64xf32>
    %1039 = vector.shape_cast %1038 : vector<1x96x64xf32> to vector<96x64xf32>
    %cst_463 = arith.constant dense<0.000000e+00> : vector<16x64xf32>
    %1040 = tpu.matmul %1037, %1039, %cst_463 {dimension_numbers = #tpu.dot_dimension_numbers<[1], [0], [0], [1], [0, 0, 1, 1], [], []>} : vector<16x96xf32>, vector<96x64xf32>, vector<16x64xf32> -> vector<16x64xf32>
    %c3_464 = arith.constant 3 : index
    %c33_465 = arith.constant 33 : index
    %c0_466 = arith.constant 0 : index
    %1041 = vector.load %arg7[%c3_464, %c33_465, %c0_466] : memref<4x40x64xf32, #tpu.memory_space<vmem>>, vector<1x1x64xf32>
    %1042 = vector.shape_cast %1041 : vector<1x1x64xf32> to vector<1x64xf32>
    %1043 = vector.broadcast %1042 : vector<1x64xf32> to vector<16x64xf32>
    %1044 = arith.addf %1040, %1043 : vector<16x64xf32>
    %cst_467 = arith.constant 0.000000e+00 : f32
    %1045 = vector.broadcast %cst_467 : f32 to vector<16x64xf32>
    %1046 = arith.maximumf %1044, %1045 : vector<16x64xf32>
    %1047 = vector.broadcast %1 : vector<16x1xf32> to vector<16x64xf32>
    %1048 = arith.mulf %1046, %1047 : vector<16x64xf32>
    %1049 = vector.extract_strided_slice %1048 {offsets = [0, 0], sizes = [15, 64], strides = [1, 1]} : vector<16x64xf32> to vector<15x64xf32>
    %1050 = tpu.concatenate %8, %1049 in 0 : vector<1x64xf32>, vector<15x64xf32> -> vector<16x64xf32>
    %1051 = vector.extract_strided_slice %1048 {offsets = [1, 0], sizes = [15, 64], strides = [1, 1]} : vector<16x64xf32> to vector<15x64xf32>
    %1052 = tpu.concatenate %1051, %8 in 0 : vector<15x64xf32>, vector<1x64xf32> -> vector<16x64xf32>
    %1053 = tpu.concatenate %1050, %1048, %1052 in 1 : vector<16x64xf32>, vector<16x64xf32>, vector<16x64xf32> -> vector<16x192xf32>
    %c3_468 = arith.constant 3 : index
    %c192_469 = arith.constant 192 : index
    %c0_470 = arith.constant 0 : index
    %1054 = vector.load %arg6[%c3_468, %c192_469, %c0_470] : memref<4x440x64xf32, #tpu.memory_space<vmem>>, vector<1x192x16xf32>
    %1055 = vector.shape_cast %1054 : vector<1x192x16xf32> to vector<192x16xf32>
    %cst_471 = arith.constant dense<0.000000e+00> : vector<16x16xf32>
    %1056 = tpu.matmul %1053, %1055, %cst_471 {dimension_numbers = #tpu.dot_dimension_numbers<[1], [0], [0], [1], [0, 0, 1, 1], [], []>} : vector<16x192xf32>, vector<192x16xf32>, vector<16x16xf32> -> vector<16x16xf32>
    %c3_472 = arith.constant 3 : index
    %c34_473 = arith.constant 34 : index
    %c0_474 = arith.constant 0 : index
    %1057 = vector.load %arg7[%c3_472, %c34_473, %c0_474] : memref<4x40x64xf32, #tpu.memory_space<vmem>>, vector<1x1x16xf32>
    %1058 = vector.shape_cast %1057 : vector<1x1x16xf32> to vector<1x16xf32>
    %1059 = vector.broadcast %1058 : vector<1x16xf32> to vector<16x16xf32>
    %1060 = arith.addf %1056, %1059 : vector<16x16xf32>
    %1061 = vector.broadcast %1 : vector<16x1xf32> to vector<16x16xf32>
    %1062 = arith.mulf %1060, %1061 : vector<16x16xf32>
    %c3_475 = arith.constant 3 : index
    %c400 = arith.constant 400 : index
    %c0_476 = arith.constant 0 : index
    %1063 = vector.load %arg6[%c3_475, %c400, %c0_476] : memref<4x440x64xf32, #tpu.memory_space<vmem>>, vector<1x32x16xf32>
    %1064 = vector.shape_cast %1063 : vector<1x32x16xf32> to vector<32x16xf32>
    %cst_477 = arith.constant dense<0.000000e+00> : vector<16x16xf32>
    %1065 = tpu.matmul %1030, %1064, %cst_477 {dimension_numbers = #tpu.dot_dimension_numbers<[1], [0], [0], [1], [0, 0, 1, 1], [], []>} : vector<16x32xf32>, vector<32x16xf32>, vector<16x16xf32> -> vector<16x16xf32>
    %c3_478 = arith.constant 3 : index
    %c432 = arith.constant 432 : index
    %c0_479 = arith.constant 0 : index
    %1066 = vector.load %arg6[%c3_478, %c432, %c0_479] : memref<4x440x64xf32, #tpu.memory_space<vmem>>, vector<1x1x16xf32>
    %1067 = vector.shape_cast %1066 : vector<1x1x16xf32> to vector<1x16xf32>
    %1068 = vector.broadcast %1067 : vector<1x16xf32> to vector<16x16xf32>
    %1069 = arith.addf %1065, %1068 : vector<16x16xf32>
    %1070 = arith.addf %1069, %1062 : vector<16x16xf32>
    %c3_480 = arith.constant 3 : index
    %c37_481 = arith.constant 37 : index
    %c0_482 = arith.constant 0 : index
    %1071 = vector.load %arg7[%c3_480, %c37_481, %c0_482] : memref<4x40x64xf32, #tpu.memory_space<vmem>>, vector<1x1x16xf32>
    %1072 = vector.shape_cast %1071 : vector<1x1x16xf32> to vector<1x16xf32>
    %c3_483 = arith.constant 3 : index
    %c38_484 = arith.constant 38 : index
    %c0_485 = arith.constant 0 : index
    %1073 = vector.load %arg7[%c3_483, %c38_484, %c0_485] : memref<4x40x64xf32, #tpu.memory_space<vmem>>, vector<1x1x16xf32>
    %1074 = vector.shape_cast %1073 : vector<1x1x16xf32> to vector<1x16xf32>
    %cst_486 = arith.constant dense<0.000000e+00> : vector<16xf32>
    %1075 = vector.multi_reduction <add>, %1070, %cst_486 [1] : vector<16x16xf32> to vector<16xf32>
    %1076 = vector.shape_cast %1075 : vector<16xf32> to vector<16x1xf32>
    %cst_487 = arith.constant 1.600000e+01 : f32
    %1077 = vector.broadcast %cst_487 : f32 to vector<16x1xf32>
    %1078 = arith.divf %1076, %1077 : vector<16x1xf32>
    %1079 = vector.broadcast %1078 : vector<16x1xf32> to vector<16x16xf32>
    %1080 = arith.subf %1070, %1079 : vector<16x16xf32>
    %1081 = arith.mulf %1080, %1080 : vector<16x16xf32>
    %cst_488 = arith.constant dense<0.000000e+00> : vector<16xf32>
    %1082 = vector.multi_reduction <add>, %1081, %cst_488 [1] : vector<16x16xf32> to vector<16xf32>
    %1083 = vector.shape_cast %1082 : vector<16xf32> to vector<16x1xf32>
    %cst_489 = arith.constant 1.600000e+01 : f32
    %1084 = vector.broadcast %cst_489 : f32 to vector<16x1xf32>
    %1085 = arith.divf %1083, %1084 : vector<16x1xf32>
    %cst_490 = arith.constant 9.99999974E-5 : f32
    %1086 = vector.broadcast %cst_490 : f32 to vector<16x1xf32>
    %1087 = arith.addf %1085, %1086 : vector<16x1xf32>
    %1088 = math.rsqrt %1087 : vector<16x1xf32>
    %1089 = vector.broadcast %1088 : vector<16x1xf32> to vector<16x16xf32>
    %1090 = arith.mulf %1080, %1089 : vector<16x16xf32>
    %1091 = vector.broadcast %1072 : vector<1x16xf32> to vector<16x16xf32>
    %1092 = arith.mulf %1090, %1091 : vector<16x16xf32>
    %1093 = vector.broadcast %1074 : vector<1x16xf32> to vector<16x16xf32>
    %1094 = arith.addf %1092, %1093 : vector<16x16xf32>
    %1095 = vector.broadcast %1 : vector<16x1xf32> to vector<16x16xf32>
    %1096 = arith.mulf %1094, %1095 : vector<16x16xf32>
    %c0_491 = arith.constant 0 : index
    %c0_492 = arith.constant 0 : index
    %c0_493 = arith.constant 0 : index
    %1097 = vector.load %arg8[%c0_491, %c0_492, %c0_493] : memref<1x16x16xf32, #tpu.memory_space<vmem>>, vector<1x16x16xf32>
    %1098 = vector.shape_cast %1097 : vector<1x16x16xf32> to vector<16x16xf32>
    %1099 = vector.shape_cast %1096 : vector<16x16xf32> to vector<1x16x16xf32>
    tpu.vector_store %arg8[%c0_491, %c0_492, %c0_493], %1099 {strides = array<i32>} : memref<1x16x16xf32, #tpu.memory_space<vmem>>, vector<1x16x16xf32>,
    return
  }
  func.func @transform_0(%arg0: i32) -> (i32, i32, i32) {
    %c0_i32 = arith.constant 0 : i32
    %c0_i32_0 = arith.constant 0 : i32
    %c0_i32_1 = arith.constant 0 : i32
    return %arg0, %c0_i32, %c0_i32_0 : i32, i32, i32
  }
  func.func @transform_1(%arg0: i32) -> (i32, i32, i32) {
    %c0_i32 = arith.constant 0 : i32
    %c0_i32_0 = arith.constant 0 : i32
    %c0_i32_1 = arith.constant 0 : i32
    return %arg0, %c0_i32, %c0_i32_0 : i32, i32, i32
  }
  func.func @transform_2(%arg0: i32) -> (i32, i32, i32) {
    %c0_i32 = arith.constant 0 : i32
    %c0_i32_0 = arith.constant 0 : i32
    %c0_i32_1 = arith.constant 0 : i32
    return %arg0, %c0_i32, %c0_i32_0 : i32, i32, i32
  }
  func.func @transform_3(%arg0: i32) -> (i32, i32, i32) {
    %c0_i32 = arith.constant 0 : i32
    %c0_i32_0 = arith.constant 0 : i32
    %c0_i32_1 = arith.constant 0 : i32
    %c0_i32_2 = arith.constant 0 : i32
    return %c0_i32, %c0_i32_0, %c0_i32_1 : i32, i32, i32
  }
  func.func @transform_4(%arg0: i32) -> (i32, i32) {
    %c0_i32 = arith.constant 0 : i32
    %c0_i32_0 = arith.constant 0 : i32
    %c0_i32_1 = arith.constant 0 : i32
    return %c0_i32, %c0_i32_0 : i32, i32
  }
  func.func @transform_5(%arg0: i32) -> (i32, i32, i32) {
    %c0_i32 = arith.constant 0 : i32
    %c0_i32_0 = arith.constant 0 : i32
    %c0_i32_1 = arith.constant 0 : i32
    %c0_i32_2 = arith.constant 0 : i32
    return %c0_i32, %c0_i32_0, %c0_i32_1 : i32, i32, i32
  }
  func.func @transform_6(%arg0: i32) -> (i32, i32, i32) {
    %c0_i32 = arith.constant 0 : i32
    %c0_i32_0 = arith.constant 0 : i32
    %c0_i32_1 = arith.constant 0 : i32
    %c0_i32_2 = arith.constant 0 : i32
    return %c0_i32, %c0_i32_0, %c0_i32_1 : i32, i32, i32
  }
  func.func @transform_7(%arg0: i32) -> (i32, i32, i32) {
    %c0_i32 = arith.constant 0 : i32
    %c0_i32_0 = arith.constant 0 : i32
    %c0_i32_1 = arith.constant 0 : i32
    return %arg0, %c0_i32, %c0_i32_0 : i32, i32, i32
  }
}

</mosaic_0001>

<bundles_post_ra>
// kernel: decoder_forward.1
= control target key start
LH: loop header
LB: loop body
LE: loop exit
PB: predicated region body
PF: predicated region fallthrough
CT: control target
= control target key end

     0   :  { %s7239_s24 = smov 0   ;;  %s10654_s0 = inlined_call_operand.vmem [shape: f32[2,16,32], index: 0, kind: input, shape index: {}]   ;;  %s10655_s1 = inlined_call_operand.vmem [shape: f32[2,16,1], index: 1, kind: input, shape index: {}]   ;;  %s10656_s2 = inlined_call_operand.vmem [shape: f32[2,32,32], index: 2, kind: input, shape index: {}]   ;;  %s10657_s3 = inlined_call_operand.vmem [shape: f32[9,32,32], index: 3, kind: input, shape index: {}]   ;;  %s10658_s4 = inlined_call_operand.vmem [shape: f32[33,32], index: 4, kind: input, shape index: {}]   ;;  %s10659_s5 = inlined_call_operand.vmem [shape: f32[4,440,64], index: 5, kind: input, shape index: {}]   ;;  %s10660_s6 = inlined_call_operand.vmem [shape: f32[4,40,64], index: 6, kind: input, shape index: {}]   ;;  %s10661_s7 = inlined_call_operand.vmem [shape: f32[2,16,16], index: 7, kind: output, shape index: {}]  }
   0x1 LB: > { %s5886_s25 = sadd.s32 4294967295, %s7181_s24   ;;  %p5890_p0 = scmp.ge.s32.totalorder %s7181_s24, 1  ;;  %s7181_s24 = sphi %s7239_s24, %s17_s24  }
   0x2   : > { %p257_p1 = scmp.lt.s32.totalorder %s7181_s24, 3 }
   0x4   : > { %p258_p2 = pnand %p5890_p0, %p257_p1 }
   0x6   : > { %261 = sbr.rel (%p258_p2) target bundleno = 11488 (0x2ce0), region = 48 }
   0xb   : > { %v334_v0 = vld [vmem:[%s10658_s4 + $0x18] sm:$0xff]  ;;  %v333_v1 = vld [vmem:[%s10658_s4 + $0x10] sm:$0xff]  ;;  %p299_p3 = scmp.lt.s32.totalorder %s5886_s25, 1  ;;  %v7183_v2 = vmov 0   ;;  %v332_v5 = vld [vmem:[%s10658_s4 + $0x8] sm:$0xff]  ;;  %vm340_vm0 = vcmask 261120  }
   0xc   : > { %6455 = vmatprep.subr.mxu0 %v334_v0  ;;  %6853 = vset.pattern.permute.xlu0 %v7183_v2  ;;  %v457_v3 = vld [vmem:[%s10659_s5 + $0x38] sm:$0xff]  ;;  %v456_v4 = vld [vmem:[%s10659_s5 + $0x30] sm:$0xff]  ;;  %v331_v6 = vld [vmem:[%s10658_s4] sm:$0xff]  ;;  %vm462_vm1 = vcmask 523264   ;;  %s7184_s16 = smov 32   ;;  %v10672_v38 = vmov 49  }
   0xd   : > { %6456 = vmatpush3.msra.mxu0 %v334_v0  ;;  %s10852_s25 = smov (!%p299_p3, %s5886_s25), 1  ;;  %6466 = vmatprep.subr.mxu1 %v457_v3  ;;  %v455_v11 = vld [vmem:[%s10659_s5 + $0x28] sm:$0xff]  ;;  %v454_v12 = vld [vmem:[%s10659_s5 + $0x20] sm:$0xff]  ;;  %v453_v13 = vld [vmem:[%s10659_s5 + $0x18] sm:$0xff]  ;;  %vm596_vm2 = vcmask 130048   ;;  %v10678_v40 = vmov 48  }
   0xe   : > { %6457 = vmatprep.subr.mxu0 %v333_v1  ;;  %6467 = vmatpush3.msra.mxu1 %v457_v3  ;;  %s7268_s15 = sshll.u32 %s10852_s25, 4  ;;  %v452_v14 = vld [vmem:[%s10659_s5 + $0x10] sm:$0xff]  ;;  %v451_v15 = vld [vmem:[%s10659_s5 + $0x8] sm:$0xff]  ;;  %v450_v16 = vld [vmem:[%s10659_s5] sm:$0xff]  ;;  %s7187_s27 = smov 112   ;;  %v10668_v50 = vmov 50  }
   0xf   : > { %6458 = vmatpush3.msra.mxu0 %v333_v1  ;;  %6468 = vmatprep.subr.mxu1 %v456_v4  ;;  %s303_s18 = scalar_lea.vmem %s10654_s0, %s7268_s15  ;;  %s308_s21 = scalar_lea.vmem %s10655_s1, %s7268_s15  ;;  %v5899_v18 = vld [vmem:[%s10658_s4 + $0x20] ss:$0 sm:$0xff]  ;;  %v461_v42 = vld [vmem:[%s10660_s6 + $0x18] sm:$0xff]  ;;  %v460_v44 = vld [vmem:[%s10660_s6 + $0x10] sm:$0xff]  ;;  %v10676_v51 = vmov 52   ;;  %v10674_v52 = vmov 51  }
  0x10   : > { %6459 = vmatprep.subr.mxu0 %v332_v5  ;;  %6469 = vmatpush3.msra.mxu1 %v456_v4  ;;  %v329_v7 = vld [vmem:[%s303_s18] sm:$0xff]  ;;  %v330_v8 = vld [vmem:[%s303_s18 + $0x8] sm:$0xff]  ;;  %v10670_v53 = vmov 55   ;;  %v10666_v54 = vmov 54   ;;  %v10664_v55 = vmov 53   ;;  %v10662_v56 = vmov 56   ;;  %s318_s18 = scalar_lea.vmem %s10661_s7, %s7268_s15 }
  0x11   : > { %6460 = vmatpush3.msra.mxu0 %v332_v5  ;;  %6463 = vmatprep.mubr.msk.f32.mxu0 %vm340_vm0, %v329_v7  ;;  %v319_v9 = vld [vmem:[%s308_s21] sm:$0xff]  ;;  %v320_v10 = vld [vmem:[%s308_s21 + $0x8] sm:$0xff]  ;;  %s6249_s30 = sshll.u32 %s10852_s25, 5  ;;  %s7196_s21 = smov 16   ;;  %vm1484_vm7 = vcmask 1040384   ;;  %vm1491_vm8 = vcmask 1046528  }
  0x12   : > { %6461 = vmatprep.subr.mxu0 %v331_v6  ;;  %426 = vperm.xlu0 %6853, %v319_v9   ;;  %v458_v37 = vld [vmem:[%s10660_s6] sm:$0xff]  ;;  %v459_v46 = vld [vmem:[%s10660_s6 + $0x8] sm:$0xff]  ;;  %s7627_s28 = scalar_lea.vmem %s10656_s2, %s6249_s30  ;;  %s7197_s17 = smov 64   ;;  %vm1531_vm9 = vcmask 785408  }
  0x13   : > { %6462 = vmatpush3.msra.mxu0 %v331_v6  ;;  %6470 = vmatprep.subr.mxu1 %v455_v11 }
  0x14   : > { %6464 = vmatmul.mubr.msk.f32.vlgmr.msra.gmra.mxu0 %vm340_vm0, %v330_v8  ;;  %6471 = vmatpush3.msra.mxu1 %v455_v11 }
  0x15   : > { %6472 = vmatprep.subr.mxu1 %v454_v12  ;;  %6854 = vset.pattern.permute.xlu1 %v10678_v40 }
  0x16   : > { %431 = vperm.xlu0 %6853, %v320_v10   ;;  %6473 = vmatpush3.msra.mxu1 %v454_v12 }
  0x17   : > { %6474 = vmatprep.subr.mxu1 %v453_v13 }
  0x18   : > { %6475 = vmatpush3.msra.mxu1 %v453_v13 }
  0x19   : > { %6476 = vmatprep.subr.mxu1 %v452_v14 }
  0x1a   : > { %6477 = vmatpush3.msra.mxu1 %v452_v14  ;;  %6856 = vset.pattern.permute.xlu0 %v10672_v38 }
  0x1b   : > { %6478 = vmatprep.subr.mxu1 %v451_v15 }
  0x1c   : > { %6479 = vmatpush3.msra.mxu1 %v451_v15 }
  0x1d   : > { %6480 = vmatprep.subr.mxu1 %v450_v16 }
  0x1e   : > { %6481 = vmatpush3.msra.mxu1 %v450_v16 }
  0x8d   : > { %v7298_v17 = vpop.permute.xlu0 %426 }
  0x8e   : > { %10745 = vst [vmem:[#allocation2_spill] sm:$0xff] %v7298_v17 }
  0x91   : > { %v7303_v22 = vpop.permute.xlu0 %431 }
  0x92   : > { %10746 = vst [vmem:[#allocation3_spill] sm:$0xff] %v7303_v22 }
  0xd4   : > { %v6465_v19 = vpop.f32.mrf.mxu0 }
  0xd5   : > { %v419_v20 = vadd.f32 %v6465_v19, %v5899_v18 }
  0xd6   : > { %v413_v21 = vpop.f32.mrf.mxu0 }
  0xd7   : > { %v423_v23 = vmax.f32 %v419_v20, 0.0  ;;  %v414_v24 = vadd.f32 %v5899_v18, %v413_v21 }
  0xd9   : > { %v422_v25 = vmax.f32 %v414_v24, 0.0  ;;  %v435_v26 = vmul.f32 %v7303_v22, %v423_v23 }
  0xdb   : > { %v434_v27 = vmul.f32 %v7298_v17, %v422_v25  ;;  %v7308_v28 = vmul.f32 %v435_v26, %v7303_v22 }
  0xdd   : > { %10747 = vst [vmem:[#allocation4_spill] sm:$0xff] %v7308_v28  ;;  %v7311_v29 = vmul.f32 %v434_v27, %v7298_v17  ;;  %v439_v31 = vsel %vm340_vm0, %v7308_v28, 0.0  ;;  %v7577_v17 = vld [vmem:[%s10657_s3 + $0xa0] sm:$0xff] }
  0xdf   : > { %10748 = vst [vmem:[#allocation5_spill] sm:$0xff] %v7311_v29  ;;  %442 = vrot.lane.b32.xlu1 %v7311_v29, %s7184_s16  ;;  %v438_v30 = vsel %vm340_vm0, %v7311_v29, 0.0 }
  0xe0   : > { %6482 = vmatprep.mubr.msk.f32.mxu1 %vm462_vm1, %v438_v30  ;;  %v7471_v30 = vld [vmem:[%s10657_s3 + $0x8] sm:$0xff] }
  0xe1   : > { %6483 = vmatmul.mubr.msk.f32.vlgmr.msra.gmra.mxu1 %vm462_vm1, %v439_v31  ;;  %v7476_v31 = vld [vmem:[%s10657_s3 + $0x28] sm:$0xff] }
  0xe3   : > { %444 = vrot.lane.b32.xlu1 %v7308_v28, %s7184_s16 }
 0x151   : > { %v443_v32 = vpop.permute.xlu1 %442 }
 0x152   : > { %v448_v33 = vsel %vm340_vm0, 0.0, %v443_v32  ;;  %v7481_v32 = vld [vmem:[%s10657_s3] sm:$0xff] }
 0x153   : > { %6485 = vmatprep.mubr.msk.f32.mxu1 %vm462_vm1, %v448_v33 }
 0x155   : > { %v445_v34 = vpop.permute.xlu1 %444 }
 0x156   : > { %v449_v35 = vsel %vm340_vm0, 0.0, %v445_v34  ;;  %v7487_v34 = vld [vmem:[%s10657_s3 + $0x20] sm:$0xff] }
 0x157   : > { %6486 = vmatmul.mubr.msk.f32.gmra.mxu1 %vm462_vm1, %v449_v35  ;;  %v7492_v35 = vld [vmem:[%s10657_s3 + $0x18] sm:$0xff] }
 0x1a1   : > { %v6484_v36 = vpop.f32.mrf.mxu1 }
 0x1a2   : > { %v7351_v49 = vadd.f32 %v6484_v36, %v459_v46  ;;  %v7497_v36 = vld [vmem:[%s10657_s3 + $0x48] sm:$0xff]  ;;  %v7511_v46 = vld [vmem:[%s10657_s3 + $0x38] sm:$0xff] }
 0x1a3   : > { %v541_v39 = vpop.f32.mrf.mxu1 }
 0x1a4   : > { %v7332_v41 = vadd.f32 %v541_v39, %v458_v37 }
 0x1a6   : > { %6496 = vmatprep.mubr.msk.f32.mxu0 %vm596_vm2, %v7332_v41 }
 0x217   : > { %v6487_v43 = vpop.f32.mrf.mxu1 }
 0x218   : > { %v7342_v45 = vadd.f32 %v6487_v43, %v461_v42 }
 0x219   : > { %v551_v47 = vpop.f32.mrf.mxu1 }
 0x21a   : > { %v7347_v48 = vadd.f32 %v551_v47, %v460_v44  ;;  %594 = vrot.lane.b32.xlu0 %v7342_v45, %s7187_s27  ;;  %v7506_v44 = vld [vmem:[%s10657_s3 + $0x40] sm:$0xff]  ;;  %v7516_v47 = vld [vmem:[%s10657_s3 + $0x68] sm:$0xff] }
 0x21c   : > { %592 = vrot.lane.b32.xlu1 %v7347_v48, %s7187_s27 }
 0x21e   : > { %590 = vrot.lane.b32.xlu0 %v7351_v49, %s7187_s27 }
 0x220   : > { %588 = vrot.lane.b32.xlu1 %v7332_v41, %s7187_s27 }
 0x222   : > { %708 = vperm.xlu0 %6856, %v7351_v49  }
 0x224   : > { %571 = vperm.xlu1 %6854, %v7351_v49  }
 0x226   : > { %6857 = vset.pattern.permute.xlu0 %v10678_v40 }
 0x227   : > { %566 = vperm.xlu0 %6857, %v7332_v41  }
 0x228   : > { %6855 = vset.pattern.permute.xlu1 %v10672_v38 }
 0x229   : > { %704 = vperm.xlu1 %6855, %v7332_v41  }
 0x22b   : > { %581 = vperm.xlu0 %6857, %v7342_v45  }
 0x22d   : > { %6858 = vset.pattern.permute.xlu1 %v10668_v50 }
 0x22e   : > { %733 = vperm.xlu1 %6858, %v7332_v41  }
 0x22f   : > { %6863 = vset.pattern.permute.xlu0 %v10676_v51 }
 0x230   : > { %795 = vperm.xlu0 %6863, %v7351_v49  }
 0x232   : > { %737 = vperm.xlu1 %6858, %v7351_v49  }
 0x234   : > { %6864 = vset.pattern.permute.xlu0 %v10674_v52 }
 0x235   : > { %762 = vperm.xlu0 %6864, %v7332_v41  }
 0x236   : > { %6859 = vset.pattern.permute.xlu1 %v10672_v38 }
 0x237   : > { %716 = vperm.xlu1 %6859, %v7342_v45  }
 0x239   : > { %774 = vperm.xlu0 %6864, %v7342_v45  }
 0x23b   : > { %6860 = vset.pattern.permute.xlu1 %v10674_v52 }
 0x23c   : > { %766 = vperm.xlu1 %6860, %v7351_v49  }
 0x23d   : > { %6870 = vset.pattern.permute.xlu0 %v10670_v53 }
 0x23e   : > { %882 = vperm.xlu0 %6870, %v7351_v49  }
 0x240   : > { %6861 = vset.pattern.permute.xlu1 %v10676_v51 }
 0x241   : > { %791 = vperm.xlu1 %6861, %v7332_v41  }
 0x242   : > { %6871 = vset.pattern.permute.xlu0 %v10666_v54 }
 0x243   : > { %849 = vperm.xlu0 %6871, %v7332_v41  }
 0x245   : > { %6862 = vset.pattern.permute.xlu1 %v10668_v50 }
 0x246   : > { %745 = vperm.xlu1 %6862, %v7342_v45  }
 0x247   : > { %861 = vperm.xlu0 %6871, %v7342_v45  }
 0x24a   : > { %6865 = vset.pattern.permute.xlu1 %v10664_v55 }
 0x24b   : > { %6875 = vset.pattern.permute.xlu0 %v10668_v50  ;;  %820 = vperm.xlu1 %6865, %v7332_v41   ;;  %v7551_v50 = vld [vmem:[%s10657_s3 + $0x78] sm:$0xff] }
 0x24c   : > { %741 = vperm.xlu0 %6875, %v7347_v48  }
 0x24f   : > { %824 = vperm.xlu1 %6865, %v7351_v49  }
 0x250   : > { %6878 = vset.pattern.permute.xlu0 %v10664_v55 }
 0x251   : > { %828 = vperm.xlu0 %6878, %v7347_v48  }
 0x253   : > { %6866 = vset.pattern.permute.xlu1 %v10676_v51 }
 0x254   : > { %803 = vperm.xlu1 %6866, %v7342_v45  }
 0x255   : > { %6879 = vset.pattern.permute.xlu0 %v10670_v53 }
 0x256   : > { %890 = vperm.xlu0 %6879, %v7342_v45  }
 0x258   : > { %6867 = vset.pattern.permute.xlu1 %v10666_v54 }
 0x259   : > { %853 = vperm.xlu1 %6867, %v7351_v49  }
 0x25a   : > { %6885 = vset.pattern.permute.xlu0 %v10672_v38 }
 0x25d   : > { %6868 = vset.pattern.permute.xlu1 %v10670_v53 }
 0x25e   : > { %878 = vperm.xlu1 %6868, %v7332_v41  }
 0x262   : > { %6869 = vset.pattern.permute.xlu1 %v10664_v55 }
 0x263   : > { %832 = vperm.xlu1 %6869, %v7342_v45  }
 0x267   : > { %6872 = vset.pattern.permute.xlu1 %v10662_v56 }
 0x268   : > { %907 = vperm.xlu1 %6872, %v7332_v41  }
 0x26c   : > { %911 = vperm.xlu1 %6872, %v7351_v49  }
 0x270   : > { %6873 = vset.pattern.permute.xlu1 %v10678_v40 }
 0x271   : > { %576 = vperm.xlu1 %6873, %v7347_v48  }
 0x275   : > { %6874 = vset.pattern.permute.xlu1 %v10672_v38 }
 0x276   : > { %712 = vperm.xlu1 %6874, %v7347_v48  }
 0x27a   : > { %6876 = vset.pattern.permute.xlu1 %v10674_v52  ;;  %v7557_v52 = vld [vmem:[%s10657_s3 + $0x80] sm:$0xff] }
 0x27b   : > { %770 = vperm.xlu1 %6876, %v7347_v48  }
 0x27f   : > { %6877 = vset.pattern.permute.xlu1 %v10676_v51 }
 0x280   : > { %799 = vperm.xlu1 %6877, %v7347_v48  }
 0x284   : > { %6880 = vset.pattern.permute.xlu1 %v10666_v54 }
 0x285   : > { %857 = vperm.xlu1 %6880, %v7347_v48  }
 0x289   : > { %6881 = vset.pattern.permute.xlu1 %v10670_v53 }
 0x28a   : > { %886 = vperm.xlu1 %6881, %v7347_v48  }
 0x28c   : > { %v595_v57 = vpop.permute.xlu0 %594 }
 0x28d   : > { %6488 = vmatprep.subr.msk.mxu0 %vm596_vm2, %v595_v57 }
 0x28e   : > { %6489 = vmatpush3.xpose.msk.msra.mxu0 %vm596_vm2, %v595_v57  ;;  %v593_v58 = vpop.permute.xlu1 %592  ;;  %6882 = vset.pattern.permute.xlu1 %v10662_v56 }
 0x28f   : > { %6490 = vmatprep.subr.msk.mxu0 %vm596_vm2, %v593_v58  ;;  %915 = vperm.xlu1 %6882, %v7347_v48  }
 0x290   : > { %v591_v59 = vpop.permute.xlu0 %590 }
 0x292   : > { %6491 = vmatpush3.xpose.msk.msra.mxu0 %vm596_vm2, %v593_v58  ;;  %v589_v60 = vpop.permute.xlu1 %588 }
 0x293   : > { %6492 = vmatprep.subr.msk.mxu0 %vm596_vm2, %v591_v59  ;;  %919 = vperm.xlu1 %6882, %v7342_v45  }
 0x296   : > { %6493 = vmatpush3.xpose.msk.msra.mxu0 %vm596_vm2, %v591_v59 }
 0x297   : > { %6494 = vmatprep.subr.msk.mxu0 %vm596_vm2, %v589_v60  ;;  %6883 = vset.pattern.permute.xlu1 %v10678_v40 }
 0x29a   : > { %6495 = vmatpush3.xpose.msk.msra.mxu0 %vm596_vm2, %v589_v60  ;;  %v7522_v60 = vld [vmem:[%s10657_s3 + $0x88] sm:$0xff] }
 0x29b   : > { %10749 = vst [vmem:[#allocation6_spill] sm:$0xff] %v7522_v60 }
 0x29d   : > { %6497 = vmatmul.mubr.msk.f32.vlgmr.msra.gmra.mxu0 %vm596_vm2, %v7351_v49  ;;  %v709_v9 = vpop.permute.xlu0 %708 }
 0x29e   : > { %6499 = vmatprep.mubr.msk.f32.mxu0 %vm596_vm2, %v7347_v48  ;;  %v720_v42 = vmul.f32 %v7476_v31, %v709_v9 }
 0x29f   : > { %v572_v61 = vpop.permute.xlu1 %571 }
 0x2a0   : > { %v585_v33 = vmul.f32 %v572_v61, %v7471_v30  ;;  %v7527_v61 = vld [vmem:[%s10657_s3 + $0x10] sm:$0xff] }
 0x2a1   : > { %6500 = vmatmul.mubr.msk.f32.gmra.mxu0 %vm596_vm2, %v7342_v45 }
 0x2a2   : > { %v567_v11 = vpop.permute.xlu0 %566 }
 0x2a3   : > { %v584_v43 = vmul.f32 %v567_v11, %v7481_v32 }
 0x2a4   : > { %v705_v62 = vpop.permute.xlu1 %704 }
 0x2a5   : > { %v719_v59 = vmul.f32 %v7487_v34, %v705_v62  ;;  %v7539_v62 = vld [vmem:[%s10657_s3 + $0x58] sm:$0xff] }
 0x2a6   : > { %v582_v13 = vpop.permute.xlu0 %581 }
 0x2a7   : > { %v587_v11 = vmul.f32 %v582_v13, %v7492_v35 }
 0x2a9   : > { %v734_v63 = vpop.permute.xlu1 %733 }
 0x2aa   : > { %v748_v13 = vmul.f32 %v7506_v44, %v734_v63  ;;  %v7562_v63 = vld [vmem:[%s10657_s3 + $0x50] sm:$0xff] }
 0x2ab   : > { %v796_v15 = vpop.permute.xlu0 %795 }
 0x2ad   : > { %v738_v0 = vpop.permute.xlu1 %737 }
 0x2ae   : > { %v749_v56 = vmul.f32 %v7497_v36, %v738_v0 }
 0x2b0   : > { %v763_v18 = vpop.permute.xlu0 %762 }
 0x2b2   : > { %v717_v1 = vpop.permute.xlu1 %716 }
 0x2b3   : > { %v722_v0 = vmul.f32 %v7511_v46, %v717_v1  ;;  %v7567_v1 = vld [vmem:[%s10657_s3 + $0xa8] sm:$0xff] }
 0x2b4   : > { %v775_v20 = vpop.permute.xlu0 %774 }
 0x2b7   : > { %v767_v2 = vpop.permute.xlu1 %766 }
 0x2b8   : > { %v778_v53 = vmul.f32 %v7516_v47, %v767_v2 }
 0x2b9   : > { %v7458_v23 = vpop.permute.xlu0 %882 }
 0x2bc   : > { %v7438_v3 = vpop.permute.xlu1 %791 }
 0x2bd   : > { %v806_v28 = vmul.f32 %v7557_v52, %v7438_v3 }
 0x2be   : > { %v7462_v25 = vpop.permute.xlu0 %849 }
 0x2c1   : > { %v7440_v4 = vpop.permute.xlu1 %745 }
 0x2c2   : > { %v7466_v27 = vpop.permute.xlu0 %861  ;;  %v751_v40 = vmul.f32 %v7539_v62, %v7440_v4 }
 0x2c6   : > { %v7442_v5 = vpop.permute.xlu1 %820 }
 0x2c7   : > { %v742_v57 = vpop.permute.xlu0 %741 }
 0x2ca   : > { %v7444_v6 = vpop.permute.xlu1 %824 }
 0x2cf   : > { %v7446_v7 = vpop.permute.xlu1 %803 }
 0x2d4   : > { %v7448_v8 = vpop.permute.xlu1 %853 }
 0x2d9   : > { %v7450_v10 = vpop.permute.xlu1 %878 }
 0x2de   : > { %v7452_v12 = vpop.permute.xlu1 %832 }
 0x2e3   : > { %v7454_v14 = vpop.permute.xlu1 %907 }
 0x2e7   : > { %v7456_v16 = vpop.permute.xlu1 %911 }
 0x2ec   : > { %v577_v19 = vpop.permute.xlu1 %576 }
 0x2f1   : > { %v713_v21 = vpop.permute.xlu1 %712 }
 0x2f6   : > { %v7460_v24 = vpop.permute.xlu1 %770 }
 0x2fb   : > { %v7464_v26 = vpop.permute.xlu1 %799 }
 0x300   : > { %v7499_v37 = vpop.permute.xlu1 %857 }
 0x305   : > { %v7580_v29 = vpop.permute.xlu1 %886 }
 0x35d   : > { %v6498_v39 = vpop.f32.mrf.mxu0 }
 0x35e   : > { %v685_v58 = vadd.f32 %v6498_v39, %v585_v33  ;;  %v7534_v33 = vld [vmem:[%s10657_s3 + $0x60] sm:$0xff]  ;;  %v7544_v39 = vld [vmem:[%s10657_s3 + $0x30] sm:$0xff] }
 0x35f   : > { %v679_v9 = vpop.f32.mrf.mxu0  ;;  %10750 = vst [vmem:[#allocation7_spill] sm:$0xff] %v7534_v33  ;;  %v777_v51 = vmul.f32 %v7534_v33, %v763_v18  ;;  %v721_v22 = vmul.f32 %v7544_v39, %v713_v21  ;;  %v750_v33 = vmul.f32 %v7562_v63, %v742_v57 }
 0x360   : > { %v724_v55 = vadd.f32 %v720_v42, %v685_v58  ;;  %v680_v54 = vadd.f32 %v679_v9, %v584_v43  ;;  %v586_v42 = vmul.f32 %v577_v19, %v7527_v61  ;;  %v807_v9 = vmul.f32 %v7522_v60, %v796_v15 }
 0x361   : > { %v6501_v38 = vpop.f32.mrf.mxu0  ;;  %v836_v60 = vmul.f32 %v7567_v1, %v7444_v6  ;;  %v7632_v6 = vld [vmem:[%s10657_s3 + $0xd8] sm:$0xff] }
 0x362   : > { %v753_v2 = vadd.f32 %v749_v56, %v724_v55  ;;  %v723_v43 = vadd.f32 %v719_v59, %v680_v54  ;;  %v695_v58 = vadd.f32 %v6501_v38, %v587_v11  ;;  %v829_v54 = vpop.permute.xlu0 %828  ;;  %v7586_v38 = vld [vmem:[%s10657_s3 + $0x98] sm:$0xff]  ;;  %v7591_v55 = vld [vmem:[%s10657_s3 + $0xc8] sm:$0xff]  ;;  %v7596_v56 = vld [vmem:[%s10657_s3 + $0x70] sm:$0xff]  ;;  %v780_v59 = vmul.f32 %v7551_v50, %v775_v20 }
 0x363   : > { %v689_v19 = vpop.f32.mrf.mxu0  ;;  %v7602_v11 = vld [vmem:[%s10657_s3 + $0xe8] sm:$0xff]  ;;  %v7617_v20 = vld [vmem:[%s10657_s3 + $0xb8] sm:$0xff] }
 0x364   : > { %v782_v4 = vadd.f32 %v778_v53, %v753_v2  ;;  %v752_v15 = vadd.f32 %v748_v13, %v723_v43  ;;  %v726_v18 = vadd.f32 %v722_v0, %v695_v58  ;;  %v690_v21 = vadd.f32 %v689_v19, %v586_v42  ;;  %v7612_v53 = vld [vmem:[%s10657_s3 + $0xc0] sm:$0xff]  ;;  %v7622_v13 = vld [vmem:[%s10657_s3 + $0x90] sm:$0xff] }
 0x365   : > { %10751 = vst [vmem:[#allocation8_spill] sm:$0xff] %v7612_v53  ;;  %v835_v2 = vmul.f32 %v7577_v17, %v7442_v5  ;;  %v809_v43 = vmul.f32 %v7586_v38, %v7446_v7  ;;  %v7650_v58 = vld [vmem:[%s10657_s3 + $0xe0] sm:$0xff]  ;;  %v7655_v5 = vld [vmem:[%s10657_s3 + $0x108] sm:$0xff]  ;;  %v894_v19 = vmul.f32 %v7602_v11, %v7458_v23 }
 0x366   : > { %v811_v3 = vadd.f32 %v807_v9, %v782_v4  ;;  %v781_v57 = vadd.f32 %v777_v51, %v752_v15  ;;  %v755_v0 = vadd.f32 %v751_v40, %v726_v18  ;;  %v725_v42 = vadd.f32 %v721_v22, %v690_v21  ;;  %v7645_v51 = vld [vmem:[%s10657_s3 + $0xb0] sm:$0xff]  ;;  %v7664_v15 = vld [vmem:[%s10657_s3 + $0xf8] sm:$0xff]  ;;  %v916_v21 = vpop.permute.xlu1 %915  ;;  %v7673_v23 = vld [vmem:[%s10657_s3 + $0x100] sm:$0xff] }
 0x367   : > { %v865_v40 = vmul.f32 %v7591_v55, %v7448_v8  ;;  %v779_v22 = vmul.f32 %v7596_v56, %v7460_v24  ;;  %v864_v4 = vmul.f32 %v7612_v53, %v7462_v25  ;;  %v838_v18 = vmul.f32 %v7617_v20, %v7452_v12  ;;  %v7678_v25 = vld [vmem:[%s10657_s3 + $0xd0] sm:$0xff] }
 0x368   : > { %v810_v7 = vadd.f32 %v806_v28, %v781_v57  ;;  %v784_v8 = vadd.f32 %v780_v59, %v755_v0  ;;  %v754_v9 = vadd.f32 %v750_v33, %v725_v42  ;;  %v840_v24 = vadd.f32 %v836_v60, %v811_v3  ;;  %v891_v60 = vpop.permute.xlu0 %890  ;;  %v7681_v3 = vld [vmem:[%s7627_s28 + $0x8] sm:$0xff] }
 0x369   : > { %v808_v28 = vmul.f32 %v7622_v13, %v7464_v26  ;;  %v867_v26 = vmul.f32 %v7632_v6, %v7466_v27  ;;  %v837_v0 = vmul.f32 %v7645_v51, %v829_v54  ;;  %v893_v42 = vmul.f32 %v7650_v58, %v7450_v10 }
 0x36a   : > { %v813_v33 = vadd.f32 %v809_v43, %v784_v8  ;;  %v783_v59 = vadd.f32 %v779_v22, %v754_v9  ;;  %v869_v12 = vadd.f32 %v865_v40, %v840_v24  ;;  %v839_v57 = vadd.f32 %v835_v2, %v810_v7  ;;  %v7693_v43 = vld [vmem:[%s10657_s3 + $0xf0] sm:$0xff]  ;;  %v7696_v40 = vld [vmem:[%s7627_s28] sm:$0xff] }
 0x36b   : > { %v923_v53 = vmul.f32 %v7655_v5, %v7456_v16  ;;  %v896_v27 = vmul.f32 %v7664_v15, %v891_v60  ;;  %v922_v10 = vmul.f32 %v7673_v23, %v7454_v14  ;;  %v866_v16 = vmul.f32 %v7678_v25, %v7499_v37  ;;  %v7714_v14 = vld [vmem:[%s10657_s3 + $0x118] sm:$0xff]  ;;  %v920_v37 = vpop.permute.xlu1 %919  ;;  %v7720_v60 = vld [vmem:[%s7627_s28 + $0x10] sm:$0xff] }
 0x36c   : > { %v812_v22 = vadd.f32 %v808_v28, %v783_v59  ;;  %v898_v8 = vadd.f32 %v894_v19, %v869_v12  ;;  %v868_v2 = vadd.f32 %v864_v4, %v839_v57  ;;  %v842_v7 = vadd.f32 %v838_v18, %v813_v33  ;;  %v7709_v4 = vld [vmem:[%s10657_s3 + $0x110] sm:$0xff] }
 0x36d   : > { %vm326_vm3 = vcmp.gt.f32.partialorder %v7681_v3, 0.5  ;;  %v895_v19 = vmul.f32 %v7693_v43, %v7580_v29  ;;  %vm325_vm4 = vcmp.gt.f32.partialorder %v7696_v40, 0.5  ;;  %v924_v12 = vmul.f32 %v7709_v4, %v916_v21 }
 0x36e   : > { %v927_v54 = vadd.f32 %v923_v53, %v898_v8  ;;  %v897_v9 = vadd.f32 %v893_v42, %v868_v2  ;;  %v841_v24 = vadd.f32 %v837_v0, %v812_v22  ;;  %v871_v28 = vadd.f32 %v867_v26, %v842_v7  ;;  %v7728_v42 = vld [vmem:[%s7627_s28 + $0x18] sm:$0xff]  ;;  %s7195_s28 = smov 96  }
 0x36f   : > { %v925_v57 = vmul.f32 %v7714_v14, %v920_v37  ;;  %vm327_vm5 = vcmp.gt.f32.partialorder %v7720_v60, 0.5  ;;  %vm328_vm6 = vcmp.gt.f32.partialorder %v7728_v42, 0.5 }
 0x370   : > { %v931_v53 = vsel %vm326_vm3, %v927_v54, -10000.0  ;;  %v926_v18 = vadd.f32 %v922_v10, %v897_v9  ;;  %v870_v29 = vadd.f32 %v866_v16, %v841_v24  ;;  %v900_v33 = vadd.f32 %v896_v27, %v871_v28 }
 0x371   : > { %v937_v59 = vsel %vm340_vm0, %v931_v53, -inf }
 0x372   : > { %938 = vmax.xlane.f32.xlu1 %v937_v59  ;;  %v930_v26 = vsel %vm325_vm4, %v926_v18, -10000.0  ;;  %v899_v0 = vadd.f32 %v895_v19, %v870_v29  ;;  %v929_v2 = vadd.f32 %v925_v57, %v900_v33 }
 0x373   : > { %v934_v22 = vsel %vm340_vm0, %v930_v26, -inf }
 0x374   : > { %935 = vmax.xlane.f32.xlu0 %v934_v22  ;;  %v928_v8 = vadd.f32 %v924_v12, %v899_v0  ;;  %v933_v27 = vsel %vm328_vm6, %v929_v2, -10000.0 }
 0x375   : > { %v943_v10 = vsel %vm340_vm0, %v933_v27, -inf }
 0x376   : > { %v932_v21 = vsel %vm327_vm5, %v928_v8, -10000.0 }
 0x377   : > { %v940_v7 = vsel %vm340_vm0, %v932_v21, -inf }
 0x378   : > { %941 = vmax.xlane.f32.xlu0 %v940_v7 }
 0x37c   : > { %944 = vmax.xlane.f32.xlu0 %v943_v10 }
 0x383   : > { %1010 = vrot.lane.b32.xlu1 %v7342_v45, %s7195_s28 }
 0x3fb   : > { %v939_v16 = vpop.xlane.xlu1 %938 }
 0x3fc   : > { %v947_v54 = vsub.f32 %v931_v53, %v939_v16 }
 0x3fd   : > { %v936_v9 = vpop.xlane.xlu0 %935 }
 0x3fe   : > { %v952_v24 = vmul.f32 1.442695, %v947_v54  ;;  %v946_v28 = vsub.f32 %v930_v26, %v936_v9 }
 0x3ff   : > { %v1011_v19 = vpop.permute.xlu1 %1010 }
 0x400   : > { %6971 = vpow2.f32 %v952_v24  ;;  %v950_v37 = vmul.f32 1.442695, %v946_v28  ;;  %6502 = vmatprep.subr.mxu0 %v1011_v19 }
 0x401   : > { %6503 = vmatpush3.msra.mxu0 %v1011_v19  ;;  %v942_v18 = vpop.xlane.xlu0 %941 }
 0x402   : > { %6973 = vpow2.f32 %v950_v37  ;;  %v948_v22 = vsub.f32 %v932_v21, %v942_v18 }
 0x404   : > { %v954_v8 = vmul.f32 1.442695, %v948_v22 }
 0x405   : > { %v945_v29 = vpop.xlane.xlu0 %944 }
 0x406   : > { %v949_v33 = vsub.f32 %v933_v27, %v945_v29 }
 0x408   : > { %v956_v59 = vmul.f32 1.442695, %v949_v33 }
 0x40a   : > { %6975 = vpow2.f32 %v956_v59 }
 0x40b   : > { %6977 = vpow2.f32 %v954_v8 }
 0x40d   : > { %v6972_v12 = vpop.eup %6971 }
 0x40e   : > { %v961_v57 = vsel %vm340_vm0, %v6972_v12, 0.0 }
 0x40f   : > { %v6974_v45 = vpop.eup %6973  ;;  %962 = vadd.xlane.f32.xlu0 %v961_v57 }
 0x410   : > { %v958_v53 = vsel %vm340_vm0, %v6974_v45, 0.0 }
 0x411   : > { %959 = vadd.xlane.f32.xlu1 %v958_v53 }
 0x417   : > { %v6976_v26 = vpop.eup %6975 }
 0x418   : > { %v967_v0 = vsel %vm340_vm0, %v6976_v26, 0.0  ;;  %v6978_v2 = vpop.eup %6977 }
 0x419   : > { %968 = vadd.xlane.f32.xlu0 %v967_v0  ;;  %v964_v7 = vsel %vm340_vm0, %v6978_v2, 0.0 }
 0x422   : > { %1006 = vrot.lane.b32.xlu1 %v7351_v49, %s7195_s28 }
 0x42f   : > { %1008 = vrot.lane.b32.xlu0 %v7347_v48, %s7195_s28 }
 0x446   : > { %965 = vadd.xlane.f32.xlu1 %v964_v7 }
 0x457   : > { %1004 = vrot.lane.b32.xlu1 %v7332_v41, %s7195_s28 }
 0x498   : > { %v963_v10 = vpop.xlane.xlu0 %962 }
 0x49a   : > { %v960_v27 = vpop.xlane.xlu1 %959 }
 0x49b   : > { %6979 = vrcp.f32 %v960_v27 }
 0x49e   : > { %v1007_v21 = vpop.permute.xlu1 %1006 }
 0x4a2   : > { %v969_v16 = vpop.xlane.xlu0 %968 }
 0x4a3   : > { %6981 = vrcp.f32 %v969_v16 }
 0x4a4   : > { %6983 = vrcp.f32 %v963_v10 }
 0x4a6   : > { %v1009_v54 = vpop.permute.xlu0 %1008 }
 0x4a7   : > { %6504 = vmatprep.subr.mxu0 %v1009_v54 }
 0x4a8   : > { %v6980_v49 = vpop.eup %6979  ;;  %6505 = vmatpush3.msra.mxu0 %v1009_v54 }
 0x4a9   : > { %v7751_v48 = vmul.f32 %v6980_v49, %v6974_v45  ;;  %6506 = vmatprep.subr.mxu0 %v1007_v21 }
 0x4aa   : > { %6507 = vmatpush3.msra.mxu0 %v1007_v21 }
 0x4ab   : > { %6510 = vmatprep.mubr.msk.f32.mxu0 %vm340_vm0, %v7751_v48 }
 0x4b0   : > { %v6982_v9 = vpop.eup %6981 }
 0x4b1   : > { %v977_v24 = vmul.f32 %v6982_v9, %v6976_v26  ;;  %v6984_v45 = vpop.eup %6983 }
 0x4b2   : > { %v7765_v53 = vmul.f32 %v6984_v45, %v6972_v12 }
 0x4b3   : > { %v1116_v41 = vmul.f32 %v7511_v46, %v977_v24  ;;  %v983_v28 = vmul.f32 %v977_v24, %v7492_v35  ;;  %v1144_v18 = vmul.f32 %v7539_v62, %v977_v24  ;;  %v1172_v33 = vmul.f32 %v7551_v50, %v977_v24 }
 0x4b4   : > { %v1200_v57 = vmul.f32 %v7586_v38, %v977_v24 }
 0x4b5   : > { %v1126_v19 = vsel %vm340_vm0, %v1116_v41, 0.0  ;;  %v993_v37 = vsel %vm340_vm0, %v983_v28, 0.0  ;;  %v1154_v29 = vsel %vm340_vm0, %v1144_v18, 0.0  ;;  %v1182_v59 = vsel %vm340_vm0, %v1172_v33, 0.0 }
 0x4b6   : > { %1127 = vadd.xlane.f32.xlu0 %v1126_v19  ;;  %994 = vadd.xlane.f32.xlu1 %v993_v37  ;;  %v1210_v35 = vsel %vm340_vm0, %v1200_v57, 0.0  ;;  %v1113_v18 = vmul.f32 %v7487_v34, %v7751_v48  ;;  %v1141_v33 = vmul.f32 %v7506_v44, %v7751_v48  ;;  %v10752_v34 = vld [vmem:[#allocation6_spill] sm:$0xff]  ;;  %v1226_v44 = vmul.f32 %v7567_v1, %v7765_v53 }
 0x4b7   : > { %v1198_v57 = vmul.f32 %v10752_v34, %v7765_v53 }
 0x4b9   : > { %v1204_v45 = vsel %vm340_vm0, %v1198_v57, 0.0 }
 0x4ba   : > { %1155 = vadd.xlane.f32.xlu0 %v1154_v29 }
 0x4be   : > { %1183 = vadd.xlane.f32.xlu0 %v1182_v59 }
 0x4c2   : > { %1211 = vadd.xlane.f32.xlu0 %v1210_v35  ;;  %v10753_v35 = vld [vmem:[#allocation7_spill] sm:$0xff] }
 0x4cf   : > { %v966_v46 = vpop.xlane.xlu1 %965 }
 0x4d0   : > { %6985 = vrcp.f32 %v966_v46  ;;  %v1169_v46 = vmul.f32 %v10753_v35, %v7751_v48 }
 0x4d3   : > { %v1005_v62 = vpop.permute.xlu1 %1004 }
 0x4d4   : > { %6508 = vmatprep.subr.mxu0 %v1005_v62 }
 0x4d5   : > { %6509 = vmatpush3.msra.mxu0 %v1005_v62  ;;  %v1197_v62 = vmul.f32 %v7557_v52, %v7751_v48  ;;  %v1282_v52 = vmul.f32 %v7602_v11, %v7765_v53 }
 0x4d6   : > { %6511 = vmatmul.mubr.msk.f32.vlgmr.msra.gmra.mxu0 %vm340_vm0, %v7765_v53 }
 0x4dd   : > { %v6986_v50 = vpop.eup %6985 }
 0x4de   : > { %v976_v26 = vmul.f32 %v6986_v50, %v6978_v2  ;;  %v1232_v50 = vsel %vm340_vm0, %v1226_v44, 0.0 }
 0x4e0   : > { %6513 = vmatprep.mubr.msk.f32.mxu0 %vm340_vm0, %v976_v26  ;;  %v982_v38 = vmul.f32 %v976_v26, %v7527_v61  ;;  %v1143_v0 = vmul.f32 %v7562_v63, %v976_v26  ;;  %v1115_v8 = vmul.f32 %v7544_v39, %v976_v26  ;;  %v1171_v7 = vmul.f32 %v7596_v56, %v976_v26 }
 0x4e1   : > { %6514 = vmatmul.mubr.msk.f32.gmra.mxu0 %vm340_vm0, %v977_v24  ;;  %v1228_v61 = vmul.f32 %v7617_v20, %v977_v24  ;;  %v1199_v63 = vmul.f32 %v7622_v13, %v976_v26  ;;  %v1256_v39 = vmul.f32 %v7632_v6, %v977_v24  ;;  %v1227_v56 = vmul.f32 %v7645_v51, %v976_v26 }
 0x4e2   : > { %v990_v22 = vsel %vm340_vm0, %v982_v38, 0.0  ;;  %v1151_v12 = vsel %vm340_vm0, %v1143_v0, 0.0  ;;  %v1123_v2 = vsel %vm340_vm0, %v1115_v8, 0.0  ;;  %v1179_v27 = vsel %vm340_vm0, %v1171_v7, 0.0 }
 0x4e3   : > { %991 = vadd.xlane.f32.xlu0 %v990_v22  ;;  %1152 = vadd.xlane.f32.xlu1 %v1151_v12  ;;  %v1238_v10 = vsel %vm340_vm0, %v1228_v61, 0.0  ;;  %v1207_v16 = vsel %vm340_vm0, %v1199_v63, 0.0  ;;  %v1266_v54 = vsel %vm340_vm0, %v1256_v39, 0.0  ;;  %v1235_v49 = vsel %vm340_vm0, %v1227_v56, 0.0  ;;  %v10754_v12 = vld [vmem:[#allocation8_spill] sm:$0xff] }
 0x4e4   : > { %v1284_v20 = vmul.f32 %v7664_v15, %v977_v24  ;;  %v1255_v13 = vmul.f32 %v7678_v25, %v976_v26  ;;  %v1312_v6 = vmul.f32 %v7714_v14, %v977_v24  ;;  %v1283_v51 = vmul.f32 %v7693_v43, %v976_v26 }
 0x4e5   : > { %v981_v15 = vmul.f32 %v7765_v53, %v7471_v30  ;;  %v1311_v25 = vmul.f32 %v7709_v4, %v976_v26  ;;  %v1114_v43 = vmul.f32 %v7476_v31, %v7765_v53  ;;  %v980_v14 = vmul.f32 %v7751_v48, %v7481_v32 }
 0x4e6   : > { %v1294_v21 = vsel %vm340_vm0, %v1284_v20, 0.0  ;;  %v1263_v9 = vsel %vm340_vm0, %v1255_v13, 0.0  ;;  %v1322_v41 = vsel %vm340_vm0, %v1312_v6, 0.0  ;;  %v1291_v28 = vsel %vm340_vm0, %v1283_v51, 0.0 }
 0x4e7   : > { %1124 = vadd.xlane.f32.xlu0 %v1123_v2  ;;  %1180 = vadd.xlane.f32.xlu1 %v1179_v27  ;;  %v987_v19 = vsel %vm340_vm0, %v981_v15, 0.0  ;;  %v1319_v37 = vsel %vm340_vm0, %v1311_v25, 0.0  ;;  %v1120_v24 = vsel %vm340_vm0, %v1114_v43, 0.0  ;;  %v984_v30 = vsel %vm340_vm0, %v980_v14, 0.0 }
 0x4e8   : > { %v1142_v4 = vmul.f32 %v7497_v36, %v7765_v53  ;;  %v1117_v31 = vsel %vm340_vm0, %v1113_v18, 0.0  ;;  %v1170_v32 = vmul.f32 %v7516_v47, %v7765_v53  ;;  %v1145_v36 = vsel %vm340_vm0, %v1141_v33, 0.0 }
 0x4e9   : > { %v1173_v47 = vsel %vm340_vm0, %v1169_v46, 0.0  ;;  %v1201_v26 = vsel %vm340_vm0, %v1197_v62, 0.0  ;;  %v1254_v38 = vmul.f32 %v7591_v55, %v7765_v53  ;;  %v1225_v0 = vmul.f32 %v7577_v17, %v7751_v48 }
 0x4ea   : > { %v1148_v29 = vsel %vm340_vm0, %v1142_v4, 0.0  ;;  %v1176_v59 = vsel %vm340_vm0, %v1170_v32, 0.0  ;;  %v1253_v8 = vmul.f32 %v10754_v12, %v7751_v48  ;;  %v1288_v7 = vsel %vm340_vm0, %v1282_v52, 0.0 }
 0x4eb   : > { %1239 = vadd.xlane.f32.xlu0 %v1238_v10  ;;  %1208 = vadd.xlane.f32.xlu1 %v1207_v16  ;;  %v1260_v22 = vsel %vm340_vm0, %v1254_v38, 0.0  ;;  %v1229_v1 = vsel %vm340_vm0, %v1225_v0, 0.0  ;;  %v1310_v17 = vmul.f32 %v7655_v5, %v7765_v53  ;;  %v1281_v2 = vmul.f32 %v7650_v58, %v7751_v48  ;;  %v1350_v5 = vld [vmem:[%s10659_s5 + $0x58] sm:$0xff]  ;;  %v1349_v58 = vld [vmem:[%s10659_s5 + $0x50] sm:$0xff]  ;;  %v1348_v53 = vld [vmem:[%s10659_s5 + $0x48] sm:$0xff] }
 0x4ec   : > { %v1257_v55 = vsel %vm340_vm0, %v1253_v8, 0.0  ;;  %v1309_v61 = vmul.f32 %v7673_v23, %v7751_v48  ;;  %6516 = vmatprep.subr.mxu0 %v1350_v5 }
 0x4ed   : > { %v1316_v27 = vsel %vm340_vm0, %v1310_v17, 0.0  ;;  %v1285_v11 = vsel %vm340_vm0, %v1281_v2, 0.0  ;;  %6517 = vmatpush3.msra.mxu0 %v1350_v5 }
 0x4ee   : > { %v1313_v63 = vsel %vm340_vm0, %v1309_v61, 0.0  ;;  %6518 = vmatprep.subr.mxu0 %v1349_v58 }
 0x4ef   : > { %1267 = vadd.xlane.f32.xlu0 %v1266_v54  ;;  %1236 = vadd.xlane.f32.xlu1 %v1235_v49 }
 0x4f0   : > { %6519 = vmatpush3.msra.mxu0 %v1349_v58 }
 0x4f1   : > { %6520 = vmatprep.subr.mxu0 %v1348_v53 }
 0x4f2   : > { %6521 = vmatpush3.msra.mxu0 %v1348_v53 }
 0x4f3   : > { %1295 = vadd.xlane.f32.xlu0 %v1294_v21  ;;  %1264 = vadd.xlane.f32.xlu1 %v1263_v9 }
 0x4f7   : > { %1323 = vadd.xlane.f32.xlu0 %v1322_v41  ;;  %1292 = vadd.xlane.f32.xlu1 %v1291_v28 }
 0x4fb   : > { %988 = vadd.xlane.f32.xlu0 %v987_v19  ;;  %1320 = vadd.xlane.f32.xlu1 %v1319_v37  ;;  %v996_v37 = vlaneseq }
 0x4ff   : > { %1121 = vadd.xlane.f32.xlu0 %v1120_v24  ;;  %985 = vadd.xlane.f32.xlu1 %v984_v30  ;;  %v997_v24 = vshrl.u32 %v996_v37, 7 }
 0x501   : > { %v7896_v18 = vsub.s32 0, %v997_v24  ;;  %v7901_v33 = vsub.s32 1, %v997_v24  ;;  %v7906_v34 = vsub.s32 3, %v997_v24  ;;  %v7922_v53 = vsub.s32 7, %v997_v24 }
 0x503   : > { %1149 = vadd.xlane.f32.xlu0 %v1148_v29  ;;  %1118 = vadd.xlane.f32.xlu1 %v1117_v31  ;;  %10755 = vst [vmem:[#allocation6_spill] sm:$0xff] %v7896_v18  ;;  %v978_v29 = vld [vmem:[%s10659_s5 + $0x180] sm:$0xff]  ;;  %10756 = vst [vmem:[#allocation7_spill] sm:$0xff] %v7901_v33 }
 0x504   : > { %10758 = vst [vmem:[#allocation9_spill] sm:$0xff] %v7906_v34  ;;  %v1132_v46 = vrot.slane %v978_v29, %v7901_v33  ;;  %v7913_v0 = vrot.slane %v978_v29, %v7906_v34  ;;  %10762 = vst [vmem:[#allocation13_spill] sm:$0xff] %v7922_v53  ;;  %v8438_v34 = vld [vmem:[%s10657_s3 + $0x50] sm:$0xff] }
 0x505   : > { %v8521_v33 = vld [vmem:[%s10657_s3 + $0xb0] sm:$0xff] }
 0x507   : > { %1177 = vadd.xlane.f32.xlu0 %v1176_v59  ;;  %1146 = vadd.xlane.f32.xlu1 %v1145_v36  ;;  %v999_v59 = vrot.slane %v978_v29, %v7896_v18  ;;  %v7904_v36 = vsub.s32 2, %v997_v24 }
 0x509   : > { %10757 = vst [vmem:[#allocation8_spill] sm:$0xff] %v7904_v36  ;;  %v1160_v62 = vrot.slane %v978_v29, %v7904_v36  ;;  %v8514_v36 = vld [vmem:[%s10657_s3 + $0xd8] sm:$0xff] }
 0x50b   : > { %1205 = vadd.xlane.f32.xlu0 %v1204_v45  ;;  %1174 = vadd.xlane.f32.xlu1 %v1173_v47  ;;  %v7909_v47 = vsub.s32 4, %v997_v24 }
 0x50d   : > { %10759 = vst [vmem:[#allocation10_spill] sm:$0xff] %v7909_v47  ;;  %v1216_v2 = vrot.slane %v978_v29, %v7909_v47  ;;  %v8432_v47 = vld [vmem:[%s10657_s3 + $0x78] sm:$0xff] }
 0x50f   : > { %1233 = vadd.xlane.f32.xlu0 %v1232_v50  ;;  %1202 = vadd.xlane.f32.xlu1 %v1201_v26 }
 0x513   : > { %1261 = vadd.xlane.f32.xlu0 %v1260_v22  ;;  %1230 = vadd.xlane.f32.xlu1 %v1229_v1  ;;  %v7915_v22 = vsub.s32 5, %v997_v24 }
 0x515   : > { %10760 = vst [vmem:[#allocation11_spill] sm:$0xff] %v7915_v22  ;;  %v1244_v58 = vrot.slane %v978_v29, %v7915_v22 }
 0x517   : > { %1289 = vadd.xlane.f32.xlu0 %v1288_v7  ;;  %1258 = vadd.xlane.f32.xlu1 %v1257_v55 }
 0x51b   : > { %1317 = vadd.xlane.f32.xlu0 %v1316_v27  ;;  %1286 = vadd.xlane.f32.xlu1 %v1285_v11  ;;  %v7918_v27 = vsub.s32 6, %v997_v24 }
 0x51d   : > { %10761 = vst [vmem:[#allocation12_spill] sm:$0xff] %v7918_v27 }
 0x51f   : > { %1314 = vadd.xlane.f32.xlu1 %v1313_v63 }
 0x53f   : > { %v7860_v23 = vpop.xlane.xlu0 %1127  ;;  %v7866_v16 = vpop.xlane.xlu1 %994 }
 0x543   : > { %v7862_v48 = vpop.xlane.xlu0 %1155 }
 0x547   : > { %v7864_v10 = vpop.xlane.xlu0 %1183 }
 0x54b   : > { %v7868_v39 = vpop.xlane.xlu0 %1211 }
 0x56c   : > { %v7870_v56 = vpop.xlane.xlu1 %1152  ;;  %v7872_v54 = vpop.xlane.xlu0 %991 }
 0x570   : > { %v7874_v49 = vpop.xlane.xlu1 %1180  ;;  %v7876_v20 = vpop.xlane.xlu0 %1124 }
 0x574   : > { %v7878_v13 = vpop.xlane.xlu1 %1208  ;;  %v7880_v21 = vpop.xlane.xlu0 %1239 }
 0x578   : > { %v7882_v9 = vpop.xlane.xlu1 %1236  ;;  %v7884_v6 = vpop.xlane.xlu0 %1267 }
 0x57c   : > { %v7886_v51 = vpop.xlane.xlu1 %1264  ;;  %v7888_v41 = vpop.xlane.xlu0 %1295 }
 0x580   : > { %v7890_v28 = vpop.xlane.xlu1 %1292  ;;  %v7892_v15 = vpop.xlane.xlu0 %1323 }
 0x584   : > { %v7894_v25 = vpop.xlane.xlu1 %1320  ;;  %v989_v19 = vpop.xlane.xlu0 %988 }
 0x585   : > { %v1001_v45 = vmul.f32 %v999_v59, %v989_v19 }
 0x588   : > { %v986_v43 = vpop.xlane.xlu1 %985  ;;  %v1122_v14 = vpop.xlane.xlu0 %1121 }
 0x589   : > { %v1000_v50 = vmul.f32 %v999_v59, %v986_v43  ;;  %v1134_v26 = vmul.f32 %v1132_v46, %v1122_v14 }
 0x58c   : > { %v1119_v30 = vpop.xlane.xlu1 %1118  ;;  %v1150_v4 = vpop.xlane.xlu0 %1149 }
 0x58d   : > { %v1133_v12 = vmul.f32 %v1132_v46, %v1119_v30  ;;  %v1162_v8 = vmul.f32 %v1160_v62, %v1150_v4 }
 0x590   : > { %v1147_v31 = vpop.xlane.xlu1 %1146  ;;  %v1178_v32 = vpop.xlane.xlu0 %1177 }
 0x591   : > { %v1161_v11 = vmul.f32 %v1160_v62, %v1147_v31  ;;  %v1190_v61 = vmul.f32 %v7913_v0, %v1178_v32  ;;  %v1003_v32 = vmul.f32 %v999_v59, %v7866_v16  ;;  %v1164_v16 = vmul.f32 %v1160_v62, %v7862_v48 }
 0x594   : > { %v1175_v57 = vpop.xlane.xlu1 %1174  ;;  %v1206_v35 = vpop.xlane.xlu0 %1205 }
 0x595   : > { %v1189_v37 = vmul.f32 %v7913_v0, %v1175_v57  ;;  %v1218_v43 = vmul.f32 %v1216_v2, %v1206_v35 }
 0x596   : > { %v6512_v44 = vpop.f32.mrf.mxu0 }
 0x597   : > { %v1100_v38 = vadd.f32 %v6512_v44, %v1001_v45  ;;  %v1272_v45 = vrot.slane %v978_v29, %v7918_v27 }
 0x598   : > { %v1203_v1 = vpop.xlane.xlu1 %1202  ;;  %v1094_v52 = vpop.f32.mrf.mxu0 }
 0x599   : > { %v1138_v7 = vadd.f32 %v1134_v26, %v1100_v38  ;;  %v1095_v55 = vadd.f32 %v1094_v52, %v1000_v50  ;;  %v1234_v17 = vpop.xlane.xlu0 %1233  ;;  %v1217_v44 = vmul.f32 %v1216_v2, %v1203_v1  ;;  %v1300_v38 = vrot.slane %v978_v29, %v7922_v53 }
 0x59a   : > { %v1246_v26 = vmul.f32 %v1244_v58, %v1234_v17  ;;  %v1135_v29 = vmul.f32 %v1132_v46, %v7876_v20  ;;  %v1220_v20 = vmul.f32 %v1216_v2, %v7868_v39 }
 0x59b   : > { %v1166_v63 = vadd.f32 %v1162_v8, %v1138_v7  ;;  %v1137_v5 = vadd.f32 %v1133_v12, %v1095_v55  ;;  %v1136_v55 = vmul.f32 %v1132_v46, %v7860_v23  ;;  %v5950_v23 = vld [vmem:[%s10659_s5 + $0x188] ss:$0 sm:$0xff] }
 0x59c   : > { %v1231_v19 = vpop.xlane.xlu1 %1230 }
 0x59d   : > { %v1194_v14 = vadd.f32 %v1190_v61, %v1166_v63  ;;  %v1165_v30 = vadd.f32 %v1161_v11, %v1137_v5  ;;  %v1262_v4 = vpop.xlane.xlu0 %1261  ;;  %v1245_v8 = vmul.f32 %v1244_v58, %v1231_v19  ;;  %v1002_v11 = vmul.f32 %v999_v59, %v7872_v54 }
 0x59e   : > { %v1274_v7 = vmul.f32 %v1272_v45, %v1262_v4 }
 0x59f   : > { %v1193_v50 = vadd.f32 %v1189_v37, %v1165_v30  ;;  %v1222_v31 = vadd.f32 %v1218_v43, %v1194_v14  ;;  %v1192_v30 = vmul.f32 %v7913_v0, %v7864_v10  ;;  %v1347_v10 = vld [vmem:[%s10659_s5 + $0x40] sm:$0xff] }
 0x5a0   : > { %v1259_v52 = vpop.xlane.xlu1 %1258  ;;  %6522 = vmatprep.subr.mxu0 %v1347_v10 }
 0x5a1   : > { %v1250_v24 = vadd.f32 %v1246_v26, %v1222_v31  ;;  %v1221_v12 = vadd.f32 %v1217_v44, %v1193_v50  ;;  %v1290_v57 = vpop.xlane.xlu0 %1289  ;;  %v6515_v35 = vpop.f32.mrf.mxu0  ;;  %v1273_v5 = vmul.f32 %v1272_v45, %v1259_v52  ;;  %v1163_v50 = vmul.f32 %v1160_v62, %v7870_v56  ;;  %6523 = vmatpush3.msra.mxu0 %v1347_v10 }
 0x5a2   : > { %v1110_v61 = vadd.f32 %v6515_v35, %v1003_v32  ;;  %v1302_v17 = vmul.f32 %v1300_v38, %v1290_v57  ;;  %v1191_v32 = vmul.f32 %v7913_v0, %v7874_v49  ;;  %v1219_v56 = vmul.f32 %v1216_v2, %v7878_v13 }
 0x5a3   : > { %v1249_v1 = vadd.f32 %v1245_v8, %v1221_v12  ;;  %v1278_v63 = vadd.f32 %v1274_v7, %v1250_v24  ;;  %v1104_v37 = vpop.f32.mrf.mxu0  ;;  %v1248_v62 = vmul.f32 %v1244_v58, %v7880_v21  ;;  %v1275_v0 = vmul.f32 %v1272_v45, %v7886_v51 }
 0x5a4   : > { %v1140_v43 = vadd.f32 %v1136_v55, %v1110_v61  ;;  %v1105_v14 = vadd.f32 %v1104_v37, %v1002_v11  ;;  %v1287_v19 = vpop.xlane.xlu1 %1286  ;;  %v1247_v55 = vmul.f32 %v1244_v58, %v7882_v9  ;;  %v1276_v11 = vmul.f32 %v1272_v45, %v7884_v6 }
 0x5a5   : > { %v1277_v54 = vadd.f32 %v1273_v5, %v1249_v1  ;;  %v1306_v59 = vadd.f32 %v1302_v17, %v1278_v63  ;;  %v1301_v4 = vmul.f32 %v1300_v38, %v1287_v19  ;;  %v1318_v44 = vpop.xlane.xlu0 %1317  ;;  %v1304_v1 = vmul.f32 %v1300_v38, %v7888_v41  ;;  %v10764_v19 = vld [vmem:[#allocation5_spill] sm:$0xff] }
 0x5a6   : > { %v1168_v31 = vadd.f32 %v1164_v16, %v1140_v43  ;;  %v1139_v48 = vadd.f32 %v1135_v29, %v1105_v14  ;;  %v1330_v26 = vmul.f32 %v5950_v23, %v1318_v44  ;;  %v1303_v17 = vmul.f32 %v1300_v38, %v7890_v28  ;;  %v10763_v43 = vld [vmem:[#allocation4_spill] sm:$0xff] }
 0x5a7   : > { %v1305_v46 = vadd.f32 %v1301_v4, %v1277_v54  ;;  %v1332_v13 = vmul.f32 %v5950_v23, %v7892_v15  ;;  %v1331_v37 = vmul.f32 %v5950_v23, %v7894_v25  ;;  %v5951_v15 = vld [vmem:[%s10660_s6 + $0x20] ss:$0 sm:$0xff] }
 0x5a8   : > { %v1196_v52 = vadd.f32 %v1192_v30, %v1168_v31  ;;  %v1167_v24 = vadd.f32 %v1163_v50, %v1139_v48  ;;  %v1334_v12 = vadd.f32 %v1330_v26, %v1306_v59  ;;  %v1315_v8 = vpop.xlane.xlu1 %1314 }
 0x5a9   : > { %v1329_v7 = vmul.f32 %v5950_v23, %v1315_v8  ;;  %v1521_v8 = vld [vmem:[%s10659_s5 + $0x98] sm:$0xff] }
 0x5aa   : > { %v1224_v39 = vadd.f32 %v1220_v20, %v1196_v52  ;;  %v1195_v57 = vadd.f32 %v1191_v32, %v1167_v24  ;;  %v1525_v32 = vld [vmem:[%s10659_s5 + $0xb8] sm:$0xff]  ;;  %v1524_v52 = vld [vmem:[%s10659_s5 + $0xb0] sm:$0xff]  ;;  %v1523_v24 = vld [vmem:[%s10659_s5 + $0xa8] sm:$0xff] }
 0x5ab   : > { %v1333_v35 = vadd.f32 %v1329_v7, %v1305_v46  ;;  %6527 = vmatprep.subr.mxu1 %v1525_v32  ;;  %v1520_v7 = vld [vmem:[%s10659_s5 + $0x90] sm:$0xff] }
 0x5ac   : > { %v1223_v61 = vadd.f32 %v1219_v56, %v1195_v57  ;;  %v1252_v49 = vadd.f32 %v1248_v62, %v1224_v39  ;;  %6528 = vmatpush3.msra.mxu1 %v1525_v32  ;;  %v1519_v56 = vld [vmem:[%s10659_s5 + $0x88] sm:$0xff]  ;;  %v1650_v32 = vld [vmem:[%s10659_s5 + $0x120] sm:$0xff] }
 0x5ad   : > { %6529 = vmatprep.subr.mxu1 %v1524_v52 }
 0x5ae   : > { %v1251_v63 = vadd.f32 %v1247_v55, %v1223_v61  ;;  %v1280_v5 = vadd.f32 %v1276_v11, %v1252_v49  ;;  %6530 = vmatpush3.msra.mxu1 %v1524_v52  ;;  %v1518_v61 = vld [vmem:[%s10659_s5 + $0x80] sm:$0xff]  ;;  %v1517_v49 = vld [vmem:[%s10659_s5 + $0x78] sm:$0xff] }
 0x5af   : > { %6531 = vmatprep.subr.mxu1 %v1523_v24  ;;  %v1649_v52 = vld [vmem:[%s10659_s5 + $0x118] sm:$0xff] }
 0x5b0   : > { %v1308_v21 = vadd.f32 %v1304_v1, %v1280_v5  ;;  %v1279_v2 = vadd.f32 %v1275_v0, %v1251_v63  ;;  %6532 = vmatpush3.msra.mxu1 %v1523_v24  ;;  %v1516_v0 = vld [vmem:[%s10659_s5 + $0x70] sm:$0xff]  ;;  %v5954_v63 = vld [vmem:[%s10660_s6 + $0x23] ss:$0 sm:$0xff] }
 0x5b1   : > { %v1648_v24 = vld [vmem:[%s10659_s5 + $0x110] sm:$0xff] }
 0x5b2   : > { %v1336_v16 = vadd.f32 %v1332_v13, %v1308_v21  ;;  %v1307_v9 = vadd.f32 %v1303_v17, %v1279_v2  ;;  %v5955_v13 = vld [vmem:[%s10660_s6 + $0x24] ss:$0 sm:$0xff]  ;;  %v1515_v21 = vld [vmem:[%s10659_s5 + $0x68] sm:$0xff] }
 0x5b4   : > { %1341 = vrot.lane.b32.xlu0 %v1336_v16, %s7196_s21  ;;  %v1335_v6 = vadd.f32 %v1331_v37, %v1307_v9  ;;  %v1514_v16 = vld [vmem:[%s10659_s5 + $0x60] sm:$0xff] }
 0x5b6   : > { %1339 = vrot.lane.b32.xlu1 %v1335_v6, %s7196_s21 }
 0x626   : > { %v1342_v51 = vpop.permute.xlu0 %1341 }
 0x627   : > { %v1346_v28 = vsel %vm596_vm2, %v1334_v12, %v1342_v51  ;;  %v1522_v12 = vld [vmem:[%s10659_s5 + $0xa0] sm:$0xff]  ;;  %v10765_v51 = vld [vmem:[#allocation3_spill] sm:$0xff] }
 0x628   : > { %v1340_v41 = vpop.permute.xlu1 %1339  ;;  %6533 = vmatprep.subr.mxu1 %v1522_v12 }
 0x629   : > { %v1345_v58 = vsel %vm596_vm2, %v1333_v35, %v1340_v41  ;;  %6534 = vmatpush3.msra.mxu1 %v1522_v12  ;;  %v1647_v12 = vld [vmem:[%s10659_s5 + $0x108] sm:$0xff] }
 0x62a   : > { %6524 = vmatprep.mubr.msk.f32.mxu0 %vm340_vm0, %v1345_v58  ;;  %6535 = vmatprep.subr.mxu1 %v1521_v8 }
 0x62b   : > { %6525 = vmatmul.mubr.msk.f32.vlgmr.msra.gmra.mxu0 %vm340_vm0, %v1346_v28  ;;  %6536 = vmatpush3.msra.mxu1 %v1521_v8  ;;  %v10766_v28 = vld [vmem:[#allocation2_spill] sm:$0xff] }
 0x62c   : > { %6537 = vmatprep.subr.mxu1 %v1520_v7  ;;  %v1646_v8 = vld [vmem:[%s10659_s5 + $0x100] sm:$0xff] }
 0x62d   : > { %6538 = vmatpush3.msra.mxu1 %v1520_v7  ;;  %v1645_v7 = vld [vmem:[%s10659_s5 + $0xf8] sm:$0xff] }
 0x62e   : > { %6539 = vmatprep.subr.mxu1 %v1519_v56 }
 0x62f   : > { %6540 = vmatpush3.msra.mxu1 %v1519_v56  ;;  %v1644_v56 = vld [vmem:[%s10659_s5 + $0xf0] sm:$0xff] }
 0x630   : > { %6541 = vmatprep.subr.mxu1 %v1518_v61 }
 0x631   : > { %6542 = vmatpush3.msra.mxu1 %v1518_v61  ;;  %v1661_v61 = vld [vmem:[%s10659_s5 + $0x178] sm:$0xff] }
 0x632   : > { %6543 = vmatprep.subr.mxu1 %v1517_v49 }
 0x633   : > { %6544 = vmatpush3.msra.mxu1 %v1517_v49  ;;  %v1660_v49 = vld [vmem:[%s10659_s5 + $0x170] sm:$0xff] }
 0x634   : > { %6545 = vmatprep.subr.mxu1 %v1516_v0 }
 0x635   : > { %6546 = vmatpush3.msra.mxu1 %v1516_v0  ;;  %v1659_v0 = vld [vmem:[%s10659_s5 + $0x168] sm:$0xff] }
 0x636   : > { %6547 = vmatprep.subr.mxu1 %v1515_v21 }
 0x637   : > { %6548 = vmatpush3.msra.mxu1 %v1515_v21  ;;  %v5956_v21 = vld [vmem:[%s10660_s6 + $0x21] ss:$0 sm:$0xff] }
 0x638   : > { %6549 = vmatprep.subr.mxu1 %v1514_v16 }
 0x639   : > { %6550 = vmatpush3.msra.mxu1 %v1514_v16 }
 0x6eb   : > { %v6526_v25 = vpop.f32.mrf.mxu0 }
 0x6ec   : > { %v1434_v45 = vadd.f32 %v6526_v25, %v5951_v15 }
 0x6ed   : > { %v1428_v38 = vpop.f32.mrf.mxu0 }
 0x6ee   : > { %v1429_v29 = vadd.f32 %v5951_v15, %v1428_v38  ;;  %v1438_v14 = vadd.f32 %v1434_v45, %v10763_v43 }
 0x6f0   : > { %v1437_v30 = vadd.f32 %v1429_v29, %v10764_v19  ;;  %v1444_v23 = vsel %vm340_vm0, %v1438_v14, 0.0 }
 0x6f1   : > { %1445 = vadd.xlane.f32.xlu0 %v1444_v23 }
 0x6f2   : > { %v1441_v54 = vsel %vm340_vm0, %v1437_v30, 0.0 }
 0x6f3   : > { %1442 = vadd.xlane.f32.xlu1 %v1441_v54 }
 0x77a   : > { %v1446_v59 = vpop.xlane.xlu0 %1445 }
 0x77b   : > { %v1449_v4 = vmul.f32 0.03125, %v1446_v59 }
 0x77c   : > { %v1443_v44 = vpop.xlane.xlu1 %1442 }
 0x77d   : > { %v1451_v50 = vsub.f32 %v1438_v14, %v1449_v4  ;;  %v1448_v31 = vmul.f32 0.03125, %v1443_v44 }
 0x77f   : > { %v1450_v48 = vsub.f32 %v1437_v30, %v1448_v31  ;;  %v1453_v26 = vmul.f32 %v1451_v50, %v1451_v50 }
 0x781   : > { %v1457_v20 = vsel %vm340_vm0, %v1453_v26, 0.0  ;;  %v1452_v46 = vmul.f32 %v1450_v48, %v1450_v48  ;;  %v1653_v26 = vld [vmem:[%s10659_s5 + $0x138] sm:$0xff] }
 0x782   : > { %1458 = vadd.xlane.f32.xlu0 %v1457_v20  ;;  %v10689_v20 = vmov 0.0  }
 0x783   : > { %v1454_v10 = vsel %vm340_vm0, %v1452_v46, 0.0  ;;  %1672 = vmatprep.subr.mxu0 %v10689_v20  ;;  %v1652_v46 = vld [vmem:[%s10659_s5 + $0x130] sm:$0xff] }
 0x784   : > { %1455 = vadd.xlane.f32.xlu1 %v1454_v10  ;;  %1673 = vmatpush1.msra.mxu0 %v1653_v26  ;;  %v1651_v10 = vld [vmem:[%s10659_s5 + $0x128] sm:$0xff] }
 0x785   : > { %1674 = vmatprep.subr.mxu0 %v10689_v20 }
 0x786   : > { %1675 = vmatpush1.msra.mxu0 %v1652_v46 }
 0x787   : > { %1676 = vmatprep.subr.mxu0 %v10689_v20 }
 0x788   : > { %1677 = vmatpush1.msra.mxu0 %v1651_v10 }
 0x789   : > { %1678 = vmatprep.subr.mxu0 %v10689_v20 }
 0x78a   : > { %1679 = vmatpush1.msra.mxu0 %v1650_v32 }
 0x78b   : > { %1680 = vmatprep.subr.mxu0 %v10689_v20 }
 0x78c   : > { %1681 = vmatpush1.msra.mxu0 %v1649_v52 }
 0x78d   : > { %1682 = vmatprep.subr.mxu0 %v10689_v20 }
 0x78e   : > { %1683 = vmatpush1.msra.mxu0 %v1648_v24 }
 0x78f   : > { %1684 = vmatprep.subr.mxu0 %v10689_v20 }
 0x790   : > { %1685 = vmatpush1.msra.mxu0 %v1647_v12 }
 0x791   : > { %1686 = vmatprep.subr.mxu0 %v10689_v20 }
 0x792   : > { %1687 = vmatpush1.msra.mxu0 %v1646_v8 }
 0x793   : > { %1688 = vmatprep.subr.mxu0 %v10689_v20 }
 0x794   : > { %1689 = vmatpush1.msra.mxu0 %v1645_v7 }
 0x795   : > { %1690 = vmatprep.subr.mxu0 %v10689_v20 }
 0x796   : > { %1691 = vmatpush1.msra.mxu0 %v1644_v56 }
 0x797   : > { %1692 = vmatprep.subr.mxu0 %v10689_v20 }
 0x80b   : > { %v1459_v62 = vpop.xlane.xlu0 %1458 }
 0x80c   : > { %v1461_v39 = vmul.f32 0.03125, %v1459_v62  ;;  %v1643_v62 = vld [vmem:[%s10659_s5 + $0xe8] sm:$0xff] }
 0x80d   : > { %v1456_v57 = vpop.xlane.xlu1 %1455  ;;  %1693 = vmatpush1.msra.mxu0 %v1643_v62 }
 0x80e   : > { %v1463_v35 = vadd.f32 0.0001, %v1461_v39  ;;  %v1460_v55 = vmul.f32 0.03125, %v1456_v57  ;;  %v1642_v39 = vld [vmem:[%s10659_s5 + $0xe0] sm:$0xff]  ;;  %1694 = vmatprep.subr.mxu0 %v10689_v20  ;;  %v1641_v57 = vld [vmem:[%s10659_s5 + $0xd8] sm:$0xff] }
 0x80f   : > { %1695 = vmatpush1.msra.mxu0 %v1642_v39 }
 0x810   : > { %6987 = vrsqrt.f32 %v1463_v35  ;;  %v1462_v11 = vadd.f32 0.0001, %v1460_v55  ;;  %1696 = vmatprep.subr.mxu0 %v10689_v20  ;;  %v1640_v35 = vld [vmem:[%s10659_s5 + $0xd0] sm:$0xff]  ;;  %v1639_v55 = vld [vmem:[%s10659_s5 + $0xc8] sm:$0xff] }
 0x811   : > { %1697 = vmatpush1.msra.mxu0 %v1641_v57 }
 0x812   : > { %6989 = vrsqrt.f32 %v1462_v11  ;;  %1698 = vmatprep.subr.mxu0 %v10689_v20  ;;  %v1638_v11 = vld [vmem:[%s10659_s5 + $0xc0] sm:$0xff] }
 0x813   : > { %1699 = vmatpush1.msra.mxu0 %v1640_v35 }
 0x814   : > { %1700 = vmatprep.subr.mxu0 %v10689_v20 }
 0x815   : > { %1701 = vmatpush1.msra.mxu0 %v1639_v55 }
 0x816   : > { %1702 = vmatprep.subr.mxu0 %v10689_v20 }
 0x817   : > { %1703 = vmatpush1.msra.mxu0 %v1638_v11 }
 0x818   : > { %1720 = vmatprep.subr.mxu0 %v10689_v20 }
 0x819   : > { %1721 = vmatpush2.msra.mxu0 %v1661_v61 }
 0x81a   : > { %1722 = vmatprep.subr.mxu0 %v10689_v20 }
 0x81b   : > { %1723 = vmatpush2.msra.mxu0 %v1660_v49 }
 0x81c   : > { %1724 = vmatprep.subr.mxu0 %v10689_v20 }
 0x81d   : > { %v6988_v1 = vpop.eup %6987  ;;  %1725 = vmatpush2.msra.mxu0 %v1659_v0 }
 0x81e   : > { %v1467_v5 = vmul.f32 %v6988_v1, %v1451_v50  ;;  %v1658_v1 = vld [vmem:[%s10659_s5 + $0x160] sm:$0xff]  ;;  %1726 = vmatprep.subr.mxu0 %v10689_v20 }
 0x81f   : > { %v6990_v17 = vpop.eup %6989  ;;  %1727 = vmatpush2.msra.mxu0 %v1658_v1 }
 0x820   : > { %v1473_v2 = vmul.f32 %v5954_v63, %v1467_v5  ;;  %v1466_v37 = vmul.f32 %v6990_v17, %v1450_v48  ;;  %1728 = vmatprep.subr.mxu0 %v10689_v20  ;;  %v1656_v5 = vld [vmem:[%s10659_s5 + $0x150] sm:$0xff]  ;;  %v1655_v17 = vld [vmem:[%s10659_s5 + $0x148] sm:$0xff] }
 0x822   : > { %v8010_v9 = vadd.f32 %v5955_v13, %v1473_v2  ;;  %v1472_v6 = vmul.f32 %v5954_v63, %v1466_v37  ;;  %v1657_v63 = vld [vmem:[%s10659_s5 + $0x158] sm:$0xff] }
 0x823   : > { %1729 = vmatpush2.msra.mxu0 %v1657_v63  ;;  %v5970_v63 = vld [vmem:[%s10659_s5 + $0x1e8] sm:$0xff] }
 0x824   : > { %v1481_v41 = vmul.f32 %v8010_v9, %v10765_v51  ;;  %v8014_v58 = vadd.f32 %v5955_v13, %v1472_v6  ;;  %1730 = vmatprep.subr.mxu0 %v10689_v20  ;;  %v1654_v13 = vld [vmem:[%s10659_s5 + $0x140] sm:$0xff] }
 0x825   : > { %1731 = vmatpush2.msra.mxu0 %v1656_v5  ;;  %v5969_v5 = vld [vmem:[%s10659_s5 + $0x1e0] sm:$0xff] }
 0x826   : > { %1499 = vrot.lane.b32.xlu0 %v1481_v41, %s7184_s16  ;;  %v1480_v15 = vmul.f32 %v8014_v58, %v10766_v28  ;;  %v1493_v45 = vrot.slane %v1481_v41, 1  ;;  %v1486_v29 = vrot.slane %v1481_v41, 7  ;;  %1732 = vmatprep.subr.mxu0 %v10689_v20 }
 0x827   : > { %1733 = vmatpush2.msra.mxu0 %v1655_v17  ;;  %v5968_v17 = vld [vmem:[%s10659_s5 + $0x1d8] sm:$0xff] }
 0x828   : > { %1497 = vrot.lane.b32.xlu1 %v1480_v15, %s7184_s16  ;;  %v1492_v25 = vrot.slane %v1480_v15, 1  ;;  %v1485_v38 = vrot.slane %v1480_v15, 7  ;;  %v1496_v19 = vsel %vm1491_vm8, %v1493_v45, 0.0  ;;  %1734 = vmatprep.subr.mxu0 %v10689_v20 }
 0x829   : > { %1735 = vmatpush2.msra.mxu0 %v1654_v13  ;;  %v5967_v13 = vld [vmem:[%s10659_s5 + $0x1d0] sm:$0xff] }
 0x82a   : > { %v1494_v43 = vsel %vm1491_vm8, %v1492_v25, %v1493_v45  ;;  %v1487_v14 = vsel %vm1484_vm7, %v1485_v38, %v1486_v29  ;;  %v1490_v23 = vsel %vm1484_vm7, 0.0, %v1485_v38 }
 0x82c   : > { %1504 = vrot.lane.b32.xlu1 %v1494_v43, %s7197_s17 }
 0x830   : > { %1506 = vrot.lane.b32.xlu1 %v1496_v19, %s7197_s17 }
 0x898   : > { %v1500_v4 = vpop.permute.xlu0 %1499 }
 0x899   : > { %v1511_v50 = vsel %vm340_vm0, %v1487_v14, %v1500_v4 }
 0x89a   : > { %v1498_v30 = vpop.permute.xlu1 %1497 }
 0x89b   : > { %v1510_v54 = vsel %vm340_vm0, %v1490_v23, %v1498_v30 }
 0x89e   : > { %v1505_v59 = vpop.permute.xlu1 %1504 }
 0x89f   : > { %v1512_v44 = vsel %vm462_vm1, %v1510_v54, %v1505_v59 }
 0x8a0   : > { %6551 = vmatprep.mubr.msk.f32.mxu1 %vm1531_vm9, %v1512_v44 }
 0x8a2   : > { %v1507_v31 = vpop.permute.xlu1 %1506 }
 0x8a3   : > { %v1513_v48 = vsel %vm462_vm1, %v1511_v50, %v1507_v31  ;;  %v5959_v31 = vld [vmem:[%s10660_s6 + $0x22] ss:$0 sm:$0xff] }
 0x8a4   : > { %6552 = vmatmul.mubr.msk.f32.vlgmr.msra.gmra.mxu1 %vm1531_vm9, %v1513_v48 }
 0x964   : > { %v6553_v2 = vpop.f32.mrf.mxu1 }
 0x965   : > { %v1610_v37 = vadd.f32 %v6553_v2, %v5956_v21  ;;  %v5965_v2 = vld [vmem:[%s10659_s5 + $0x1c0] sm:$0xff] }
 0x966   : > { %v1604_v16 = vpop.f32.mrf.mxu1 }
 0x967   : > { %v1614_v6 = vmax.f32 %v1610_v37, 0.0  ;;  %v1605_v41 = vadd.f32 %v5956_v21, %v1604_v16  ;;  %v5966_v21 = vld [vmem:[%s10659_s5 + $0x1c8] sm:$0xff]  ;;  %v5964_v37 = vld [vmem:[%s10659_s5 + $0x1b8] sm:$0xff] }
 0x969   : > { %v1616_v15 = vmul.f32 %v1614_v6, %v10765_v51  ;;  %v1613_v25 = vmax.f32 %v1605_v41, 0.0 }
 0x96b   : > { %v1615_v45 = vmul.f32 %v1613_v25, %v10766_v28  ;;  %1632 = vrot.lane.b32.xlu1 %v1616_v15, %s7197_s17  ;;  %v1620_v38 = vrot.slane %v1616_v15, 7  ;;  %v1626_v29 = vrot.slane %v1616_v15, 1 }
 0x96d   : > { %v1625_v43 = vrot.slane %v1615_v45, 1  ;;  %1630 = vrot.lane.b32.xlu0 %v1615_v45, %s7197_s17  ;;  %v1619_v14 = vrot.slane %v1615_v45, 7  ;;  %v1629_v44 = vsel %vm1491_vm8, %v1626_v29, 0.0 }
 0x96f   : > { %v1627_v19 = vsel %vm1491_vm8, %v1625_v43, %v1626_v29  ;;  %v1621_v30 = vsel %vm1484_vm7, %v1619_v14, %v1620_v38  ;;  %v1624_v54 = vsel %vm1484_vm7, 0.0, %v1619_v14  ;;  %v5962_v29 = vld [vmem:[%s10660_s6 + $0x25] ss:$0 sm:$0xff]  ;;  %v5963_v14 = vld [vmem:[%s10660_s6 + $0x26] ss:$0 sm:$0xff] }
 0x970   : > { %5960 = vmatprep.mubr.msk.f32.mxu0 %vm462_vm1, %v1627_v19 }
 0x9dd   : > { %v1633_v4 = vpop.permute.xlu1 %1632 }
 0x9de   : > { %v1637_v50 = vsel %vm462_vm1, %v1621_v30, %v1633_v4 }
 0x9df   : > { %v1631_v23 = vpop.permute.xlu0 %1630 }
 0x9e0   : > { %v1636_v59 = vsel %vm462_vm1, %v1624_v54, %v1631_v23 }
 0x9e1   : > { %1737 = vmatmul.mubr.f32.vlgmr.msra.gmra.mxu0 %v1636_v59 }
 0x9e2   : > { %5961 = vmatprep.mubr.msk.f32.mxu0 %vm462_vm1, %v1629_v44 }
 0x9e5   : > { %1742 = vmatmul.mubr.f32.gmra.mxu0 %v1637_v50 }
 0xaa1   : > { %v1738_v48 = vpop.f32.mrf.mxu0 }
 0xaa2   : > { %v1739_v26 = vadd.f32 %v5959_v31, %v1738_v48 }
 0xaa3   : > { %v1740_v46 = vpop.f32.mrf.mxu0 }
 0xaa4   : > { %v1747_v10 = vmul.f32 %v1739_v26, %v10766_v28 }
 0xaa5   : > { %v1743_v32 = vpop.f32.mrf.mxu0 }
 0xaa6   : > { %v1744_v52 = vadd.f32 %v5959_v31, %v1743_v32  ;;  %v1749_v24 = vadd.f32 %v1747_v10, %v8014_v58 }
 0xaa7   : > { %v1745_v12 = vpop.f32.mrf.mxu0 }
 0xaa8   : > { %v1748_v8 = vmul.f32 %v1744_v52, %v10765_v51  ;;  %v1753_v7 = vsel %vm340_vm0, %v1749_v24, 0.0  ;;  %v5973_v52 = vld [vmem:[%s10660_s6 + $0x30] sm:$0xff]  ;;  %v5972_v12 = vld [vmem:[%s10660_s6 + $0x28] sm:$0xff] }
 0xaa9   : > { %1754 = vadd.xlane.f32.xlu0 %v1753_v7 }
 0xaaa   : > { %v1750_v56 = vadd.f32 %v1748_v8, %v8010_v9  ;;  %v5971_v9 = vld [vmem:[%s10659_s5 + $0x1f0] sm:$0xff] }
 0xaab   : > { %6554 = vmatprep.subr.mxu1 %v5971_v9 }
 0xaac   : > { %v1756_v62 = vsel %vm340_vm0, %v1750_v56, 0.0  ;;  %6555 = vmatpush3.msra.mxu1 %v5971_v9  ;;  %v10774_v9 = vmov 50  }
 0xaad   : > { %1757 = vadd.xlane.f32.xlu1 %v1756_v62  ;;  %6556 = vmatprep.subr.mxu1 %v5970_v63  ;;  %v10769_v62 = vmov 48  }
 0xaae   : > { %6557 = vmatpush3.msra.mxu1 %v5970_v63  ;;  %v10775_v63 = vmov 54  }
 0xaaf   : > { %6558 = vmatprep.subr.mxu1 %v5969_v5 }
 0xab0   : > { %6559 = vmatpush3.msra.mxu1 %v5969_v5  ;;  %v10776_v5 = vmov 53  }
 0xab1   : > { %6560 = vmatprep.subr.mxu1 %v5968_v17 }
 0xab2   : > { %6561 = vmatpush3.msra.mxu1 %v5968_v17  ;;  %v10777_v17 = vmov 56  }
 0xab3   : > { %6562 = vmatprep.subr.mxu1 %v5967_v13 }
 0xab4   : > { %6563 = vmatpush3.msra.mxu1 %v5967_v13 }
 0xab5   : > { %6564 = vmatprep.subr.mxu1 %v5966_v21 }
 0xab6   : > { %6565 = vmatpush3.msra.mxu1 %v5966_v21 }
 0xab7   : > { %6566 = vmatprep.subr.mxu1 %v5965_v2 }
 0xab8   : > { %6567 = vmatpush3.msra.mxu1 %v5965_v2 }
 0xab9   : > { %6568 = vmatprep.subr.mxu1 %v5964_v37 }
 0xaba   : > { %6569 = vmatpush3.msra.mxu1 %v5964_v37 }
 0xb32   : > { %v1755_v39 = vpop.xlane.xlu0 %1754 }
 0xb33   : > { %v1759_v57 = vmul.f32 0.03125, %v1755_v39  ;;  %v5975_v39 = vld [vmem:[%s10660_s6 + $0x40] sm:$0xff] }
 0xb35   : > { %v1761_v35 = vsub.f32 %v1749_v24, %v1759_v57 }
 0xb36   : > { %v1758_v55 = vpop.xlane.xlu1 %1757 }
 0xb37   : > { %v1760_v11 = vmul.f32 0.03125, %v1758_v55  ;;  %v1763_v61 = vmul.f32 %v1761_v35, %v1761_v35 }
 0xb39   : > { %v1762_v49 = vsub.f32 %v1750_v56, %v1760_v11  ;;  %v1765_v58 = vsel %vm340_vm0, %v1763_v61, 0.0  ;;  %v5974_v11 = vld [vmem:[%s10660_s6 + $0x38] sm:$0xff] }
 0xb3a   : > { %1766 = vadd.xlane.f32.xlu0 %v1765_v58  ;;  %v10771_v58 = vmov 51  }
 0xb3b   : > { %v1764_v0 = vmul.f32 %v1762_v49, %v1762_v49 }
 0xb3d   : > { %v1768_v1 = vsel %vm340_vm0, %v1764_v0, 0.0  ;;  %v10772_v0 = vmov 49  }
 0xb3e   : > { %1769 = vadd.xlane.f32.xlu0 %v1768_v1  ;;  %v10773_v1 = vmov 55  }
 0xbc3   : > { %v1767_v16 = vpop.xlane.xlu0 %1766 }
 0xbc4   : > { %v1771_v6 = vmul.f32 0.03125, %v1767_v16 }
 0xbc6   : > { %v1773_v41 = vadd.f32 0.0001, %v1771_v6 }
 0xbc7   : > { %v1770_v15 = vpop.xlane.xlu0 %1769 }
 0xbc8   : > { %6991 = vrsqrt.f32 %v1773_v41  ;;  %v1772_v25 = vmul.f32 0.03125, %v1770_v15 }
 0xbca   : > { %v1774_v45 = vadd.f32 0.0001, %v1772_v25 }
 0xbcc   : > { %6993 = vrsqrt.f32 %v1774_v45 }
 0xbd5   : > { %v6992_v38 = vpop.eup %6991 }
 0xbd6   : > { %v1777_v43 = vmul.f32 %v6992_v38, %v1761_v35 }
 0xbd8   : > { %v1783_v19 = vmul.f32 %v5962_v29, %v1777_v43 }
 0xbd9   : > { %v6994_v30 = vpop.eup %6993 }
 0xbda   : > { %v1789_v23 = vadd.f32 %v5963_v14, %v1783_v19  ;;  %v1778_v54 = vmul.f32 %v6994_v30, %v1762_v49  ;;  %v10770_v49 = vmov 52  }
 0xbdc   : > { %v8185_v59 = vmul.f32 %v1789_v23, %v10766_v28  ;;  %v1784_v4 = vmul.f32 %v5962_v29, %v1778_v54 }
 0xbde   : > { %10767 = vst [vmem:[#allocation4_spill] sm:$0xff] %v8185_v59  ;;  %1797 = vrot.lane.b32.xlu1 %v8185_v59, %s7184_s16  ;;  %v1793_v44 = vsel %vm340_vm0, %v8185_v59, 0.0  ;;  %v1790_v50 = vadd.f32 %v5963_v14, %v1784_v4 }
 0xbdf   : > { %6570 = vmatprep.mubr.msk.f32.mxu1 %vm462_vm1, %v1793_v44 }
 0xbe0   : > { %v8193_v31 = vmul.f32 %v1790_v50, %v10765_v51 }
 0xbe2   : > { %10768 = vst [vmem:[#allocation5_spill] sm:$0xff] %v8193_v31  ;;  %1799 = vrot.lane.b32.xlu0 %v8193_v31, %s7184_s16  ;;  %v1794_v48 = vsel %vm340_vm0, %v8193_v31, 0.0 }
 0xbe3   : > { %6571 = vmatmul.mubr.msk.f32.vlgmr.msra.gmra.mxu1 %vm462_vm1, %v1794_v48 }
 0xc50   : > { %v1798_v26 = vpop.permute.xlu1 %1797 }
 0xc51   : > { %v1803_v46 = vsel %vm340_vm0, 0.0, %v1798_v26 }
 0xc52   : > { %6573 = vmatprep.mubr.msk.f32.mxu1 %vm462_vm1, %v1803_v46 }
 0xc54   : > { %v1800_v10 = vpop.permute.xlu0 %1799 }
 0xc55   : > { %v1804_v32 = vsel %vm340_vm0, 0.0, %v1800_v10 }
 0xc56   : > { %6574 = vmatmul.mubr.msk.f32.gmra.mxu1 %vm462_vm1, %v1804_v32 }
 0xca3   : > { %v6572_v24 = vpop.f32.mrf.mxu1 }
 0xca4   : > { %v8210_v8 = vadd.f32 %v6572_v24, %v5973_v52 }
 0xca5   : > { %v1897_v7 = vpop.f32.mrf.mxu1 }
 0xca6   : > { %v8212_v56 = vadd.f32 %v5972_v12, %v1897_v7  ;;  %1942 = vrot.lane.b32.xlu0 %v8210_v8, %s7187_s27 }
 0xca8   : > { %6584 = vmatprep.mubr.msk.f32.mxu1 %vm596_vm2, %v8212_v56 }
 0xcaa   : > { %2054 = vperm.xlu0 %6885, %v8210_v8  }
 0xcae   : > { %6886 = vset.pattern.permute.xlu0 %v10769_v62 }
 0xcaf   : > { %1918 = vperm.xlu0 %6886, %v8212_v56  }
 0xd16   : > { %v6575_v57 = vpop.f32.mrf.mxu1 }
 0xd17   : > { %v8224_v35 = vadd.f32 %v6575_v57, %v5975_v39 }
 0xd18   : > { %v1907_v55 = vpop.f32.mrf.mxu1  ;;  %v1943_v2 = vpop.permute.xlu0 %1942 }
 0xd19   : > { %1933 = vperm.xlu0 %6886, %v8224_v35   ;;  %1946 = vrot.lane.b32.xlu1 %v8224_v35, %s7187_s27  ;;  %v8232_v61 = vadd.f32 %v5974_v11, %v1907_v55  ;;  %v8344_v11 = vld [vmem:[%s10657_s3 + $0x8] sm:$0xff] }
 0xd1d   : > { %6892 = vset.pattern.permute.xlu0 %v10770_v49  ;;  %1944 = vrot.lane.b32.xlu1 %v8232_v61, %s7187_s27 }
 0xd1e   : > { %2126 = vperm.xlu0 %6892, %v8210_v8  }
 0xd21   : > { %1940 = vrot.lane.b32.xlu1 %v8212_v56, %s7187_s27 }
 0xd22   : > { %6893 = vset.pattern.permute.xlu0 %v10771_v58 }
 0xd23   : > { %2098 = vperm.xlu0 %6893, %v8212_v56  }
 0xd25   : > { %1923 = vperm.xlu1 %6883, %v8210_v8   ;;  %v2055_v23 = vpop.permute.xlu0 %2054 }
 0xd27   : > { %2110 = vperm.xlu0 %6893, %v8224_v35  }
 0xd29   : > { %6884 = vset.pattern.permute.xlu1 %v10772_v0 }
 0xd2a   : > { %2050 = vperm.xlu1 %6884, %v8212_v56   ;;  %v1919_v4 = vpop.permute.xlu0 %1918 }
 0xd2b   : > { %6899 = vset.pattern.permute.xlu0 %v10773_v1 }
 0xd2c   : > { %2198 = vperm.xlu0 %6899, %v8210_v8  }
 0xd2e   : > { %6887 = vset.pattern.permute.xlu1 %v10774_v9 }
 0xd2f   : > { %2074 = vperm.xlu1 %6887, %v8212_v56  }
 0xd30   : > { %6900 = vset.pattern.permute.xlu0 %v10775_v63 }
 0xd31   : > { %2170 = vperm.xlu0 %6900, %v8212_v56  }
 0xd33   : > { %2078 = vperm.xlu1 %6887, %v8210_v8  }
 0xd35   : > { %2182 = vperm.xlu0 %6900, %v8224_v35  }
 0xd37   : > { %6888 = vset.pattern.permute.xlu1 %v10772_v0 }
 0xd38   : > { %2062 = vperm.xlu1 %6888, %v8224_v35  }
 0xd39   : > { %6904 = vset.pattern.permute.xlu0 %v10774_v9 }
 0xd3a   : > { %2082 = vperm.xlu0 %6904, %v8232_v61  }
 0xd3c   : > { %6889 = vset.pattern.permute.xlu1 %v10771_v58 }
 0xd3d   : > { %2102 = vperm.xlu1 %6889, %v8210_v8  }
 0xd3e   : > { %6907 = vset.pattern.permute.xlu0 %v10776_v5 }
 0xd3f   : > { %2154 = vperm.xlu0 %6907, %v8232_v61  }
 0xd41   : > { %6890 = vset.pattern.permute.xlu1 %v10770_v49 }
 0xd42   : > { %2122 = vperm.xlu1 %6890, %v8212_v56  }
 0xd43   : > { %6908 = vset.pattern.permute.xlu0 %v10773_v1 }
 0xd44   : > { %2206 = vperm.xlu0 %6908, %v8224_v35  }
 0xd46   : > { %6891 = vset.pattern.permute.xlu1 %v10774_v9 }
 0xd47   : > { %2086 = vperm.xlu1 %6891, %v8224_v35  }
 0xd48   : > { %6914 = vset.pattern.permute.xlu0 %v10772_v0 }
 0xd4b   : > { %6894 = vset.pattern.permute.xlu1 %v10776_v5 }
 0xd4c   : > { %2146 = vperm.xlu1 %6894, %v8212_v56  }
 0xd50   : > { %2150 = vperm.xlu1 %6894, %v8210_v8  }
 0xd54   : > { %6895 = vset.pattern.permute.xlu1 %v10770_v49 }
 0xd55   : > { %2134 = vperm.xlu1 %6895, %v8224_v35  }
 0xd59   : > { %6896 = vset.pattern.permute.xlu1 %v10775_v63 }
 0xd5a   : > { %2174 = vperm.xlu1 %6896, %v8210_v8  }
 0xd5e   : > { %6897 = vset.pattern.permute.xlu1 %v10773_v1 }
 0xd5f   : > { %2194 = vperm.xlu1 %6897, %v8212_v56  }
 0xd63   : > { %6898 = vset.pattern.permute.xlu1 %v10776_v5 }
 0xd64   : > { %2158 = vperm.xlu1 %6898, %v8224_v35  }
 0xd68   : > { %6901 = vset.pattern.permute.xlu1 %v10777_v17 }
 0xd69   : > { %2218 = vperm.xlu1 %6901, %v8212_v56  }
 0xd6d   : > { %2222 = vperm.xlu1 %6901, %v8210_v8  }
 0xd71   : > { %6902 = vset.pattern.permute.xlu1 %v10769_v62 }
 0xd72   : > { %1928 = vperm.xlu1 %6902, %v8232_v61  }
 0xd76   : > { %6903 = vset.pattern.permute.xlu1 %v10772_v0 }
 0xd77   : > { %2058 = vperm.xlu1 %6903, %v8232_v61  }
 0xd7b   : > { %6905 = vset.pattern.permute.xlu1 %v10771_v58 }
 0xd7c   : > { %2106 = vperm.xlu1 %6905, %v8232_v61  }
 0xd80   : > { %6906 = vset.pattern.permute.xlu1 %v10770_v49 }
 0xd81   : > { %2130 = vperm.xlu1 %6906, %v8232_v61  }
 0xd85   : > { %6909 = vset.pattern.permute.xlu1 %v10775_v63 }
 0xd86   : > { %2178 = vperm.xlu1 %6909, %v8232_v61  }
 0xd8a   : > { %6910 = vset.pattern.permute.xlu1 %v10773_v1 }
 0xd8b   : > { %v1947_v13 = vpop.permute.xlu1 %1946  ;;  %2202 = vperm.xlu1 %6910, %v8232_v61  }
 0xd8c   : > { %6576 = vmatprep.subr.msk.mxu1 %vm596_vm2, %v1947_v13 }
 0xd8d   : > { %6577 = vmatpush3.xpose.msk.msra.mxu1 %vm596_vm2, %v1947_v13 }
 0xd8f   : > { %6911 = vset.pattern.permute.xlu1 %v10777_v17  ;;  %v1945_v21 = vpop.permute.xlu1 %1944  ;;  %v8358_v17 = vld [vmem:[%s10657_s3] sm:$0xff] }
 0xd90   : > { %2226 = vperm.xlu1 %6911, %v8232_v61   ;;  %6578 = vmatprep.subr.msk.mxu1 %vm596_vm2, %v1945_v21  ;;  %v1936_v5 = vmul.f32 %v8358_v17, %v1919_v4  ;;  %v8376_v4 = vld [vmem:[%s10657_s3 + $0x48] sm:$0xff] }
 0xd91   : > { %6579 = vmatpush3.xpose.msk.msra.mxu1 %vm596_vm2, %v1945_v21 }
 0xd92   : > { %6580 = vmatprep.subr.msk.mxu1 %vm596_vm2, %v1943_v2 }
 0xd93   : > { %v1941_v37 = vpop.permute.xlu1 %1940 }
 0xd94   : > { %2230 = vperm.xlu1 %6911, %v8224_v35   ;;  %v1934_v50 = vpop.permute.xlu0 %1933 }
 0xd95   : > { %6581 = vmatpush3.xpose.msk.msra.mxu1 %vm596_vm2, %v1943_v2 }
 0xd96   : > { %6582 = vmatprep.subr.msk.mxu1 %vm596_vm2, %v1941_v37 }
 0xd98   : > { %6912 = vset.pattern.permute.xlu1 %v10769_v62 }
 0xd99   : > { %6583 = vmatpush3.xpose.msk.msra.mxu1 %vm596_vm2, %v1941_v37  ;;  %v2127_v26 = vpop.permute.xlu0 %2126  ;;  %v8352_v37 = vld [vmem:[%s10657_s3 + $0x28] sm:$0xff] }
 0xd9a   : > { %v2066_v20 = vmul.f32 %v8352_v37, %v2055_v23  ;;  %v8370_v23 = vld [vmem:[%s10657_s3 + $0x20] sm:$0xff] }
 0xd9c   : > { %6585 = vmatmul.mubr.msk.f32.vlgmr.msra.gmra.mxu1 %vm596_vm2, %v8210_v8 }
 0xd9d   : > { %6587 = vmatprep.mubr.msk.f32.mxu1 %vm596_vm2, %v8232_v61 }
 0xd9e   : > { %v2099_v10 = vpop.permute.xlu0 %2098 }
 0xda0   : > { %6588 = vmatmul.mubr.msk.f32.gmra.mxu1 %vm596_vm2, %v8224_v35  ;;  %v1924_v16 = vpop.permute.xlu1 %1923 }
 0xda1   : > { %v1937_v13 = vmul.f32 %v8344_v11, %v1924_v16  ;;  %v8364_v16 = vld [vmem:[%s10657_s3 + $0x18] sm:$0xff] }
 0xda2   : > { %v2111_v52 = vpop.permute.xlu0 %2110  ;;  %v1939_v1 = vmul.f32 %v8364_v16, %v1934_v50  ;;  %v8382_v50 = vld [vmem:[%s10657_s3 + $0x40] sm:$0xff] }
 0xda5   : > { %v2051_v6 = vpop.permute.xlu1 %2050 }
 0xda6   : > { %v2065_v58 = vmul.f32 %v8370_v23, %v2051_v6  ;;  %v8388_v6 = vld [vmem:[%s10657_s3 + $0x38] sm:$0xff] }
 0xda7   : > { %v8331_v12 = vpop.permute.xlu0 %2198 }
 0xdaa   : > { %v2075_v41 = vpop.permute.xlu1 %2074 }
 0xdab   : > { %v2089_v62 = vmul.f32 %v8382_v50, %v2075_v41 }
 0xdac   : > { %v8335_v39 = vpop.permute.xlu0 %2170 }
 0xdae   : > { %v2079_v15 = vpop.permute.xlu1 %2078 }
 0xdb0   : > { %v8339_v55 = vpop.permute.xlu0 %2182 }
 0xdb3   : > { %v2063_v25 = vpop.permute.xlu1 %2062 }
 0xdb4   : > { %v2068_v28 = vmul.f32 %v8388_v6, %v2063_v25  ;;  %v8406_v25 = vld [vmem:[%s10657_s3 + $0x88] sm:$0xff] }
 0xdb5   : > { %v2083_v63 = vpop.permute.xlu0 %2082  ;;  %v2138_v31 = vmul.f32 %v8406_v25, %v2127_v26 }
 0xdb8   : > { %v2103_v45 = vpop.permute.xlu1 %2102 }
 0xdbd   : > { %v8313_v38 = vpop.permute.xlu1 %2122 }
 0xdc2   : > { %v2087_v29 = vpop.permute.xlu1 %2086 }
 0xdc7   : > { %v8315_v43 = vpop.permute.xlu1 %2146 }
 0xdcb   : > { %v8317_v14 = vpop.permute.xlu1 %2150 }
 0xdd0   : > { %v8319_v19 = vpop.permute.xlu1 %2134 }
 0xdd5   : > { %v8321_v30 = vpop.permute.xlu1 %2174 }
 0xdda   : > { %v8323_v54 = vpop.permute.xlu1 %2194 }
 0xddf   : > { %v8325_v44 = vpop.permute.xlu1 %2158 }
 0xde4   : > { %v8327_v48 = vpop.permute.xlu1 %2218 }
 0xde8   : > { %v8329_v46 = vpop.permute.xlu1 %2222 }
 0xded   : > { %v1929_v32 = vpop.permute.xlu1 %1928 }
 0xdf2   : > { %v2059_v24 = vpop.permute.xlu1 %2058 }
 0xdf7   : > { %v8333_v7 = vpop.permute.xlu1 %2106 }
 0xdfc   : > { %v8337_v57 = vpop.permute.xlu1 %2130 }
 0xe01   : > { %v8347_v21 = vpop.permute.xlu1 %2178 }
 0xe06   : > { %v8427_v26 = vpop.permute.xlu1 %2202 }
 0xe5c   : > { %v6586_v2 = vpop.f32.mrf.mxu1 }
 0xe5d   : > { %v2036_v9 = vadd.f32 %v6586_v2, %v1937_v13  ;;  %v2090_v13 = vmul.f32 %v8376_v4, %v2079_v15  ;;  %v8394_v15 = vld [vmem:[%s10657_s3 + $0x68] sm:$0xff] }
 0xe5e   : > { %v2030_v0 = vpop.f32.mrf.mxu1 }
 0xe5f   : > { %v2070_v2 = vadd.f32 %v2066_v20, %v2036_v9  ;;  %v2031_v49 = vadd.f32 %v2030_v0, %v1936_v5  ;;  %v2114_v20 = vmul.f32 %v8394_v15, %v2103_v45  ;;  %v8400_v9 = vld [vmem:[%s10657_s3 + $0x10] sm:$0xff]  ;;  %v8412_v45 = vld [vmem:[%s10657_s3 + $0x60] sm:$0xff] }
 0xe60   : > { %v6589_v0 = vpop.f32.mrf.mxu1  ;;  %v1938_v5 = vmul.f32 %v8400_v9, %v1929_v32  ;;  %v2113_v53 = vmul.f32 %v8412_v45, %v2099_v10  ;;  %v8418_v32 = vld [vmem:[%s10657_s3 + $0x58] sm:$0xff] }
 0xe61   : > { %v2094_v41 = vadd.f32 %v2090_v13, %v2070_v2  ;;  %v2069_v51 = vadd.f32 %v2065_v58, %v2031_v49  ;;  %v2046_v59 = vadd.f32 %v6589_v0, %v1939_v1  ;;  %v2092_v49 = vmul.f32 %v8418_v32, %v2087_v29  ;;  %v8424_v58 = vld [vmem:[%s10657_s3 + $0x30] sm:$0xff]  ;;  %v2155_v2 = vpop.permute.xlu0 %2154 }
 0xe62   : > { %v2067_v1 = vmul.f32 %v8424_v58, %v2059_v24  ;;  %v2040_v13 = vpop.f32.mrf.mxu1  ;;  %v2116_v29 = vmul.f32 %v8432_v47, %v2111_v52  ;;  %v2091_v24 = vmul.f32 %v8438_v34, %v2083_v63 }
 0xe63   : > { %v2118_v0 = vadd.f32 %v2114_v20, %v2094_v41  ;;  %v2093_v10 = vadd.f32 %v2089_v62, %v2069_v51  ;;  %v2072_v27 = vadd.f32 %v2068_v28, %v2046_v59  ;;  %v2041_v22 = vadd.f32 %v2040_v13, %v1938_v5  ;;  %v8444_v51 = vld [vmem:[%s10657_s3 + $0x80] sm:$0xff]  ;;  %v8451_v59 = vld [vmem:[%s10657_s3 + $0xa8] sm:$0xff]  ;;  %v8465_v13 = vld [vmem:[%s10657_s3 + $0x98] sm:$0xff] }
 0xe64   : > { %v2137_v28 = vmul.f32 %v8444_v51, %v8313_v38  ;;  %v2162_v62 = vmul.f32 %v8451_v59, %v8317_v14  ;;  %v8458_v41 = vld [vmem:[%s10657_s3 + $0xa0] sm:$0xff]  ;;  %v2140_v14 = vmul.f32 %v8465_v13, %v8319_v19 }
 0xe65   : > { %v2142_v52 = vadd.f32 %v2138_v31, %v2118_v0  ;;  %v2117_v20 = vadd.f32 %v2113_v53, %v2093_v10  ;;  %v2096_v5 = vadd.f32 %v2092_v49, %v2072_v27  ;;  %v2071_v63 = vadd.f32 %v2067_v1, %v2041_v22  ;;  %v8472_v22 = vld [vmem:[%s10657_s3 + $0xc8] sm:$0xff]  ;;  %v8479_v53 = vld [vmem:[%s10657_s3 + $0x70] sm:$0xff]  ;;  %v8493_v10 = vld [vmem:[%s10657_s3 + $0xc0] sm:$0xff] }
 0xe66   : > { %v2161_v38 = vmul.f32 %v8458_v41, %v8315_v43  ;;  %v2186_v27 = vmul.f32 %v8472_v22, %v8321_v30  ;;  %v2115_v31 = vmul.f32 %v8479_v53, %v8333_v7  ;;  %v8486_v0 = vld [vmem:[%s10657_s3 + $0xe8] sm:$0xff]  ;;  %v2185_v7 = vmul.f32 %v8493_v10, %v8335_v39 }
 0xe67   : > { %v2166_v43 = vadd.f32 %v2162_v62, %v2142_v52  ;;  %v2141_v49 = vadd.f32 %v2137_v28, %v2117_v20  ;;  %v2120_v1 = vadd.f32 %v2116_v29, %v2096_v5  ;;  %v2095_v19 = vadd.f32 %v2091_v24, %v2071_v63  ;;  %v8500_v29 = vld [vmem:[%s10657_s3 + $0xb8] sm:$0xff]  ;;  %v2227_v62 = vpop.permute.xlu1 %2226  ;;  %v2207_v52 = vpop.permute.xlu0 %2206 }
 0xe68   : > { %v2210_v30 = vmul.f32 %v8486_v0, %v8331_v12  ;;  %v2164_v24 = vmul.f32 %v8500_v29, %v8325_v44  ;;  %v8507_v12 = vld [vmem:[%s10657_s3 + $0x90] sm:$0xff]  ;;  %v2188_v44 = vmul.f32 %v8514_v36, %v8339_v55 }
 0xe69   : > { %v2139_v28 = vmul.f32 %v8507_v12, %v8337_v57  ;;  %v2165_v20 = vadd.f32 %v2161_v38, %v2141_v49  ;;  %v2144_v39 = vadd.f32 %v2140_v14, %v2120_v1  ;;  %v2119_v5 = vadd.f32 %v2115_v31, %v2095_v19  ;;  %v8527_v38 = vld [vmem:[%s10657_s3 + $0xe0] sm:$0xff]  ;;  %v8541_v1 = vld [vmem:[%s10657_s3 + $0xf8] sm:$0xff] }
 0xe6a   : > { %v2190_v63 = vadd.f32 %v2186_v27, %v2166_v43  ;;  %v2163_v57 = vmul.f32 %v8521_v33, %v2155_v2  ;;  %v2209_v14 = vmul.f32 %v8527_v38, %v8323_v54  ;;  %v8534_v27 = vld [vmem:[%s10657_s3 + $0x108] sm:$0xff]  ;;  %v2212_v19 = vmul.f32 %v8541_v1, %v2207_v52  ;;  %v8547_v54 = vld [vmem:[%s10657_s3 + $0x100] sm:$0xff] }
 0xe6b   : > { %10778 = vst [vmem:[#allocation14_spill] sm:$0xff] %v8534_v27  ;;  %v2234_v55 = vmul.f32 %v8534_v27, %v8329_v46  ;;  %v2168_v31 = vadd.f32 %v2164_v24, %v2144_v39  ;;  %v2143_v43 = vadd.f32 %v2139_v28, %v2119_v5  ;;  %v2189_v2 = vadd.f32 %v2185_v7, %v2165_v20  ;;  %v8554_v46 = vld [vmem:[%s10657_s3 + $0xd0] sm:$0xff]  ;;  %v2231_v39 = vpop.permute.xlu1 %2230 }
 0xe6c   : > { %v2214_v49 = vadd.f32 %v2210_v30, %v2190_v63  ;;  %10779 = vst [vmem:[#allocation15_spill] sm:$0xff] %v8547_v54  ;;  %v2233_v18 = vmul.f32 %v8547_v54, %v8327_v48  ;;  %v2187_v30 = vmul.f32 %v8554_v46, %v8347_v21  ;;  %v8561_v20 = vld [vmem:[%s10657_s3 + $0xf0] sm:$0xff] }
 0xe6d   : > { %v2167_v7 = vadd.f32 %v2163_v57, %v2143_v43  ;;  %v2213_v28 = vadd.f32 %v2209_v14, %v2189_v2  ;;  %v2192_v52 = vadd.f32 %v2188_v44, %v2168_v31  ;;  %v2211_v48 = vmul.f32 %v8561_v20, %v8427_v26  ;;  %v8571_v44 = vld [vmem:[%s10657_s3 + $0x110] sm:$0xff]  ;;  %v8577_v26 = vld [vmem:[%s10657_s3 + $0x118] sm:$0xff] }
 0xe6e   : > { %v2238_v24 = vadd.f32 %v2234_v55, %v2214_v49  ;;  %v2235_v57 = vmul.f32 %v8571_v44, %v2227_v62  ;;  %v2236_v14 = vmul.f32 %v8577_v26, %v2231_v39 }
 0xe6f   : > { %v2237_v63 = vadd.f32 %v2233_v18, %v2213_v28  ;;  %v2191_v54 = vadd.f32 %v2187_v30, %v2167_v7  ;;  %v2216_v27 = vadd.f32 %v2212_v19, %v2192_v52 }
 0xe70   : > { %v2242_v5 = vsel %vm326_vm3, %v2238_v24, -10000.0 }
 0xe71   : > { %v2248_v21 = vsel %vm340_vm0, %v2242_v5, -inf  ;;  %v2241_v18 = vsel %vm325_vm4, %v2237_v63, -10000.0  ;;  %v2215_v55 = vadd.f32 %v2211_v48, %v2191_v54  ;;  %v2240_v49 = vadd.f32 %v2236_v14, %v2216_v27 }
 0xe72   : > { %2249 = vmax.xlane.f32.xlu1 %v2248_v21  ;;  %v2245_v31 = vsel %vm340_vm0, %v2241_v18, -inf }
 0xe73   : > { %2246 = vmax.xlane.f32.xlu0 %v2245_v31  ;;  %v2239_v43 = vadd.f32 %v2235_v57, %v2215_v55  ;;  %v2244_v19 = vsel %vm328_vm6, %v2240_v49, -10000.0 }
 0xe74   : > { %v2254_v30 = vsel %vm340_vm0, %v2244_v19, -inf }
 0xe75   : > { %v2243_v62 = vsel %vm327_vm5, %v2239_v43, -10000.0 }
 0xe76   : > { %v2251_v2 = vsel %vm340_vm0, %v2243_v62, -inf }
 0xe77   : > { %2252 = vmax.xlane.f32.xlu0 %v2251_v2 }
 0xe7b   : > { %2255 = vmax.xlane.f32.xlu0 %v2254_v30 }
 0xe83   : > { %2321 = vrot.lane.b32.xlu1 %v8224_v35, %s7195_s28 }
 0xefb   : > { %v2250_v54 = vpop.xlane.xlu1 %2249 }
 0xefc   : > { %v2258_v7 = vsub.f32 %v2242_v5, %v2250_v54  ;;  %v2247_v24 = vpop.xlane.xlu0 %2246 }
 0xefd   : > { %v2257_v27 = vsub.f32 %v2241_v18, %v2247_v24 }
 0xefe   : > { %v2263_v28 = vmul.f32 1.442695, %v2258_v7 }
 0xeff   : > { %v2322_v52 = vpop.permute.xlu1 %2321  ;;  %v2261_v48 = vmul.f32 1.442695, %v2257_v27 }
 0xf00   : > { %6995 = vpow2.f32 %v2263_v28  ;;  %6590 = vmatprep.subr.mxu0 %v2322_v52  ;;  %v2253_v39 = vpop.xlane.xlu0 %2252 }
 0xf01   : > { %6591 = vmatpush3.msra.mxu0 %v2322_v52  ;;  %6997 = vpow2.f32 %v2261_v48  ;;  %v2259_v43 = vsub.f32 %v2243_v62, %v2253_v39 }
 0xf03   : > { %v2265_v49 = vmul.f32 1.442695, %v2259_v43 }
 0xf04   : > { %v2256_v63 = vpop.xlane.xlu0 %2255 }
 0xf05   : > { %v2260_v21 = vsub.f32 %v2244_v19, %v2256_v63 }
 0xf07   : > { %v2267_v57 = vmul.f32 1.442695, %v2260_v21 }
 0xf09   : > { %6999 = vpow2.f32 %v2267_v57 }
 0xf0a   : > { %7001 = vpow2.f32 %v2265_v49 }
 0xf0d   : > { %v6996_v14 = vpop.eup %6995 }
 0xf0e   : > { %v2272_v55 = vsel %vm340_vm0, %v6996_v14, 0.0  ;;  %v6998_v35 = vpop.eup %6997 }
 0xf0f   : > { %2273 = vadd.xlane.f32.xlu0 %v2272_v55  ;;  %v2269_v5 = vsel %vm340_vm0, %v6998_v35, 0.0 }
 0xf10   : > { %2270 = vadd.xlane.f32.xlu1 %v2269_v5 }
 0xf16   : > { %v7000_v18 = vpop.eup %6999 }
 0xf17   : > { %v2278_v31 = vsel %vm340_vm0, %v7000_v18, 0.0  ;;  %v7002_v2 = vpop.eup %7001 }
 0xf18   : > { %2279 = vadd.xlane.f32.xlu0 %v2278_v31  ;;  %v2275_v19 = vsel %vm340_vm0, %v7002_v2, 0.0 }
 0xf21   : > { %2317 = vrot.lane.b32.xlu1 %v8210_v8, %s7195_s28 }
 0xf2e   : > { %2319 = vrot.lane.b32.xlu0 %v8232_v61, %s7195_s28 }
 0xf45   : > { %2276 = vadd.xlane.f32.xlu1 %v2275_v19 }
 0xf56   : > { %2315 = vrot.lane.b32.xlu1 %v8212_v56, %s7195_s28 }
 0xf98   : > { %v2274_v54 = vpop.xlane.xlu0 %2273 }
 0xf99   : > { %v2271_v30 = vpop.xlane.xlu1 %2270 }
 0xf9a   : > { %7003 = vrcp.f32 %v2271_v30 }
 0xf9d   : > { %v2318_v62 = vpop.permute.xlu1 %2317 }
 0xfa1   : > { %v2280_v7 = vpop.xlane.xlu0 %2279 }
 0xfa2   : > { %7005 = vrcp.f32 %v2280_v7 }
 0xfa3   : > { %7007 = vrcp.f32 %v2274_v54 }
 0xfa5   : > { %v2320_v24 = vpop.permute.xlu0 %2319 }
 0xfa6   : > { %6592 = vmatprep.subr.mxu0 %v2320_v24 }
 0xfa7   : > { %v7004_v8 = vpop.eup %7003  ;;  %6593 = vmatpush3.msra.mxu0 %v2320_v24 }
 0xfa8   : > { %v8601_v61 = vmul.f32 %v7004_v8, %v6998_v35  ;;  %6594 = vmatprep.subr.mxu0 %v2318_v62 }
 0xfa9   : > { %6595 = vmatpush3.msra.mxu0 %v2318_v62 }
 0xfaa   : > { %6598 = vmatprep.mubr.msk.f32.mxu0 %vm340_vm0, %v8601_v61 }
 0xfaf   : > { %v7006_v28 = vpop.eup %7005 }
 0xfb0   : > { %v2288_v27 = vmul.f32 %v7006_v28, %v7000_v18  ;;  %v7008_v5 = vpop.eup %7007 }
 0xfb1   : > { %v8615_v18 = vmul.f32 %v7008_v5, %v6996_v14 }
 0xfb2   : > { %v2427_v56 = vmul.f32 %v8388_v6, %v2288_v27  ;;  %v2294_v52 = vmul.f32 %v8364_v16, %v2288_v27  ;;  %v2455_v63 = vmul.f32 %v8418_v32, %v2288_v27  ;;  %v2483_v57 = vmul.f32 %v8432_v47, %v2288_v27 }
 0xfb3   : > { %v2511_v35 = vmul.f32 %v8465_v13, %v2288_v27  ;;  %v2537_v5 = vmul.f32 %v8451_v59, %v8615_v18  ;;  %v2564_v59 = vmul.f32 %v8493_v10, %v8601_v61 }
 0xfb4   : > { %v2437_v48 = vsel %vm340_vm0, %v2427_v56, 0.0  ;;  %v2304_v39 = vsel %vm340_vm0, %v2294_v52, 0.0  ;;  %v2465_v21 = vsel %vm340_vm0, %v2455_v63, 0.0  ;;  %v2493_v55 = vsel %vm340_vm0, %v2483_v57, 0.0 }
 0xfb5   : > { %2438 = vadd.xlane.f32.xlu0 %v2437_v48  ;;  %2305 = vadd.xlane.f32.xlu1 %v2304_v39  ;;  %v2521_v16 = vsel %vm340_vm0, %v2511_v35, 0.0 }
 0xfb9   : > { %2466 = vadd.xlane.f32.xlu0 %v2465_v21  ;;  %v2453_v21 = vmul.f32 %v8376_v4, %v8615_v18  ;;  %v2480_v4 = vmul.f32 %v8412_v45, %v8601_v61  ;;  %v2543_v45 = vsel %vm340_vm0, %v2537_v5, 0.0 }
 0xfbd   : > { %2494 = vadd.xlane.f32.xlu0 %v2493_v55  ;;  %v2481_v55 = vmul.f32 %v8394_v15, %v8615_v18  ;;  %v2508_v15 = vmul.f32 %v8444_v51, %v8601_v61 }
 0xfc1   : > { %2522 = vadd.xlane.f32.xlu0 %v2521_v16  ;;  %v2509_v16 = vmul.f32 %v8406_v25, %v8615_v18  ;;  %v2536_v25 = vmul.f32 %v8458_v41, %v8601_v61 }
 0xfce   : > { %v2277_v6 = vpop.xlane.xlu1 %2276 }
 0xfcf   : > { %7009 = vrcp.f32 %v2277_v6  ;;  %v2484_v6 = vsel %vm340_vm0, %v2480_v4, 0.0 }
 0xfd2   : > { %v2316_v32 = vpop.permute.xlu1 %2315 }
 0xfd3   : > { %6596 = vmatprep.subr.mxu0 %v2316_v32 }
 0xfd4   : > { %6597 = vmatpush3.msra.mxu0 %v2316_v32  ;;  %v2512_v32 = vsel %vm340_vm0, %v2508_v15, 0.0 }
 0xfd5   : > { %6599 = vmatmul.mubr.msk.f32.vlgmr.msra.gmra.mxu0 %vm340_vm0, %v8615_v18 }
 0xfdc   : > { %v7010_v47 = vpop.eup %7009 }
 0xfdd   : > { %v2287_v31 = vmul.f32 %v7010_v47, %v7002_v2  ;;  %v2565_v47 = vmul.f32 %v8472_v22, %v8615_v18  ;;  %v2592_v22 = vmul.f32 %v8527_v38, %v8601_v61  ;;  %v5998_v38 = vld [vmem:[%s10659_s5 + $0x210] sm:$0xff] }
 0xfde   : > { %6604 = vmatprep.subr.mxu1 %v5998_v38 }
 0xfdf   : > { %6601 = vmatprep.mubr.msk.f32.mxu0 %vm340_vm0, %v2287_v31  ;;  %v2454_v13 = vmul.f32 %v8438_v34, %v2287_v31  ;;  %v2293_v43 = vmul.f32 %v8400_v9, %v2287_v31  ;;  %v2482_v19 = vmul.f32 %v8479_v53, %v2287_v31  ;;  %v2426_v30 = vmul.f32 %v8424_v58, %v2287_v31 }
 0xfe0   : > { %6602 = vmatmul.mubr.msk.f32.gmra.mxu0 %vm340_vm0, %v2288_v27  ;;  %v2510_v34 = vmul.f32 %v8507_v12, %v2287_v31  ;;  %v2539_v9 = vmul.f32 %v8500_v29, %v2288_v27  ;;  %v2538_v53 = vmul.f32 %v8521_v33, %v2287_v31  ;;  %v2567_v58 = vmul.f32 %v8514_v36, %v2288_v27 }
 0xfe1   : > { %v2462_v49 = vsel %vm340_vm0, %v2454_v13, 0.0  ;;  %v2301_v14 = vsel %vm340_vm0, %v2293_v43, 0.0  ;;  %v2490_v2 = vsel %vm340_vm0, %v2482_v19, 0.0  ;;  %v2434_v54 = vsel %vm340_vm0, %v2426_v30, 0.0  ;;  %6605 = vmatpush3.msra.mxu1 %v5998_v38 }
 0xfe2   : > { %2463 = vadd.xlane.f32.xlu1 %v2462_v49  ;;  %2302 = vadd.xlane.f32.xlu0 %v2301_v14  ;;  %v2518_v7 = vsel %vm340_vm0, %v2510_v34, 0.0  ;;  %v2549_v24 = vsel %vm340_vm0, %v2539_v9, 0.0  ;;  %v2546_v8 = vsel %vm340_vm0, %v2538_v53, 0.0  ;;  %v2577_v62 = vsel %vm340_vm0, %v2567_v58, 0.0  ;;  %v10780_v49 = vld [vmem:[#allocation14_spill] sm:$0xff] }
 0xfe3   : > { %v2566_v12 = vmul.f32 %v8554_v46, %v2287_v31  ;;  %v2595_v29 = vmul.f32 %v8541_v1, %v2288_v27  ;;  %v2594_v33 = vmul.f32 %v8561_v20, %v2287_v31  ;;  %v2623_v36 = vmul.f32 %v8577_v26, %v2288_v27 }
 0xfe4   : > { %v2622_v46 = vmul.f32 %v8571_v44, %v2287_v31  ;;  %v2292_v1 = vmul.f32 %v8344_v11, %v8615_v18  ;;  %v2291_v20 = vmul.f32 %v8358_v17, %v8601_v61  ;;  %v2425_v26 = vmul.f32 %v8352_v37, %v8615_v18 }
 0xfe5   : > { %v2574_v28 = vsel %vm340_vm0, %v2566_v12, 0.0  ;;  %v2605_v56 = vsel %vm340_vm0, %v2595_v29, 0.0  ;;  %v2602_v52 = vsel %vm340_vm0, %v2594_v33, 0.0  ;;  %v2633_v48 = vsel %vm340_vm0, %v2623_v36, 0.0 }
 0xfe6   : > { %2491 = vadd.xlane.f32.xlu1 %v2490_v2  ;;  %2435 = vadd.xlane.f32.xlu0 %v2434_v54  ;;  %v2630_v39 = vsel %vm340_vm0, %v2622_v46, 0.0  ;;  %v2298_v63 = vsel %vm340_vm0, %v2292_v1, 0.0  ;;  %v2295_v27 = vsel %vm340_vm0, %v2291_v20, 0.0  ;;  %v2431_v44 = vsel %vm340_vm0, %v2425_v26, 0.0  ;;  %v5996_v54 = vld [vmem:[%s10659_s5 + $0x200] sm:$0xff] }
 0xfe7   : > { %v2424_v11 = vmul.f32 %v8370_v23, %v8601_v61  ;;  %v2459_v17 = vsel %vm340_vm0, %v2453_v21, 0.0  ;;  %v2452_v37 = vmul.f32 %v8382_v50, %v8601_v61  ;;  %v2487_v23 = vsel %vm340_vm0, %v2481_v55, 0.0  ;;  %v10782_v21 = vld [vmem:[#allocation6_spill] sm:$0xff]  ;;  %v10783_v55 = vld [vmem:[#allocation7_spill] sm:$0xff] }
 0xfe8   : > { %v2515_v50 = vsel %vm340_vm0, %v2509_v16, 0.0  ;;  %v2540_v31 = vsel %vm340_vm0, %v2536_v25, 0.0  ;;  %v2571_v51 = vsel %vm340_vm0, %v2565_v47, 0.0  ;;  %v2593_v13 = vmul.f32 %v8486_v0, %v8615_v18  ;;  %v10781_v0 = vld [vmem:[#allocation15_spill] sm:$0xff]  ;;  %v10784_v16 = vld [vmem:[#allocation8_spill] sm:$0xff] }
 0xfe9   : > { %v2428_v57 = vsel %vm340_vm0, %v2424_v11, 0.0  ;;  %v2456_v35 = vsel %vm340_vm0, %v2452_v37, 0.0  ;;  %v2568_v43 = vsel %vm340_vm0, %v2564_v59, 0.0  ;;  %v2621_v14 = vmul.f32 %v10780_v49, %v8615_v18  ;;  %v5997_v18 = vld [vmem:[%s10659_s5 + $0x208] sm:$0xff] }
 0xfea   : > { %2519 = vadd.xlane.f32.xlu1 %v2518_v7  ;;  %2550 = vadd.xlane.f32.xlu0 %v2549_v24  ;;  %v2599_v41 = vsel %vm340_vm0, %v2593_v13, 0.0  ;;  %v2596_v19 = vsel %vm340_vm0, %v2592_v22, 0.0  ;;  %v2620_v30 = vmul.f32 %v10781_v0, %v8601_v61  ;;  %v10787_v0 = vld [vmem:[#allocation11_spill] sm:$0xff] }
 0xfeb   : > { %v2627_v10 = vsel %vm340_vm0, %v2621_v14, 0.0  ;;  %6606 = vmatprep.subr.mxu1 %v5997_v18 }
 0xfec   : > { %v2624_v2 = vsel %vm340_vm0, %v2620_v30, 0.0  ;;  %6607 = vmatpush3.msra.mxu1 %v5997_v18 }
 0xfed   : > { %6608 = vmatprep.subr.mxu1 %v5996_v54 }
 0xfee   : > { %2547 = vadd.xlane.f32.xlu1 %v2546_v8  ;;  %2578 = vadd.xlane.f32.xlu0 %v2577_v62 }
 0xfef   : > { %6609 = vmatpush3.msra.mxu1 %v5996_v54 }
 0xff2   : > { %2575 = vadd.xlane.f32.xlu1 %v2574_v28  ;;  %2606 = vadd.xlane.f32.xlu0 %v2605_v56 }
 0xff6   : > { %2603 = vadd.xlane.f32.xlu1 %v2602_v52  ;;  %2634 = vadd.xlane.f32.xlu0 %v2633_v48 }
 0xffa   : > { %2631 = vadd.xlane.f32.xlu1 %v2630_v39  ;;  %2299 = vadd.xlane.f32.xlu0 %v2298_v63 }
 0xffe   : > { %2296 = vadd.xlane.f32.xlu1 %v2295_v27  ;;  %2432 = vadd.xlane.f32.xlu0 %v2431_v44  ;;  %v5988_v27 = vld [vmem:[%s10659_s5 + $0x338] sm:$0xff] }
 0xfff   : > { %v2555_v30 = vrot.slane %v5988_v27, %v10787_v0 }
0x1002   : > { %2429 = vadd.xlane.f32.xlu1 %v2428_v57  ;;  %2460 = vadd.xlane.f32.xlu0 %v2459_v17  ;;  %v2310_v57 = vrot.slane %v5988_v27, %v10782_v21 }
0x1006   : > { %2457 = vadd.xlane.f32.xlu1 %v2456_v35  ;;  %2488 = vadd.xlane.f32.xlu0 %v2487_v23  ;;  %v2443_v35 = vrot.slane %v5988_v27, %v10783_v55  ;;  %v9346_v55 = vld [vmem:[%s10657_s3 + $0xb0] sm:$0xff] }
0x100a   : > { %2485 = vadd.xlane.f32.xlu1 %v2484_v6  ;;  %2516 = vadd.xlane.f32.xlu0 %v2515_v50  ;;  %v2471_v6 = vrot.slane %v5988_v27, %v10784_v16  ;;  %v9339_v16 = vld [vmem:[%s10657_s3 + $0xd8] sm:$0xff] }
0x100e   : > { %2513 = vadd.xlane.f32.xlu1 %v2512_v32  ;;  %2544 = vadd.xlane.f32.xlu0 %v2543_v45  ;;  %v10785_v32 = vld [vmem:[#allocation9_spill] sm:$0xff] }
0x100f   : > { %v2499_v45 = vrot.slane %v5988_v27, %v10785_v32  ;;  %v9263_v32 = vld [vmem:[%s10657_s3 + $0x50] sm:$0xff] }
0x1012   : > { %2541 = vadd.xlane.f32.xlu1 %v2540_v31  ;;  %2572 = vadd.xlane.f32.xlu0 %v2571_v51 }
0x1016   : > { %2569 = vadd.xlane.f32.xlu1 %v2568_v43  ;;  %2600 = vadd.xlane.f32.xlu0 %v2599_v41  ;;  %v10786_v41 = vld [vmem:[#allocation10_spill] sm:$0xff] }
0x1017   : > { %v2527_v22 = vrot.slane %v5988_v27, %v10786_v41  ;;  %v9257_v41 = vld [vmem:[%s10657_s3 + $0x78] sm:$0xff] }
0x101a   : > { %2597 = vadd.xlane.f32.xlu1 %v2596_v19  ;;  %2628 = vadd.xlane.f32.xlu0 %v2627_v10 }
0x101e   : > { %2625 = vadd.xlane.f32.xlu1 %v2624_v2 }
0x103e   : > { %v8710_v61 = vpop.xlane.xlu0 %2438  ;;  %v2306_v7 = vpop.xlane.xlu1 %2305 }
0x1042   : > { %v8712_v34 = vpop.xlane.xlu0 %2466 }
0x1046   : > { %v8714_v9 = vpop.xlane.xlu0 %2494 }
0x104a   : > { %v8716_v24 = vpop.xlane.xlu0 %2522 }
0x106b   : > { %v8718_v53 = vpop.xlane.xlu0 %2302  ;;  %v8720_v58 = vpop.xlane.xlu1 %2463 }
0x106f   : > { %v8722_v8 = vpop.xlane.xlu0 %2435  ;;  %v8724_v62 = vpop.xlane.xlu1 %2491 }
0x1073   : > { %v8726_v12 = vpop.xlane.xlu0 %2550  ;;  %v8728_v29 = vpop.xlane.xlu1 %2519 }
0x1077   : > { %v8730_v28 = vpop.xlane.xlu0 %2578  ;;  %v8732_v56 = vpop.xlane.xlu1 %2547 }
0x107b   : > { %v8734_v33 = vpop.xlane.xlu0 %2606  ;;  %v8736_v36 = vpop.xlane.xlu1 %2575 }
0x107f   : > { %v8738_v52 = vpop.xlane.xlu0 %2634  ;;  %v8740_v48 = vpop.xlane.xlu1 %2603 }
0x1083   : > { %v2300_v46 = vpop.xlane.xlu0 %2299  ;;  %v8742_v1 = vpop.xlane.xlu1 %2631 }
0x1084   : > { %v2312_v23 = vmul.f32 %v2310_v57, %v2300_v46 }
0x1087   : > { %v2433_v39 = vpop.xlane.xlu0 %2432  ;;  %v2297_v63 = vpop.xlane.xlu1 %2296 }
0x1088   : > { %v2445_v50 = vmul.f32 %v2443_v35, %v2433_v39  ;;  %v2311_v15 = vmul.f32 %v2310_v57, %v2297_v63  ;;  %v10788_v63 = vld [vmem:[#allocation12_spill] sm:$0xff] }
0x108b   : > { %v2461_v20 = vpop.xlane.xlu0 %2460  ;;  %v2430_v26 = vpop.xlane.xlu1 %2429 }
0x108c   : > { %v2473_v31 = vmul.f32 %v2471_v6, %v2461_v20  ;;  %v2444_v51 = vmul.f32 %v2443_v35, %v2430_v26  ;;  %v2583_v20 = vrot.slane %v5988_v27, %v10788_v63 }
0x108f   : > { %v2489_v44 = vpop.xlane.xlu0 %2488  ;;  %v2458_v11 = vpop.xlane.xlu1 %2457 }
0x1090   : > { %v2501_v49 = vmul.f32 %v2499_v45, %v2489_v44  ;;  %v2472_v14 = vmul.f32 %v2471_v6, %v2458_v11 }
0x1093   : > { %v2517_v17 = vpop.xlane.xlu0 %2516  ;;  %v2486_v37 = vpop.xlane.xlu1 %2485 }
0x1094   : > { %v2529_v38 = vmul.f32 %v2527_v22, %v2517_v17  ;;  %v2500_v18 = vmul.f32 %v2499_v45, %v2486_v37  ;;  %v2447_v37 = vmul.f32 %v2443_v35, %v8710_v61  ;;  %v2503_v61 = vmul.f32 %v2499_v45, %v8714_v9 }
0x1095   : > { %v6600_v4 = vpop.f32.mrf.mxu0 }
0x1096   : > { %v2411_v5 = vadd.f32 %v6600_v4, %v2312_v23 }
0x1097   : > { %v2545_v25 = vpop.xlane.xlu0 %2544  ;;  %v2405_v47 = vpop.f32.mrf.mxu0 }
0x1098   : > { %v2449_v59 = vadd.f32 %v2445_v50, %v2411_v5  ;;  %v2406_v13 = vadd.f32 %v2405_v47, %v2311_v15  ;;  %v2514_v43 = vpop.xlane.xlu1 %2513  ;;  %v2557_v23 = vmul.f32 %v2555_v30, %v2545_v25  ;;  %v2314_v15 = vmul.f32 %v2310_v57, %v2306_v7  ;;  %v10789_v5 = vld [vmem:[#allocation13_spill] sm:$0xff] }
0x1099   : > { %v2528_v50 = vmul.f32 %v2527_v22, %v2514_v43  ;;  %v2611_v44 = vrot.slane %v5988_v27, %v10789_v5  ;;  %v2475_v7 = vmul.f32 %v2471_v6, %v8712_v34  ;;  %v2446_v27 = vmul.f32 %v2443_v35, %v8722_v8 }
0x109a   : > { %v2477_v19 = vadd.f32 %v2473_v31, %v2449_v59  ;;  %v2448_v10 = vadd.f32 %v2444_v51, %v2406_v13  ;;  %v2531_v8 = vmul.f32 %v2527_v22, %v8716_v24 }
0x109b   : > { %v2573_v2 = vpop.xlane.xlu0 %2572 }
0x109c   : > { %v2505_v54 = vadd.f32 %v2501_v49, %v2477_v19  ;;  %v2476_v46 = vadd.f32 %v2472_v14, %v2448_v10  ;;  %v2542_v39 = vpop.xlane.xlu1 %2541  ;;  %v2585_v51 = vmul.f32 %v2583_v20, %v2573_v2  ;;  %v2313_v49 = vmul.f32 %v2310_v57, %v8718_v53  ;;  %v5994_v2 = vld [vmem:[%s10659_s5 + $0x340] ss:$0 sm:$0xff] }
0x109d   : > { %v2556_v59 = vmul.f32 %v2555_v30, %v2542_v39 }
0x109e   : > { %v2533_v26 = vadd.f32 %v2529_v38, %v2505_v54  ;;  %v2504_v4 = vadd.f32 %v2500_v18, %v2476_v46 }
0x109f   : > { %v2601_v11 = vpop.xlane.xlu0 %2600 }
0x10a0   : > { %v2561_v47 = vadd.f32 %v2557_v23, %v2533_v26  ;;  %v2532_v31 = vadd.f32 %v2528_v50, %v2504_v4  ;;  %v2570_v13 = vpop.xlane.xlu1 %2569  ;;  %v6603_v17 = vpop.f32.mrf.mxu0  ;;  %v2613_v25 = vmul.f32 %v2611_v44, %v2601_v11  ;;  %v2474_v23 = vmul.f32 %v2471_v6, %v8720_v58 }
0x10a1   : > { %v2421_v14 = vadd.f32 %v6603_v17, %v2314_v15  ;;  %v2584_v38 = vmul.f32 %v2583_v20, %v2570_v13  ;;  %v5995_v15 = vld [vmem:[%s10659_s5 + $0x1f8] sm:$0xff]  ;;  %v2502_v11 = vmul.f32 %v2499_v45, %v8724_v62  ;;  %v2530_v58 = vmul.f32 %v2527_v22, %v8728_v29 }
0x10a2   : > { %v2589_v19 = vadd.f32 %v2585_v51, %v2561_v47  ;;  %v2560_v10 = vadd.f32 %v2556_v59, %v2532_v31  ;;  %v2415_v43 = vpop.f32.mrf.mxu0  ;;  %6610 = vmatprep.subr.mxu1 %v5995_v15  ;;  %v2559_v51 = vmul.f32 %v2555_v30, %v8726_v12  ;;  %v10790_v17 = vmov 0.0  }
0x10a3   : > { %v2451_v18 = vadd.f32 %v2447_v37, %v2421_v14  ;;  %v2416_v54 = vadd.f32 %v2415_v43, %v2313_v49  ;;  %v2629_v46 = vpop.xlane.xlu0 %2628  ;;  %6611 = vmatpush3.msra.mxu1 %v5995_v15  ;;  %v2587_v37 = vmul.f32 %v2583_v20, %v8730_v28  ;;  %v2558_v49 = vmul.f32 %v2555_v30, %v8732_v56 }
0x10a4   : > { %v2617_v53 = vadd.f32 %v2613_v25, %v2589_v19  ;;  %v2588_v57 = vadd.f32 %v2584_v38, %v2560_v10  ;;  %v2641_v39 = vmul.f32 %v5994_v2, %v2629_v46  ;;  %v2598_v26 = vpop.xlane.xlu1 %2597  ;;  %2979 = vmatprep.subr.mxu1 %v10790_v17  ;;  %v2615_v19 = vmul.f32 %v2611_v44, %v8734_v33  ;;  %v10792_v46 = vld [vmem:[#allocation4_spill] sm:$0xff] }
0x10a5   : > { %v2479_v4 = vadd.f32 %v2475_v7, %v2451_v18  ;;  %v2450_v50 = vadd.f32 %v2446_v27, %v2416_v54  ;;  %v2612_v34 = vmul.f32 %v2611_v44, %v2598_v26  ;;  %v2586_v12 = vmul.f32 %v2583_v20, %v8736_v36 }
0x10a6   : > { %v2645_v35 = vadd.f32 %v2641_v39, %v2617_v53  ;;  %v2643_v29 = vmul.f32 %v5994_v2, %v8738_v52  ;;  %v2614_v22 = vmul.f32 %v2611_v44, %v8740_v48  ;;  %v2642_v7 = vmul.f32 %v5994_v2, %v8742_v1  ;;  %v6000_v52 = vld [vmem:[%s10660_s6 + $0x48] ss:$0 sm:$0xff] }
0x10a7   : > { %v2507_v47 = vadd.f32 %v2503_v61, %v2479_v4  ;;  %v2478_v9 = vadd.f32 %v2474_v23, %v2450_v50  ;;  %v2616_v31 = vadd.f32 %v2612_v34, %v2588_v57 }
0x10a8   : > { %v2626_v59 = vpop.xlane.xlu1 %2625 }
0x10a9   : > { %v2535_v6 = vadd.f32 %v2531_v8, %v2507_v47  ;;  %v2506_v13 = vadd.f32 %v2502_v11, %v2478_v9  ;;  %v2640_v24 = vmul.f32 %v5994_v2, %v2626_v59  ;;  %v10791_v2 = vld [vmem:[#allocation5_spill] sm:$0xff]  ;;  %v6018_v47 = vld [vmem:[%s10659_s5 + $0x270] sm:$0xff]  ;;  %v6017_v9 = vld [vmem:[%s10659_s5 + $0x268] sm:$0xff] }
0x10aa   : > { %6615 = vmatprep.subr.mxu0 %v6018_v47  ;;  %v6014_v59 = vld [vmem:[%s10659_s5 + $0x250] sm:$0xff] }
0x10ab   : > { %v2563_v62 = vadd.f32 %v2559_v51, %v2535_v6  ;;  %v2534_v45 = vadd.f32 %v2530_v58, %v2506_v13  ;;  %v2644_v14 = vadd.f32 %v2640_v24, %v2616_v31  ;;  %6616 = vmatpush3.msra.mxu0 %v6018_v47  ;;  %v6016_v31 = vld [vmem:[%s10659_s5 + $0x260] sm:$0xff]  ;;  %v6015_v51 = vld [vmem:[%s10659_s5 + $0x258] sm:$0xff]  ;;  %v6013_v58 = vld [vmem:[%s10659_s5 + $0x248] sm:$0xff] }
0x10ac   : > { %6617 = vmatprep.subr.mxu0 %v6017_v9  ;;  %v6012_v6 = vld [vmem:[%s10659_s5 + $0x240] sm:$0xff]  ;;  %v6035_v47 = vld [vmem:[%s10659_s5 + $0x2d8] sm:$0xff] }
0x10ad   : > { %v2562_v10 = vadd.f32 %v2558_v49, %v2534_v45  ;;  %v2591_v25 = vadd.f32 %v2587_v37, %v2563_v62  ;;  %6618 = vmatpush3.msra.mxu0 %v6017_v9  ;;  %v6034_v9 = vld [vmem:[%s10659_s5 + $0x2d0] sm:$0xff] }
0x10ae   : > { %6619 = vmatprep.subr.mxu0 %v6016_v31 }
0x10af   : > { %v2619_v38 = vadd.f32 %v2615_v19, %v2591_v25  ;;  %v2590_v43 = vadd.f32 %v2586_v12, %v2562_v10  ;;  %6620 = vmatpush3.msra.mxu0 %v6016_v31  ;;  %v6010_v19 = vld [vmem:[%s10659_s5 + $0x230] sm:$0xff]  ;;  %v6009_v12 = vld [vmem:[%s10659_s5 + $0x228] sm:$0xff] }
0x10b0   : > { %6621 = vmatprep.subr.mxu0 %v6015_v51  ;;  %v6005_v25 = vld [vmem:[%s10660_s6 + $0x4b] ss:$0 sm:$0xff] }
0x10b1   : > { %v2647_v28 = vadd.f32 %v2643_v29, %v2619_v38  ;;  %v2618_v27 = vadd.f32 %v2614_v22, %v2590_v43  ;;  %6622 = vmatpush3.msra.mxu0 %v6015_v51  ;;  %v6006_v38 = vld [vmem:[%s10660_s6 + $0x4c] ss:$0 sm:$0xff]  ;;  %v6008_v43 = vld [vmem:[%s10659_s5 + $0x220] sm:$0xff] }
0x10b2   : > { %6623 = vmatprep.subr.mxu0 %v6014_v59  ;;  %v6033_v31 = vld [vmem:[%s10659_s5 + $0x2c8] sm:$0xff]  ;;  %v6032_v51 = vld [vmem:[%s10659_s5 + $0x2c0] sm:$0xff] }
0x10b3   : > { %2652 = vrot.lane.b32.xlu0 %v2647_v28, %s7196_s21  ;;  %v2646_v56 = vadd.f32 %v2642_v7, %v2618_v27  ;;  %6624 = vmatpush3.msra.mxu0 %v6014_v59  ;;  %v6007_v27 = vld [vmem:[%s10659_s5 + $0x218] sm:$0xff] }
0x10b4   : > { %6625 = vmatprep.subr.mxu0 %v6013_v58  ;;  %v6031_v59 = vld [vmem:[%s10659_s5 + $0x2b8] sm:$0xff] }
0x10b5   : > { %2650 = vrot.lane.b32.xlu1 %v2646_v56, %s7196_s21  ;;  %6626 = vmatpush3.msra.mxu0 %v6013_v58  ;;  %v6030_v58 = vld [vmem:[%s10659_s5 + $0x2b0] sm:$0xff] }
0x10b6   : > { %6627 = vmatprep.subr.mxu0 %v6012_v6 }
0x10b7   : > { %6628 = vmatpush3.msra.mxu0 %v6012_v6  ;;  %v6029_v6 = vld [vmem:[%s10659_s5 + $0x2a8] sm:$0xff] }
0x1125   : > { %v2653_v33 = vpop.permute.xlu0 %2652 }
0x1126   : > { %v2657_v20 = vsel %vm596_vm2, %v2645_v35, %v2653_v33 }
0x1127   : > { %v2651_v30 = vpop.permute.xlu1 %2650 }
0x1128   : > { %v2656_v36 = vsel %vm596_vm2, %v2644_v14, %v2651_v30  ;;  %v6011_v14 = vld [vmem:[%s10659_s5 + $0x238] sm:$0xff]  ;;  %v10793_v30 = vld [vmem:[#allocation3_spill] sm:$0xff] }
0x1129   : > { %6612 = vmatprep.mubr.msk.f32.mxu1 %vm340_vm0, %v2656_v36  ;;  %6629 = vmatprep.subr.mxu0 %v6011_v14 }
0x112a   : > { %6613 = vmatmul.mubr.msk.f32.vlgmr.msra.gmra.mxu1 %vm340_vm0, %v2657_v20  ;;  %6630 = vmatpush3.msra.mxu0 %v6011_v14  ;;  %v6046_v14 = vld [vmem:[%s10659_s5 + $0x330] sm:$0xff] }
0x112b   : > { %6631 = vmatprep.subr.mxu0 %v6010_v19 }
0x112c   : > { %6632 = vmatpush3.msra.mxu0 %v6010_v19  ;;  %v6045_v19 = vld [vmem:[%s10659_s5 + $0x328] sm:$0xff] }
0x112d   : > { %6633 = vmatprep.subr.mxu0 %v6009_v12 }
0x112e   : > { %6634 = vmatpush3.msra.mxu0 %v6009_v12  ;;  %v6044_v12 = vld [vmem:[%s10659_s5 + $0x320] sm:$0xff] }
0x112f   : > { %6635 = vmatprep.subr.mxu0 %v6008_v43 }
0x1130   : > { %6636 = vmatpush3.msra.mxu0 %v6008_v43  ;;  %v6020_v43 = vld [vmem:[%s10660_s6 + $0x49] ss:$0 sm:$0xff] }
0x1131   : > { %6637 = vmatprep.subr.mxu0 %v6007_v27 }
0x1132   : > { %6638 = vmatpush3.msra.mxu0 %v6007_v27 }
0x11ea   : > { %v6614_v48 = vpop.f32.mrf.mxu1 }
0x11eb   : > { %v2745_v1 = vadd.f32 %v6614_v48, %v6000_v52 }
0x11ec   : > { %v2739_v44 = vpop.f32.mrf.mxu1 }
0x11ed   : > { %v2749_v18 = vadd.f32 %v2745_v1, %v10791_v2  ;;  %v2740_v54 = vadd.f32 %v6000_v52, %v2739_v44  ;;  %v10794_v52 = vld [vmem:[#allocation2_spill] sm:$0xff] }
0x11ef   : > { %v2748_v61 = vadd.f32 %v2740_v54, %v10792_v46  ;;  %v2755_v53 = vsel %vm340_vm0, %v2749_v18, 0.0 }
0x11f0   : > { %2756 = vadd.xlane.f32.xlu0 %v2755_v53 }
0x11f1   : > { %v2752_v57 = vsel %vm340_vm0, %v2748_v61, 0.0 }
0x11f2   : > { %2753 = vadd.xlane.f32.xlu1 %v2752_v57 }
0x1279   : > { %v2757_v39 = vpop.xlane.xlu0 %2756 }
0x127a   : > { %v2759_v26 = vmul.f32 0.03125, %v2757_v39 }
0x127b   : > { %v2754_v23 = vpop.xlane.xlu1 %2753 }
0x127c   : > { %v2761_v4 = vsub.f32 %v2749_v18, %v2759_v26  ;;  %v2758_v50 = vmul.f32 0.03125, %v2754_v23 }
0x127e   : > { %v2760_v34 = vsub.f32 %v2748_v61, %v2758_v50  ;;  %v2763_v8 = vmul.f32 %v2761_v4, %v2761_v4 }
0x1280   : > { %v2767_v35 = vsel %vm340_vm0, %v2763_v8, 0.0  ;;  %v2762_v15 = vmul.f32 %v2760_v34, %v2760_v34 }
0x1281   : > { %2768 = vadd.xlane.f32.xlu0 %v2767_v35  ;;  %v6038_v35 = vld [vmem:[%s10659_s5 + $0x2f0] sm:$0xff] }
0x1282   : > { %v2764_v11 = vsel %vm340_vm0, %v2762_v15, 0.0  ;;  %v6037_v15 = vld [vmem:[%s10659_s5 + $0x2e8] sm:$0xff]  ;;  %2980 = vmatpush1.msra.mxu1 %v6038_v35 }
0x1283   : > { %2765 = vadd.xlane.f32.xlu1 %v2764_v11  ;;  %2981 = vmatprep.subr.mxu1 %v10790_v17  ;;  %v6036_v11 = vld [vmem:[%s10659_s5 + $0x2e0] sm:$0xff] }
0x1284   : > { %2982 = vmatpush1.msra.mxu1 %v6037_v15 }
0x1285   : > { %2983 = vmatprep.subr.mxu1 %v10790_v17 }
0x1286   : > { %2984 = vmatpush1.msra.mxu1 %v6036_v11 }
0x1287   : > { %2985 = vmatprep.subr.mxu1 %v10790_v17 }
0x1288   : > { %2986 = vmatpush1.msra.mxu1 %v6035_v47 }
0x1289   : > { %2987 = vmatprep.subr.mxu1 %v10790_v17 }
0x128a   : > { %2988 = vmatpush1.msra.mxu1 %v6034_v9 }
0x128b   : > { %2989 = vmatprep.subr.mxu1 %v10790_v17 }
0x128c   : > { %2990 = vmatpush1.msra.mxu1 %v6033_v31 }
0x128d   : > { %2991 = vmatprep.subr.mxu1 %v10790_v17 }
0x128e   : > { %2992 = vmatpush1.msra.mxu1 %v6032_v51 }
0x128f   : > { %2993 = vmatprep.subr.mxu1 %v10790_v17 }
0x1290   : > { %2994 = vmatpush1.msra.mxu1 %v6031_v59 }
0x1291   : > { %2995 = vmatprep.subr.mxu1 %v10790_v17 }
0x1292   : > { %2996 = vmatpush1.msra.mxu1 %v6030_v58 }
0x1293   : > { %2997 = vmatprep.subr.mxu1 %v10790_v17 }
0x1294   : > { %2998 = vmatpush1.msra.mxu1 %v6029_v6 }
0x1295   : > { %2999 = vmatprep.subr.mxu1 %v10790_v17 }
0x130a   : > { %v2769_v13 = vpop.xlane.xlu0 %2768 }
0x130b   : > { %v2771_v24 = vmul.f32 0.03125, %v2769_v13  ;;  %v6028_v13 = vld [vmem:[%s10659_s5 + $0x2a0] sm:$0xff] }
0x130c   : > { %v2766_v37 = vpop.xlane.xlu1 %2765  ;;  %3000 = vmatpush1.msra.mxu1 %v6028_v13 }
0x130d   : > { %v2773_v49 = vadd.f32 0.0001, %v2771_v24  ;;  %v2770_v62 = vmul.f32 0.03125, %v2766_v37  ;;  %v6027_v24 = vld [vmem:[%s10659_s5 + $0x298] sm:$0xff]  ;;  %3001 = vmatprep.subr.mxu1 %v10790_v17  ;;  %v6026_v37 = vld [vmem:[%s10659_s5 + $0x290] sm:$0xff] }
0x130e   : > { %3002 = vmatpush1.msra.mxu1 %v6027_v24 }
0x130f   : > { %7011 = vrsqrt.f32 %v2773_v49  ;;  %v2772_v45 = vadd.f32 0.0001, %v2770_v62  ;;  %3003 = vmatprep.subr.mxu1 %v10790_v17  ;;  %v6025_v49 = vld [vmem:[%s10659_s5 + $0x288] sm:$0xff]  ;;  %v6024_v62 = vld [vmem:[%s10659_s5 + $0x280] sm:$0xff] }
0x1310   : > { %3004 = vmatpush1.msra.mxu1 %v6026_v37 }
0x1311   : > { %7013 = vrsqrt.f32 %v2772_v45  ;;  %3005 = vmatprep.subr.mxu1 %v10790_v17  ;;  %v6023_v45 = vld [vmem:[%s10659_s5 + $0x278] sm:$0xff] }
0x1312   : > { %3006 = vmatpush1.msra.mxu1 %v6025_v49 }
0x1313   : > { %3007 = vmatprep.subr.mxu1 %v10790_v17 }
0x1314   : > { %3008 = vmatpush1.msra.mxu1 %v6024_v62 }
0x1315   : > { %3009 = vmatprep.subr.mxu1 %v10790_v17 }
0x1316   : > { %3010 = vmatpush1.msra.mxu1 %v6023_v45 }
0x1317   : > { %3027 = vmatprep.subr.mxu1 %v10790_v17 }
0x1318   : > { %3028 = vmatpush2.msra.mxu1 %v6046_v14 }
0x1319   : > { %3029 = vmatprep.subr.mxu1 %v10790_v17 }
0x131a   : > { %3030 = vmatpush2.msra.mxu1 %v6045_v19 }
0x131b   : > { %3031 = vmatprep.subr.mxu1 %v10790_v17 }
0x131c   : > { %v7012_v10 = vpop.eup %7011  ;;  %3032 = vmatpush2.msra.mxu1 %v6044_v12 }
0x131d   : > { %v2777_v29 = vmul.f32 %v7012_v10, %v2761_v4  ;;  %v6043_v10 = vld [vmem:[%s10659_s5 + $0x318] sm:$0xff]  ;;  %3033 = vmatprep.subr.mxu1 %v10790_v17 }
0x131e   : > { %v7014_v22 = vpop.eup %7013  ;;  %3034 = vmatpush2.msra.mxu1 %v6043_v10 }
0x131f   : > { %v2783_v7 = vmul.f32 %v6005_v25, %v2777_v29  ;;  %v2776_v28 = vmul.f32 %v7014_v22, %v2760_v34  ;;  %3035 = vmatprep.subr.mxu1 %v10790_v17  ;;  %v6041_v29 = vld [vmem:[%s10659_s5 + $0x308] sm:$0xff]  ;;  %v6040_v22 = vld [vmem:[%s10659_s5 + $0x300] sm:$0xff] }
0x1321   : > { %v8836_v56 = vadd.f32 %v6006_v38, %v2783_v7  ;;  %v2782_v33 = vmul.f32 %v6005_v25, %v2776_v28  ;;  %v6042_v25 = vld [vmem:[%s10659_s5 + $0x310] sm:$0xff] }
0x1322   : > { %3036 = vmatpush2.msra.mxu1 %v6042_v25  ;;  %v6061_v25 = vld [vmem:[%s10659_s5 + $0x3a0] sm:$0xff] }
0x1323   : > { %v2791_v36 = vmul.f32 %v8836_v56, %v10793_v30  ;;  %v8840_v20 = vadd.f32 %v6006_v38, %v2782_v33  ;;  %3037 = vmatprep.subr.mxu1 %v10790_v17  ;;  %v6039_v38 = vld [vmem:[%s10659_s5 + $0x2f8] sm:$0xff] }
0x1324   : > { %3038 = vmatpush2.msra.mxu1 %v6041_v29  ;;  %v6060_v29 = vld [vmem:[%s10659_s5 + $0x398] sm:$0xff] }
0x1325   : > { %2807 = vrot.lane.b32.xlu0 %v2791_v36, %s7184_s16  ;;  %v2790_v48 = vmul.f32 %v8840_v20, %v10794_v52  ;;  %v2801_v44 = vrot.slane %v2791_v36, 1  ;;  %v2795_v18 = vrot.slane %v2791_v36, 7  ;;  %3039 = vmatprep.subr.mxu1 %v10790_v17 }
0x1326   : > { %3040 = vmatpush2.msra.mxu1 %v6040_v22  ;;  %v6059_v22 = vld [vmem:[%s10659_s5 + $0x390] sm:$0xff] }
0x1327   : > { %2805 = vrot.lane.b32.xlu1 %v2790_v48, %s7184_s16  ;;  %v2800_v1 = vrot.slane %v2790_v48, 1  ;;  %v2794_v2 = vrot.slane %v2790_v48, 7  ;;  %v2804_v61 = vsel %vm1491_vm8, %v2801_v44, 0.0  ;;  %3041 = vmatprep.subr.mxu1 %v10790_v17 }
0x1328   : > { %3042 = vmatpush2.msra.mxu1 %v6039_v38  ;;  %v6058_v38 = vld [vmem:[%s10659_s5 + $0x388] sm:$0xff] }
0x1329   : > { %v2802_v54 = vsel %vm1491_vm8, %v2800_v1, %v2801_v44  ;;  %v2796_v46 = vsel %vm1484_vm7, %v2794_v2, %v2795_v18  ;;  %v2799_v57 = vsel %vm1484_vm7, 0.0, %v2794_v2 }
0x132b   : > { %2812 = vrot.lane.b32.xlu1 %v2802_v54, %s7197_s17 }
0x132f   : > { %2814 = vrot.lane.b32.xlu1 %v2804_v61, %s7197_s17 }
0x1397   : > { %v2808_v23 = vpop.permute.xlu0 %2807 }
0x1398   : > { %v2819_v50 = vsel %vm340_vm0, %v2796_v46, %v2808_v23 }
0x1399   : > { %v2806_v53 = vpop.permute.xlu1 %2805 }
0x139a   : > { %v2818_v39 = vsel %vm340_vm0, %v2799_v57, %v2806_v53 }
0x139d   : > { %v2813_v26 = vpop.permute.xlu1 %2812 }
0x139e   : > { %v2820_v4 = vsel %vm462_vm1, %v2818_v39, %v2813_v26 }
0x139f   : > { %6639 = vmatprep.mubr.msk.f32.mxu0 %vm1531_vm9, %v2820_v4 }
0x13a1   : > { %v2815_v34 = vpop.permute.xlu1 %2814 }
0x13a2   : > { %v2821_v8 = vsel %vm462_vm1, %v2819_v50, %v2815_v34  ;;  %v6048_v34 = vld [vmem:[%s10660_s6 + $0x4a] ss:$0 sm:$0xff] }
0x13a3   : > { %6640 = vmatmul.mubr.msk.f32.vlgmr.msra.gmra.mxu0 %vm1531_vm9, %v2821_v8 }
0x1463   : > { %v6641_v7 = vpop.f32.mrf.mxu0 }
0x1464   : > { %v2917_v28 = vadd.f32 %v6641_v7, %v6020_v43  ;;  %v6056_v7 = vld [vmem:[%s10659_s5 + $0x378] sm:$0xff] }
0x1465   : > { %v2911_v27 = vpop.f32.mrf.mxu0 }
0x1466   : > { %v2921_v33 = vmax.f32 %v2917_v28, 0.0  ;;  %v2912_v36 = vadd.f32 %v6020_v43, %v2911_v27  ;;  %v6057_v43 = vld [vmem:[%s10659_s5 + $0x380] sm:$0xff]  ;;  %v6055_v28 = vld [vmem:[%s10659_s5 + $0x370] sm:$0xff] }
0x1468   : > { %v2923_v48 = vmul.f32 %v2921_v33, %v10793_v30  ;;  %v2920_v1 = vmax.f32 %v2912_v36, 0.0 }
0x146a   : > { %v2922_v44 = vmul.f32 %v2920_v1, %v10794_v52  ;;  %2939 = vrot.lane.b32.xlu1 %v2923_v48, %s7197_s17  ;;  %v2927_v2 = vrot.slane %v2923_v48, 7  ;;  %v2933_v18 = vrot.slane %v2923_v48, 1 }
0x146c   : > { %v2932_v54 = vrot.slane %v2922_v44, 1  ;;  %2937 = vrot.lane.b32.xlu0 %v2922_v44, %s7197_s17  ;;  %v2926_v46 = vrot.slane %v2922_v44, 7  ;;  %v2936_v4 = vsel %vm1491_vm8, %v2933_v18, 0.0 }
0x146e   : > { %v2934_v61 = vsel %vm1491_vm8, %v2932_v54, %v2933_v18  ;;  %v2928_v53 = vsel %vm1484_vm7, %v2926_v46, %v2927_v2  ;;  %v2931_v39 = vsel %vm1484_vm7, 0.0, %v2926_v46  ;;  %v6053_v18 = vld [vmem:[%s10660_s6 + $0x4d] ss:$0 sm:$0xff]  ;;  %v6054_v46 = vld [vmem:[%s10660_s6 + $0x4e] ss:$0 sm:$0xff] }
0x146f   : > { %6049 = vmatprep.mubr.msk.f32.mxu1 %vm462_vm1, %v2934_v61 }
0x14dc   : > { %v2940_v23 = vpop.permute.xlu1 %2939 }
0x14dd   : > { %v2944_v50 = vsel %vm462_vm1, %v2928_v53, %v2940_v23 }
0x14de   : > { %v2938_v57 = vpop.permute.xlu0 %2937 }
0x14df   : > { %v2943_v26 = vsel %vm462_vm1, %v2931_v39, %v2938_v57 }
0x14e0   : > { %3044 = vmatmul.mubr.f32.vlgmr.msra.gmra.mxu1 %v2943_v26 }
0x14e1   : > { %6050 = vmatprep.mubr.msk.f32.mxu1 %vm462_vm1, %v2936_v4 }
0x14e4   : > { %3049 = vmatmul.mubr.f32.gmra.mxu1 %v2944_v50 }
0x15a0   : > { %v3045_v8 = vpop.f32.mrf.mxu1 }
0x15a1   : > { %v3046_v35 = vadd.f32 %v6048_v34, %v3045_v8 }
0x15a2   : > { %v3047_v15 = vpop.f32.mrf.mxu1 }
0x15a3   : > { %v3054_v11 = vmul.f32 %v3046_v35, %v10794_v52 }
0x15a4   : > { %v3050_v47 = vpop.f32.mrf.mxu1 }
0x15a5   : > { %v3051_v9 = vadd.f32 %v6048_v34, %v3050_v47  ;;  %v3056_v31 = vadd.f32 %v3054_v11, %v8840_v20 }
0x15a6   : > { %v3052_v51 = vpop.f32.mrf.mxu1 }
0x15a7   : > { %v3055_v59 = vmul.f32 %v3051_v9, %v10793_v30  ;;  %v3060_v58 = vsel %vm340_vm0, %v3056_v31, 0.0  ;;  %v6064_v9 = vld [vmem:[%s10660_s6 + $0x58] sm:$0xff]  ;;  %v6063_v51 = vld [vmem:[%s10660_s6 + $0x50] sm:$0xff] }
0x15a8   : > { %3061 = vadd.xlane.f32.xlu0 %v3060_v58 }
0x15a9   : > { %v3057_v6 = vadd.f32 %v3055_v59, %v8836_v56  ;;  %v6062_v56 = vld [vmem:[%s10659_s5 + $0x3a8] sm:$0xff] }
0x15aa   : > { %6642 = vmatprep.subr.mxu0 %v6062_v56 }
0x15ab   : > { %v3063_v13 = vsel %vm340_vm0, %v3057_v6, 0.0  ;;  %6643 = vmatpush3.msra.mxu0 %v6062_v56  ;;  %v10802_v56 = vmov 50  }
0x15ac   : > { %3064 = vadd.xlane.f32.xlu1 %v3063_v13  ;;  %6644 = vmatprep.subr.mxu0 %v6061_v25  ;;  %v10797_v13 = vmov 48  }
0x15ad   : > { %6645 = vmatpush3.msra.mxu0 %v6061_v25  ;;  %v10803_v25 = vmov 54  }
0x15ae   : > { %6646 = vmatprep.subr.mxu0 %v6060_v29 }
0x15af   : > { %6647 = vmatpush3.msra.mxu0 %v6060_v29  ;;  %v10804_v29 = vmov 53  }
0x15b0   : > { %6648 = vmatprep.subr.mxu0 %v6059_v22 }
0x15b1   : > { %6649 = vmatpush3.msra.mxu0 %v6059_v22  ;;  %v10805_v22 = vmov 56  }
0x15b2   : > { %6650 = vmatprep.subr.mxu0 %v6058_v38 }
0x15b3   : > { %6651 = vmatpush3.msra.mxu0 %v6058_v38 }
0x15b4   : > { %6652 = vmatprep.subr.mxu0 %v6057_v43 }
0x15b5   : > { %6653 = vmatpush3.msra.mxu0 %v6057_v43 }
0x15b6   : > { %6654 = vmatprep.subr.mxu0 %v6056_v7 }
0x15b7   : > { %6655 = vmatpush3.msra.mxu0 %v6056_v7 }
0x15b8   : > { %6656 = vmatprep.subr.mxu0 %v6055_v28 }
0x15b9   : > { %6657 = vmatpush3.msra.mxu0 %v6055_v28 }
0x1631   : > { %v3062_v24 = vpop.xlane.xlu0 %3061 }
0x1632   : > { %v3066_v37 = vmul.f32 0.03125, %v3062_v24  ;;  %v6066_v24 = vld [vmem:[%s10660_s6 + $0x68] sm:$0xff] }
0x1634   : > { %v3068_v49 = vsub.f32 %v3056_v31, %v3066_v37 }
0x1635   : > { %v3065_v62 = vpop.xlane.xlu1 %3064 }
0x1636   : > { %v3067_v45 = vmul.f32 0.03125, %v3065_v62  ;;  %v3070_v14 = vmul.f32 %v3068_v49, %v3068_v49 }
0x1638   : > { %v3069_v19 = vsub.f32 %v3057_v6, %v3067_v45  ;;  %v3072_v20 = vsel %vm340_vm0, %v3070_v14, 0.0  ;;  %v6065_v45 = vld [vmem:[%s10660_s6 + $0x60] sm:$0xff] }
0x1639   : > { %3073 = vadd.xlane.f32.xlu0 %v3072_v20  ;;  %v10799_v20 = vmov 51  }
0x163a   : > { %v3071_v12 = vmul.f32 %v3069_v19, %v3069_v19 }
0x163c   : > { %v3075_v10 = vsel %vm340_vm0, %v3071_v12, 0.0  ;;  %v10800_v12 = vmov 49  }
0x163d   : > { %3076 = vadd.xlane.f32.xlu0 %v3075_v10  ;;  %v10801_v10 = vmov 55  }
0x16c2   : > { %v3074_v27 = vpop.xlane.xlu0 %3073 }
0x16c3   : > { %v3078_v33 = vmul.f32 0.03125, %v3074_v27 }
0x16c5   : > { %v3080_v36 = vadd.f32 0.0001, %v3078_v33 }
0x16c6   : > { %v3077_v48 = vpop.xlane.xlu0 %3076 }
0x16c7   : > { %7015 = vrsqrt.f32 %v3080_v36  ;;  %v3079_v1 = vmul.f32 0.03125, %v3077_v48 }
0x16c9   : > { %v3081_v44 = vadd.f32 0.0001, %v3079_v1 }
0x16cb   : > { %7017 = vrsqrt.f32 %v3081_v44 }
0x16d4   : > { %v7016_v2 = vpop.eup %7015 }
0x16d5   : > { %v3084_v54 = vmul.f32 %v7016_v2, %v3068_v49 }
0x16d7   : > { %v3090_v61 = vmul.f32 %v6053_v18, %v3084_v54 }
0x16d8   : > { %v7018_v53 = vpop.eup %7017 }
0x16d9   : > { %v3096_v57 = vadd.f32 %v6054_v46, %v3090_v61  ;;  %v3085_v39 = vmul.f32 %v7018_v53, %v3069_v19  ;;  %v10798_v19 = vmov 52  }
0x16db   : > { %v9010_v26 = vmul.f32 %v3096_v57, %v10794_v52  ;;  %v3091_v23 = vmul.f32 %v6053_v18, %v3085_v39 }
0x16dd   : > { %10795 = vst [vmem:[#allocation14_spill] sm:$0xff] %v9010_v26  ;;  %3104 = vrot.lane.b32.xlu1 %v9010_v26, %s7184_s16  ;;  %v3100_v4 = vsel %vm340_vm0, %v9010_v26, 0.0  ;;  %v3097_v50 = vadd.f32 %v6054_v46, %v3091_v23 }
0x16de   : > { %6658 = vmatprep.mubr.msk.f32.mxu0 %vm462_vm1, %v3100_v4 }
0x16df   : > { %v9018_v34 = vmul.f32 %v3097_v50, %v10793_v30 }
0x16e1   : > { %10796 = vst [vmem:[#allocation15_spill] sm:$0xff] %v9018_v34  ;;  %3106 = vrot.lane.b32.xlu0 %v9018_v34, %s7184_s16  ;;  %v3101_v8 = vsel %vm340_vm0, %v9018_v34, 0.0 }
0x16e2   : > { %6659 = vmatmul.mubr.msk.f32.vlgmr.msra.gmra.mxu0 %vm462_vm1, %v3101_v8 }
0x174f   : > { %v3105_v35 = vpop.permute.xlu1 %3104 }
0x1750   : > { %v3110_v15 = vsel %vm340_vm0, 0.0, %v3105_v35 }
0x1751   : > { %6661 = vmatprep.mubr.msk.f32.mxu0 %vm462_vm1, %v3110_v15 }
0x1753   : > { %v3107_v11 = vpop.permute.xlu0 %3106 }
0x1754   : > { %v3111_v47 = vsel %vm340_vm0, 0.0, %v3107_v11 }
0x1755   : > { %6662 = vmatmul.mubr.msk.f32.gmra.mxu0 %vm462_vm1, %v3111_v47 }
0x17a2   : > { %v6660_v31 = vpop.f32.mrf.mxu0 }
0x17a3   : > { %v9035_v59 = vadd.f32 %v6660_v31, %v6064_v9 }
0x17a4   : > { %v3204_v58 = vpop.f32.mrf.mxu0 }
0x17a5   : > { %v9037_v6 = vadd.f32 %v6063_v51, %v3204_v58  ;;  %3249 = vrot.lane.b32.xlu0 %v9035_v59, %s7187_s27 }
0x17a7   : > { %6672 = vmatprep.mubr.msk.f32.mxu0 %vm596_vm2, %v9037_v6 }
0x17a9   : > { %3361 = vperm.xlu0 %6914, %v9035_v59  }
0x17ad   : > { %6915 = vset.pattern.permute.xlu0 %v10797_v13 }
0x17ae   : > { %3225 = vperm.xlu0 %6915, %v9037_v6  }
0x1815   : > { %v6663_v37 = vpop.f32.mrf.mxu0 }
0x1816   : > { %v9049_v49 = vadd.f32 %v6663_v37, %v6066_v24 }
0x1817   : > { %v3214_v62 = vpop.f32.mrf.mxu0  ;;  %v3250_v7 = vpop.permute.xlu0 %3249 }
0x1818   : > { %3240 = vperm.xlu0 %6915, %v9049_v49   ;;  %3253 = vrot.lane.b32.xlu1 %v9049_v49, %s7187_s27  ;;  %v9057_v14 = vadd.f32 %v6065_v45, %v3214_v62  ;;  %v9169_v45 = vld [vmem:[%s10657_s3 + $0x8] sm:$0xff] }
0x181c   : > { %6921 = vset.pattern.permute.xlu0 %v10798_v19  ;;  %3251 = vrot.lane.b32.xlu1 %v9057_v14, %s7187_s27 }
0x181d   : > { %3433 = vperm.xlu0 %6921, %v9035_v59  }
0x1820   : > { %3247 = vrot.lane.b32.xlu1 %v9037_v6, %s7187_s27 }
0x1821   : > { %6922 = vset.pattern.permute.xlu0 %v10799_v20 }
0x1822   : > { %3405 = vperm.xlu0 %6922, %v9037_v6  }
0x1824   : > { %3230 = vperm.xlu1 %6912, %v9035_v59   ;;  %v3362_v57 = vpop.permute.xlu0 %3361 }
0x1826   : > { %3417 = vperm.xlu0 %6922, %v9049_v49  }
0x1828   : > { %6913 = vset.pattern.permute.xlu1 %v10800_v12 }
0x1829   : > { %3357 = vperm.xlu1 %6913, %v9037_v6   ;;  %v3226_v23 = vpop.permute.xlu0 %3225 }
0x182a   : > { %6928 = vset.pattern.permute.xlu0 %v10801_v10 }
0x182b   : > { %3505 = vperm.xlu0 %6928, %v9035_v59  }
0x182d   : > { %6916 = vset.pattern.permute.xlu1 %v10802_v56 }
0x182e   : > { %3381 = vperm.xlu1 %6916, %v9037_v6  }
0x182f   : > { %6929 = vset.pattern.permute.xlu0 %v10803_v25 }
0x1830   : > { %3477 = vperm.xlu0 %6929, %v9037_v6  }
0x1832   : > { %3385 = vperm.xlu1 %6916, %v9035_v59  }
0x1834   : > { %3489 = vperm.xlu0 %6929, %v9049_v49  }
0x1836   : > { %6917 = vset.pattern.permute.xlu1 %v10800_v12 }
0x1837   : > { %3369 = vperm.xlu1 %6917, %v9049_v49  }
0x1838   : > { %6933 = vset.pattern.permute.xlu0 %v10802_v56 }
0x1839   : > { %3389 = vperm.xlu0 %6933, %v9057_v14  }
0x183b   : > { %6918 = vset.pattern.permute.xlu1 %v10799_v20 }
0x183c   : > { %3409 = vperm.xlu1 %6918, %v9035_v59  }
0x183d   : > { %6936 = vset.pattern.permute.xlu0 %v10804_v29 }
0x183e   : > { %3461 = vperm.xlu0 %6936, %v9057_v14  }
0x1840   : > { %6919 = vset.pattern.permute.xlu1 %v10798_v19 }
0x1841   : > { %3429 = vperm.xlu1 %6919, %v9037_v6  }
0x1842   : > { %6937 = vset.pattern.permute.xlu0 %v10801_v10 }
0x1843   : > { %3513 = vperm.xlu0 %6937, %v9049_v49  }
0x1845   : > { %6920 = vset.pattern.permute.xlu1 %v10802_v56 }
0x1846   : > { %3393 = vperm.xlu1 %6920, %v9049_v49  }
0x1847   : > { %6943 = vset.pattern.permute.xlu0 %v10800_v12 }
0x184a   : > { %6923 = vset.pattern.permute.xlu1 %v10804_v29 }
0x184b   : > { %3453 = vperm.xlu1 %6923, %v9037_v6  }
0x184f   : > { %3457 = vperm.xlu1 %6923, %v9035_v59  }
0x1853   : > { %6924 = vset.pattern.permute.xlu1 %v10798_v19 }
0x1854   : > { %3441 = vperm.xlu1 %6924, %v9049_v49  }
0x1858   : > { %6925 = vset.pattern.permute.xlu1 %v10803_v25 }
0x1859   : > { %3481 = vperm.xlu1 %6925, %v9035_v59  }
0x185d   : > { %6926 = vset.pattern.permute.xlu1 %v10801_v10 }
0x185e   : > { %3501 = vperm.xlu1 %6926, %v9037_v6  }
0x1862   : > { %6927 = vset.pattern.permute.xlu1 %v10804_v29  ;;  %v9183_v29 = vld [vmem:[%s10657_s3] sm:$0xff] }
0x1863   : > { %3465 = vperm.xlu1 %6927, %v9049_v49  }
0x1867   : > { %6930 = vset.pattern.permute.xlu1 %v10805_v22 }
0x1868   : > { %3525 = vperm.xlu1 %6930, %v9037_v6  }
0x186c   : > { %3529 = vperm.xlu1 %6930, %v9035_v59  }
0x1870   : > { %6931 = vset.pattern.permute.xlu1 %v10797_v13 }
0x1871   : > { %3235 = vperm.xlu1 %6931, %v9057_v14  }
0x1875   : > { %6932 = vset.pattern.permute.xlu1 %v10800_v12 }
0x1876   : > { %3365 = vperm.xlu1 %6932, %v9057_v14  }
0x187a   : > { %6934 = vset.pattern.permute.xlu1 %v10799_v20 }
0x187b   : > { %3413 = vperm.xlu1 %6934, %v9057_v14  }
0x187f   : > { %6935 = vset.pattern.permute.xlu1 %v10798_v19 }
0x1880   : > { %3437 = vperm.xlu1 %6935, %v9057_v14  }
0x1884   : > { %6938 = vset.pattern.permute.xlu1 %v10803_v25  ;;  %v3243_v25 = vmul.f32 %v9183_v29, %v3226_v23  ;;  %v9201_v23 = vld [vmem:[%s10657_s3 + $0x48] sm:$0xff] }
0x1885   : > { %3485 = vperm.xlu1 %6938, %v9057_v14  }
0x1889   : > { %6939 = vset.pattern.permute.xlu1 %v10801_v10 }
0x188a   : > { %v3254_v38 = vpop.permute.xlu1 %3253  ;;  %3509 = vperm.xlu1 %6939, %v9057_v14  }
0x188b   : > { %6664 = vmatprep.subr.msk.mxu0 %vm596_vm2, %v3254_v38 }
0x188c   : > { %6665 = vmatpush3.xpose.msk.msra.mxu0 %vm596_vm2, %v3254_v38 }
0x188e   : > { %6940 = vset.pattern.permute.xlu1 %v10805_v22  ;;  %v3252_v43 = vpop.permute.xlu1 %3251 }
0x188f   : > { %3533 = vperm.xlu1 %6940, %v9057_v14   ;;  %6666 = vmatprep.subr.msk.mxu0 %vm596_vm2, %v3252_v43 }
0x1890   : > { %6667 = vmatpush3.xpose.msk.msra.mxu0 %vm596_vm2, %v3252_v43 }
0x1891   : > { %6668 = vmatprep.subr.msk.mxu0 %vm596_vm2, %v3250_v7 }
0x1892   : > { %v3248_v28 = vpop.permute.xlu1 %3247 }
0x1893   : > { %3537 = vperm.xlu1 %6940, %v9049_v49   ;;  %v3241_v50 = vpop.permute.xlu0 %3240 }
0x1894   : > { %6669 = vmatpush3.xpose.msk.msra.mxu0 %vm596_vm2, %v3250_v7 }
0x1895   : > { %6670 = vmatprep.subr.msk.mxu0 %vm596_vm2, %v3248_v28 }
0x1897   : > { %6941 = vset.pattern.permute.xlu1 %v10797_v13 }
0x1898   : > { %6671 = vmatpush3.xpose.msk.msra.mxu0 %vm596_vm2, %v3248_v28  ;;  %v3434_v35 = vpop.permute.xlu0 %3433  ;;  %v9177_v28 = vld [vmem:[%s10657_s3 + $0x28] sm:$0xff] }
0x1899   : > { %v3373_v22 = vmul.f32 %v9177_v28, %v3362_v57  ;;  %v9195_v57 = vld [vmem:[%s10657_s3 + $0x20] sm:$0xff] }
0x189b   : > { %6673 = vmatmul.mubr.msk.f32.vlgmr.msra.gmra.mxu0 %vm596_vm2, %v9035_v59 }
0x189c   : > { %6675 = vmatprep.mubr.msk.f32.mxu0 %vm596_vm2, %v9057_v14 }
0x189d   : > { %v3406_v11 = vpop.permute.xlu0 %3405 }
0x189f   : > { %6676 = vmatmul.mubr.msk.f32.gmra.mxu0 %vm596_vm2, %v9049_v49  ;;  %v3231_v27 = vpop.permute.xlu1 %3230 }
0x18a0   : > { %v3244_v38 = vmul.f32 %v9169_v45, %v3231_v27  ;;  %v9189_v27 = vld [vmem:[%s10657_s3 + $0x18] sm:$0xff] }
0x18a1   : > { %v3418_v9 = vpop.permute.xlu0 %3417  ;;  %v3246_v12 = vmul.f32 %v9189_v27, %v3241_v50  ;;  %v9207_v50 = vld [vmem:[%s10657_s3 + $0x40] sm:$0xff] }
0x18a4   : > { %v3358_v33 = vpop.permute.xlu1 %3357 }
0x18a5   : > { %v3372_v19 = vmul.f32 %v9195_v57, %v3358_v33  ;;  %v9213_v33 = vld [vmem:[%s10657_s3 + $0x38] sm:$0xff] }
0x18a6   : > { %v9156_v51 = vpop.permute.xlu0 %3505 }
0x18a9   : > { %v3382_v36 = vpop.permute.xlu1 %3381 }
0x18aa   : > { %v3396_v52 = vmul.f32 %v9207_v50, %v3382_v36 }
0x18ab   : > { %v9160_v24 = vpop.permute.xlu0 %3477 }
0x18ad   : > { %v3386_v48 = vpop.permute.xlu1 %3385 }
0x18af   : > { %v9164_v62 = vpop.permute.xlu0 %3489 }
0x18b2   : > { %v3370_v1 = vpop.permute.xlu1 %3369 }
0x18b3   : > { %v3375_v30 = vmul.f32 %v9213_v33, %v3370_v1  ;;  %v9231_v1 = vld [vmem:[%s10657_s3 + $0x88] sm:$0xff] }
0x18b4   : > { %v3390_v56 = vpop.permute.xlu0 %3389  ;;  %v3445_v17 = vmul.f32 %v9231_v1, %v3434_v35 }
0x18b7   : > { %v3410_v44 = vpop.permute.xlu1 %3409 }
0x18bc   : > { %v9138_v2 = vpop.permute.xlu1 %3429 }
0x18c1   : > { %v3394_v18 = vpop.permute.xlu1 %3393 }
0x18c6   : > { %v9140_v54 = vpop.permute.xlu1 %3453 }
0x18ca   : > { %v9142_v46 = vpop.permute.xlu1 %3457 }
0x18cf   : > { %v9144_v61 = vpop.permute.xlu1 %3441 }
0x18d4   : > { %v9146_v53 = vpop.permute.xlu1 %3481 }
0x18d9   : > { %v9148_v39 = vpop.permute.xlu1 %3501 }
0x18de   : > { %v9150_v4 = vpop.permute.xlu1 %3465 }
0x18e3   : > { %v9152_v8 = vpop.permute.xlu1 %3525 }
0x18e7   : > { %v9154_v15 = vpop.permute.xlu1 %3529 }
0x18ec   : > { %v3236_v47 = vpop.permute.xlu1 %3235 }
0x18f1   : > { %v3366_v31 = vpop.permute.xlu1 %3365 }
0x18f6   : > { %v9158_v58 = vpop.permute.xlu1 %3413 }
0x18fb   : > { %v9162_v37 = vpop.permute.xlu1 %3437 }
0x1900   : > { %v9172_v43 = vpop.permute.xlu1 %3485 }
0x1905   : > { %v9252_v35 = vpop.permute.xlu1 %3509 }
0x195b   : > { %v6674_v7 = vpop.f32.mrf.mxu0 }
0x195c   : > { %v3343_v10 = vadd.f32 %v6674_v7, %v3244_v38  ;;  %v3397_v38 = vmul.f32 %v9201_v23, %v3386_v48  ;;  %v9219_v48 = vld [vmem:[%s10657_s3 + $0x68] sm:$0xff] }
0x195d   : > { %v3337_v20 = vpop.f32.mrf.mxu0 }
0x195e   : > { %v3377_v7 = vadd.f32 %v3373_v22, %v3343_v10  ;;  %v3338_v13 = vadd.f32 %v3337_v20, %v3243_v25  ;;  %v3421_v20 = vmul.f32 %v9219_v48, %v3410_v44  ;;  %v9225_v25 = vld [vmem:[%s10657_s3 + $0x10] sm:$0xff]  ;;  %v9237_v44 = vld [vmem:[%s10657_s3 + $0x60] sm:$0xff] }
0x195f   : > { %v6677_v10 = vpop.f32.mrf.mxu0  ;;  %v3245_v22 = vmul.f32 %v9225_v25, %v3236_v47  ;;  %v3420_v5 = vmul.f32 %v9237_v44, %v3406_v11  ;;  %v9243_v47 = vld [vmem:[%s10657_s3 + $0x58] sm:$0xff] }
0x1960   : > { %v3401_v36 = vadd.f32 %v3397_v38, %v3377_v7  ;;  %v3376_v26 = vadd.f32 %v3372_v19, %v3338_v13  ;;  %v3353_v34 = vadd.f32 %v6677_v10, %v3246_v12  ;;  %v3399_v13 = vmul.f32 %v9243_v47, %v3394_v18  ;;  %v9249_v19 = vld [vmem:[%s10657_s3 + $0x30] sm:$0xff]  ;;  %v3462_v7 = vpop.permute.xlu0 %3461 }
0x1961   : > { %v3374_v12 = vmul.f32 %v9249_v19, %v3366_v31  ;;  %v3347_v38 = vpop.f32.mrf.mxu0  ;;  %v3423_v18 = vmul.f32 %v9257_v41, %v3418_v9  ;;  %v3398_v31 = vmul.f32 %v9263_v32, %v3390_v56 }
0x1962   : > { %v3425_v10 = vadd.f32 %v3421_v20, %v3401_v36  ;;  %v3400_v11 = vadd.f32 %v3396_v52, %v3376_v26  ;;  %v3379_v63 = vadd.f32 %v3375_v30, %v3353_v34  ;;  %v3348_v0 = vadd.f32 %v3347_v38, %v3245_v22  ;;  %v9269_v52 = vld [vmem:[%s10657_s3 + $0x80] sm:$0xff]  ;;  %v9276_v26 = vld [vmem:[%s10657_s3 + $0xa8] sm:$0xff]  ;;  %v9290_v38 = vld [vmem:[%s10657_s3 + $0x98] sm:$0xff] }
0x1963   : > { %v3444_v30 = vmul.f32 %v9269_v52, %v9138_v2  ;;  %v3469_v34 = vmul.f32 %v9276_v26, %v9142_v46  ;;  %v9283_v36 = vld [vmem:[%s10657_s3 + $0xa0] sm:$0xff]  ;;  %v3447_v46 = vmul.f32 %v9290_v38, %v9144_v61 }
0x1964   : > { %v3449_v9 = vadd.f32 %v3445_v17, %v3425_v10  ;;  %v3424_v20 = vadd.f32 %v3420_v5, %v3400_v11  ;;  %v3403_v22 = vadd.f32 %v3399_v13, %v3379_v63  ;;  %v3378_v56 = vadd.f32 %v3374_v12, %v3348_v0  ;;  %v9297_v0 = vld [vmem:[%s10657_s3 + $0xc8] sm:$0xff]  ;;  %v9304_v5 = vld [vmem:[%s10657_s3 + $0x70] sm:$0xff]  ;;  %v9318_v11 = vld [vmem:[%s10657_s3 + $0xc0] sm:$0xff] }
0x1965   : > { %v3468_v2 = vmul.f32 %v9283_v36, %v9140_v54  ;;  %v3493_v63 = vmul.f32 %v9297_v0, %v9146_v53  ;;  %v3422_v17 = vmul.f32 %v9304_v5, %v9158_v58  ;;  %v9311_v10 = vld [vmem:[%s10657_s3 + $0xe8] sm:$0xff]  ;;  %v3492_v58 = vmul.f32 %v9318_v11, %v9160_v24 }
0x1966   : > { %v3473_v54 = vadd.f32 %v3469_v34, %v3449_v9  ;;  %v3448_v13 = vadd.f32 %v3444_v30, %v3424_v20  ;;  %v3427_v12 = vadd.f32 %v3423_v18, %v3403_v22  ;;  %v3402_v61 = vadd.f32 %v3398_v31, %v3378_v56  ;;  %v9325_v18 = vld [vmem:[%s10657_s3 + $0xb8] sm:$0xff]  ;;  %v3534_v34 = vpop.permute.xlu1 %3533  ;;  %v3514_v9 = vpop.permute.xlu0 %3513 }
0x1967   : > { %v3517_v53 = vmul.f32 %v9311_v10, %v9156_v51  ;;  %v3471_v31 = vmul.f32 %v9325_v18, %v9150_v4  ;;  %v9332_v51 = vld [vmem:[%s10657_s3 + $0x90] sm:$0xff]  ;;  %v3495_v4 = vmul.f32 %v9339_v16, %v9164_v62 }
0x1968   : > { %v3446_v30 = vmul.f32 %v9332_v51, %v9162_v37  ;;  %v3472_v20 = vadd.f32 %v3468_v2, %v3448_v13  ;;  %v3451_v24 = vadd.f32 %v3447_v46, %v3427_v12  ;;  %v3426_v22 = vadd.f32 %v3422_v17, %v3402_v61  ;;  %v9352_v2 = vld [vmem:[%s10657_s3 + $0xe0] sm:$0xff]  ;;  %v9366_v12 = vld [vmem:[%s10657_s3 + $0xf8] sm:$0xff] }
0x1969   : > { %v3497_v56 = vadd.f32 %v3493_v63, %v3473_v54  ;;  %v3470_v37 = vmul.f32 %v9346_v55, %v3462_v7  ;;  %v3516_v46 = vmul.f32 %v9352_v2, %v9148_v39  ;;  %v9359_v63 = vld [vmem:[%s10657_s3 + $0x108] sm:$0xff]  ;;  %v3519_v61 = vmul.f32 %v9366_v12, %v3514_v9  ;;  %v9372_v39 = vld [vmem:[%s10657_s3 + $0x100] sm:$0xff] }
0x196a   : > { %10806 = vst [vmem:[#allocation5_spill] sm:$0xff] %v9359_v63  ;;  %v3541_v62 = vmul.f32 %v9359_v63, %v9154_v15  ;;  %v3475_v17 = vadd.f32 %v3471_v31, %v3451_v24  ;;  %v3450_v54 = vadd.f32 %v3446_v30, %v3426_v22  ;;  %v3496_v7 = vadd.f32 %v3492_v58, %v3472_v20  ;;  %v9379_v15 = vld [vmem:[%s10657_s3 + $0xd0] sm:$0xff]  ;;  %v3538_v24 = vpop.permute.xlu1 %3537 }
0x196b   : > { %v3521_v13 = vadd.f32 %v3517_v53, %v3497_v56  ;;  %10807 = vst [vmem:[#allocation4_spill] sm:$0xff] %v9372_v39  ;;  %v3540_v21 = vmul.f32 %v9372_v39, %v9152_v8  ;;  %v3494_v53 = vmul.f32 %v9379_v15, %v9172_v43  ;;  %v9386_v20 = vld [vmem:[%s10657_s3 + $0xf0] sm:$0xff] }
0x196c   : > { %v3474_v58 = vadd.f32 %v3470_v37, %v3450_v54  ;;  %v3520_v30 = vadd.f32 %v3516_v46, %v3496_v7  ;;  %v3499_v9 = vadd.f32 %v3495_v4, %v3475_v17  ;;  %v3518_v8 = vmul.f32 %v9386_v20, %v9252_v35  ;;  %v9396_v4 = vld [vmem:[%s10657_s3 + $0x110] sm:$0xff]  ;;  %v9402_v35 = vld [vmem:[%s10657_s3 + $0x118] sm:$0xff] }
0x196d   : > { %v3545_v31 = vadd.f32 %v3541_v62, %v3521_v13  ;;  %v3542_v37 = vmul.f32 %v9396_v4, %v3534_v34  ;;  %v3543_v46 = vmul.f32 %v9402_v35, %v3538_v24 }
0x196e   : > { %v3544_v56 = vadd.f32 %v3540_v21, %v3520_v30  ;;  %v3498_v39 = vadd.f32 %v3494_v53, %v3474_v58  ;;  %v3523_v63 = vadd.f32 %v3519_v61, %v3499_v9 }
0x196f   : > { %v3549_v22 = vsel %vm326_vm3, %v3545_v31, -10000.0 }
0x1970   : > { %v3555_v43 = vsel %vm340_vm0, %v3549_v22, -inf  ;;  %v3548_v21 = vsel %vm325_vm4, %v3544_v56, -10000.0  ;;  %v3522_v62 = vadd.f32 %v3518_v8, %v3498_v39  ;;  %v3547_v13 = vadd.f32 %v3543_v46, %v3523_v63 }
0x1971   : > { %3556 = vmax.xlane.f32.xlu1 %v3555_v43  ;;  %v3552_v17 = vsel %vm340_vm0, %v3548_v21, -inf }
0x1972   : > { %3553 = vmax.xlane.f32.xlu0 %v3552_v17  ;;  %v3546_v54 = vadd.f32 %v3542_v37, %v3522_v62  ;;  %v3551_v61 = vsel %vm328_vm6, %v3547_v13, -10000.0 }
0x1973   : > { %v3561_v53 = vsel %vm340_vm0, %v3551_v61, -inf }
0x1974   : > { %v3550_v34 = vsel %vm327_vm5, %v3546_v54, -10000.0 }
0x1975   : > { %v3558_v7 = vsel %vm340_vm0, %v3550_v34, -inf }
0x1976   : > { %3559 = vmax.xlane.f32.xlu0 %v3558_v7 }
0x197a   : > { %3562 = vmax.xlane.f32.xlu0 %v3561_v53 }
0x1982   : > { %3628 = vrot.lane.b32.xlu1 %v9049_v49, %s7195_s28 }
0x19fa   : > { %v3557_v39 = vpop.xlane.xlu1 %3556 }
0x19fb   : > { %v3565_v58 = vsub.f32 %v3549_v22, %v3557_v39  ;;  %v3554_v31 = vpop.xlane.xlu0 %3553 }
0x19fc   : > { %v3564_v63 = vsub.f32 %v3548_v21, %v3554_v31 }
0x19fd   : > { %v3570_v30 = vmul.f32 1.442695, %v3565_v58 }
0x19fe   : > { %v3629_v9 = vpop.permute.xlu1 %3628  ;;  %v3568_v8 = vmul.f32 1.442695, %v3564_v63 }
0x19ff   : > { %7019 = vpow2.f32 %v3570_v30  ;;  %6678 = vmatprep.subr.mxu1 %v3629_v9  ;;  %v3560_v24 = vpop.xlane.xlu0 %3559 }
0x1a00   : > { %6679 = vmatpush3.msra.mxu1 %v3629_v9  ;;  %7021 = vpow2.f32 %v3568_v8  ;;  %v3566_v54 = vsub.f32 %v3550_v34, %v3560_v24 }
0x1a02   : > { %v3572_v13 = vmul.f32 1.442695, %v3566_v54 }
0x1a03   : > { %v3563_v56 = vpop.xlane.xlu0 %3562 }
0x1a04   : > { %v3567_v43 = vsub.f32 %v3551_v61, %v3563_v56 }
0x1a06   : > { %v3574_v37 = vmul.f32 1.442695, %v3567_v43 }
0x1a08   : > { %7023 = vpow2.f32 %v3574_v37 }
0x1a09   : > { %7025 = vpow2.f32 %v3572_v13 }
0x1a0c   : > { %v7020_v46 = vpop.eup %7019 }
0x1a0d   : > { %v3579_v62 = vsel %vm340_vm0, %v7020_v46, 0.0  ;;  %v7022_v49 = vpop.eup %7021 }
0x1a0e   : > { %3580 = vadd.xlane.f32.xlu0 %v3579_v62  ;;  %v3576_v22 = vsel %vm340_vm0, %v7022_v49, 0.0 }
0x1a0f   : > { %3577 = vadd.xlane.f32.xlu1 %v3576_v22 }
0x1a15   : > { %v7024_v21 = vpop.eup %7023 }
0x1a16   : > { %v3585_v17 = vsel %vm340_vm0, %v7024_v21, 0.0  ;;  %v7026_v7 = vpop.eup %7025 }
0x1a17   : > { %3586 = vadd.xlane.f32.xlu0 %v3585_v17  ;;  %v3582_v61 = vsel %vm340_vm0, %v7026_v7, 0.0 }
0x1a20   : > { %3624 = vrot.lane.b32.xlu1 %v9035_v59, %s7195_s28 }
0x1a2d   : > { %3626 = vrot.lane.b32.xlu0 %v9057_v14, %s7195_s28 }
0x1a44   : > { %3583 = vadd.xlane.f32.xlu1 %v3582_v61 }
0x1a55   : > { %3622 = vrot.lane.b32.xlu1 %v9037_v6, %s7195_s28 }
0x1a97   : > { %v3581_v39 = vpop.xlane.xlu0 %3580 }
0x1a98   : > { %v3578_v53 = vpop.xlane.xlu1 %3577 }
0x1a99   : > { %7027 = vrcp.f32 %v3578_v53 }
0x1a9c   : > { %v3625_v34 = vpop.permute.xlu1 %3624 }
0x1aa0   : > { %v3587_v58 = vpop.xlane.xlu0 %3586 }
0x1aa1   : > { %7029 = vrcp.f32 %v3587_v58 }
0x1aa2   : > { %7031 = vrcp.f32 %v3581_v39 }
0x1aa4   : > { %v3627_v31 = vpop.permute.xlu0 %3626 }
0x1aa5   : > { %6680 = vmatprep.subr.mxu1 %v3627_v31 }
0x1aa6   : > { %v7028_v59 = vpop.eup %7027  ;;  %6681 = vmatpush3.msra.mxu1 %v3627_v31 }
0x1aa7   : > { %v9426_v14 = vmul.f32 %v7028_v59, %v7022_v49  ;;  %6682 = vmatprep.subr.mxu1 %v3625_v34 }
0x1aa8   : > { %6683 = vmatpush3.msra.mxu1 %v3625_v34 }
0x1aa9   : > { %6686 = vmatprep.mubr.msk.f32.mxu1 %vm340_vm0, %v9426_v14 }
0x1aae   : > { %v7030_v30 = vpop.eup %7029 }
0x1aaf   : > { %v3595_v63 = vmul.f32 %v7030_v30, %v7024_v21  ;;  %v7032_v22 = vpop.eup %7031 }
0x1ab0   : > { %v9440_v21 = vmul.f32 %v7032_v22, %v7020_v46 }
0x1ab1   : > { %v3734_v6 = vmul.f32 %v9213_v33, %v3595_v63  ;;  %v3601_v9 = vmul.f32 %v9189_v27, %v3595_v63  ;;  %v3762_v56 = vmul.f32 %v9243_v47, %v3595_v63  ;;  %v3790_v37 = vmul.f32 %v9257_v41, %v3595_v63 }
0x1ab2   : > { %v3818_v49 = vmul.f32 %v9290_v38, %v3595_v63  ;;  %v3844_v22 = vmul.f32 %v9276_v26, %v9440_v21  ;;  %v3871_v26 = vmul.f32 %v9318_v11, %v9426_v14 }
0x1ab3   : > { %v3744_v8 = vsel %vm340_vm0, %v3734_v6, 0.0  ;;  %v3611_v24 = vsel %vm340_vm0, %v3601_v9, 0.0  ;;  %v3772_v43 = vsel %vm340_vm0, %v3762_v56, 0.0  ;;  %v3800_v62 = vsel %vm340_vm0, %v3790_v37, 0.0 }
0x1ab4   : > { %3745 = vadd.xlane.f32.xlu0 %v3744_v8  ;;  %3612 = vadd.xlane.f32.xlu1 %v3611_v24  ;;  %v3828_v27 = vsel %vm340_vm0, %v3818_v49, 0.0 }
0x1ab8   : > { %3773 = vadd.xlane.f32.xlu0 %v3772_v43  ;;  %v3760_v43 = vmul.f32 %v9201_v23, %v9440_v21  ;;  %v3787_v23 = vmul.f32 %v9237_v44, %v9426_v14  ;;  %v3850_v44 = vsel %vm340_vm0, %v3844_v22, 0.0 }
0x1abc   : > { %3801 = vadd.xlane.f32.xlu0 %v3800_v62  ;;  %v3788_v62 = vmul.f32 %v9219_v48, %v9440_v21  ;;  %v3815_v48 = vmul.f32 %v9269_v52, %v9426_v14 }
0x1ac0   : > { %3829 = vadd.xlane.f32.xlu0 %v3828_v27  ;;  %v3816_v27 = vmul.f32 %v9231_v1, %v9440_v21  ;;  %v3843_v1 = vmul.f32 %v9283_v36, %v9426_v14 }
0x1acd   : > { %v3584_v33 = vpop.xlane.xlu1 %3583 }
0x1ace   : > { %7033 = vrcp.f32 %v3584_v33  ;;  %v3791_v33 = vsel %vm340_vm0, %v3787_v23, 0.0 }
0x1ad1   : > { %v3623_v47 = vpop.permute.xlu1 %3622 }
0x1ad2   : > { %6684 = vmatprep.subr.mxu1 %v3623_v47 }
0x1ad3   : > { %6685 = vmatpush3.msra.mxu1 %v3623_v47  ;;  %v3819_v47 = vsel %vm340_vm0, %v3815_v48, 0.0 }
0x1ad4   : > { %6687 = vmatmul.mubr.msk.f32.vlgmr.msra.gmra.mxu1 %vm340_vm0, %v9440_v21 }
0x1adb   : > { %v7034_v41 = vpop.eup %7033 }
0x1adc   : > { %v3594_v17 = vmul.f32 %v7034_v41, %v7026_v7  ;;  %v3872_v41 = vmul.f32 %v9297_v0, %v9440_v21  ;;  %v3899_v0 = vmul.f32 %v9352_v2, %v9426_v14  ;;  %v6089_v2 = vld [vmem:[%s10659_s5 + $0x3c8] sm:$0xff] }
0x1add   : > { %6692 = vmatprep.subr.mxu0 %v6089_v2 }
0x1ade   : > { %6689 = vmatprep.mubr.msk.f32.mxu1 %vm340_vm0, %v3594_v17  ;;  %v3761_v38 = vmul.f32 %v9263_v32, %v3594_v17  ;;  %v3600_v54 = vmul.f32 %v9225_v25, %v3594_v17  ;;  %v3789_v61 = vmul.f32 %v9304_v5, %v3594_v17  ;;  %v3733_v53 = vmul.f32 %v9249_v19, %v3594_v17 }
0x1adf   : > { %6690 = vmatmul.mubr.msk.f32.gmra.mxu1 %vm340_vm0, %v3595_v63  ;;  %v3817_v32 = vmul.f32 %v9332_v51, %v3594_v17  ;;  %v3846_v25 = vmul.f32 %v9325_v18, %v3595_v63  ;;  %v3845_v5 = vmul.f32 %v9346_v55, %v3594_v17  ;;  %v3874_v19 = vmul.f32 %v9339_v16, %v3595_v63 }
0x1ae0   : > { %v3769_v13 = vsel %vm340_vm0, %v3761_v38, 0.0  ;;  %v3608_v46 = vsel %vm340_vm0, %v3600_v54, 0.0  ;;  %v3797_v7 = vsel %vm340_vm0, %v3789_v61, 0.0  ;;  %v3741_v39 = vsel %vm340_vm0, %v3733_v53, 0.0  ;;  %6693 = vmatpush3.msra.mxu0 %v6089_v2 }
0x1ae1   : > { %3770 = vadd.xlane.f32.xlu1 %v3769_v13  ;;  %3609 = vadd.xlane.f32.xlu0 %v3608_v46  ;;  %v3825_v58 = vsel %vm340_vm0, %v3817_v32, 0.0  ;;  %v3856_v31 = vsel %vm340_vm0, %v3846_v25, 0.0  ;;  %v3853_v59 = vsel %vm340_vm0, %v3845_v5, 0.0  ;;  %v3884_v34 = vsel %vm340_vm0, %v3874_v19, 0.0  ;;  %v10808_v13 = vld [vmem:[#allocation5_spill] sm:$0xff] }
0x1ae2   : > { %v3873_v51 = vmul.f32 %v9379_v15, %v3594_v17  ;;  %v3902_v18 = vmul.f32 %v9366_v12, %v3595_v63  ;;  %v3901_v55 = vmul.f32 %v9386_v20, %v3594_v17  ;;  %v3930_v16 = vmul.f32 %v9402_v35, %v3595_v63 }
0x1ae3   : > { %v3929_v15 = vmul.f32 %v9396_v4, %v3594_v17  ;;  %v3599_v12 = vmul.f32 %v9169_v45, %v9440_v21  ;;  %v3598_v20 = vmul.f32 %v9183_v29, %v9426_v14  ;;  %v3732_v35 = vmul.f32 %v9177_v28, %v9440_v21 }
0x1ae4   : > { %v3881_v30 = vsel %vm340_vm0, %v3873_v51, 0.0  ;;  %v3912_v6 = vsel %vm340_vm0, %v3902_v18, 0.0  ;;  %v3909_v9 = vsel %vm340_vm0, %v3901_v55, 0.0  ;;  %v3940_v8 = vsel %vm340_vm0, %v3930_v16, 0.0 }
0x1ae5   : > { %3798 = vadd.xlane.f32.xlu1 %v3797_v7  ;;  %3742 = vadd.xlane.f32.xlu0 %v3741_v39  ;;  %v3937_v24 = vsel %vm340_vm0, %v3929_v15, 0.0  ;;  %v3605_v56 = vsel %vm340_vm0, %v3599_v12, 0.0  ;;  %v3602_v63 = vsel %vm340_vm0, %v3598_v20, 0.0  ;;  %v3738_v4 = vsel %vm340_vm0, %v3732_v35, 0.0  ;;  %v6087_v39 = vld [vmem:[%s10659_s5 + $0x3b8] sm:$0xff] }
0x1ae6   : > { %v3731_v45 = vmul.f32 %v9195_v57, %v9426_v14  ;;  %v3766_v29 = vsel %vm340_vm0, %v3760_v43, 0.0  ;;  %v3759_v28 = vmul.f32 %v9207_v50, %v9426_v14  ;;  %v3794_v57 = vsel %vm340_vm0, %v3788_v62, 0.0  ;;  %v10810_v43 = vld [vmem:[#allocation6_spill] sm:$0xff]  ;;  %v10811_v62 = vld [vmem:[#allocation7_spill] sm:$0xff] }
0x1ae7   : > { %v3822_v50 = vsel %vm340_vm0, %v3816_v27, 0.0  ;;  %v3847_v17 = vsel %vm340_vm0, %v3843_v1, 0.0  ;;  %v3878_v52 = vsel %vm340_vm0, %v3872_v41, 0.0  ;;  %v3900_v38 = vmul.f32 %v9311_v10, %v9440_v21  ;;  %v10809_v10 = vld [vmem:[#allocation4_spill] sm:$0xff] }
0x1ae8   : > { %v3735_v37 = vsel %vm340_vm0, %v3731_v45, 0.0  ;;  %v3763_v49 = vsel %vm340_vm0, %v3759_v28, 0.0  ;;  %v3875_v54 = vsel %vm340_vm0, %v3871_v26, 0.0  ;;  %v3928_v46 = vmul.f32 %v10808_v13, %v9440_v21  ;;  %v6088_v21 = vld [vmem:[%s10659_s5 + $0x3c0] sm:$0xff]  ;;  %v10812_v27 = vld [vmem:[#allocation8_spill] sm:$0xff] }
0x1ae9   : > { %3826 = vadd.xlane.f32.xlu1 %v3825_v58  ;;  %3857 = vadd.xlane.f32.xlu0 %v3856_v31  ;;  %v3906_v36 = vsel %vm340_vm0, %v3900_v38, 0.0  ;;  %v3903_v61 = vsel %vm340_vm0, %v3899_v0, 0.0  ;;  %v3927_v53 = vmul.f32 %v10809_v10, %v9426_v14  ;;  %v10815_v10 = vld [vmem:[#allocation11_spill] sm:$0xff] }
0x1aea   : > { %v3934_v11 = vsel %vm340_vm0, %v3928_v46, 0.0  ;;  %6694 = vmatprep.subr.mxu0 %v6088_v21 }
0x1aeb   : > { %v3931_v7 = vsel %vm340_vm0, %v3927_v53, 0.0  ;;  %6695 = vmatpush3.msra.mxu0 %v6088_v21 }
0x1aec   : > { %6696 = vmatprep.subr.mxu0 %v6087_v39 }
0x1aed   : > { %3854 = vadd.xlane.f32.xlu1 %v3853_v59  ;;  %3885 = vadd.xlane.f32.xlu0 %v3884_v34 }
0x1aee   : > { %6697 = vmatpush3.msra.mxu0 %v6087_v39 }
0x1af1   : > { %3882 = vadd.xlane.f32.xlu1 %v3881_v30  ;;  %3913 = vadd.xlane.f32.xlu0 %v3912_v6 }
0x1af5   : > { %3910 = vadd.xlane.f32.xlu1 %v3909_v9  ;;  %3941 = vadd.xlane.f32.xlu0 %v3940_v8 }
0x1af9   : > { %3938 = vadd.xlane.f32.xlu1 %v3937_v24  ;;  %3606 = vadd.xlane.f32.xlu0 %v3605_v56 }
0x1afd   : > { %3603 = vadd.xlane.f32.xlu1 %v3602_v63  ;;  %3739 = vadd.xlane.f32.xlu0 %v3738_v4  ;;  %v6079_v63 = vld [vmem:[%s10659_s5 + $0x4f0] sm:$0xff] }
0x1afe   : > { %v3862_v53 = vrot.slane %v6079_v63, %v10815_v10 }
0x1b01   : > { %3736 = vadd.xlane.f32.xlu1 %v3735_v37  ;;  %3767 = vadd.xlane.f32.xlu0 %v3766_v29  ;;  %v3617_v37 = vrot.slane %v6079_v63, %v10810_v43 }
0x1b05   : > { %3764 = vadd.xlane.f32.xlu1 %v3763_v49  ;;  %3795 = vadd.xlane.f32.xlu0 %v3794_v57  ;;  %v3750_v49 = vrot.slane %v6079_v63, %v10811_v62  ;;  %v10170_v62 = vld [vmem:[%s10657_s3 + $0xb0] sm:$0xff] }
0x1b09   : > { %3792 = vadd.xlane.f32.xlu1 %v3791_v33  ;;  %3823 = vadd.xlane.f32.xlu0 %v3822_v50  ;;  %v3778_v33 = vrot.slane %v6079_v63, %v10812_v27  ;;  %v10163_v27 = vld [vmem:[%s10657_s3 + $0xd8] sm:$0xff] }
0x1b0d   : > { %3820 = vadd.xlane.f32.xlu1 %v3819_v47  ;;  %3851 = vadd.xlane.f32.xlu0 %v3850_v44  ;;  %v10813_v47 = vld [vmem:[#allocation9_spill] sm:$0xff] }
0x1b0e   : > { %v3806_v44 = vrot.slane %v6079_v63, %v10813_v47  ;;  %v10087_v47 = vld [vmem:[%s10657_s3 + $0x50] sm:$0xff] }
0x1b11   : > { %3848 = vadd.xlane.f32.xlu1 %v3847_v17  ;;  %3879 = vadd.xlane.f32.xlu0 %v3878_v52 }
0x1b15   : > { %3876 = vadd.xlane.f32.xlu1 %v3875_v54  ;;  %3907 = vadd.xlane.f32.xlu0 %v3906_v36  ;;  %v10814_v36 = vld [vmem:[#allocation10_spill] sm:$0xff] }
0x1b16   : > { %v3834_v0 = vrot.slane %v6079_v63, %v10814_v36  ;;  %v10081_v36 = vld [vmem:[%s10657_s3 + $0x78] sm:$0xff] }
0x1b19   : > { %3904 = vadd.xlane.f32.xlu1 %v3903_v61  ;;  %3935 = vadd.xlane.f32.xlu0 %v3934_v11 }
0x1b1d   : > { %3932 = vadd.xlane.f32.xlu1 %v3931_v7 }
0x1b3d   : > { %v9535_v14 = vpop.xlane.xlu0 %3745  ;;  %v3613_v58 = vpop.xlane.xlu1 %3612 }
0x1b41   : > { %v9537_v32 = vpop.xlane.xlu0 %3773 }
0x1b45   : > { %v9539_v25 = vpop.xlane.xlu0 %3801 }
0x1b49   : > { %v9541_v31 = vpop.xlane.xlu0 %3829 }
0x1b6a   : > { %v9543_v5 = vpop.xlane.xlu0 %3609  ;;  %v9545_v19 = vpop.xlane.xlu1 %3770 }
0x1b6e   : > { %v9547_v59 = vpop.xlane.xlu0 %3742  ;;  %v9549_v34 = vpop.xlane.xlu1 %3798 }
0x1b72   : > { %v9551_v51 = vpop.xlane.xlu0 %3857  ;;  %v9553_v18 = vpop.xlane.xlu1 %3826 }
0x1b76   : > { %v9555_v30 = vpop.xlane.xlu0 %3885  ;;  %v9557_v6 = vpop.xlane.xlu1 %3854 }
0x1b7a   : > { %v9559_v55 = vpop.xlane.xlu0 %3913  ;;  %v9561_v16 = vpop.xlane.xlu1 %3882 }
0x1b7e   : > { %v9563_v9 = vpop.xlane.xlu0 %3941  ;;  %v9565_v8 = vpop.xlane.xlu1 %3910 }
0x1b82   : > { %v3607_v15 = vpop.xlane.xlu0 %3606  ;;  %v9567_v12 = vpop.xlane.xlu1 %3938 }
0x1b83   : > { %v3619_v57 = vmul.f32 %v3617_v37, %v3607_v15 }
0x1b86   : > { %v3740_v24 = vpop.xlane.xlu0 %3739  ;;  %v3604_v56 = vpop.xlane.xlu1 %3603 }
0x1b87   : > { %v3752_v50 = vmul.f32 %v3750_v49, %v3740_v24  ;;  %v3618_v48 = vmul.f32 %v3617_v37, %v3604_v56  ;;  %v10816_v56 = vld [vmem:[#allocation12_spill] sm:$0xff] }
0x1b8a   : > { %v3768_v20 = vpop.xlane.xlu0 %3767  ;;  %v3737_v35 = vpop.xlane.xlu1 %3736 }
0x1b8b   : > { %v3780_v17 = vmul.f32 %v3778_v33, %v3768_v20  ;;  %v3751_v52 = vmul.f32 %v3750_v49, %v3737_v35  ;;  %v3890_v20 = vrot.slane %v6079_v63, %v10816_v56 }
0x1b8e   : > { %v3796_v4 = vpop.xlane.xlu0 %3795  ;;  %v3765_v45 = vpop.xlane.xlu1 %3764 }
0x1b8f   : > { %v3808_v13 = vmul.f32 %v3806_v44, %v3796_v4  ;;  %v3779_v46 = vmul.f32 %v3778_v33, %v3765_v45 }
0x1b92   : > { %v3824_v29 = vpop.xlane.xlu0 %3823  ;;  %v3793_v28 = vpop.xlane.xlu1 %3792 }
0x1b93   : > { %v3836_v2 = vmul.f32 %v3834_v0, %v3824_v29  ;;  %v3807_v21 = vmul.f32 %v3806_v44, %v3793_v28  ;;  %v3754_v28 = vmul.f32 %v3750_v49, %v9535_v14  ;;  %v3810_v14 = vmul.f32 %v3806_v44, %v9539_v25 }
0x1b94   : > { %v6688_v23 = vpop.f32.mrf.mxu1 }
0x1b95   : > { %v3718_v22 = vadd.f32 %v6688_v23, %v3619_v57 }
0x1b96   : > { %v3852_v1 = vpop.xlane.xlu0 %3851  ;;  %v3712_v41 = vpop.f32.mrf.mxu1 }
0x1b97   : > { %v3756_v26 = vadd.f32 %v3752_v50, %v3718_v22  ;;  %v3713_v38 = vadd.f32 %v3712_v41, %v3618_v48  ;;  %v3821_v54 = vpop.xlane.xlu1 %3820  ;;  %v3864_v57 = vmul.f32 %v3862_v53, %v3852_v1  ;;  %v3621_v48 = vmul.f32 %v3617_v37, %v3613_v58  ;;  %v10817_v22 = vld [vmem:[#allocation13_spill] sm:$0xff] }
0x1b98   : > { %v3835_v50 = vmul.f32 %v3834_v0, %v3821_v54  ;;  %v3918_v4 = vrot.slane %v6079_v63, %v10817_v22  ;;  %v3782_v58 = vmul.f32 %v3778_v33, %v9537_v32  ;;  %v3753_v63 = vmul.f32 %v3750_v49, %v9547_v59 }
0x1b99   : > { %v3784_v61 = vadd.f32 %v3780_v17, %v3756_v26  ;;  %v3755_v11 = vadd.f32 %v3751_v52, %v3713_v38  ;;  %v3838_v59 = vmul.f32 %v3834_v0, %v9541_v31 }
0x1b9a   : > { %v3880_v7 = vpop.xlane.xlu0 %3879 }
0x1b9b   : > { %v3812_v39 = vadd.f32 %v3808_v13, %v3784_v61  ;;  %v3783_v15 = vadd.f32 %v3779_v46, %v3755_v11  ;;  %v3849_v24 = vpop.xlane.xlu1 %3848  ;;  %v3892_v52 = vmul.f32 %v3890_v20, %v3880_v7  ;;  %v3620_v13 = vmul.f32 %v3617_v37, %v9543_v5  ;;  %v6085_v7 = vld [vmem:[%s10659_s5 + $0x4f8] ss:$0 sm:$0xff] }
0x1b9c   : > { %v3863_v26 = vmul.f32 %v3862_v53, %v3849_v24 }
0x1b9d   : > { %v3840_v35 = vadd.f32 %v3836_v2, %v3812_v39  ;;  %v3811_v23 = vadd.f32 %v3807_v21, %v3783_v15 }
0x1b9e   : > { %v3908_v45 = vpop.xlane.xlu0 %3907 }
0x1b9f   : > { %v3868_v41 = vadd.f32 %v3864_v57, %v3840_v35  ;;  %v3839_v17 = vadd.f32 %v3835_v50, %v3811_v23  ;;  %v3877_v38 = vpop.xlane.xlu1 %3876  ;;  %v6691_v29 = vpop.f32.mrf.mxu1  ;;  %v3920_v1 = vmul.f32 %v3918_v4, %v3908_v45  ;;  %v3781_v57 = vmul.f32 %v3778_v33, %v9545_v19 }
0x1ba0   : > { %v3728_v46 = vadd.f32 %v6691_v29, %v3621_v48  ;;  %v3891_v2 = vmul.f32 %v3890_v20, %v3877_v38  ;;  %v6086_v48 = vld [vmem:[%s10659_s5 + $0x3b0] sm:$0xff]  ;;  %v3809_v45 = vmul.f32 %v3806_v44, %v9549_v34  ;;  %v3837_v19 = vmul.f32 %v3834_v0, %v9553_v18 }
0x1ba1   : > { %v3896_v61 = vadd.f32 %v3892_v52, %v3868_v41  ;;  %v3867_v11 = vadd.f32 %v3863_v26, %v3839_v17  ;;  %v3722_v54 = vpop.f32.mrf.mxu1  ;;  %6698 = vmatprep.subr.mxu0 %v6086_v48  ;;  %v3866_v52 = vmul.f32 %v3862_v53, %v9551_v51  ;;  %v10818_v29 = vmov 0.0  }
0x1ba2   : > { %v3758_v21 = vadd.f32 %v3754_v28, %v3728_v46  ;;  %v3723_v39 = vadd.f32 %v3722_v54, %v3620_v13  ;;  %v3936_v15 = vpop.xlane.xlu0 %3935  ;;  %6699 = vmatpush3.msra.mxu0 %v6086_v48  ;;  %v3894_v28 = vmul.f32 %v3890_v20, %v9555_v30  ;;  %v3865_v13 = vmul.f32 %v3862_v53, %v9557_v6 }
0x1ba3   : > { %v3924_v5 = vadd.f32 %v3920_v1, %v3896_v61  ;;  %v3895_v37 = vadd.f32 %v3891_v2, %v3867_v11  ;;  %v3948_v24 = vmul.f32 %v6085_v7, %v3936_v15  ;;  %v3905_v35 = vpop.xlane.xlu1 %3904  ;;  %4286 = vmatprep.subr.mxu0 %v10818_v29  ;;  %v3922_v61 = vmul.f32 %v3918_v4, %v9559_v55  ;;  %v10820_v15 = vld [vmem:[#allocation14_spill] sm:$0xff] }
0x1ba4   : > { %v3786_v23 = vadd.f32 %v3782_v58, %v3758_v21  ;;  %v3757_v50 = vadd.f32 %v3753_v63, %v3723_v39  ;;  %v3919_v32 = vmul.f32 %v3918_v4, %v3905_v35  ;;  %v3893_v51 = vmul.f32 %v3890_v20, %v9561_v16 }
0x1ba5   : > { %v3952_v49 = vadd.f32 %v3948_v24, %v3924_v5  ;;  %v3950_v18 = vmul.f32 %v6085_v7, %v9563_v9  ;;  %v3921_v0 = vmul.f32 %v3918_v4, %v9565_v8  ;;  %v3949_v58 = vmul.f32 %v6085_v7, %v9567_v12  ;;  %v6091_v9 = vld [vmem:[%s10660_s6 + $0x70] ss:$0 sm:$0xff] }
0x1ba6   : > { %v3814_v41 = vadd.f32 %v3810_v14, %v3786_v23  ;;  %v3785_v25 = vadd.f32 %v3781_v57, %v3757_v50  ;;  %v3923_v17 = vadd.f32 %v3919_v32, %v3895_v37 }
0x1ba7   : > { %v3933_v26 = vpop.xlane.xlu1 %3932 }
0x1ba8   : > { %v3842_v33 = vadd.f32 %v3838_v59, %v3814_v41  ;;  %v3813_v38 = vadd.f32 %v3809_v45, %v3785_v25  ;;  %v3947_v31 = vmul.f32 %v6085_v7, %v3933_v26  ;;  %v10819_v7 = vld [vmem:[#allocation15_spill] sm:$0xff]  ;;  %v6108_v25 = vld [vmem:[%s10659_s5 + $0x420] sm:$0xff] }
0x1ba9   : > { %v6109_v41 = vld [vmem:[%s10659_s5 + $0x428] sm:$0xff] }
0x1baa   : > { %v3870_v34 = vadd.f32 %v3866_v52, %v3842_v33  ;;  %v3841_v44 = vadd.f32 %v3837_v19, %v3813_v38  ;;  %v3951_v46 = vadd.f32 %v3947_v31, %v3923_v17  ;;  %6703 = vmatprep.subr.mxu1 %v6109_v41  ;;  %v6107_v17 = vld [vmem:[%s10659_s5 + $0x418] sm:$0xff]  ;;  %v6106_v52 = vld [vmem:[%s10659_s5 + $0x410] sm:$0xff]  ;;  %v6105_v26 = vld [vmem:[%s10659_s5 + $0x408] sm:$0xff] }
0x1bab   : > { %6704 = vmatpush3.msra.mxu1 %v6109_v41  ;;  %v6104_v19 = vld [vmem:[%s10659_s5 + $0x400] sm:$0xff]  ;;  %v6103_v33 = vld [vmem:[%s10659_s5 + $0x3f8] sm:$0xff]  ;;  %v6126_v41 = vld [vmem:[%s10659_s5 + $0x490] sm:$0xff] }
0x1bac   : > { %v3869_v11 = vadd.f32 %v3865_v13, %v3841_v44  ;;  %v3898_v1 = vadd.f32 %v3894_v28, %v3870_v34  ;;  %6705 = vmatprep.subr.mxu1 %v6108_v25 }
0x1bad   : > { %6706 = vmatpush3.msra.mxu1 %v6108_v25  ;;  %v6125_v25 = vld [vmem:[%s10659_s5 + $0x488] sm:$0xff] }
0x1bae   : > { %v3926_v2 = vadd.f32 %v3922_v61, %v3898_v1  ;;  %v3897_v54 = vadd.f32 %v3893_v51, %v3869_v11  ;;  %6707 = vmatprep.subr.mxu1 %v6107_v17  ;;  %v6101_v61 = vld [vmem:[%s10659_s5 + $0x3e8] sm:$0xff]  ;;  %v6100_v51 = vld [vmem:[%s10659_s5 + $0x3e0] sm:$0xff]  ;;  %v6096_v1 = vld [vmem:[%s10660_s6 + $0x73] ss:$0 sm:$0xff] }
0x1baf   : > { %6708 = vmatpush3.msra.mxu1 %v6107_v17  ;;  %v6124_v17 = vld [vmem:[%s10659_s5 + $0x480] sm:$0xff] }
0x1bb0   : > { %v3954_v30 = vadd.f32 %v3950_v18, %v3926_v2  ;;  %v3925_v63 = vadd.f32 %v3921_v0, %v3897_v54  ;;  %6709 = vmatprep.subr.mxu1 %v6106_v52  ;;  %v6097_v2 = vld [vmem:[%s10660_s6 + $0x74] ss:$0 sm:$0xff]  ;;  %v6099_v54 = vld [vmem:[%s10659_s5 + $0x3d8] sm:$0xff] }
0x1bb1   : > { %6710 = vmatpush3.msra.mxu1 %v6106_v52  ;;  %v6123_v52 = vld [vmem:[%s10659_s5 + $0x478] sm:$0xff] }
0x1bb2   : > { %3959 = vrot.lane.b32.xlu0 %v3954_v30, %s7196_s21  ;;  %v3953_v6 = vadd.f32 %v3949_v58, %v3925_v63  ;;  %6711 = vmatprep.subr.mxu1 %v6105_v26  ;;  %v6098_v63 = vld [vmem:[%s10659_s5 + $0x3d0] sm:$0xff] }
0x1bb3   : > { %6712 = vmatpush3.msra.mxu1 %v6105_v26  ;;  %v6122_v26 = vld [vmem:[%s10659_s5 + $0x470] sm:$0xff] }
0x1bb4   : > { %3957 = vrot.lane.b32.xlu1 %v3953_v6, %s7196_s21  ;;  %6713 = vmatprep.subr.mxu1 %v6104_v19 }
0x1bb5   : > { %6714 = vmatpush3.msra.mxu1 %v6104_v19  ;;  %v6121_v19 = vld [vmem:[%s10659_s5 + $0x468] sm:$0xff] }
0x1bb6   : > { %6715 = vmatprep.subr.mxu1 %v6103_v33 }
0x1bb7   : > { %6716 = vmatpush3.msra.mxu1 %v6103_v33  ;;  %v6120_v33 = vld [vmem:[%s10659_s5 + $0x460] sm:$0xff] }
0x1c24   : > { %v3960_v55 = vpop.permute.xlu0 %3959 }
0x1c25   : > { %v3964_v20 = vsel %vm596_vm2, %v3952_v49, %v3960_v55 }
0x1c26   : > { %v3958_v53 = vpop.permute.xlu1 %3957 }
0x1c27   : > { %v3963_v16 = vsel %vm596_vm2, %v3951_v46, %v3958_v53  ;;  %v6102_v46 = vld [vmem:[%s10659_s5 + $0x3f0] sm:$0xff]  ;;  %v10821_v53 = vld [vmem:[#allocation3_spill] sm:$0xff] }
0x1c28   : > { %6700 = vmatprep.mubr.msk.f32.mxu0 %vm340_vm0, %v3963_v16  ;;  %6717 = vmatprep.subr.mxu1 %v6102_v46 }
0x1c29   : > { %6701 = vmatmul.mubr.msk.f32.vlgmr.msra.gmra.mxu0 %vm340_vm0, %v3964_v20  ;;  %6718 = vmatpush3.msra.mxu1 %v6102_v46  ;;  %v6137_v46 = vld [vmem:[%s10659_s5 + $0x4e8] sm:$0xff] }
0x1c2a   : > { %6719 = vmatprep.subr.mxu1 %v6101_v61 }
0x1c2b   : > { %6720 = vmatpush3.msra.mxu1 %v6101_v61  ;;  %v6136_v61 = vld [vmem:[%s10659_s5 + $0x4e0] sm:$0xff] }
0x1c2c   : > { %6721 = vmatprep.subr.mxu1 %v6100_v51 }
0x1c2d   : > { %6722 = vmatpush3.msra.mxu1 %v6100_v51  ;;  %v6135_v51 = vld [vmem:[%s10659_s5 + $0x4d8] sm:$0xff] }
0x1c2e   : > { %6723 = vmatprep.subr.mxu1 %v6099_v54 }
0x1c2f   : > { %6724 = vmatpush3.msra.mxu1 %v6099_v54  ;;  %v6111_v54 = vld [vmem:[%s10660_s6 + $0x71] ss:$0 sm:$0xff] }
0x1c30   : > { %6725 = vmatprep.subr.mxu1 %v6098_v63 }
0x1c31   : > { %6726 = vmatpush3.msra.mxu1 %v6098_v63 }
0x1ce9   : > { %v6702_v8 = vpop.f32.mrf.mxu0 }
0x1cea   : > { %v4052_v12 = vadd.f32 %v6702_v8, %v6091_v9 }
0x1ceb   : > { %v4046_v4 = vpop.f32.mrf.mxu0 }
0x1cec   : > { %v4056_v21 = vadd.f32 %v4052_v12, %v10819_v7  ;;  %v4047_v39 = vadd.f32 %v6091_v9, %v4046_v4  ;;  %v10822_v9 = vld [vmem:[#allocation2_spill] sm:$0xff] }
0x1cee   : > { %v4055_v14 = vadd.f32 %v4047_v39, %v10820_v15  ;;  %v4062_v5 = vsel %vm340_vm0, %v4056_v21, 0.0 }
0x1cef   : > { %4063 = vadd.xlane.f32.xlu0 %v4062_v5 }
0x1cf0   : > { %v4059_v37 = vsel %vm340_vm0, %v4055_v14, 0.0 }
0x1cf1   : > { %4060 = vadd.xlane.f32.xlu1 %v4059_v37 }
0x1d78   : > { %v4064_v24 = vpop.xlane.xlu0 %4063 }
0x1d79   : > { %v4066_v35 = vmul.f32 0.03125, %v4064_v24 }
0x1d7a   : > { %v4061_v57 = vpop.xlane.xlu1 %4060 }
0x1d7b   : > { %v4068_v23 = vsub.f32 %v4056_v21, %v4066_v35  ;;  %v4065_v50 = vmul.f32 0.03125, %v4061_v57 }
0x1d7d   : > { %v4067_v32 = vsub.f32 %v4055_v14, %v4065_v50  ;;  %v4070_v59 = vmul.f32 %v4068_v23, %v4068_v23 }
0x1d7f   : > { %v4074_v49 = vsel %vm340_vm0, %v4070_v59, 0.0  ;;  %v4069_v48 = vmul.f32 %v4067_v32, %v4067_v32 }
0x1d80   : > { %4075 = vadd.xlane.f32.xlu0 %v4074_v49  ;;  %v6129_v49 = vld [vmem:[%s10659_s5 + $0x4a8] sm:$0xff] }
0x1d81   : > { %v4071_v45 = vsel %vm340_vm0, %v4069_v48, 0.0  ;;  %v6128_v48 = vld [vmem:[%s10659_s5 + $0x4a0] sm:$0xff]  ;;  %4287 = vmatpush1.msra.mxu0 %v6129_v49 }
0x1d82   : > { %4072 = vadd.xlane.f32.xlu1 %v4071_v45  ;;  %4288 = vmatprep.subr.mxu0 %v10818_v29  ;;  %v6127_v45 = vld [vmem:[%s10659_s5 + $0x498] sm:$0xff] }
0x1d83   : > { %4289 = vmatpush1.msra.mxu0 %v6128_v48 }
0x1d84   : > { %4290 = vmatprep.subr.mxu0 %v10818_v29 }
0x1d85   : > { %4291 = vmatpush1.msra.mxu0 %v6127_v45 }
0x1d86   : > { %4292 = vmatprep.subr.mxu0 %v10818_v29 }
0x1d87   : > { %4293 = vmatpush1.msra.mxu0 %v6126_v41 }
0x1d88   : > { %4294 = vmatprep.subr.mxu0 %v10818_v29 }
0x1d89   : > { %4295 = vmatpush1.msra.mxu0 %v6125_v25 }
0x1d8a   : > { %4296 = vmatprep.subr.mxu0 %v10818_v29 }
0x1d8b   : > { %4297 = vmatpush1.msra.mxu0 %v6124_v17 }
0x1d8c   : > { %4298 = vmatprep.subr.mxu0 %v10818_v29 }
0x1d8d   : > { %4299 = vmatpush1.msra.mxu0 %v6123_v52 }
0x1d8e   : > { %4300 = vmatprep.subr.mxu0 %v10818_v29 }
0x1d8f   : > { %4301 = vmatpush1.msra.mxu0 %v6122_v26 }
0x1d90   : > { %4302 = vmatprep.subr.mxu0 %v10818_v29 }
0x1d91   : > { %4303 = vmatpush1.msra.mxu0 %v6121_v19 }
0x1d92   : > { %4304 = vmatprep.subr.mxu0 %v10818_v29 }
0x1d93   : > { %4305 = vmatpush1.msra.mxu0 %v6120_v33 }
0x1d94   : > { %4306 = vmatprep.subr.mxu0 %v10818_v29 }
0x1e09   : > { %v4076_v38 = vpop.xlane.xlu0 %4075 }
0x1e0a   : > { %v4078_v31 = vmul.f32 0.03125, %v4076_v38  ;;  %v6119_v38 = vld [vmem:[%s10659_s5 + $0x458] sm:$0xff] }
0x1e0b   : > { %v4073_v28 = vpop.xlane.xlu1 %4072  ;;  %4307 = vmatpush1.msra.mxu0 %v6119_v38 }
0x1e0c   : > { %v4080_v13 = vadd.f32 0.0001, %v4078_v31  ;;  %v4077_v34 = vmul.f32 0.03125, %v4073_v28  ;;  %v6118_v31 = vld [vmem:[%s10659_s5 + $0x450] sm:$0xff]  ;;  %4308 = vmatprep.subr.mxu0 %v10818_v29  ;;  %v6117_v28 = vld [vmem:[%s10659_s5 + $0x448] sm:$0xff] }
0x1e0d   : > { %4309 = vmatpush1.msra.mxu0 %v6118_v31 }
0x1e0e   : > { %7035 = vrsqrt.f32 %v4080_v13  ;;  %v4079_v44 = vadd.f32 0.0001, %v4077_v34  ;;  %4310 = vmatprep.subr.mxu0 %v10818_v29  ;;  %v6116_v13 = vld [vmem:[%s10659_s5 + $0x440] sm:$0xff]  ;;  %v6115_v34 = vld [vmem:[%s10659_s5 + $0x438] sm:$0xff] }
0x1e0f   : > { %4311 = vmatpush1.msra.mxu0 %v6117_v28 }
0x1e10   : > { %7037 = vrsqrt.f32 %v4079_v44  ;;  %4312 = vmatprep.subr.mxu0 %v10818_v29  ;;  %v6114_v44 = vld [vmem:[%s10659_s5 + $0x430] sm:$0xff] }
0x1e11   : > { %4313 = vmatpush1.msra.mxu0 %v6116_v13 }
0x1e12   : > { %4314 = vmatprep.subr.mxu0 %v10818_v29 }
0x1e13   : > { %4315 = vmatpush1.msra.mxu0 %v6115_v34 }
0x1e14   : > { %4316 = vmatprep.subr.mxu0 %v10818_v29 }
0x1e15   : > { %4317 = vmatpush1.msra.mxu0 %v6114_v44 }
0x1e16   : > { %4334 = vmatprep.subr.mxu0 %v10818_v29 }
0x1e17   : > { %4335 = vmatpush2.msra.mxu0 %v6137_v46 }
0x1e18   : > { %4336 = vmatprep.subr.mxu0 %v10818_v29 }
0x1e19   : > { %4337 = vmatpush2.msra.mxu0 %v6136_v61 }
0x1e1a   : > { %4338 = vmatprep.subr.mxu0 %v10818_v29 }
0x1e1b   : > { %v7036_v11 = vpop.eup %7035  ;;  %4339 = vmatpush2.msra.mxu0 %v6135_v51 }
0x1e1c   : > { %v4084_v18 = vmul.f32 %v7036_v11, %v4068_v23  ;;  %v6134_v11 = vld [vmem:[%s10659_s5 + $0x4d0] sm:$0xff]  ;;  %4340 = vmatprep.subr.mxu0 %v10818_v29 }
0x1e1d   : > { %v7038_v0 = vpop.eup %7037  ;;  %4341 = vmatpush2.msra.mxu0 %v6134_v11 }
0x1e1e   : > { %v4090_v58 = vmul.f32 %v6096_v1, %v4084_v18  ;;  %v4083_v30 = vmul.f32 %v7038_v0, %v4067_v32  ;;  %4342 = vmatprep.subr.mxu0 %v10818_v29  ;;  %v6132_v18 = vld [vmem:[%s10659_s5 + $0x4c0] sm:$0xff]  ;;  %v6131_v0 = vld [vmem:[%s10659_s5 + $0x4b8] sm:$0xff] }
0x1e20   : > { %v9661_v6 = vadd.f32 %v6097_v2, %v4090_v58  ;;  %v4089_v55 = vmul.f32 %v6096_v1, %v4083_v30  ;;  %v6133_v1 = vld [vmem:[%s10659_s5 + $0x4c8] sm:$0xff] }
0x1e21   : > { %4343 = vmatpush2.msra.mxu0 %v6133_v1  ;;  %v6152_v1 = vld [vmem:[%s10659_s5 + $0x558] sm:$0xff] }
0x1e22   : > { %v4098_v16 = vmul.f32 %v9661_v6, %v10821_v53  ;;  %v9665_v20 = vadd.f32 %v6097_v2, %v4089_v55  ;;  %4344 = vmatprep.subr.mxu0 %v10818_v29  ;;  %v6130_v2 = vld [vmem:[%s10659_s5 + $0x4b0] sm:$0xff] }
0x1e23   : > { %4345 = vmatpush2.msra.mxu0 %v6132_v18  ;;  %v6151_v18 = vld [vmem:[%s10659_s5 + $0x550] sm:$0xff] }
0x1e24   : > { %4114 = vrot.lane.b32.xlu0 %v4098_v16, %s7184_s16  ;;  %v4097_v8 = vmul.f32 %v9665_v20, %v10822_v9  ;;  %v4108_v4 = vrot.slane %v4098_v16, 1  ;;  %v4102_v21 = vrot.slane %v4098_v16, 7  ;;  %4346 = vmatprep.subr.mxu0 %v10818_v29 }
0x1e25   : > { %4347 = vmatpush2.msra.mxu0 %v6131_v0  ;;  %v6150_v0 = vld [vmem:[%s10659_s5 + $0x548] sm:$0xff] }
0x1e26   : > { %4112 = vrot.lane.b32.xlu1 %v4097_v8, %s7184_s16  ;;  %v4107_v12 = vrot.slane %v4097_v8, 1  ;;  %v4101_v7 = vrot.slane %v4097_v8, 7  ;;  %v4111_v14 = vsel %vm1491_vm8, %v4108_v4, 0.0  ;;  %4348 = vmatprep.subr.mxu0 %v10818_v29 }
0x1e27   : > { %4349 = vmatpush2.msra.mxu0 %v6130_v2  ;;  %v6149_v2 = vld [vmem:[%s10659_s5 + $0x540] sm:$0xff] }
0x1e28   : > { %v4109_v39 = vsel %vm1491_vm8, %v4107_v12, %v4108_v4  ;;  %v4103_v15 = vsel %vm1484_vm7, %v4101_v7, %v4102_v21  ;;  %v4106_v37 = vsel %vm1484_vm7, 0.0, %v4101_v7 }
0x1e2a   : > { %4119 = vrot.lane.b32.xlu1 %v4109_v39, %s7197_s17 }
0x1e2e   : > { %4121 = vrot.lane.b32.xlu1 %v4111_v14, %s7197_s17 }
0x1e96   : > { %v4115_v57 = vpop.permute.xlu0 %4114 }
0x1e97   : > { %v4126_v50 = vsel %vm340_vm0, %v4103_v15, %v4115_v57 }
0x1e98   : > { %v4113_v5 = vpop.permute.xlu1 %4112 }
0x1e99   : > { %v4125_v24 = vsel %vm340_vm0, %v4106_v37, %v4113_v5 }
0x1e9c   : > { %v4120_v35 = vpop.permute.xlu1 %4119 }
0x1e9d   : > { %v4127_v23 = vsel %vm462_vm1, %v4125_v24, %v4120_v35 }
0x1e9e   : > { %6727 = vmatprep.mubr.msk.f32.mxu1 %vm1531_vm9, %v4127_v23 }
0x1ea0   : > { %v4122_v32 = vpop.permute.xlu1 %4121 }
0x1ea1   : > { %v4128_v59 = vsel %vm462_vm1, %v4126_v50, %v4122_v32  ;;  %v6139_v32 = vld [vmem:[%s10660_s6 + $0x72] ss:$0 sm:$0xff] }
0x1ea2   : > { %6728 = vmatmul.mubr.msk.f32.vlgmr.msra.gmra.mxu1 %vm1531_vm9, %v4128_v59 }
0x1f62   : > { %v6729_v58 = vpop.f32.mrf.mxu1 }
0x1f63   : > { %v4224_v30 = vadd.f32 %v6729_v58, %v6111_v54  ;;  %v6147_v58 = vld [vmem:[%s10659_s5 + $0x530] sm:$0xff] }
0x1f64   : > { %v4218_v63 = vpop.f32.mrf.mxu1 }
0x1f65   : > { %v4228_v55 = vmax.f32 %v4224_v30, 0.0  ;;  %v4219_v16 = vadd.f32 %v6111_v54, %v4218_v63  ;;  %v6148_v54 = vld [vmem:[%s10659_s5 + $0x538] sm:$0xff]  ;;  %v6146_v30 = vld [vmem:[%s10659_s5 + $0x528] sm:$0xff] }
0x1f67   : > { %v4230_v8 = vmul.f32 %v4228_v55, %v10821_v53  ;;  %v4227_v12 = vmax.f32 %v4219_v16, 0.0 }
0x1f69   : > { %v4229_v4 = vmul.f32 %v4227_v12, %v10822_v9  ;;  %4246 = vrot.lane.b32.xlu1 %v4230_v8, %s7197_s17  ;;  %v4234_v7 = vrot.slane %v4230_v8, 7  ;;  %v4240_v21 = vrot.slane %v4230_v8, 1 }
0x1f6b   : > { %v4239_v39 = vrot.slane %v4229_v4, 1  ;;  %4244 = vrot.lane.b32.xlu0 %v4229_v4, %s7197_s17  ;;  %v4233_v15 = vrot.slane %v4229_v4, 7  ;;  %v4243_v23 = vsel %vm1491_vm8, %v4240_v21, 0.0 }
0x1f6d   : > { %v4241_v14 = vsel %vm1491_vm8, %v4239_v39, %v4240_v21  ;;  %v4235_v5 = vsel %vm1484_vm7, %v4233_v15, %v4234_v7  ;;  %v4238_v24 = vsel %vm1484_vm7, 0.0, %v4233_v15  ;;  %v6144_v21 = vld [vmem:[%s10660_s6 + $0x75] ss:$0 sm:$0xff]  ;;  %v6145_v15 = vld [vmem:[%s10660_s6 + $0x76] ss:$0 sm:$0xff] }
0x1f6e   : > { %6140 = vmatprep.mubr.msk.f32.mxu0 %vm462_vm1, %v4241_v14 }
0x1fdb   : > { %v4247_v57 = vpop.permute.xlu1 %4246 }
0x1fdc   : > { %v4251_v50 = vsel %vm462_vm1, %v4235_v5, %v4247_v57 }
0x1fdd   : > { %v4245_v37 = vpop.permute.xlu0 %4244 }
0x1fde   : > { %v4250_v35 = vsel %vm462_vm1, %v4238_v24, %v4245_v37 }
0x1fdf   : > { %4351 = vmatmul.mubr.f32.vlgmr.msra.gmra.mxu0 %v4250_v35 }
0x1fe0   : > { %6141 = vmatprep.mubr.msk.f32.mxu0 %vm462_vm1, %v4243_v23 }
0x1fe3   : > { %4356 = vmatmul.mubr.f32.gmra.mxu0 %v4251_v50 }
0x209f   : > { %v4352_v59 = vpop.f32.mrf.mxu0 }
0x20a0   : > { %v4353_v49 = vadd.f32 %v6139_v32, %v4352_v59 }
0x20a1   : > { %v4354_v48 = vpop.f32.mrf.mxu0 }
0x20a2   : > { %v4361_v45 = vmul.f32 %v4353_v49, %v10822_v9 }
0x20a3   : > { %v4357_v41 = vpop.f32.mrf.mxu0 }
0x20a4   : > { %v4358_v25 = vadd.f32 %v6139_v32, %v4357_v41  ;;  %v4363_v17 = vadd.f32 %v4361_v45, %v9665_v20 }
0x20a5   : > { %v4359_v52 = vpop.f32.mrf.mxu0 }
0x20a6   : > { %v4362_v26 = vmul.f32 %v4358_v25, %v10821_v53  ;;  %v4367_v19 = vsel %vm340_vm0, %v4363_v17, 0.0  ;;  %v6155_v25 = vld [vmem:[%s10660_s6 + $0x80] sm:$0xff]  ;;  %v6154_v52 = vld [vmem:[%s10660_s6 + $0x78] sm:$0xff] }
0x20a7   : > { %4368 = vadd.xlane.f32.xlu0 %v4367_v19 }
0x20a8   : > { %v4364_v33 = vadd.f32 %v4362_v26, %v9661_v6  ;;  %v6153_v6 = vld [vmem:[%s10659_s5 + $0x560] sm:$0xff] }
0x20a9   : > { %6730 = vmatprep.subr.mxu1 %v6153_v6 }
0x20aa   : > { %v4370_v38 = vsel %vm340_vm0, %v4364_v33, 0.0  ;;  %6731 = vmatpush3.msra.mxu1 %v6153_v6  ;;  %v10830_v6 = vmov 50  }
0x20ab   : > { %4371 = vadd.xlane.f32.xlu1 %v4370_v38  ;;  %6732 = vmatprep.subr.mxu1 %v6152_v1  ;;  %v10825_v38 = vmov 48  }
0x20ac   : > { %6733 = vmatpush3.msra.mxu1 %v6152_v1  ;;  %v10831_v1 = vmov 54  }
0x20ad   : > { %6734 = vmatprep.subr.mxu1 %v6151_v18 }
0x20ae   : > { %6735 = vmatpush3.msra.mxu1 %v6151_v18  ;;  %v10832_v18 = vmov 53  }
0x20af   : > { %6736 = vmatprep.subr.mxu1 %v6150_v0 }
0x20b0   : > { %6737 = vmatpush3.msra.mxu1 %v6150_v0  ;;  %v10833_v0 = vmov 56  }
0x20b1   : > { %6738 = vmatprep.subr.mxu1 %v6149_v2 }
0x20b2   : > { %6739 = vmatpush3.msra.mxu1 %v6149_v2 }
0x20b3   : > { %6740 = vmatprep.subr.mxu1 %v6148_v54 }
0x20b4   : > { %6741 = vmatpush3.msra.mxu1 %v6148_v54 }
0x20b5   : > { %6742 = vmatprep.subr.mxu1 %v6147_v58 }
0x20b6   : > { %6743 = vmatpush3.msra.mxu1 %v6147_v58 }
0x20b7   : > { %6744 = vmatprep.subr.mxu1 %v6146_v30 }
0x20b8   : > { %6745 = vmatpush3.msra.mxu1 %v6146_v30 }
0x2130   : > { %v4369_v31 = vpop.xlane.xlu0 %4368 }
0x2131   : > { %v4373_v28 = vmul.f32 0.03125, %v4369_v31  ;;  %v6157_v31 = vld [vmem:[%s10660_s6 + $0x90] sm:$0xff] }
0x2133   : > { %v4375_v13 = vsub.f32 %v4363_v17, %v4373_v28 }
0x2134   : > { %v4372_v34 = vpop.xlane.xlu1 %4371 }
0x2135   : > { %v4374_v44 = vmul.f32 0.03125, %v4372_v34  ;;  %v4377_v46 = vmul.f32 %v4375_v13, %v4375_v13 }
0x2137   : > { %v4376_v61 = vsub.f32 %v4364_v33, %v4374_v44  ;;  %v4379_v20 = vsel %vm340_vm0, %v4377_v46, 0.0  ;;  %v6156_v44 = vld [vmem:[%s10660_s6 + $0x88] sm:$0xff] }
0x2138   : > { %4380 = vadd.xlane.f32.xlu0 %v4379_v20  ;;  %v10827_v20 = vmov 51  }
0x2139   : > { %v4378_v51 = vmul.f32 %v4376_v61, %v4376_v61 }
0x213b   : > { %v4382_v11 = vsel %vm340_vm0, %v4378_v51, 0.0  ;;  %v10828_v51 = vmov 49  }
0x213c   : > { %4383 = vadd.xlane.f32.xlu0 %v4382_v11  ;;  %v10829_v11 = vmov 55  }
0x21c1   : > { %v4381_v63 = vpop.xlane.xlu0 %4380 }
0x21c2   : > { %v4385_v55 = vmul.f32 0.03125, %v4381_v63 }
0x21c4   : > { %v4387_v16 = vadd.f32 0.0001, %v4385_v55 }
0x21c5   : > { %v4384_v8 = vpop.xlane.xlu0 %4383 }
0x21c6   : > { %7039 = vrsqrt.f32 %v4387_v16  ;;  %v4386_v12 = vmul.f32 0.03125, %v4384_v8 }
0x21c8   : > { %v4388_v4 = vadd.f32 0.0001, %v4386_v12 }
0x21ca   : > { %7041 = vrsqrt.f32 %v4388_v4 }
0x21d3   : > { %v7040_v7 = vpop.eup %7039 }
0x21d4   : > { %v4391_v39 = vmul.f32 %v7040_v7, %v4375_v13 }
0x21d6   : > { %v4397_v14 = vmul.f32 %v6144_v21, %v4391_v39 }
0x21d7   : > { %v7042_v5 = vpop.eup %7041 }
0x21d8   : > { %v4403_v37 = vadd.f32 %v6145_v15, %v4397_v14  ;;  %v4392_v24 = vmul.f32 %v7042_v5, %v4376_v61  ;;  %v10826_v61 = vmov 52  }
0x21da   : > { %v9835_v35 = vmul.f32 %v4403_v37, %v10822_v9  ;;  %v4398_v57 = vmul.f32 %v6144_v21, %v4392_v24 }
0x21dc   : > { %10823 = vst [vmem:[#allocation5_spill] sm:$0xff] %v9835_v35  ;;  %4411 = vrot.lane.b32.xlu1 %v9835_v35, %s7184_s16  ;;  %v4407_v23 = vsel %vm340_vm0, %v9835_v35, 0.0  ;;  %v4404_v50 = vadd.f32 %v6145_v15, %v4398_v57 }
0x21dd   : > { %6746 = vmatprep.mubr.msk.f32.mxu1 %vm462_vm1, %v4407_v23 }
0x21de   : > { %v9843_v32 = vmul.f32 %v4404_v50, %v10821_v53 }
0x21e0   : > { %10824 = vst [vmem:[#allocation4_spill] sm:$0xff] %v9843_v32  ;;  %4413 = vrot.lane.b32.xlu0 %v9843_v32, %s7184_s16  ;;  %v4408_v59 = vsel %vm340_vm0, %v9843_v32, 0.0 }
0x21e1   : > { %6747 = vmatmul.mubr.msk.f32.vlgmr.msra.gmra.mxu1 %vm462_vm1, %v4408_v59 }
0x224e   : > { %v4412_v49 = vpop.permute.xlu1 %4411 }
0x224f   : > { %v4417_v48 = vsel %vm340_vm0, 0.0, %v4412_v49 }
0x2250   : > { %6749 = vmatprep.mubr.msk.f32.mxu1 %vm462_vm1, %v4417_v48 }
0x2252   : > { %v4414_v45 = vpop.permute.xlu0 %4413 }
0x2253   : > { %v4418_v41 = vsel %vm340_vm0, 0.0, %v4414_v45 }
0x2254   : > { %6750 = vmatmul.mubr.msk.f32.gmra.mxu1 %vm462_vm1, %v4418_v41 }
0x22a1   : > { %v6748_v17 = vpop.f32.mrf.mxu1 }
0x22a2   : > { %v9860_v26 = vadd.f32 %v6748_v17, %v6155_v25 }
0x22a3   : > { %v4511_v19 = vpop.f32.mrf.mxu1 }
0x22a4   : > { %v9862_v33 = vadd.f32 %v6154_v52, %v4511_v19  ;;  %4556 = vrot.lane.b32.xlu0 %v9860_v26, %s7187_s27 }
0x22a6   : > { %6760 = vmatprep.mubr.msk.f32.mxu1 %vm596_vm2, %v9862_v33 }
0x22a8   : > { %4668 = vperm.xlu0 %6943, %v9860_v26  }
0x22ac   : > { %6944 = vset.pattern.permute.xlu0 %v10825_v38 }
0x22ad   : > { %4532 = vperm.xlu0 %6944, %v9862_v33  }
0x2314   : > { %v6751_v28 = vpop.f32.mrf.mxu1 }
0x2315   : > { %v9874_v13 = vadd.f32 %v6751_v28, %v6157_v31 }
0x2316   : > { %v4521_v34 = vpop.f32.mrf.mxu1  ;;  %v4557_v58 = vpop.permute.xlu0 %4556 }
0x2317   : > { %4547 = vperm.xlu0 %6944, %v9874_v13   ;;  %4560 = vrot.lane.b32.xlu1 %v9874_v13, %s7187_s27  ;;  %v9882_v46 = vadd.f32 %v6156_v44, %v4521_v34  ;;  %v9993_v34 = vld [vmem:[%s10657_s3 + $0x8] sm:$0xff] }
0x231b   : > { %6950 = vset.pattern.permute.xlu0 %v10826_v61  ;;  %4558 = vrot.lane.b32.xlu1 %v9882_v46, %s7187_s27 }
0x231c   : > { %4740 = vperm.xlu0 %6950, %v9860_v26  }
0x231f   : > { %4554 = vrot.lane.b32.xlu1 %v9862_v33, %s7187_s27 }
0x2320   : > { %6951 = vset.pattern.permute.xlu0 %v10827_v20 }
0x2321   : > { %4712 = vperm.xlu0 %6951, %v9862_v33  }
0x2323   : > { %4537 = vperm.xlu1 %6941, %v9860_v26   ;;  %v4669_v37 = vpop.permute.xlu0 %4668 }
0x2325   : > { %4724 = vperm.xlu0 %6951, %v9874_v13  }
0x2327   : > { %6942 = vset.pattern.permute.xlu1 %v10828_v51 }
0x2328   : > { %4664 = vperm.xlu1 %6942, %v9862_v33   ;;  %v4533_v57 = vpop.permute.xlu0 %4532 }
0x2329   : > { %6957 = vset.pattern.permute.xlu0 %v10829_v11 }
0x232a   : > { %4812 = vperm.xlu0 %6957, %v9860_v26  }
0x232c   : > { %6945 = vset.pattern.permute.xlu1 %v10830_v6 }
0x232d   : > { %4688 = vperm.xlu1 %6945, %v9862_v33  }
0x232e   : > { %6958 = vset.pattern.permute.xlu0 %v10831_v1 }
0x232f   : > { %4784 = vperm.xlu0 %6958, %v9862_v33  }
0x2331   : > { %4692 = vperm.xlu1 %6945, %v9860_v26  }
0x2333   : > { %4796 = vperm.xlu0 %6958, %v9874_v13  }
0x2335   : > { %6946 = vset.pattern.permute.xlu1 %v10828_v51 }
0x2336   : > { %4676 = vperm.xlu1 %6946, %v9874_v13  }
0x2337   : > { %6962 = vset.pattern.permute.xlu0 %v10830_v6 }
0x2338   : > { %4696 = vperm.xlu0 %6962, %v9882_v46  }
0x233a   : > { %6947 = vset.pattern.permute.xlu1 %v10827_v20 }
0x233b   : > { %4716 = vperm.xlu1 %6947, %v9860_v26  }
0x233c   : > { %6965 = vset.pattern.permute.xlu0 %v10832_v18 }
0x233d   : > { %4768 = vperm.xlu0 %6965, %v9882_v46  }
0x233f   : > { %6948 = vset.pattern.permute.xlu1 %v10826_v61 }
0x2340   : > { %4736 = vperm.xlu1 %6948, %v9862_v33  }
0x2341   : > { %6966 = vset.pattern.permute.xlu0 %v10829_v11 }
0x2342   : > { %4820 = vperm.xlu0 %6966, %v9874_v13  }
0x2344   : > { %6949 = vset.pattern.permute.xlu1 %v10830_v6  ;;  %v10007_v6 = vld [vmem:[%s10657_s3] sm:$0xff] }
0x2345   : > { %4700 = vperm.xlu1 %6949, %v9874_v13  }
0x2346   : > { %6970 = vset.pattern.permute.xlu0 %v10833_v0 }
0x2349   : > { %6952 = vset.pattern.permute.xlu1 %v10832_v18 }
0x234a   : > { %4760 = vperm.xlu1 %6952, %v9862_v33  }
0x234e   : > { %4764 = vperm.xlu1 %6952, %v9860_v26  }
0x2352   : > { %6953 = vset.pattern.permute.xlu1 %v10826_v61 }
0x2353   : > { %4748 = vperm.xlu1 %6953, %v9874_v13  }
0x2357   : > { %6954 = vset.pattern.permute.xlu1 %v10831_v1 }
0x2358   : > { %4788 = vperm.xlu1 %6954, %v9860_v26  }
0x235c   : > { %6955 = vset.pattern.permute.xlu1 %v10829_v11 }
0x235d   : > { %4808 = vperm.xlu1 %6955, %v9862_v33  }
0x2361   : > { %6956 = vset.pattern.permute.xlu1 %v10832_v18 }
0x2362   : > { %4772 = vperm.xlu1 %6956, %v9874_v13  }
0x2366   : > { %6959 = vset.pattern.permute.xlu1 %v10833_v0 }
0x2367   : > { %4832 = vperm.xlu1 %6959, %v9862_v33  }
0x236b   : > { %4836 = vperm.xlu1 %6959, %v9860_v26  }
0x236f   : > { %6960 = vset.pattern.permute.xlu1 %v10825_v38 }
0x2370   : > { %4542 = vperm.xlu1 %6960, %v9882_v46  }
0x2374   : > { %6961 = vset.pattern.permute.xlu1 %v10828_v51  ;;  %v10001_v51 = vld [vmem:[%s10657_s3 + $0x28] sm:$0xff] }
0x2375   : > { %4672 = vperm.xlu1 %6961, %v9882_v46  }
0x2379   : > { %6963 = vset.pattern.permute.xlu1 %v10827_v20 }
0x237a   : > { %4720 = vperm.xlu1 %6963, %v9882_v46  }
0x237e   : > { %6964 = vset.pattern.permute.xlu1 %v10826_v61 }
0x237f   : > { %4744 = vperm.xlu1 %6964, %v9882_v46  }
0x2383   : > { %6967 = vset.pattern.permute.xlu1 %v10831_v1  ;;  %v4550_v1 = vmul.f32 %v10007_v6, %v4533_v57 }
0x2384   : > { %4792 = vperm.xlu1 %6967, %v9882_v46  }
0x2388   : > { %6968 = vset.pattern.permute.xlu1 %v10829_v11  ;;  %v4680_v11 = vmul.f32 %v10001_v51, %v4669_v37  ;;  %v10025_v37 = vld [vmem:[%s10657_s3 + $0x48] sm:$0xff] }
0x2389   : > { %v4561_v2 = vpop.permute.xlu1 %4560  ;;  %4816 = vperm.xlu1 %6968, %v9882_v46  }
0x238a   : > { %6752 = vmatprep.subr.msk.mxu1 %vm596_vm2, %v4561_v2 }
0x238b   : > { %6753 = vmatpush3.xpose.msk.msra.mxu1 %vm596_vm2, %v4561_v2  ;;  %v10013_v2 = vld [vmem:[%s10657_s3 + $0x18] sm:$0xff] }
0x238d   : > { %6969 = vset.pattern.permute.xlu1 %v10833_v0  ;;  %v4559_v54 = vpop.permute.xlu1 %4558 }
0x238e   : > { %4840 = vperm.xlu1 %6969, %v9882_v46   ;;  %6754 = vmatprep.subr.msk.mxu1 %vm596_vm2, %v4559_v54 }
0x238f   : > { %6755 = vmatpush3.xpose.msk.msra.mxu1 %vm596_vm2, %v4559_v54 }
0x2390   : > { %6756 = vmatprep.subr.msk.mxu1 %vm596_vm2, %v4557_v58 }
0x2391   : > { %v4555_v30 = vpop.permute.xlu1 %4554 }
0x2392   : > { %4844 = vperm.xlu1 %6969, %v9874_v13   ;;  %v4548_v50 = vpop.permute.xlu0 %4547 }
0x2393   : > { %6757 = vmatpush3.xpose.msk.msra.mxu1 %vm596_vm2, %v4557_v58  ;;  %v4553_v54 = vmul.f32 %v10013_v2, %v4548_v50  ;;  %v10031_v50 = vld [vmem:[%s10657_s3 + $0x40] sm:$0xff] }
0x2394   : > { %6758 = vmatprep.subr.msk.mxu1 %vm596_vm2, %v4555_v30 }
0x2397   : > { %6759 = vmatpush3.xpose.msk.msra.mxu1 %vm596_vm2, %v4555_v30  ;;  %v4741_v49 = vpop.permute.xlu0 %4740  ;;  %v10019_v30 = vld [vmem:[%s10657_s3 + $0x20] sm:$0xff] }
0x239a   : > { %6761 = vmatmul.mubr.msk.f32.vlgmr.msra.gmra.mxu1 %vm596_vm2, %v9860_v26 }
0x239b   : > { %6763 = vmatprep.mubr.msk.f32.mxu1 %vm596_vm2, %v9882_v46 }
0x239c   : > { %v4713_v45 = vpop.permute.xlu0 %4712 }
0x239e   : > { %6764 = vmatmul.mubr.msk.f32.gmra.mxu1 %vm596_vm2, %v9874_v13  ;;  %v4538_v63 = vpop.permute.xlu1 %4537 }
0x239f   : > { %v4551_v44 = vmul.f32 %v9993_v34, %v4538_v63 }
0x23a0   : > { %v4725_v25 = vpop.permute.xlu0 %4724 }
0x23a3   : > { %v4665_v55 = vpop.permute.xlu1 %4664 }
0x23a4   : > { %v4679_v63 = vmul.f32 %v10019_v30, %v4665_v55  ;;  %v10037_v55 = vld [vmem:[%s10657_s3 + $0x38] sm:$0xff] }
0x23a5   : > { %v9980_v52 = vpop.permute.xlu0 %4812 }
0x23a8   : > { %v4689_v16 = vpop.permute.xlu1 %4688 }
0x23a9   : > { %v4703_v9 = vmul.f32 %v10031_v50, %v4689_v16 }
0x23aa   : > { %v9984_v38 = vpop.permute.xlu0 %4784 }
0x23ac   : > { %v4693_v8 = vpop.permute.xlu1 %4692 }
0x23ad   : > { %v4704_v57 = vmul.f32 %v10025_v37, %v4693_v8  ;;  %v10043_v8 = vld [vmem:[%s10657_s3 + $0x68] sm:$0xff] }
0x23ae   : > { %v9988_v28 = vpop.permute.xlu0 %4796 }
0x23b1   : > { %v4677_v12 = vpop.permute.xlu1 %4676 }
0x23b2   : > { %v4682_v53 = vmul.f32 %v10037_v55, %v4677_v12  ;;  %v10055_v12 = vld [vmem:[%s10657_s3 + $0x88] sm:$0xff] }
0x23b3   : > { %v4697_v18 = vpop.permute.xlu0 %4696  ;;  %v4752_v29 = vmul.f32 %v10055_v12, %v4741_v49 }
0x23b6   : > { %v4717_v4 = vpop.permute.xlu1 %4716 }
0x23bb   : > { %v9962_v7 = vpop.permute.xlu1 %4736 }
0x23c0   : > { %v4701_v21 = vpop.permute.xlu1 %4700 }
0x23c5   : > { %v9964_v39 = vpop.permute.xlu1 %4760 }
0x23c9   : > { %v9966_v15 = vpop.permute.xlu1 %4764 }
0x23ce   : > { %v9968_v14 = vpop.permute.xlu1 %4748 }
0x23d3   : > { %v9970_v5 = vpop.permute.xlu1 %4788 }
0x23d8   : > { %v9972_v24 = vpop.permute.xlu1 %4808 }
0x23dd   : > { %v9974_v23 = vpop.permute.xlu1 %4772 }
0x23e2   : > { %v9976_v59 = vpop.permute.xlu1 %4832 }
0x23e6   : > { %v9978_v48 = vpop.permute.xlu1 %4836 }
0x23eb   : > { %v4543_v41 = vpop.permute.xlu1 %4542 }
0x23f0   : > { %v4673_v17 = vpop.permute.xlu1 %4672 }
0x23f5   : > { %v9982_v19 = vpop.permute.xlu1 %4720 }
0x23fa   : > { %v9986_v31 = vpop.permute.xlu1 %4744 }
0x23ff   : > { %v9996_v61 = vpop.permute.xlu1 %4792 }
0x245a   : > { %v6762_v20 = vpop.f32.mrf.mxu1 }
0x245b   : > { %v4650_v0 = vadd.f32 %v6762_v20, %v4551_v44 }
0x245c   : > { %v4644_v58 = vpop.f32.mrf.mxu1 }
0x245d   : > { %v4684_v44 = vadd.f32 %v4680_v11, %v4650_v0  ;;  %v4645_v20 = vadd.f32 %v4644_v58, %v4550_v1  ;;  %v4728_v11 = vmul.f32 %v10043_v8, %v4717_v4  ;;  %v10049_v0 = vld [vmem:[%s10657_s3 + $0x10] sm:$0xff]  ;;  %v10061_v4 = vld [vmem:[%s10657_s3 + $0x60] sm:$0xff] }
0x245e   : > { %v6765_v1 = vpop.f32.mrf.mxu1  ;;  %v4552_v16 = vmul.f32 %v10049_v0, %v4543_v41  ;;  %v4727_v22 = vmul.f32 %v10061_v4, %v4713_v45  ;;  %v10067_v41 = vld [vmem:[%s10657_s3 + $0x58] sm:$0xff] }
0x245f   : > { %v4708_v58 = vadd.f32 %v4704_v57, %v4684_v44  ;;  %v4683_v35 = vadd.f32 %v4679_v63, %v4645_v20  ;;  %v4660_v32 = vadd.f32 %v6765_v1, %v4553_v54  ;;  %v4706_v54 = vmul.f32 %v10067_v41, %v4701_v21  ;;  %v10073_v63 = vld [vmem:[%s10657_s3 + $0x30] sm:$0xff]  ;;  %v10076_v57 = vpop.permute.xlu1 %4816  ;;  %v4769_v20 = vpop.permute.xlu0 %4768 }
0x2460   : > { %v4681_v49 = vmul.f32 %v10073_v63, %v4673_v17  ;;  %v4654_v44 = vpop.f32.mrf.mxu1  ;;  %v4730_v21 = vmul.f32 %v10081_v36, %v4725_v25  ;;  %v4705_v17 = vmul.f32 %v10087_v47, %v4697_v18 }
0x2461   : > { %v4732_v1 = vadd.f32 %v4728_v11, %v4708_v58  ;;  %v4707_v45 = vadd.f32 %v4703_v9, %v4683_v35  ;;  %v4686_v56 = vadd.f32 %v4682_v53, %v4660_v32  ;;  %v4655_v10 = vadd.f32 %v4654_v44, %v4552_v16  ;;  %v10093_v9 = vld [vmem:[%s10657_s3 + $0x80] sm:$0xff]  ;;  %v10100_v35 = vld [vmem:[%s10657_s3 + $0xa8] sm:$0xff]  ;;  %v10114_v44 = vld [vmem:[%s10657_s3 + $0x98] sm:$0xff] }
0x2462   : > { %v4751_v53 = vmul.f32 %v10093_v9, %v9962_v7  ;;  %v4776_v32 = vmul.f32 %v10100_v35, %v9966_v15  ;;  %v10107_v58 = vld [vmem:[%s10657_s3 + $0xa0] sm:$0xff]  ;;  %v4754_v15 = vmul.f32 %v10114_v44, %v9968_v14 }
0x2463   : > { %v4756_v25 = vadd.f32 %v4752_v29, %v4732_v1  ;;  %v4731_v11 = vadd.f32 %v4727_v22, %v4707_v45  ;;  %v4710_v16 = vadd.f32 %v4706_v54, %v4686_v56  ;;  %v4685_v18 = vadd.f32 %v4681_v49, %v4655_v10  ;;  %v10121_v10 = vld [vmem:[%s10657_s3 + $0xc8] sm:$0xff]  ;;  %v10128_v22 = vld [vmem:[%s10657_s3 + $0x70] sm:$0xff]  ;;  %v10142_v45 = vld [vmem:[%s10657_s3 + $0xc0] sm:$0xff] }
0x2464   : > { %v4775_v7 = vmul.f32 %v10107_v58, %v9964_v39  ;;  %v4800_v56 = vmul.f32 %v10121_v10, %v9970_v5  ;;  %v4729_v29 = vmul.f32 %v10128_v22, %v9982_v19  ;;  %v10135_v1 = vld [vmem:[%s10657_s3 + $0xe8] sm:$0xff]  ;;  %v4799_v19 = vmul.f32 %v10142_v45, %v9984_v38 }
0x2465   : > { %v4780_v39 = vadd.f32 %v4776_v32, %v4756_v25  ;;  %v4755_v54 = vadd.f32 %v4751_v53, %v4731_v11  ;;  %v4734_v49 = vadd.f32 %v4730_v21, %v4710_v16  ;;  %v4709_v14 = vadd.f32 %v4705_v17, %v4685_v18  ;;  %v10149_v21 = vld [vmem:[%s10657_s3 + $0xb8] sm:$0xff]  ;;  %v4841_v32 = vpop.permute.xlu1 %4840  ;;  %v4821_v25 = vpop.permute.xlu0 %4820 }
0x2466   : > { %v4824_v5 = vmul.f32 %v10135_v1, %v9980_v52  ;;  %v4778_v17 = vmul.f32 %v10149_v21, %v9974_v23  ;;  %v10156_v52 = vld [vmem:[%s10657_s3 + $0x90] sm:$0xff]  ;;  %v4802_v23 = vmul.f32 %v10163_v27, %v9988_v28 }
0x2467   : > { %v4753_v53 = vmul.f32 %v10156_v52, %v9986_v31  ;;  %v4779_v11 = vadd.f32 %v4775_v7, %v4755_v54  ;;  %v4758_v38 = vadd.f32 %v4754_v15, %v4734_v49  ;;  %v4733_v16 = vadd.f32 %v4729_v29, %v4709_v14  ;;  %v10176_v7 = vld [vmem:[%s10657_s3 + $0xe0] sm:$0xff]  ;;  %v10190_v49 = vld [vmem:[%s10657_s3 + $0xf8] sm:$0xff] }
0x2468   : > { %v4804_v18 = vadd.f32 %v4800_v56, %v4780_v39  ;;  %v4777_v31 = vmul.f32 %v10170_v62, %v4769_v20  ;;  %v4823_v15 = vmul.f32 %v10176_v7, %v9972_v24  ;;  %v10183_v56 = vld [vmem:[%s10657_s3 + $0x108] sm:$0xff]  ;;  %v4826_v14 = vmul.f32 %v10190_v49, %v4821_v25  ;;  %v10196_v24 = vld [vmem:[%s10657_s3 + $0x100] sm:$0xff] }
0x2469   : > { %10834 = vst [vmem:[#allocation15_spill] sm:$0xff] %v10183_v56  ;;  %v4848_v28 = vmul.f32 %v10183_v56, %v9978_v48  ;;  %v4782_v29 = vadd.f32 %v4778_v17, %v4758_v38  ;;  %v4757_v39 = vadd.f32 %v4753_v53, %v4733_v16  ;;  %v4803_v20 = vadd.f32 %v4799_v19, %v4779_v11  ;;  %v10203_v48 = vld [vmem:[%s10657_s3 + $0xd0] sm:$0xff]  ;;  %v4845_v38 = vpop.permute.xlu1 %4844 }
0x246a   : > { %v4828_v54 = vadd.f32 %v4824_v5, %v4804_v18  ;;  %10835 = vst [vmem:[#allocation14_spill] sm:$0xff] %v10196_v24  ;;  %v4847_v43 = vmul.f32 %v10196_v24, %v9976_v59  ;;  %v4801_v5 = vmul.f32 %v10203_v48, %v9996_v61  ;;  %v10210_v11 = vld [vmem:[%s10657_s3 + $0xf0] sm:$0xff] }
0x246b   : > { %v4781_v19 = vadd.f32 %v4777_v31, %v4757_v39  ;;  %v4827_v53 = vadd.f32 %v4823_v15, %v4803_v20  ;;  %v4806_v25 = vadd.f32 %v4802_v23, %v4782_v29  ;;  %v4825_v59 = vmul.f32 %v10210_v11, %v10076_v57  ;;  %v10220_v23 = vld [vmem:[%s10657_s3 + $0x110] sm:$0xff]  ;;  %v10226_v57 = vld [vmem:[%s10657_s3 + $0x118] sm:$0xff] }
0x246c   : > { %v4852_v17 = vadd.f32 %v4848_v28, %v4828_v54  ;;  %v4849_v31 = vmul.f32 %v10220_v23, %v4841_v32  ;;  %v4850_v3 = vmul.f32 %v10226_v57, %v4845_v38 }
0x246d   : > { %v4851_v18 = vadd.f32 %v4847_v43, %v4827_v53  ;;  %v4805_v24 = vadd.f32 %v4801_v5, %v4781_v19  ;;  %v4830_v56 = vadd.f32 %v4826_v14, %v4806_v25 }
0x246e   : > { %v4856_v16 = vsel %vm326_vm3, %v4852_v17, -10000.0 }
0x246f   : > { %v4862_v61 = vsel %vm340_vm0, %v4856_v16, -inf  ;;  %v4855_v43 = vsel %vm325_vm4, %v4851_v18, -10000.0  ;;  %v4829_v15 = vadd.f32 %v4825_v59, %v4805_v24  ;;  %v4854_v39 = vadd.f32 %v4850_v3, %v4830_v56 }
0x2470   : > { %4863 = vmax.xlane.f32.xlu1 %v4862_v61  ;;  %v4859_v28 = vsel %vm340_vm0, %v4855_v43, -inf }
0x2471   : > { %4860 = vmax.xlane.f32.xlu0 %v4859_v28  ;;  %v4853_v29 = vadd.f32 %v4849_v31, %v4829_v15  ;;  %v4858_v20 = vsel %vm328_vm6, %v4854_v39, -10000.0 }
0x2472   : > { %v4868_v14 = vsel %vm340_vm0, %v4858_v20, -inf }
0x2473   : > { %v4857_v32 = vsel %vm327_vm5, %v4853_v29, -10000.0 }
0x2474   : > { %v4865_v54 = vsel %vm340_vm0, %v4857_v32, -inf }
0x2475   : > { %4866 = vmax.xlane.f32.xlu0 %v4865_v54 }
0x2479   : > { %4869 = vmax.xlane.f32.xlu0 %v4868_v14 }
0x2481   : > { %4935 = vrot.lane.b32.xlu1 %v9874_v13, %s7195_s28 }
0x24f9   : > { %v4864_v40 = vpop.xlane.xlu1 %4863 }
0x24fa   : > { %v4872_v24 = vsub.f32 %v4856_v16, %v4864_v40  ;;  %v4861_v5 = vpop.xlane.xlu0 %4860 }
0x24fb   : > { %v4871_v56 = vsub.f32 %v4855_v43, %v4861_v5 }
0x24fc   : > { %v4877_v19 = vmul.f32 1.442695, %v4872_v24 }
0x24fd   : > { %v4936_v17 = vpop.permute.xlu1 %4935  ;;  %v4875_v60 = vmul.f32 1.442695, %v4871_v56 }
0x24fe   : > { %7043 = vpow2.f32 %v4877_v19  ;;  %6766 = vmatprep.subr.mxu0 %v4936_v17  ;;  %v4867_v53 = vpop.xlane.xlu0 %4866 }
0x24ff   : > { %6767 = vmatpush3.msra.mxu0 %v4936_v17  ;;  %7045 = vpow2.f32 %v4875_v60  ;;  %v4873_v3 = vsub.f32 %v4857_v32, %v4867_v53 }
0x2501   : > { %v4879_v43 = vmul.f32 1.442695, %v4873_v3 }
0x2502   : > { %v4870_v42 = vpop.xlane.xlu0 %4869 }
0x2503   : > { %v4874_v25 = vsub.f32 %v4858_v20, %v4870_v42 }
0x2505   : > { %v4881_v59 = vmul.f32 1.442695, %v4874_v25 }
0x2507   : > { %7047 = vpow2.f32 %v4881_v59 }
0x2508   : > { %7049 = vpow2.f32 %v4879_v43 }
0x250b   : > { %v7044_v38 = vpop.eup %7043 }
0x250c   : > { %v4886_v18 = vsel %vm340_vm0, %v7044_v38, 0.0  ;;  %v7046_v13 = vpop.eup %7045 }
0x250d   : > { %4887 = vadd.xlane.f32.xlu0 %v4886_v18  ;;  %v4883_v16 = vsel %vm340_vm0, %v7046_v13, 0.0 }
0x250e   : > { %4884 = vadd.xlane.f32.xlu1 %v4883_v16 }
0x2514   : > { %v7048_v61 = vpop.eup %7047 }
0x2515   : > { %v4892_v31 = vsel %vm340_vm0, %v7048_v61, 0.0  ;;  %v7050_v15 = vpop.eup %7049 }
0x2516   : > { %4893 = vadd.xlane.f32.xlu0 %v4892_v31  ;;  %v4889_v28 = vsel %vm340_vm0, %v7050_v15, 0.0 }
0x251f   : > { %4931 = vrot.lane.b32.xlu1 %v9860_v26, %s7195_s28 }
0x252c   : > { %4933 = vrot.lane.b32.xlu0 %v9882_v46, %s7195_s28 }
0x2543   : > { %4890 = vadd.xlane.f32.xlu1 %v4889_v28 }
0x2554   : > { %4929 = vrot.lane.b32.xlu1 %v9862_v33, %s7195_s28 }
0x2596   : > { %v4888_v39 = vpop.xlane.xlu0 %4887 }
0x2597   : > { %v4885_v29 = vpop.xlane.xlu1 %4884 }
0x2598   : > { %7051 = vrcp.f32 %v4885_v29 }
0x259b   : > { %v4932_v32 = vpop.permute.xlu1 %4931 }
0x259f   : > { %v4894_v54 = vpop.xlane.xlu0 %4893 }
0x25a0   : > { %7053 = vrcp.f32 %v4894_v54 }
0x25a1   : > { %7055 = vrcp.f32 %v4888_v39 }
0x25a3   : > { %v4934_v20 = vpop.permute.xlu0 %4933 }
0x25a4   : > { %6768 = vmatprep.subr.mxu0 %v4934_v20 }
0x25a5   : > { %v7052_v26 = vpop.eup %7051  ;;  %6769 = vmatpush3.msra.mxu0 %v4934_v20 }
0x25a6   : > { %v10250_v46 = vmul.f32 %v7052_v26, %v7046_v13  ;;  %6770 = vmatprep.subr.mxu0 %v4932_v32 }
0x25a7   : > { %6771 = vmatpush3.msra.mxu0 %v4932_v32 }
0x25a8   : > { %6774 = vmatprep.mubr.msk.f32.mxu0 %vm340_vm0, %v10250_v46 }
0x25ad   : > { %v7054_v14 = vpop.eup %7053 }
0x25ae   : > { %v4902_v40 = vmul.f32 %v7054_v14, %v7048_v61  ;;  %v7056_v25 = vpop.eup %7055 }
0x25af   : > { %v10264_v59 = vmul.f32 %v7056_v25, %v7044_v38 }
0x25b0   : > { %v5041_v33 = vmul.f32 %v10037_v55, %v4902_v40  ;;  %v4908_v24 = vmul.f32 %v10013_v2, %v4902_v40  ;;  %v5069_v56 = vmul.f32 %v10067_v41, %v4902_v40  ;;  %v5097_v60 = vmul.f32 %v10081_v36, %v4902_v40 }
0x25b1   : > { %v5125_v42 = vmul.f32 %v10114_v44, %v4902_v40  ;;  %v5207_v25 = vmul.f32 %v10135_v1, %v10264_v59  ;;  %v10837_v1 = vld [vmem:[#allocation14_spill] sm:$0xff] }
0x25b2   : > { %v5051_v5 = vsel %vm340_vm0, %v5041_v33, 0.0  ;;  %v4918_v19 = vsel %vm340_vm0, %v4908_v24, 0.0  ;;  %v5079_v17 = vsel %vm340_vm0, %v5069_v56, 0.0  ;;  %v5107_v53 = vsel %vm340_vm0, %v5097_v60, 0.0 }
0x25b3   : > { %5052 = vadd.xlane.f32.xlu0 %v5051_v5  ;;  %4919 = vadd.xlane.f32.xlu1 %v4918_v19  ;;  %v5135_v2 = vsel %vm340_vm0, %v5125_v42, 0.0  ;;  %v5067_v24 = vmul.f32 %v10025_v37, %v10264_v59  ;;  %v5095_v19 = vmul.f32 %v10043_v8, %v10264_v59  ;;  %v5094_v37 = vmul.f32 %v10061_v4, %v10250_v46 }
0x25b4   : > { %v5122_v8 = vmul.f32 %v10093_v9, %v10250_v46 }
0x25b5   : > { %v5098_v60 = vsel %vm340_vm0, %v5094_v37, 0.0 }
0x25b6   : > { %v5126_v42 = vsel %vm340_vm0, %v5122_v8, 0.0 }
0x25b7   : > { %5080 = vadd.xlane.f32.xlu0 %v5079_v17  ;;  %v5123_v17 = vmul.f32 %v10055_v12, %v10264_v59  ;;  %v5150_v12 = vmul.f32 %v10107_v58, %v10250_v46  ;;  %v5213_v58 = vsel %vm340_vm0, %v5207_v25, 0.0 }
0x25bb   : > { %5108 = vadd.xlane.f32.xlu0 %v5107_v53  ;;  %v5151_v53 = vmul.f32 %v10100_v35, %v10264_v59  ;;  %v5178_v35 = vmul.f32 %v10142_v45, %v10250_v46 }
0x25bd   : > { %v5157_v4 = vsel %vm340_vm0, %v5151_v53, 0.0 }
0x25bf   : > { %5136 = vadd.xlane.f32.xlu0 %v5135_v2  ;;  %v5179_v2 = vmul.f32 %v10121_v10, %v10264_v59  ;;  %v5206_v10 = vmul.f32 %v10176_v7, %v10250_v46  ;;  %v6180_v7 = vld [vmem:[%s10659_s5 + $0x580] sm:$0xff] }
0x25c0   : > { %6780 = vmatprep.subr.mxu1 %v6180_v7 }
0x25c1   : > { %v5185_v9 = vsel %vm340_vm0, %v5179_v2, 0.0  ;;  %6781 = vmatpush3.msra.mxu1 %v6180_v7 }
0x25cc   : > { %v4891_v55 = vpop.xlane.xlu1 %4890 }
0x25cd   : > { %7057 = vrcp.f32 %v4891_v55  ;;  %v5154_v55 = vsel %vm340_vm0, %v5150_v12, 0.0 }
0x25d0   : > { %v4930_v41 = vpop.permute.xlu1 %4929 }
0x25d1   : > { %6772 = vmatprep.subr.mxu0 %v4930_v41 }
0x25d2   : > { %6773 = vmatpush3.msra.mxu0 %v4930_v41  ;;  %v5182_v41 = vsel %vm340_vm0, %v5178_v35, 0.0 }
0x25d3   : > { %6775 = vmatmul.mubr.msk.f32.vlgmr.msra.gmra.mxu0 %vm340_vm0, %v10264_v59 }
0x25da   : > { %v7058_v36 = vpop.eup %7057 }
0x25db   : > { %v4901_v18 = vmul.f32 %v7058_v36, %v7050_v15  ;;  %v10836_v36 = vld [vmem:[#allocation15_spill] sm:$0xff] }
0x25dd   : > { %6777 = vmatprep.mubr.msk.f32.mxu0 %vm340_vm0, %v4901_v18  ;;  %v5068_v44 = vmul.f32 %v10087_v47, %v4901_v18  ;;  %v4907_v13 = vmul.f32 %v10049_v0, %v4901_v18  ;;  %v5096_v61 = vmul.f32 %v10128_v22, %v4901_v18  ;;  %v5040_v31 = vmul.f32 %v10073_v63, %v4901_v18 }
0x25de   : > { %6778 = vmatmul.mubr.msk.f32.gmra.mxu0 %vm340_vm0, %v4902_v40  ;;  %v5124_v47 = vmul.f32 %v10156_v52, %v4901_v18  ;;  %v5153_v0 = vmul.f32 %v10149_v21, %v4902_v40  ;;  %v5152_v22 = vmul.f32 %v10170_v62, %v4901_v18  ;;  %v5181_v63 = vmul.f32 %v10163_v27, %v4902_v40 }
0x25df   : > { %v5076_v16 = vsel %vm340_vm0, %v5068_v44, 0.0  ;;  %v4915_v38 = vsel %vm340_vm0, %v4907_v13, 0.0  ;;  %v5104_v3 = vsel %vm340_vm0, %v5096_v61, 0.0  ;;  %v5048_v43 = vsel %vm340_vm0, %v5040_v31, 0.0 }
0x25e0   : > { %5077 = vadd.xlane.f32.xlu1 %v5076_v16  ;;  %4916 = vadd.xlane.f32.xlu0 %v4915_v38  ;;  %v5132_v15 = vsel %vm340_vm0, %v5124_v47, 0.0  ;;  %v5163_v28 = vsel %vm340_vm0, %v5153_v0, 0.0  ;;  %v5160_v29 = vsel %vm340_vm0, %v5152_v22, 0.0  ;;  %v5191_v39 = vsel %vm340_vm0, %v5181_v63, 0.0  ;;  %v6178_v38 = vld [vmem:[%s10659_s5 + $0x570] sm:$0xff] }
0x25e1   : > { %v5180_v52 = vmul.f32 %v10203_v48, %v4901_v18  ;;  %v5209_v21 = vmul.f32 %v10190_v49, %v4902_v40  ;;  %v5208_v62 = vmul.f32 %v10210_v11, %v4901_v18  ;;  %v5237_v27 = vmul.f32 %v10226_v57, %v4902_v40 }
0x25e2   : > { %v5236_v48 = vmul.f32 %v10220_v23, %v4901_v18  ;;  %v4906_v49 = vmul.f32 %v9993_v34, %v10264_v59  ;;  %v4905_v11 = vmul.f32 %v10007_v6, %v10250_v46  ;;  %v5039_v57 = vmul.f32 %v10001_v51, %v10264_v59 }
0x25e3   : > { %v5188_v54 = vsel %vm340_vm0, %v5180_v52, 0.0  ;;  %v5219_v20 = vsel %vm340_vm0, %v5209_v21, 0.0  ;;  %v5216_v26 = vsel %vm340_vm0, %v5208_v62, 0.0  ;;  %v5247_v32 = vsel %vm340_vm0, %v5237_v27, 0.0 }
0x25e4   : > { %5105 = vadd.xlane.f32.xlu1 %v5104_v3  ;;  %5049 = vadd.xlane.f32.xlu0 %v5048_v43  ;;  %v5244_v14 = vsel %vm340_vm0, %v5236_v48, 0.0  ;;  %v4912_v33 = vsel %vm340_vm0, %v4906_v49, 0.0  ;;  %v4909_v40 = vsel %vm340_vm0, %v4905_v11, 0.0  ;;  %v5045_v23 = vsel %vm340_vm0, %v5039_v57, 0.0  ;;  %v10838_v57 = vld [vmem:[#allocation6_spill] sm:$0xff] }
0x25e5   : > { %v5038_v34 = vmul.f32 %v10019_v30, %v10250_v46  ;;  %v5073_v6 = vsel %vm340_vm0, %v5067_v24, 0.0  ;;  %v5066_v51 = vmul.f32 %v10031_v50, %v10250_v46  ;;  %v5101_v30 = vsel %vm340_vm0, %v5095_v19, 0.0  ;;  %v10839_v24 = vld [vmem:[#allocation7_spill] sm:$0xff]  ;;  %v10840_v19 = vld [vmem:[#allocation8_spill] sm:$0xff] }
0x25e6   : > { %v5129_v50 = vsel %vm340_vm0, %v5123_v17, 0.0  ;;  %v5235_v18 = vmul.f32 %v10836_v36, %v10264_v59  ;;  %v5210_v44 = vsel %vm340_vm0, %v5206_v10, 0.0  ;;  %v5234_v13 = vmul.f32 %v10837_v1, %v10250_v46  ;;  %v6179_v59 = vld [vmem:[%s10659_s5 + $0x578] sm:$0xff]  ;;  %v10843_v36 = vld [vmem:[#allocation11_spill] sm:$0xff] }
0x25e7   : > { %v5042_v5 = vsel %vm340_vm0, %v5038_v34, 0.0  ;;  %v5070_v56 = vsel %vm340_vm0, %v5066_v51, 0.0  ;;  %6782 = vmatprep.subr.mxu1 %v6179_v59 }
0x25e8   : > { %5133 = vadd.xlane.f32.xlu1 %v5132_v15  ;;  %5164 = vadd.xlane.f32.xlu0 %v5163_v28  ;;  %v5241_v45 = vsel %vm340_vm0, %v5235_v18, 0.0  ;;  %v5238_v16 = vsel %vm340_vm0, %v5234_v13, 0.0 }
0x25e9   : > { %6783 = vmatpush3.msra.mxu1 %v6179_v59  ;;  %v10844_v59 = vld [vmem:[#allocation12_spill] sm:$0xff] }
0x25ea   : > { %6784 = vmatprep.subr.mxu1 %v6178_v38 }
0x25eb   : > { %6785 = vmatpush3.msra.mxu1 %v6178_v38 }
0x25ec   : > { %5161 = vadd.xlane.f32.xlu1 %v5160_v29  ;;  %5192 = vadd.xlane.f32.xlu0 %v5191_v39 }
0x25f0   : > { %5189 = vadd.xlane.f32.xlu1 %v5188_v54  ;;  %5220 = vadd.xlane.f32.xlu0 %v5219_v20 }
0x25f4   : > { %5217 = vadd.xlane.f32.xlu1 %v5216_v26  ;;  %5248 = vadd.xlane.f32.xlu0 %v5247_v32 }
0x25f8   : > { %5245 = vadd.xlane.f32.xlu1 %v5244_v14  ;;  %4913 = vadd.xlane.f32.xlu0 %v4912_v33  ;;  %v6170_v14 = vld [vmem:[%s10659_s5 + $0x6a8] sm:$0xff] }
0x25f9   : > { %v5169_v18 = vrot.slane %v6170_v14, %v10843_v36  ;;  %v5197_v38 = vrot.slane %v6170_v14, %v10844_v59 }
0x25fc   : > { %4910 = vadd.xlane.f32.xlu1 %v4909_v40  ;;  %5046 = vadd.xlane.f32.xlu0 %v5045_v23  ;;  %v4924_v40 = vrot.slane %v6170_v14, %v10838_v57  ;;  %v10845_v57 = vld [vmem:[#allocation13_spill] sm:$0xff] }
0x2600   : > { %5043 = vadd.xlane.f32.xlu1 %v5042_v5  ;;  %5074 = vadd.xlane.f32.xlu0 %v5073_v6  ;;  %v5057_v5 = vrot.slane %v6170_v14, %v10839_v24 }
0x2604   : > { %5071 = vadd.xlane.f32.xlu1 %v5070_v56  ;;  %5102 = vadd.xlane.f32.xlu0 %v5101_v30  ;;  %v5085_v56 = vrot.slane %v6170_v14, %v10840_v19 }
0x2608   : > { %5099 = vadd.xlane.f32.xlu1 %v5098_v60  ;;  %5130 = vadd.xlane.f32.xlu0 %v5129_v50  ;;  %v10841_v60 = vld [vmem:[#allocation9_spill] sm:$0xff] }
0x2609   : > { %v5113_v50 = vrot.slane %v6170_v14, %v10841_v60 }
0x260c   : > { %5127 = vadd.xlane.f32.xlu1 %v5126_v42  ;;  %5158 = vadd.xlane.f32.xlu0 %v5157_v4 }
0x2610   : > { %5155 = vadd.xlane.f32.xlu1 %v5154_v55  ;;  %5186 = vadd.xlane.f32.xlu0 %v5185_v9  ;;  %v10842_v9 = vld [vmem:[#allocation10_spill] sm:$0xff] }
0x2611   : > { %v5141_v35 = vrot.slane %v6170_v14, %v10842_v9 }
0x2614   : > { %5183 = vadd.xlane.f32.xlu1 %v5182_v41  ;;  %5214 = vadd.xlane.f32.xlu0 %v5213_v58 }
0x2618   : > { %5211 = vadd.xlane.f32.xlu1 %v5210_v44  ;;  %5242 = vadd.xlane.f32.xlu0 %v5241_v45 }
0x261c   : > { %5239 = vadd.xlane.f32.xlu1 %v5238_v16 }
0x263c   : > { %v10359_v46 = vpop.xlane.xlu0 %5052  ;;  %v4920_v3 = vpop.xlane.xlu1 %4919 }
0x2640   : > { %v10361_v61 = vpop.xlane.xlu0 %5080 }
0x2644   : > { %v10363_v31 = vpop.xlane.xlu0 %5108 }
0x2648   : > { %v10365_v43 = vpop.xlane.xlu0 %5136 }
0x2669   : > { %v10367_v47 = vpop.xlane.xlu0 %4916  ;;  %v10369_v0 = vpop.xlane.xlu1 %5077 }
0x266d   : > { %v10371_v15 = vpop.xlane.xlu0 %5049  ;;  %v10373_v28 = vpop.xlane.xlu1 %5105 }
0x2671   : > { %v10375_v22 = vpop.xlane.xlu0 %5164  ;;  %v10377_v63 = vpop.xlane.xlu1 %5133 }
0x2675   : > { %v10379_v29 = vpop.xlane.xlu0 %5192  ;;  %v10381_v39 = vpop.xlane.xlu1 %5161 }
0x2679   : > { %v10383_v52 = vpop.xlane.xlu0 %5220  ;;  %v10385_v21 = vpop.xlane.xlu1 %5189 }
0x267d   : > { %v10387_v54 = vpop.xlane.xlu0 %5248  ;;  %v10389_v20 = vpop.xlane.xlu1 %5217 }
0x2681   : > { %v4914_v62 = vpop.xlane.xlu0 %4913  ;;  %v10391_v27 = vpop.xlane.xlu1 %5245 }
0x2682   : > { %v4926_v6 = vmul.f32 %v4924_v40, %v4914_v62 }
0x2685   : > { %v5047_v26 = vpop.xlane.xlu0 %5046  ;;  %v4911_v32 = vpop.xlane.xlu1 %4910 }
0x2686   : > { %v5059_v30 = vmul.f32 %v5057_v5, %v5047_v26  ;;  %v4925_v37 = vmul.f32 %v4924_v40, %v4911_v32 }
0x2689   : > { %v5075_v48 = vpop.xlane.xlu0 %5074  ;;  %v5044_v49 = vpop.xlane.xlu1 %5043 }
0x268a   : > { %v5087_v42 = vmul.f32 %v5085_v56, %v5075_v48  ;;  %v5058_v4 = vmul.f32 %v5057_v5, %v5044_v49  ;;  %v4928_v49 = vmul.f32 %v4924_v40, %v4920_v3  ;;  %v5089_v3 = vmul.f32 %v5085_v56, %v10361_v61 }
0x268d   : > { %v5103_v33 = vpop.xlane.xlu0 %5102  ;;  %v5072_v11 = vpop.xlane.xlu1 %5071 }
0x268e   : > { %v5115_v25 = vmul.f32 %v5113_v50, %v5103_v33  ;;  %v5086_v41 = vmul.f32 %v5085_v56, %v5072_v11  ;;  %v5225_v33 = vrot.slane %v6170_v14, %v10845_v57  ;;  %v5060_v14 = vmul.f32 %v5057_v5, %v10371_v15 }
0x268f   : > { %v5145_v15 = vmul.f32 %v5141_v35, %v10365_v43 }
0x2691   : > { %v5131_v23 = vpop.xlane.xlu0 %5130  ;;  %v5100_v34 = vpop.xlane.xlu1 %5099 }
0x2692   : > { %v5143_v45 = vmul.f32 %v5141_v35, %v5131_v23  ;;  %v5114_v1 = vmul.f32 %v5113_v50, %v5100_v34  ;;  %v5061_v34 = vmul.f32 %v5057_v5, %v10359_v46  ;;  %v5117_v46 = vmul.f32 %v5113_v50, %v10363_v31 }
0x2693   : > { %v6776_v51 = vpop.f32.mrf.mxu0 }
0x2694   : > { %v5025_v17 = vadd.f32 %v6776_v51, %v4926_v6 }
0x2695   : > { %v5159_v8 = vpop.xlane.xlu0 %5158  ;;  %v5019_v53 = vpop.f32.mrf.mxu0 }
0x2696   : > { %v5063_v12 = vadd.f32 %v5059_v30, %v5025_v17  ;;  %v5020_v2 = vadd.f32 %v5019_v53, %v4925_v37  ;;  %v5128_v55 = vpop.xlane.xlu1 %5127  ;;  %v5171_v26 = vmul.f32 %v5169_v18, %v5159_v8  ;;  %v4927_v37 = vmul.f32 %v4924_v40, %v10367_v47 }
0x2697   : > { %v5142_v48 = vmul.f32 %v5141_v35, %v5128_v55 }
0x2698   : > { %v5091_v58 = vadd.f32 %v5087_v42, %v5063_v12  ;;  %v5062_v10 = vadd.f32 %v5058_v4, %v5020_v2  ;;  %v6176_v12 = vld [vmem:[%s10659_s5 + $0x6b0] ss:$0 sm:$0xff] }
0x2699   : > { %v5187_v44 = vpop.xlane.xlu0 %5186 }
0x269a   : > { %v5119_v13 = vadd.f32 %v5115_v25, %v5091_v58  ;;  %v5090_v16 = vadd.f32 %v5086_v41, %v5062_v10  ;;  %v5156_v7 = vpop.xlane.xlu1 %5155  ;;  %v5199_v51 = vmul.f32 %v5197_v38, %v5187_v44  ;;  %v5088_v58 = vmul.f32 %v5085_v56, %v10369_v0  ;;  %v6177_v44 = vld [vmem:[%s10659_s5 + $0x568] sm:$0xff] }
0x269b   : > { %v5170_v19 = vmul.f32 %v5169_v18, %v5156_v7  ;;  %6786 = vmatprep.subr.mxu1 %v6177_v44  ;;  %v5144_v0 = vmul.f32 %v5141_v35, %v10377_v63  ;;  %v5257_v63 = vmul.f32 %v6176_v12, %v10387_v54  ;;  %v5228_v35 = vmul.f32 %v5225_v33, %v10389_v20  ;;  %v6182_v54 = vld [vmem:[%s10660_s6 + $0x98] ss:$0 sm:$0xff] }
0x269c   : > { %v5147_v62 = vadd.f32 %v5143_v45, %v5119_v13  ;;  %v5118_v32 = vadd.f32 %v5114_v1, %v5090_v16  ;;  %v5116_v45 = vmul.f32 %v5113_v50, %v10373_v28  ;;  %v5173_v16 = vmul.f32 %v5169_v18, %v10375_v22  ;;  %6787 = vmatpush3.msra.mxu1 %v6177_v44 }
0x269d   : > { %v5215_v11 = vpop.xlane.xlu0 %5214  ;;  %v5200_v22 = vmul.f32 %v5197_v38, %v10385_v21 }
0x269e   : > { %v5175_v24 = vadd.f32 %v5171_v26, %v5147_v62  ;;  %v5146_v6 = vadd.f32 %v5142_v48, %v5118_v32  ;;  %v5184_v30 = vpop.xlane.xlu1 %5183  ;;  %v6779_v23 = vpop.f32.mrf.mxu0  ;;  %v5227_v8 = vmul.f32 %v5225_v33, %v5215_v11  ;;  %v10846_v62 = vmov 0.0  }
0x269f   : > { %v5035_v17 = vadd.f32 %v6779_v23, %v4928_v49  ;;  %v5198_v42 = vmul.f32 %v5197_v38, %v5184_v30  ;;  %5593 = vmatprep.subr.mxu1 %v10846_v62  ;;  %v5201_v26 = vmul.f32 %v5197_v38, %v10379_v29  ;;  %v5172_v32 = vmul.f32 %v5169_v18, %v10381_v39  ;;  %v10847_v30 = vld [vmem:[#allocation4_spill] sm:$0xff] }
0x26a0   : > { %v5203_v60 = vadd.f32 %v5199_v51, %v5175_v24  ;;  %v5174_v53 = vadd.f32 %v5170_v19, %v5146_v6  ;;  %v5029_v4 = vpop.f32.mrf.mxu0  ;;  %v5229_v49 = vmul.f32 %v5225_v33, %v10383_v52  ;;  %v5256_v51 = vmul.f32 %v6176_v12, %v10391_v27 }
0x26a1   : > { %v5065_v2 = vadd.f32 %v5061_v34, %v5035_v17  ;;  %v5030_v55 = vadd.f32 %v5029_v4, %v4927_v37  ;;  %v5243_v9 = vpop.xlane.xlu0 %5242  ;;  %v10848_v37 = vld [vmem:[#allocation5_spill] sm:$0xff] }
0x26a2   : > { %v5231_v47 = vadd.f32 %v5227_v8, %v5203_v60  ;;  %v5202_v40 = vadd.f32 %v5198_v42, %v5174_v53  ;;  %v5255_v25 = vmul.f32 %v6176_v12, %v5243_v9  ;;  %v5212_v41 = vpop.xlane.xlu1 %5211 }
0x26a3   : > { %v5093_v10 = vadd.f32 %v5089_v3, %v5065_v2  ;;  %v5064_v36 = vadd.f32 %v5060_v14, %v5030_v55  ;;  %v5226_v61 = vmul.f32 %v5225_v33, %v5212_v41  ;;  %v6197_v41 = vld [vmem:[%s10659_s5 + $0x5c8] sm:$0xff] }
0x26a4   : > { %v5259_v5 = vadd.f32 %v5255_v25, %v5231_v47  ;;  %v6200_v47 = vld [vmem:[%s10659_s5 + $0x5e0] sm:$0xff]  ;;  %v6198_v25 = vld [vmem:[%s10659_s5 + $0x5d0] sm:$0xff] }
0x26a5   : > { %v5121_v1 = vadd.f32 %v5117_v46, %v5093_v10  ;;  %v5092_v31 = vadd.f32 %v5088_v58, %v5064_v36  ;;  %v5230_v13 = vadd.f32 %v5226_v61, %v5202_v40  ;;  %v6199_v40 = vld [vmem:[%s10659_s5 + $0x5d8] sm:$0xff]  ;;  %6791 = vmatprep.subr.mxu0 %v6200_v47  ;;  %v6196_v58 = vld [vmem:[%s10659_s5 + $0x5c0] sm:$0xff]  ;;  %v6194_v36 = vld [vmem:[%s10659_s5 + $0x5b0] sm:$0xff] }
0x26a6   : > { %v5240_v7 = vpop.xlane.xlu1 %5239  ;;  %6792 = vmatpush3.msra.mxu0 %v6200_v47  ;;  %v6195_v10 = vld [vmem:[%s10659_s5 + $0x5b8] sm:$0xff]  ;;  %v6209_v47 = vld [vmem:[%s10659_s5 + $0x608] sm:$0xff] }
0x26a7   : > { %v5149_v56 = vadd.f32 %v5145_v15, %v5121_v1  ;;  %v5120_v59 = vadd.f32 %v5116_v45, %v5092_v31  ;;  %v5254_v43 = vmul.f32 %v6176_v12, %v5240_v7  ;;  %6793 = vmatprep.subr.mxu0 %v6199_v40  ;;  %v6193_v31 = vld [vmem:[%s10659_s5 + $0x5a8] sm:$0xff] }
0x26a8   : > { %6794 = vmatpush3.msra.mxu0 %v6199_v40  ;;  %v6208_v40 = vld [vmem:[%s10659_s5 + $0x600] sm:$0xff] }
0x26a9   : > { %v5177_v28 = vadd.f32 %v5173_v16, %v5149_v56  ;;  %v5148_v50 = vadd.f32 %v5144_v0, %v5120_v59  ;;  %v5258_v48 = vadd.f32 %v5254_v43, %v5230_v13  ;;  %6795 = vmatprep.subr.mxu0 %v6198_v25  ;;  %v6192_v13 = vld [vmem:[%s10659_s5 + $0x5a0] sm:$0xff]  ;;  %v6191_v16 = vld [vmem:[%s10659_s5 + $0x598] sm:$0xff] }
0x26aa   : > { %6796 = vmatpush3.msra.mxu0 %v6198_v25  ;;  %v6187_v0 = vld [vmem:[%s10660_s6 + $0x9b] ss:$0 sm:$0xff]  ;;  %v6188_v43 = vld [vmem:[%s10660_s6 + $0x9c] ss:$0 sm:$0xff] }
0x26ab   : > { %v5176_v57 = vadd.f32 %v5172_v32, %v5148_v50  ;;  %v5205_v11 = vadd.f32 %v5201_v26, %v5177_v28  ;;  %6797 = vmatprep.subr.mxu0 %v6197_v41  ;;  %v6190_v26 = vld [vmem:[%s10659_s5 + $0x590] sm:$0xff]  ;;  %v6189_v50 = vld [vmem:[%s10659_s5 + $0x588] sm:$0xff]  ;;  %v6207_v25 = vld [vmem:[%s10659_s5 + $0x5f8] sm:$0xff] }
0x26ac   : > { %6798 = vmatpush3.msra.mxu0 %v6197_v41  ;;  %v6206_v41 = vld [vmem:[%s10659_s5 + $0x5f0] sm:$0xff] }
0x26ad   : > { %v5233_v24 = vadd.f32 %v5229_v49, %v5205_v11  ;;  %v5204_v6 = vadd.f32 %v5200_v22, %v5176_v57  ;;  %6799 = vmatprep.subr.mxu0 %v6196_v58  ;;  %v6236_v22 = vld [vmem:[%s10659_s5 + $0x6d0] sm:$0xff]  ;;  %v10849_v57 = vld [vmem:[#allocation3_spill] sm:$0xff] }
0x26ae   : > { %6800 = vmatpush3.msra.mxu0 %v6196_v58  ;;  %v6205_v58 = vld [vmem:[%s10659_s5 + $0x5e8] sm:$0xff] }
0x26af   : > { %v5261_v29 = vadd.f32 %v5257_v63, %v5233_v24  ;;  %v5232_v19 = vadd.f32 %v5228_v35, %v5204_v6  ;;  %6801 = vmatprep.subr.mxu0 %v6195_v10  ;;  %v10850_v35 = vld [vmem:[#allocation2_spill] sm:$0xff] }
0x26b0   : > { %6802 = vmatpush3.msra.mxu0 %v6195_v10  ;;  %v6228_v10 = vld [vmem:[%s10659_s5 + $0x6a0] sm:$0xff] }
0x26b1   : > { %5266 = vrot.lane.b32.xlu0 %v5261_v29, %s7196_s21  ;;  %v5260_v39 = vadd.f32 %v5256_v51, %v5232_v19  ;;  %6803 = vmatprep.subr.mxu0 %v6194_v36 }
0x26b2   : > { %6804 = vmatpush3.msra.mxu0 %v6194_v36  ;;  %v6227_v36 = vld [vmem:[%s10659_s5 + $0x698] sm:$0xff] }
0x26b3   : > { %5264 = vrot.lane.b32.xlu1 %v5260_v39, %s7196_s21  ;;  %6805 = vmatprep.subr.mxu0 %v6193_v31 }
0x26b4   : > { %6806 = vmatpush3.msra.mxu0 %v6193_v31  ;;  %v6202_v31 = vld [vmem:[%s10660_s6 + $0x99] ss:$0 sm:$0xff] }
0x26b5   : > { %6807 = vmatprep.subr.mxu0 %v6192_v13 }
0x26b6   : > { %6808 = vmatpush3.msra.mxu0 %v6192_v13 }
0x26b7   : > { %6809 = vmatprep.subr.mxu0 %v6191_v16 }
0x26b8   : > { %6810 = vmatpush3.msra.mxu0 %v6191_v16 }
0x26b9   : > { %6811 = vmatprep.subr.mxu0 %v6190_v26 }
0x26ba   : > { %6812 = vmatpush3.msra.mxu0 %v6190_v26 }
0x26bb   : > { %6813 = vmatprep.subr.mxu0 %v6189_v50 }
0x26bc   : > { %6814 = vmatpush3.msra.mxu0 %v6189_v50 }
0x26bd   : > { %6818 = vmatprep.subr.mxu0 %v6236_v22 }
0x2723   : > { %v5267_v52 = vpop.permute.xlu0 %5266 }
0x2724   : > { %v5271_v38 = vsel %vm596_vm2, %v5259_v5, %v5267_v52 }
0x2725   : > { %v5265_v18 = vpop.permute.xlu1 %5264 }
0x2726   : > { %v5270_v21 = vsel %vm596_vm2, %v5258_v48, %v5265_v18 }
0x2727   : > { %6788 = vmatprep.mubr.msk.f32.mxu1 %vm340_vm0, %v5270_v21 }
0x2728   : > { %6789 = vmatmul.mubr.msk.f32.vlgmr.msra.gmra.mxu1 %vm340_vm0, %v5271_v38 }
0x27e8   : > { %v6790_v20 = vpop.f32.mrf.mxu1 }
0x27e9   : > { %v5359_v27 = vadd.f32 %v6790_v20, %v6182_v54 }
0x27ea   : > { %v5353_v33 = vpop.f32.mrf.mxu1 }
0x27eb   : > { %v5363_v23 = vadd.f32 %v5359_v27, %v10847_v30  ;;  %v5354_v34 = vadd.f32 %v6182_v54, %v5353_v33 }
0x27ed   : > { %v5362_v17 = vadd.f32 %v5354_v34, %v10848_v37  ;;  %v5369_v60 = vsel %vm340_vm0, %v5363_v23, 0.0  ;;  %v6235_v37 = vld [vmem:[%s10659_s5 + $0x6c8] sm:$0xff] }
0x27ee   : > { %5370 = vadd.xlane.f32.xlu0 %v5369_v60  ;;  %v6233_v60 = vld [vmem:[%s10659_s5 + $0x6b8] sm:$0xff] }
0x27ef   : > { %v5366_v53 = vsel %vm340_vm0, %v5362_v17, 0.0 }
0x27f0   : > { %5367 = vadd.xlane.f32.xlu1 %v5366_v53  ;;  %v6220_v53 = vld [vmem:[%s10659_s5 + $0x660] sm:$0xff] }
0x27f1   : > { %5594 = vmatpush1.msra.mxu1 %v6220_v53 }
0x27f2   : > { %5595 = vmatprep.subr.mxu1 %v10846_v62 }
0x2877   : > { %v5371_v8 = vpop.xlane.xlu0 %5370 }
0x2878   : > { %v5373_v42 = vmul.f32 0.03125, %v5371_v8  ;;  %v6219_v8 = vld [vmem:[%s10659_s5 + $0x658] sm:$0xff] }
0x2879   : > { %v5368_v4 = vpop.xlane.xlu1 %5367  ;;  %5596 = vmatpush1.msra.mxu1 %v6219_v8 }
0x287a   : > { %v5375_v3 = vsub.f32 %v5363_v23, %v5373_v42  ;;  %v5372_v14 = vmul.f32 0.03125, %v5368_v4  ;;  %v6218_v42 = vld [vmem:[%s10659_s5 + $0x650] sm:$0xff]  ;;  %5597 = vmatprep.subr.mxu1 %v10846_v62  ;;  %v6217_v4 = vld [vmem:[%s10659_s5 + $0x648] sm:$0xff] }
0x287b   : > { %5598 = vmatpush1.msra.mxu1 %v6218_v42 }
0x287c   : > { %v5374_v12 = vsub.f32 %v5362_v17, %v5372_v14  ;;  %v5377_v2 = vmul.f32 %v5375_v3, %v5375_v3  ;;  %v6234_v17 = vld [vmem:[%s10659_s5 + $0x6c0] sm:$0xff]  ;;  %5599 = vmatprep.subr.mxu1 %v10846_v62  ;;  %v6215_v14 = vld [vmem:[%s10659_s5 + $0x638] sm:$0xff] }
0x287d   : > { %5600 = vmatpush1.msra.mxu1 %v6217_v4 }
0x287e   : > { %v5381_v55 = vsel %vm340_vm0, %v5377_v2, 0.0  ;;  %v5376_v9 = vmul.f32 %v5374_v12, %v5374_v12  ;;  %5601 = vmatprep.subr.mxu1 %v10846_v62  ;;  %v6213_v2 = vld [vmem:[%s10659_s5 + $0x628] sm:$0xff] }
0x287f   : > { %5382 = vadd.xlane.f32.xlu0 %v5381_v55  ;;  %v6212_v55 = vld [vmem:[%s10659_s5 + $0x620] sm:$0xff] }
0x2880   : > { %v5378_v46 = vsel %vm340_vm0, %v5376_v9, 0.0  ;;  %v6211_v9 = vld [vmem:[%s10659_s5 + $0x618] sm:$0xff] }
0x2881   : > { %5379 = vadd.xlane.f32.xlu1 %v5378_v46  ;;  %v6210_v46 = vld [vmem:[%s10659_s5 + $0x610] sm:$0xff] }
0x2908   : > { %v5383_v61 = vpop.xlane.xlu0 %5382 }
0x2909   : > { %v5385_v15 = vmul.f32 0.03125, %v5383_v61  ;;  %v6226_v61 = vld [vmem:[%s10659_s5 + $0x690] sm:$0xff] }
0x290a   : > { %v5380_v5 = vpop.xlane.xlu1 %5379 }
0x290b   : > { %v5387_v44 = vadd.f32 0.0001, %v5385_v15  ;;  %v5384_v45 = vmul.f32 0.03125, %v5380_v5  ;;  %v6225_v15 = vld [vmem:[%s10659_s5 + $0x688] sm:$0xff]  ;;  %v6224_v5 = vld [vmem:[%s10659_s5 + $0x680] sm:$0xff] }
0x290d   : > { %7059 = vrsqrt.f32 %v5387_v44  ;;  %v5386_v1 = vadd.f32 0.0001, %v5384_v45  ;;  %v6223_v44 = vld [vmem:[%s10659_s5 + $0x678] sm:$0xff]  ;;  %v6222_v45 = vld [vmem:[%s10659_s5 + $0x670] sm:$0xff] }
0x290f   : > { %7061 = vrsqrt.f32 %v5386_v1  ;;  %v6221_v1 = vld [vmem:[%s10659_s5 + $0x668] sm:$0xff] }
0x291a   : > { %v7060_v7 = vpop.eup %7059 }
0x291b   : > { %v5391_v56 = vmul.f32 %v7060_v7, %v5375_v3  ;;  %v6216_v3 = vld [vmem:[%s10659_s5 + $0x640] sm:$0xff] }
0x291c   : > { %v7062_v59 = vpop.eup %7061  ;;  %5602 = vmatpush1.msra.mxu1 %v6216_v3 }
0x291d   : > { %v5397_v32 = vmul.f32 %v6187_v0, %v5391_v56  ;;  %v5390_v28 = vmul.f32 %v7062_v59, %v5374_v12  ;;  %5603 = vmatprep.subr.mxu1 %v10846_v62  ;;  %v6214_v12 = vld [vmem:[%s10659_s5 + $0x630] sm:$0xff] }
0x291e   : > { %5604 = vmatpush1.msra.mxu1 %v6215_v14 }
0x291f   : > { %v5403_v48 = vadd.f32 %v6188_v43, %v5397_v32  ;;  %v5396_v49 = vmul.f32 %v6187_v0, %v5390_v28  ;;  %5605 = vmatprep.subr.mxu1 %v10846_v62 }
0x2920   : > { %5606 = vmatpush1.msra.mxu1 %v6214_v12 }
0x2921   : > { %v5405_v11 = vmul.f32 %v5403_v48, %v10849_v57  ;;  %v5402_v63 = vadd.f32 %v6188_v43, %v5396_v49  ;;  %5607 = vmatprep.subr.mxu1 %v10846_v62 }
0x2922   : > { %5608 = vmatpush1.msra.mxu1 %v6213_v2 }
0x2923   : > { %5421 = vrot.lane.b32.xlu0 %v5405_v11, %s7184_s16  ;;  %v5404_v24 = vmul.f32 %v5402_v63, %v10850_v35  ;;  %v5415_v51 = vrot.slane %v5405_v11, 1  ;;  %v5409_v19 = vrot.slane %v5405_v11, 7  ;;  %5609 = vmatprep.subr.mxu1 %v10846_v62 }
0x2924   : > { %5610 = vmatpush1.msra.mxu1 %v6212_v55 }
0x2925   : > { %5419 = vrot.lane.b32.xlu1 %v5404_v24, %s7184_s16  ;;  %v5414_v6 = vrot.slane %v5404_v24, 1  ;;  %v5408_v29 = vrot.slane %v5404_v24, 7  ;;  %v5418_v18 = vsel %vm1491_vm8, %v5415_v51, 0.0  ;;  %5611 = vmatprep.subr.mxu1 %v10846_v62 }
0x2926   : > { %5612 = vmatpush1.msra.mxu1 %v6211_v9 }
0x2927   : > { %v5416_v39 = vsel %vm1491_vm8, %v5414_v6, %v5415_v51  ;;  %v5410_v52 = vsel %vm1484_vm7, %v5408_v29, %v5409_v19  ;;  %v5413_v38 = vsel %vm1484_vm7, 0.0, %v5408_v29  ;;  %5613 = vmatprep.subr.mxu1 %v10846_v62  ;;  %v6230_v19 = vld [vmem:[%s10660_s6 + $0x9a] ss:$0 sm:$0xff] }
0x2928   : > { %5614 = vmatpush1.msra.mxu1 %v6210_v46 }
0x2929   : > { %5426 = vrot.lane.b32.xlu1 %v5416_v39, %s7197_s17  ;;  %5615 = vmatprep.subr.mxu1 %v10846_v62 }
0x292a   : > { %5616 = vmatpush1.msra.mxu1 %v6209_v47 }
0x292b   : > { %5617 = vmatprep.subr.mxu1 %v10846_v62 }
0x292c   : > { %5618 = vmatpush1.msra.mxu1 %v6208_v40 }
0x292d   : > { %5428 = vrot.lane.b32.xlu1 %v5418_v18, %s7197_s17  ;;  %5619 = vmatprep.subr.mxu1 %v10846_v62 }
0x292e   : > { %5620 = vmatpush1.msra.mxu1 %v6207_v25 }
0x292f   : > { %5621 = vmatprep.subr.mxu1 %v10846_v62 }
0x2930   : > { %5622 = vmatpush1.msra.mxu1 %v6206_v41 }
0x2931   : > { %5623 = vmatprep.subr.mxu1 %v10846_v62 }
0x2932   : > { %5624 = vmatpush1.msra.mxu1 %v6205_v58 }
0x2933   : > { %5641 = vmatprep.subr.mxu1 %v10846_v62 }
0x2934   : > { %5642 = vmatpush2.msra.mxu1 %v6228_v10 }
0x2935   : > { %5643 = vmatprep.subr.mxu1 %v10846_v62 }
0x2936   : > { %5644 = vmatpush2.msra.mxu1 %v6227_v36 }
0x2937   : > { %5645 = vmatprep.subr.mxu1 %v10846_v62 }
0x2938   : > { %5646 = vmatpush2.msra.mxu1 %v6226_v61  ;;  %v6243_v61 = vld [vmem:[%s10660_s6 + $0x9d] ss:$0 sm:$0xff] }
0x2939   : > { %5647 = vmatprep.subr.mxu1 %v10846_v62 }
0x293a   : > { %5648 = vmatpush2.msra.mxu1 %v6225_v15 }
0x293b   : > { %5649 = vmatprep.subr.mxu1 %v10846_v62 }
0x293c   : > { %5650 = vmatpush2.msra.mxu1 %v6224_v5  ;;  %v6244_v5 = vld [vmem:[%s10660_s6 + $0x9e] ss:$0 sm:$0xff] }
0x293d   : > { %5651 = vmatprep.subr.mxu1 %v10846_v62 }
0x293e   : > { %5652 = vmatpush2.msra.mxu1 %v6223_v44 }
0x293f   : > { %5653 = vmatprep.subr.mxu1 %v10846_v62 }
0x2940   : > { %5654 = vmatpush2.msra.mxu1 %v6222_v45 }
0x2941   : > { %5655 = vmatprep.subr.mxu1 %v10846_v62 }
0x2942   : > { %5656 = vmatpush2.msra.mxu1 %v6221_v1 }
0x2995   : > { %v5422_v27 = vpop.permute.xlu0 %5421 }
0x2996   : > { %v5433_v30 = vsel %vm340_vm0, %v5410_v52, %v5422_v27 }
0x2997   : > { %v5420_v21 = vpop.permute.xlu1 %5419 }
0x2998   : > { %v5432_v54 = vsel %vm340_vm0, %v5413_v38, %v5420_v21  ;;  %v6238_v21 = vld [vmem:[%s10659_s5 + $0x6d8] ss:$0 sm:$0xff] }
0x299b   : > { %v5427_v20 = vpop.permute.xlu1 %5426 }
0x299c   : > { %v5434_v33 = vsel %vm462_vm1, %v5432_v54, %v5427_v20 }
0x299d   : > { %6815 = vmatprep.mubr.msk.f32.mxu0 %vm1531_vm9, %v5434_v33 }
0x299f   : > { %v5429_v23 = vpop.permute.xlu1 %5428 }
0x29a0   : > { %v5435_v34 = vsel %vm462_vm1, %v5433_v30, %v5429_v23 }
0x29a1   : > { %6816 = vmatmul.mubr.msk.f32.vlgmr.msra.gmra.mxu0 %vm1531_vm9, %v5435_v34 }
0x29a2   : > { %6819 = vmatpush3.msra.mxu0 %v6236_v22  ;;  %6826 = vmatprep.mubr.msk.f32.mxu0 %vm340_vm0, %v5402_v63 }
0x29a3   : > { %6820 = vmatprep.subr.mxu0 %v6235_v37 }
0x29a4   : > { %6821 = vmatpush3.msra.mxu0 %v6235_v37 }
0x29a5   : > { %6822 = vmatprep.subr.mxu0 %v6234_v17 }
0x29a6   : > { %6823 = vmatpush3.msra.mxu0 %v6234_v17 }
0x29a7   : > { %6824 = vmatprep.subr.mxu0 %v6233_v60 }
0x29a8   : > { %6825 = vmatpush3.msra.mxu0 %v6233_v60 }
0x29a9   : > { %6827 = vmatmul.mubr.msk.f32.vlgmr.msra.gmra.mxu0 %vm340_vm0, %v5403_v48 }
0x2a61   : > { %v6817_v13 = vpop.f32.mrf.mxu0 }
0x2a62   : > { %v5531_v16 = vadd.f32 %v6817_v13, %v6202_v31 }
0x2a63   : > { %v5525_v7 = vpop.f32.mrf.mxu0 }
0x2a64   : > { %v5535_v0 = vmax.f32 %v5531_v16, 0.0  ;;  %v5526_v56 = vadd.f32 %v6202_v31, %v5525_v7 }
0x2a66   : > { %v5537_v59 = vmul.f32 %v5535_v0, %v10849_v57  ;;  %v5534_v43 = vmax.f32 %v5526_v56, 0.0 }
0x2a68   : > { %v5536_v26 = vmul.f32 %v5534_v43, %v10850_v35  ;;  %5553 = vrot.lane.b32.xlu1 %v5537_v59, %s7197_s17  ;;  %v5541_v62 = vrot.slane %v5537_v59, 7  ;;  %v5547_v32 = vrot.slane %v5537_v59, 1 }
0x2a69   : > { %v6828_v29 = vpop.f32.mrf.mxu0 }
0x2a6a   : > { %v5546_v28 = vrot.slane %v5536_v26, 1  ;;  %5551 = vrot.lane.b32.xlu0 %v5536_v26, %s7197_s17  ;;  %v5540_v50 = vrot.slane %v5536_v26, 7  ;;  %v5550_v6 = vsel %vm1491_vm8, %v5547_v32, 0.0  ;;  %v5757_v34 = vadd.f32 %v6828_v29, %v6238_v21 }
0x2a6b   : > { %v5751_v39 = vpop.f32.mrf.mxu0 }
0x2a6c   : > { %v5548_v48 = vsel %vm1491_vm8, %v5546_v28, %v5547_v32  ;;  %v5542_v49 = vsel %vm1484_vm7, %v5540_v50, %v5541_v62  ;;  %v5545_v11 = vsel %vm1484_vm7, 0.0, %v5540_v50  ;;  %v5752_v54 = vadd.f32 %v6238_v21, %v5751_v39 }
0x2a6d   : > { %6231 = vmatprep.mubr.msk.f32.mxu1 %vm462_vm1, %v5548_v48 }
0x2ada   : > { %v5554_v24 = vpop.permute.xlu1 %5553 }
0x2adb   : > { %v5558_v51 = vsel %vm462_vm1, %v5542_v49, %v5554_v24 }
0x2adc   : > { %v5552_v22 = vpop.permute.xlu0 %5551 }
0x2add   : > { %v5557_v63 = vsel %vm462_vm1, %v5545_v11, %v5552_v22 }
0x2ade   : > { %5658 = vmatmul.mubr.f32.vlgmr.msra.gmra.mxu1 %v5557_v63 }
0x2adf   : > { %6232 = vmatprep.mubr.msk.f32.mxu1 %vm462_vm1, %v5550_v6 }
0x2ae2   : > { %5663 = vmatmul.mubr.f32.gmra.mxu1 %v5558_v51 }
0x2b9e   : > { %v5659_v52 = vpop.f32.mrf.mxu1 }
0x2b9f   : > { %v5660_v18 = vadd.f32 %v6230_v19, %v5659_v52 }
0x2ba0   : > { %v5661_v38 = vpop.f32.mrf.mxu1 }
0x2ba1   : > { %v5668_v20 = vmul.f32 %v5660_v18, %v10850_v35 }
0x2ba2   : > { %v5664_v27 = vpop.f32.mrf.mxu1 }
0x2ba3   : > { %v5665_v33 = vadd.f32 %v6230_v19, %v5664_v27  ;;  %v5760_v30 = vadd.f32 %v5752_v54, %v5668_v20 }
0x2ba4   : > { %v5666_v23 = vpop.f32.mrf.mxu1 }
0x2ba5   : > { %v5669_v37 = vmul.f32 %v5665_v33, %v10849_v57  ;;  %v5764_v17 = vsel %vm596_vm2, %v5760_v30, 0.0 }
0x2ba6   : > { %5765 = vadd.xlane.f32.xlu0 %v5764_v17 }
0x2ba7   : > { %v5761_v60 = vadd.f32 %v5757_v34, %v5669_v37 }
0x2ba9   : > { %v5767_v53 = vsel %vm596_vm2, %v5761_v60, 0.0 }
0x2baa   : > { %5768 = vadd.xlane.f32.xlu1 %v5767_v53 }
0x2c2f   : > { %v5766_v8 = vpop.xlane.xlu0 %5765 }
0x2c30   : > { %v5771_v42 = vmul.f32 0.0625, %v5766_v8 }
0x2c32   : > { %v5773_v4 = vsub.f32 %v5760_v30, %v5771_v42 }
0x2c33   : > { %v5769_v3 = vpop.xlane.xlu1 %5768 }
0x2c34   : > { %v5772_v14 = vmul.f32 0.0625, %v5769_v3  ;;  %v5775_v12 = vmul.f32 %v5773_v4, %v5773_v4 }
0x2c36   : > { %v5774_v2 = vsub.f32 %v5761_v60, %v5772_v14  ;;  %v5777_v55 = vsel %vm596_vm2, %v5775_v12, 0.0 }
0x2c37   : > { %5778 = vadd.xlane.f32.xlu0 %v5777_v55 }
0x2c38   : > { %v5776_v9 = vmul.f32 %v5774_v2, %v5774_v2 }
0x2c3a   : > { %v5780_v46 = vsel %vm596_vm2, %v5776_v9, 0.0 }
0x2c3b   : > { %5781 = vadd.xlane.f32.xlu0 %v5780_v46 }
0x2cc0   : > { %v5779_v47 = vpop.xlane.xlu0 %5778 }
0x2cc1   : > { %v5783_v40 = vmul.f32 0.0625, %v5779_v47 }
0x2cc3   : > { %v5785_v25 = vadd.f32 0.0001, %v5783_v40 }
0x2cc4   : > { %v5782_v41 = vpop.xlane.xlu0 %5781 }
0x2cc5   : > { %7063 = vrsqrt.f32 %v5785_v25  ;;  %v5784_v58 = vmul.f32 0.0625, %v5782_v41 }
0x2cc7   : > { %v5786_v10 = vadd.f32 0.0001, %v5784_v58 }
0x2cc9   : > { %7065 = vrsqrt.f32 %v5786_v10 }
0x2cd2   : > { %v7064_v36 = vpop.eup %7063 }
0x2cd3   : > { %v5789_v15 = vmul.f32 %v7064_v36, %v5773_v4 }
0x2cd5   : > { %v5795_v44 = vmul.f32 %v6243_v61, %v5789_v15 }
0x2cd6   : > { %v7066_v45 = vpop.eup %7065 }
0x2cd7   : > { %v5801_v1 = vadd.f32 %v6244_v5, %v5795_v44  ;;  %v5790_v31 = vmul.f32 %v7066_v45, %v5774_v2 }
0x2cd9   : > { %v5803_v13 = vmul.f32 %v5801_v1, %v10850_v35  ;;  %v5796_v16 = vmul.f32 %v6243_v61, %v5790_v31 }
0x2cdb   : > { %5805 = vst.msk [vmem:[%s318_s18] sm:$0xff] %vm596_vm2, %v5803_v13  ;;  %v5802_v7 = vadd.f32 %v6244_v5, %v5796_v16 }
0x2cdd   : > { %v5804_v0 = vmul.f32 %v5802_v7, %v10849_v57 }
0x2cdf   : > { %5806 = vst.msk [vmem:[%s318_s18 + $0x8] sm:$0xff] %vm596_vm2, %v5804_v0 }
0x2ce0 PF: > { %s17_s24 = sadd.s32 1, %s7181_s24  }
0x2ce1   : > { %p14_p4 = scmp.ge.s32.totalorder %s17_s24, 4  }
0x2ce3   :  { %16 = sbr.rel (!%p14_p4) target bundleno = 1 (0x1), region = 98 }

</bundles_post_ra>
